<compile_context>
chip_gen: v6e
topology: v6e:2x2x1
jax: 0.10.0
libtpu: 0.0.40
codegen_flags: <defaults>
</compile_context>

<pallas_src>
import jax
import jax.numpy as jnp
from jax.experimental import pallas as pl
from jax.experimental.pallas import tpu as pltpu

_LANE = 128
# (kernel_size, stride, out_channels) for the five conv layers.
_CONV_CFG = ((5, 2, 24), (5, 2, 36), (5, 2, 48), (3, 1, 64), (3, 1, 64))
_FC_SIZES = (64, 100, 50, 10)  # followed by act_dim


def _round_up(n, m):
    return ((n + m - 1) // m) * m


def _elu(x):
    # ELU(alpha=1); exp(min(x,0)) keeps the inactive branch finite for x>0.
    return jnp.where(x > 0.0, x, jnp.exp(jnp.minimum(x, 0.0)) - 1.0)


def _pad2(a, rows, cols):
    """Zero-pad a 2-D array up to (rows, cols)."""
    return jnp.pad(a, ((0, rows - a.shape[0]), (0, cols - a.shape[1])))


# ---------------------------------------------------------------------------
# Pallas kernels
# ---------------------------------------------------------------------------
def _gemm_bias_elu_kernel(x_ref, w_ref, b_ref, o_ref):
    """o = ELU(x @ w + b) for one M-tile; w/b stay resident across the grid."""
    y = jnp.dot(x_ref[...], w_ref[...], preferred_element_type=jnp.float32)
    o_ref[...] = _elu(y + b_ref[...])


def _tail_kernel(x_ref, w4_ref, b4_ref, w5_ref, b5_ref,
                 fw1_ref, fb1_ref, fw2_ref, fb2_ref,
                 fw3_ref, fb3_ref, fw4_ref, fb4_ref, o_ref):
    """Fused conv4 -> ELU -> conv5 -> ELU -> Linear-ELU x3 -> Linear -> tanh.

    x_ref holds, per batch row, the 9 conv4 im2col patches (conv4 output is
    3x3 spatial), each zero-padded to a lane-aligned 512-wide chunk.  conv5's
    output is 1x1 spatial, so it is a 9-way accumulation over those positions.
    All weights are zero-padded to lane-dense 128-wide tiles.
    """
    n_patch = w5_ref.shape[0]              # 9 conv4 output positions
    kout = w5_ref.shape[2]                 # 128 (padded channels)
    kk_pad = w4_ref.shape[0]               # 512 (padded per-patch conv4 features)
    w4 = w4_ref[...]
    b4 = b4_ref[...]
    acc = jnp.zeros((x_ref.shape[0], kout), jnp.float32)
    for p in range(n_patch):               # static unroll: 2 small dots each
        xp = x_ref[:, p * kk_pad:(p + 1) * kk_pad]
        h4 = _elu(jnp.dot(xp, w4, preferred_element_type=jnp.float32) + b4)
        acc = acc + jnp.dot(h4, w5_ref[p], preferred_element_type=jnp.float32)
    h = _elu(acc + b5_ref[...])
    h = _elu(jnp.dot(h, fw1_ref[...], preferred_element_type=jnp.float32) + fb1_ref[...])
    h = _elu(jnp.dot(h, fw2_ref[...], preferred_element_type=jnp.float32) + fb2_ref[...])
    h = _elu(jnp.dot(h, fw3_ref[...], preferred_element_type=jnp.float32) + fb3_ref[...])
    y = jnp.dot(h, fw4_ref[...], preferred_element_type=jnp.float32) + fb4_ref[...]
    o_ref[...] = jnp.tanh(y)


# ---------------------------------------------------------------------------
# Wrappers
# ---------------------------------------------------------------------------
def _im2col(x, k, s):
    """[B,H,W,C] -> [B,Ho,Wo,k*k*C] patches for a VALID stride-s convolution.

    # TODO(synk): patch extraction for conv1/conv2 is still wrapper-side XLA
    # strided slicing (pure layout plumbing, zero FLOPs); moving it in-kernel
    # via a manual slab DMA would cut the ~5x inflated cols HBM round-trip.
    """
    B, H, W, C = x.shape
    ho = (H - k) // s + 1
    wo = (W - k) // s + 1
    cols = []
    for i in range(k):
        for j in range(k):
            cols.append(
                jax.lax.slice(
                    x,
                    (0, i, j, 0),
                    (B, i + s * (ho - 1) + 1, j + s * (wo - 1) + 1, C),
                    (1, s, s, 1),
                )
            )
    return jnp.concatenate(cols, axis=-1)


def _conv_gemm_elu(cols, w, b, *, tile_m_max=512):
    """ELU(cols @ w + b) via a balanced, tiled Pallas GEMM.

    cols:[M,K], w:[K,Cout].  Output is written at its true width Cout (no lane
    padding) so the dominant HBM write traffic of conv1/conv2 isn't inflated.
    """
    M, K = cols.shape
    cout = w.shape[-1]

    n_tiles = -(-M // tile_m_max)                   # ceil
    tile_m = _round_up(-(-M // n_tiles), 8)         # balanced tile, 8-aligned
    m_pad = n_tiles * tile_m
    if m_pad != M:
        cols = jnp.pad(cols, ((0, m_pad - M), (0, 0)))

    cost = pl.CostEstimate(
        flops=2 * M * K * cout,
        transcendentals=M * cout,
        bytes_accessed=4 * (M * K + K * cout + M * cout),
    )
    out = pl.pallas_call(
        _gemm_bias_elu_kernel,
        out_shape=jax.ShapeDtypeStruct((m_pad, cout), jnp.float32),
        grid=(n_tiles,),
        in_specs=[
            pl.BlockSpec((tile_m, K), lambda i: (i, 0)),
            pl.BlockSpec((K, cout), lambda i: (0, 0)),
            pl.BlockSpec((1, cout), lambda i: (0, 0)),
        ],
        out_specs=pl.BlockSpec((tile_m, cout), lambda i: (i, 0)),
        compiler_params=pltpu.CompilerParams(dimension_semantics=("parallel",)),
        cost_estimate=cost,
    )(cols, w, b)
    return out if m_pad == M else out[:M]


def _fused_tail(cols4, params, act_dim, *, tile_b_max=128):
    """conv4 + conv5 + MLP head in a single pallas_call over batch tiles.

    cols4: [B, 9, 3*3*48] conv4 im2col patches (9 = conv4's 3x3 output grid).
    """
    B, n_patch, kk = cols4.shape
    kk_pad = _round_up(kk, _LANE)                    # 432 -> 512: lane-aligned chunks
    x = jnp.pad(cols4, ((0, 0), (0, 0), (0, kk_pad - kk)))
    x = x.reshape(B, n_patch * kk_pad)

    # conv4: [3,3,48,64] -> [432,64] -> zero-pad to [512,128].
    w4 = _pad2(params["cw3"].reshape(kk, 64), kk_pad, _LANE)
    b4 = _pad2(params["cb3"], 1, _LANE)
    # conv5: [3,3,64,64] -> [9,64,64] -> zero-pad to [9,128,128].
    w5 = jnp.pad(params["cw4"].reshape(n_patch, 64, 64),
                 ((0, 0), (0, _LANE - 64), (0, _LANE - 64)))
    b5 = _pad2(params["cb4"], 1, _LANE)
    # FC chain, all zero-padded to lane-dense [128,128]/[1,128] tiles.
    fws = [_pad2(params[f"fw{i}"], _LANE, _LANE) for i in range(1, 5)]
    fbs = [_pad2(params[f"fb{i}"], 1, _LANE) for i in range(1, 5)]

    n_tiles = -(-B // tile_b_max)
    tile_b = _round_up(-(-B // n_tiles), 8)
    b_pad = n_tiles * tile_b
    if b_pad != B:
        x = jnp.pad(x, ((0, b_pad - B), (0, 0)))

    full2 = lambda i: (0, 0)   # noqa: E731
    full3 = lambda i: (0, 0, 0)  # noqa: E731
    out = pl.pallas_call(
        _tail_kernel,
        out_shape=jax.ShapeDtypeStruct((b_pad, _LANE), jnp.float32),
        grid=(n_tiles,),
        in_specs=[
            pl.BlockSpec((tile_b, n_patch * kk_pad), lambda i: (i, 0)),
            pl.BlockSpec(w4.shape, full2), pl.BlockSpec(b4.shape, full2),
            pl.BlockSpec(w5.shape, full3), pl.BlockSpec(b5.shape, full2),
            pl.BlockSpec(fws[0].shape, full2), pl.BlockSpec(fbs[0].shape, full2),
            pl.BlockSpec(fws[1].shape, full2), pl.BlockSpec(fbs[1].shape, full2),
            pl.BlockSpec(fws[2].shape, full2), pl.BlockSpec(fbs[2].shape, full2),
            pl.BlockSpec(fws[3].shape, full2), pl.BlockSpec(fbs[3].shape, full2),
        ],
        out_specs=pl.BlockSpec((tile_b, _LANE), lambda i: (i, 0)),
        compiler_params=pltpu.CompilerParams(dimension_semantics=("parallel",)),
    )(x, w4, b4, w5, b5,
      fws[0], fbs[0], fws[1], fbs[1], fws[2], fbs[2], fws[3], fbs[3])
    return out[:B, :act_dim]


@jax.jit
def cnn_actor_forward(obs, params):
    """Pallas forward for CNNActor. obs: [B, H, W, C] float32 (NHWC)."""
    x = obs
    B = obs.shape[0]
    # conv1..conv3: wrapper-side im2col (layout plumbing) + tiled Pallas GEMM+ELU.
    for l, (k, s, cout) in enumerate(_CONV_CFG[:3]):
        cols = _im2col(x, k, s)                       # [B, Ho, Wo, k*k*Cin]
        _, ho, wo, kk = cols.shape
        w = params[f"cw{l}"].reshape(kk, cout)        # HWIO -> [k*k*Cin, Cout]
        y = _conv_gemm_elu(cols.reshape(B * ho * wo, kk), w, params[f"cb{l}"])
        x = y.reshape(B, ho, wo, cout)
    # Fused tail: conv4 + conv5 (1x1 spatial output) + 4-layer MLP head + tanh.
    cols4 = _im2col(x, 3, 1)                          # [B, 3, 3, 3*3*48]
    cols4 = cols4.reshape(B, 9, cols4.shape[-1])
    act_dim = params["fw4"].shape[-1]
    return _fused_tail(cols4, params, act_dim)


# ---------------------------------------------------------------------------
# Parameter init (mirrors nn.Conv2d / nn.Linear default U(-1/sqrt(fan_in), ..))
# and a pure-JAX reference for validation.
# ---------------------------------------------------------------------------
def init_params(key, obs_dim, act_dim):
    h, w, c = obs_dim
    params = {}
    cin = c
    for l, (k, s, cout) in enumerate(_CONV_CFG):
        key, kw_, kb_ = jax.random.split(key, 3)
        bound = (cin * k * k) ** -0.5
        params[f"cw{l}"] = jax.random.uniform(
            kw_, (k, k, cin, cout), jnp.float32, minval=-bound, maxval=bound)
        params[f"cb{l}"] = jax.random.uniform(
            kb_, (1, cout), jnp.float32, minval=-bound, maxval=bound)
        cin = cout
    sizes = list(_FC_SIZES) + [act_dim]
    for i in range(4):
        key, kw_, kb_ = jax.random.split(key, 3)
        bound = sizes[i] ** -0.5
        params[f"fw{i + 1}"] = jax.random.uniform(
            kw_, (sizes[i], sizes[i + 1]), jnp.float32, minval=-bound, maxval=bound)
        params[f"fb{i + 1}"] = jax.random.uniform(
            kb_, (1, sizes[i + 1]), jnp.float32, minval=-bound, maxval=bound)
    return params


def reference_forward(obs, params):
    """Pure-JAX reference with identical semantics (sanity check)."""
    x = obs
    for l, (k, s, cout) in enumerate(_CONV_CFG):
        x = jax.lax.conv_general_dilated(
            x, params[f"cw{l}"], window_strides=(s, s), padding="VALID",
            dimension_numbers=("NHWC", "HWIO", "NHWC"))
        x = jax.nn.elu(x + params[f"cb{l}"])
    x = x.reshape(x.shape[0], -1)
    for i in range(1, 4):
        x = jax.nn.elu(x @ params[f"fw{i}"] + params[f"fb{i}"])
    return jnp.tanh(x @ params["fw4"] + params["fb4"])


if __name__ == "__main__":
    # Smallest valid input for this architecture: 61x61 spatial (conv stack
    # ends at 1x1 so Flatten yields exactly 64 features), 3 channels.
    B, H, W, C = 2, 61, 61, 3
    ACT_DIM = 2

    key = jax.random.PRNGKey(0)
    key, k_obs = jax.random.split(key)
    obs = jax.random.normal(k_obs, (B, H, W, C), jnp.float32)
    params = init_params(key, (H, W, C), ACT_DIM)

    out = jax.block_until_ready(cnn_actor_forward(obs, params))
    ref = reference_forward(obs, params)

    assert out.shape == (B, ACT_DIM)
    assert jnp.allclose(out, ref, atol=1e-4, rtol=1e-4), "mismatch vs reference"

    print("KERNEL_OK")
</pallas_src>

<mosaic_0001>
module attributes {stable_mosaic.version = 11 : i64} {
  func.func @_gemm_bias_elu_kernel(%arg0: i32, %arg1: memref<424x75xf32, #tpu.memory_space<vmem>>, %arg2: memref<75x24xf32, #tpu.memory_space<vmem>>, %arg3: memref<1x24xf32, #tpu.memory_space<vmem>>, %arg4: memref<424x24xf32, #tpu.memory_space<vmem>>) attributes {dimension_semantics = [#tpu.dimension_semantics<parallel>], iteration_bounds = array<i64: 4>, scalar_prefetch = 0 : i64, scratch_operands = 0 : i64, tpu.core_type = #tpu.core_type<tc>, window_params = [{transform_indices = @transform_0, window_bounds = array<i64: 424, 75>}, {pipeline_mode = #tpu.pipeline_mode<synchronous>, transform_indices = @transform_1, window_bounds = array<i64: 75, 24>}, {pipeline_mode = #tpu.pipeline_mode<synchronous>, transform_indices = @transform_2, window_bounds = array<i64: 1, 24>}, {transform_indices = @transform_3, window_bounds = array<i64: 424, 24>}]} {
    %c0 = arith.constant 0 : index
    %c0_0 = arith.constant 0 : index
    %0 = vector.load %arg1[%c0, %c0_0] : memref<424x75xf32, #tpu.memory_space<vmem>>, vector<424x75xf32>
    %c0_1 = arith.constant 0 : index
    %c0_2 = arith.constant 0 : index
    %1 = vector.load %arg2[%c0_1, %c0_2] : memref<75x24xf32, #tpu.memory_space<vmem>>, vector<75x24xf32>
    %cst = arith.constant dense<0.000000e+00> : vector<424x24xf32>
    %2 = tpu.matmul %0, %1, %cst {dimension_numbers = #tpu.dot_dimension_numbers<[1], [0], [0], [1], [0, 0, 1, 1], [], []>} : vector<424x75xf32>, vector<75x24xf32>, vector<424x24xf32> -> vector<424x24xf32>
    %c0_3 = arith.constant 0 : index
    %c0_4 = arith.constant 0 : index
    %3 = vector.load %arg3[%c0_3, %c0_4] : memref<1x24xf32, #tpu.memory_space<vmem>>, vector<1x24xf32>
    %4 = vector.broadcast %3 : vector<1x24xf32> to vector<424x24xf32>
    %5 = arith.addf %2, %4 : vector<424x24xf32>
    %cst_5 = arith.constant 0.000000e+00 : f32
    %6 = vector.broadcast %cst_5 : f32 to vector<424x24xf32>
    %7 = arith.cmpf ogt, %5, %6 : vector<424x24xf32>
    %cst_6 = arith.constant 0.000000e+00 : f32
    %8 = vector.broadcast %cst_6 : f32 to vector<424x24xf32>
    %9 = arith.minimumf %5, %8 : vector<424x24xf32>
    %10 = math.exp %9 : vector<424x24xf32>
    %cst_7 = arith.constant 1.000000e+00 : f32
    %11 = vector.broadcast %cst_7 : f32 to vector<424x24xf32>
    %12 = arith.subf %10, %11 : vector<424x24xf32>
    %13 = arith.select %7, %5, %12 : vector<424x24xi1>, vector<424x24xf32>
    %c0_8 = arith.constant 0 : index
    %c0_9 = arith.constant 0 : index
    %14 = vector.load %arg4[%c0_8, %c0_9] : memref<424x24xf32, #tpu.memory_space<vmem>>, vector<424x24xf32>
    tpu.vector_store %arg4[%c0_8, %c0_9], %13 {strides = array<i32>} : memref<424x24xf32, #tpu.memory_space<vmem>>, vector<424x24xf32>,
    return
  }
  func.func @transform_0(%arg0: i32) -> (i32, i32) {
    %c0_i32 = arith.constant 0 : i32
    %c0_i32_0 = arith.constant 0 : i32
    return %arg0, %c0_i32 : i32, i32
  }
  func.func @transform_1(%arg0: i32) -> (i32, i32) {
    %c0_i32 = arith.constant 0 : i32
    %c0_i32_0 = arith.constant 0 : i32
    %c0_i32_1 = arith.constant 0 : i32
    return %c0_i32, %c0_i32_0 : i32, i32
  }
  func.func @transform_2(%arg0: i32) -> (i32, i32) {
    %c0_i32 = arith.constant 0 : i32
    %c0_i32_0 = arith.constant 0 : i32
    %c0_i32_1 = arith.constant 0 : i32
    return %c0_i32, %c0_i32_0 : i32, i32
  }
  func.func @transform_3(%arg0: i32) -> (i32, i32) {
    %c0_i32 = arith.constant 0 : i32
    %c0_i32_0 = arith.constant 0 : i32
    return %arg0, %c0_i32 : i32, i32
  }
}

module attributes {stable_mosaic.version = 11 : i64} {
  func.func @_gemm_bias_elu_kernel(%arg0: i32, %arg1: memref<344x600xf32, #tpu.memory_space<vmem>>, %arg2: memref<600x36xf32, #tpu.memory_space<vmem>>, %arg3: memref<1x36xf32, #tpu.memory_space<vmem>>, %arg4: memref<344x36xf32, #tpu.memory_space<vmem>>) attributes {dimension_semantics = [#tpu.dimension_semantics<parallel>], iteration_bounds = array<i64: 1>, scalar_prefetch = 0 : i64, scratch_operands = 0 : i64, tpu.core_type = #tpu.core_type<tc>, window_params = [{transform_indices = @transform_0, window_bounds = array<i64: 344, 600>}, {pipeline_mode = #tpu.pipeline_mode<synchronous>, transform_indices = @transform_1, window_bounds = array<i64: 600, 36>}, {pipeline_mode = #tpu.pipeline_mode<synchronous>, transform_indices = @transform_2, window_bounds = array<i64: 1, 36>}, {transform_indices = @transform_3, window_bounds = array<i64: 344, 36>}]} {
    %c0 = arith.constant 0 : index
    %c0_0 = arith.constant 0 : index
    %0 = vector.load %arg1[%c0, %c0_0] : memref<344x600xf32, #tpu.memory_space<vmem>>, vector<344x600xf32>
    %c0_1 = arith.constant 0 : index
    %c0_2 = arith.constant 0 : index
    %1 = vector.load %arg2[%c0_1, %c0_2] : memref<600x36xf32, #tpu.memory_space<vmem>>, vector<600x36xf32>
    %cst = arith.constant dense<0.000000e+00> : vector<344x36xf32>
    %2 = tpu.matmul %0, %1, %cst {dimension_numbers = #tpu.dot_dimension_numbers<[1], [0], [0], [1], [0, 0, 1, 1], [], []>} : vector<344x600xf32>, vector<600x36xf32>, vector<344x36xf32> -> vector<344x36xf32>
    %c0_3 = arith.constant 0 : index
    %c0_4 = arith.constant 0 : index
    %3 = vector.load %arg3[%c0_3, %c0_4] : memref<1x36xf32, #tpu.memory_space<vmem>>, vector<1x36xf32>
    %4 = vector.broadcast %3 : vector<1x36xf32> to vector<344x36xf32>
    %5 = arith.addf %2, %4 : vector<344x36xf32>
    %cst_5 = arith.constant 0.000000e+00 : f32
    %6 = vector.broadcast %cst_5 : f32 to vector<344x36xf32>
    %7 = arith.cmpf ogt, %5, %6 : vector<344x36xf32>
    %cst_6 = arith.constant 0.000000e+00 : f32
    %8 = vector.broadcast %cst_6 : f32 to vector<344x36xf32>
    %9 = arith.minimumf %5, %8 : vector<344x36xf32>
    %10 = math.exp %9 : vector<344x36xf32>
    %cst_7 = arith.constant 1.000000e+00 : f32
    %11 = vector.broadcast %cst_7 : f32 to vector<344x36xf32>
    %12 = arith.subf %10, %11 : vector<344x36xf32>
    %13 = arith.select %7, %5, %12 : vector<344x36xi1>, vector<344x36xf32>
    %c0_8 = arith.constant 0 : index
    %c0_9 = arith.constant 0 : index
    %14 = vector.load %arg4[%c0_8, %c0_9] : memref<344x36xf32, #tpu.memory_space<vmem>>, vector<344x36xf32>
    tpu.vector_store %arg4[%c0_8, %c0_9], %13 {strides = array<i32>} : memref<344x36xf32, #tpu.memory_space<vmem>>, vector<344x36xf32>,
    return
  }
  func.func @transform_0(%arg0: i32) -> (i32, i32) {
    %c0_i32 = arith.constant 0 : i32
    %c0_i32_0 = arith.constant 0 : i32
    return %arg0, %c0_i32 : i32, i32
  }
  func.func @transform_1(%arg0: i32) -> (i32, i32) {
    %c0_i32 = arith.constant 0 : i32
    %c0_i32_0 = arith.constant 0 : i32
    %c0_i32_1 = arith.constant 0 : i32
    return %c0_i32, %c0_i32_0 : i32, i32
  }
  func.func @transform_2(%arg0: i32) -> (i32, i32) {
    %c0_i32 = arith.constant 0 : i32
    %c0_i32_0 = arith.constant 0 : i32
    %c0_i32_1 = arith.constant 0 : i32
    return %c0_i32, %c0_i32_0 : i32, i32
  }
  func.func @transform_3(%arg0: i32) -> (i32, i32) {
    %c0_i32 = arith.constant 0 : i32
    %c0_i32_0 = arith.constant 0 : i32
    return %arg0, %c0_i32 : i32, i32
  }
}

module attributes {stable_mosaic.version = 11 : i64} {
  func.func @_gemm_bias_elu_kernel(%arg0: i32, %arg1: memref<56x900xf32, #tpu.memory_space<vmem>>, %arg2: memref<900x48xf32, #tpu.memory_space<vmem>>, %arg3: memref<1x48xf32, #tpu.memory_space<vmem>>, %arg4: memref<56x48xf32, #tpu.memory_space<vmem>>) attributes {dimension_semantics = [#tpu.dimension_semantics<parallel>], iteration_bounds = array<i64: 1>, scalar_prefetch = 0 : i64, scratch_operands = 0 : i64, tpu.core_type = #tpu.core_type<tc>, window_params = [{transform_indices = @transform_0, window_bounds = array<i64: 56, 900>}, {pipeline_mode = #tpu.pipeline_mode<synchronous>, transform_indices = @transform_1, window_bounds = array<i64: 900, 48>}, {pipeline_mode = #tpu.pipeline_mode<synchronous>, transform_indices = @transform_2, window_bounds = array<i64: 1, 48>}, {transform_indices = @transform_3, window_bounds = array<i64: 56, 48>}]} {
    %c0 = arith.constant 0 : index
    %c0_0 = arith.constant 0 : index
    %0 = vector.load %arg1[%c0, %c0_0] : memref<56x900xf32, #tpu.memory_space<vmem>>, vector<56x900xf32>
    %c0_1 = arith.constant 0 : index
    %c0_2 = arith.constant 0 : index
    %1 = vector.load %arg2[%c0_1, %c0_2] : memref<900x48xf32, #tpu.memory_space<vmem>>, vector<900x48xf32>
    %cst = arith.constant dense<0.000000e+00> : vector<56x48xf32>
    %2 = tpu.matmul %0, %1, %cst {dimension_numbers = #tpu.dot_dimension_numbers<[1], [0], [0], [1], [0, 0, 1, 1], [], []>} : vector<56x900xf32>, vector<900x48xf32>, vector<56x48xf32> -> vector<56x48xf32>
    %c0_3 = arith.constant 0 : index
    %c0_4 = arith.constant 0 : index
    %3 = vector.load %arg3[%c0_3, %c0_4] : memref<1x48xf32, #tpu.memory_space<vmem>>, vector<1x48xf32>
    %4 = vector.broadcast %3 : vector<1x48xf32> to vector<56x48xf32>
    %5 = arith.addf %2, %4 : vector<56x48xf32>
    %cst_5 = arith.constant 0.000000e+00 : f32
    %6 = vector.broadcast %cst_5 : f32 to vector<56x48xf32>
    %7 = arith.cmpf ogt, %5, %6 : vector<56x48xf32>
    %cst_6 = arith.constant 0.000000e+00 : f32
    %8 = vector.broadcast %cst_6 : f32 to vector<56x48xf32>
    %9 = arith.minimumf %5, %8 : vector<56x48xf32>
    %10 = math.exp %9 : vector<56x48xf32>
    %cst_7 = arith.constant 1.000000e+00 : f32
    %11 = vector.broadcast %cst_7 : f32 to vector<56x48xf32>
    %12 = arith.subf %10, %11 : vector<56x48xf32>
    %13 = arith.select %7, %5, %12 : vector<56x48xi1>, vector<56x48xf32>
    %c0_8 = arith.constant 0 : index
    %c0_9 = arith.constant 0 : index
    %14 = vector.load %arg4[%c0_8, %c0_9] : memref<56x48xf32, #tpu.memory_space<vmem>>, vector<56x48xf32>
    tpu.vector_store %arg4[%c0_8, %c0_9], %13 {strides = array<i32>} : memref<56x48xf32, #tpu.memory_space<vmem>>, vector<56x48xf32>,
    return
  }
  func.func @transform_0(%arg0: i32) -> (i32, i32) {
    %c0_i32 = arith.constant 0 : i32
    %c0_i32_0 = arith.constant 0 : i32
    return %arg0, %c0_i32 : i32, i32
  }
  func.func @transform_1(%arg0: i32) -> (i32, i32) {
    %c0_i32 = arith.constant 0 : i32
    %c0_i32_0 = arith.constant 0 : i32
    %c0_i32_1 = arith.constant 0 : i32
    return %c0_i32, %c0_i32_0 : i32, i32
  }
  func.func @transform_2(%arg0: i32) -> (i32, i32) {
    %c0_i32 = arith.constant 0 : i32
    %c0_i32_0 = arith.constant 0 : i32
    %c0_i32_1 = arith.constant 0 : i32
    return %c0_i32, %c0_i32_0 : i32, i32
  }
  func.func @transform_3(%arg0: i32) -> (i32, i32) {
    %c0_i32 = arith.constant 0 : i32
    %c0_i32_0 = arith.constant 0 : i32
    return %arg0, %c0_i32 : i32, i32
  }
}

module attributes {stable_mosaic.version = 11 : i64} {
  func.func @_tail_kernel(%arg0: i32, %arg1: memref<8x4608xf32, #tpu.memory_space<vmem>>, %arg2: memref<512x128xf32, #tpu.memory_space<vmem>>, %arg3: memref<1x128xf32, #tpu.memory_space<vmem>>, %arg4: memref<9x128x128xf32, #tpu.memory_space<vmem>>, %arg5: memref<1x128xf32, #tpu.memory_space<vmem>>, %arg6: memref<128x128xf32, #tpu.memory_space<vmem>>, %arg7: memref<1x128xf32, #tpu.memory_space<vmem>>, %arg8: memref<128x128xf32, #tpu.memory_space<vmem>>, %arg9: memref<1x128xf32, #tpu.memory_space<vmem>>, %arg10: memref<128x128xf32, #tpu.memory_space<vmem>>, %arg11: memref<1x128xf32, #tpu.memory_space<vmem>>, %arg12: memref<128x128xf32, #tpu.memory_space<vmem>>, %arg13: memref<1x128xf32, #tpu.memory_space<vmem>>, %arg14: memref<8x128xf32, #tpu.memory_space<vmem>>) attributes {dimension_semantics = [#tpu.dimension_semantics<parallel>], iteration_bounds = array<i64: 1>, scalar_prefetch = 0 : i64, scratch_operands = 0 : i64, tpu.core_type = #tpu.core_type<tc>, window_params = [{transform_indices = @transform_0, window_bounds = array<i64: 8, 4608>}, {pipeline_mode = #tpu.pipeline_mode<synchronous>, transform_indices = @transform_1, window_bounds = array<i64: 512, 128>}, {pipeline_mode = #tpu.pipeline_mode<synchronous>, transform_indices = @transform_2, window_bounds = array<i64: 1, 128>}, {pipeline_mode = #tpu.pipeline_mode<synchronous>, transform_indices = @transform_3, window_bounds = array<i64: 9, 128, 128>}, {pipeline_mode = #tpu.pipeline_mode<synchronous>, transform_indices = @transform_4, window_bounds = array<i64: 1, 128>}, {pipeline_mode = #tpu.pipeline_mode<synchronous>, transform_indices = @transform_5, window_bounds = array<i64: 128, 128>}, {pipeline_mode = #tpu.pipeline_mode<synchronous>, transform_indices = @transform_6, window_bounds = array<i64: 1, 128>}, {pipeline_mode = #tpu.pipeline_mode<synchronous>, transform_indices = @transform_7, window_bounds = array<i64: 128, 128>}, {pipeline_mode = #tpu.pipeline_mode<synchronous>, transform_indices = @transform_8, window_bounds = array<i64: 1, 128>}, {pipeline_mode = #tpu.pipeline_mode<synchronous>, transform_indices = @transform_9, window_bounds = array<i64: 128, 128>}, {pipeline_mode = #tpu.pipeline_mode<synchronous>, transform_indices = @transform_10, window_bounds = array<i64: 1, 128>}, {pipeline_mode = #tpu.pipeline_mode<synchronous>, transform_indices = @transform_11, window_bounds = array<i64: 128, 128>}, {pipeline_mode = #tpu.pipeline_mode<synchronous>, transform_indices = @transform_12, window_bounds = array<i64: 1, 128>}, {transform_indices = @transform_13, window_bounds = array<i64: 8, 128>}]} {
    %c0 = arith.constant 0 : index
    %c0_0 = arith.constant 0 : index
    %0 = vector.load %arg2[%c0, %c0_0] : memref<512x128xf32, #tpu.memory_space<vmem>>, vector<512x128xf32>
    %c0_1 = arith.constant 0 : index
    %c0_2 = arith.constant 0 : index
    %1 = vector.load %arg3[%c0_1, %c0_2] : memref<1x128xf32, #tpu.memory_space<vmem>>, vector<1x128xf32>
    %cst = arith.constant 0.000000e+00 : f32
    %2 = vector.broadcast %cst : f32 to vector<8x128xf32>
    %c0_3 = arith.constant 0 : index
    %c0_4 = arith.constant 0 : index
    %3 = vector.load %arg1[%c0_3, %c0_4] : memref<8x4608xf32, #tpu.memory_space<vmem>>, vector<8x512xf32>
    %cst_5 = arith.constant dense<0.000000e+00> : vector<8x128xf32>
    %4 = tpu.matmul %3, %0, %cst_5 {dimension_numbers = #tpu.dot_dimension_numbers<[1], [0], [0], [1], [0, 0, 1, 1], [], []>} : vector<8x512xf32>, vector<512x128xf32>, vector<8x128xf32> -> vector<8x128xf32>
    %5 = vector.broadcast %1 : vector<1x128xf32> to vector<8x128xf32>
    %6 = arith.addf %4, %5 : vector<8x128xf32>
    %cst_6 = arith.constant 0.000000e+00 : f32
    %7 = vector.broadcast %cst_6 : f32 to vector<8x128xf32>
    %8 = arith.cmpf ogt, %6, %7 : vector<8x128xf32>
    %cst_7 = arith.constant 0.000000e+00 : f32
    %9 = vector.broadcast %cst_7 : f32 to vector<8x128xf32>
    %10 = arith.minimumf %6, %9 : vector<8x128xf32>
    %11 = math.exp %10 : vector<8x128xf32>
    %cst_8 = arith.constant 1.000000e+00 : f32
    %12 = vector.broadcast %cst_8 : f32 to vector<8x128xf32>
    %13 = arith.subf %11, %12 : vector<8x128xf32>
    %14 = arith.select %8, %6, %13 : vector<8x128xi1>, vector<8x128xf32>
    %c0_9 = arith.constant 0 : index
    %c0_10 = arith.constant 0 : index
    %c0_11 = arith.constant 0 : index
    %15 = vector.load %arg4[%c0_9, %c0_10, %c0_11] : memref<9x128x128xf32, #tpu.memory_space<vmem>>, vector<1x128x128xf32>
    %16 = vector.shape_cast %15 : vector<1x128x128xf32> to vector<128x128xf32>
    %cst_12 = arith.constant dense<0.000000e+00> : vector<8x128xf32>
    %17 = tpu.matmul %14, %16, %cst_12 {dimension_numbers = #tpu.dot_dimension_numbers<[1], [0], [0], [1], [0, 0, 1, 1], [], []>} : vector<8x128xf32>, vector<128x128xf32>, vector<8x128xf32> -> vector<8x128xf32>
    %18 = arith.addf %2, %17 : vector<8x128xf32>
    %c0_13 = arith.constant 0 : index
    %c512 = arith.constant 512 : index
    %19 = vector.load %arg1[%c0_13, %c512] : memref<8x4608xf32, #tpu.memory_space<vmem>>, vector<8x512xf32>
    %cst_14 = arith.constant dense<0.000000e+00> : vector<8x128xf32>
    %20 = tpu.matmul %19, %0, %cst_14 {dimension_numbers = #tpu.dot_dimension_numbers<[1], [0], [0], [1], [0, 0, 1, 1], [], []>} : vector<8x512xf32>, vector<512x128xf32>, vector<8x128xf32> -> vector<8x128xf32>
    %21 = vector.broadcast %1 : vector<1x128xf32> to vector<8x128xf32>
    %22 = arith.addf %20, %21 : vector<8x128xf32>
    %cst_15 = arith.constant 0.000000e+00 : f32
    %23 = vector.broadcast %cst_15 : f32 to vector<8x128xf32>
    %24 = arith.cmpf ogt, %22, %23 : vector<8x128xf32>
    %cst_16 = arith.constant 0.000000e+00 : f32
    %25 = vector.broadcast %cst_16 : f32 to vector<8x128xf32>
    %26 = arith.minimumf %22, %25 : vector<8x128xf32>
    %27 = math.exp %26 : vector<8x128xf32>
    %cst_17 = arith.constant 1.000000e+00 : f32
    %28 = vector.broadcast %cst_17 : f32 to vector<8x128xf32>
    %29 = arith.subf %27, %28 : vector<8x128xf32>
    %30 = arith.select %24, %22, %29 : vector<8x128xi1>, vector<8x128xf32>
    %c1 = arith.constant 1 : index
    %c0_18 = arith.constant 0 : index
    %c0_19 = arith.constant 0 : index
    %31 = vector.load %arg4[%c1, %c0_18, %c0_19] : memref<9x128x128xf32, #tpu.memory_space<vmem>>, vector<1x128x128xf32>
    %32 = vector.shape_cast %31 : vector<1x128x128xf32> to vector<128x128xf32>
    %cst_20 = arith.constant dense<0.000000e+00> : vector<8x128xf32>
    %33 = tpu.matmul %30, %32, %cst_20 {dimension_numbers = #tpu.dot_dimension_numbers<[1], [0], [0], [1], [0, 0, 1, 1], [], []>} : vector<8x128xf32>, vector<128x128xf32>, vector<8x128xf32> -> vector<8x128xf32>
    %34 = arith.addf %18, %33 : vector<8x128xf32>
    %c0_21 = arith.constant 0 : index
    %c1024 = arith.constant 1024 : index
    %35 = vector.load %arg1[%c0_21, %c1024] : memref<8x4608xf32, #tpu.memory_space<vmem>>, vector<8x512xf32>
    %cst_22 = arith.constant dense<0.000000e+00> : vector<8x128xf32>
    %36 = tpu.matmul %35, %0, %cst_22 {dimension_numbers = #tpu.dot_dimension_numbers<[1], [0], [0], [1], [0, 0, 1, 1], [], []>} : vector<8x512xf32>, vector<512x128xf32>, vector<8x128xf32> -> vector<8x128xf32>
    %37 = vector.broadcast %1 : vector<1x128xf32> to vector<8x128xf32>
    %38 = arith.addf %36, %37 : vector<8x128xf32>
    %cst_23 = arith.constant 0.000000e+00 : f32
    %39 = vector.broadcast %cst_23 : f32 to vector<8x128xf32>
    %40 = arith.cmpf ogt, %38, %39 : vector<8x128xf32>
    %cst_24 = arith.constant 0.000000e+00 : f32
    %41 = vector.broadcast %cst_24 : f32 to vector<8x128xf32>
    %42 = arith.minimumf %38, %41 : vector<8x128xf32>
    %43 = math.exp %42 : vector<8x128xf32>
    %cst_25 = arith.constant 1.000000e+00 : f32
    %44 = vector.broadcast %cst_25 : f32 to vector<8x128xf32>
    %45 = arith.subf %43, %44 : vector<8x128xf32>
    %46 = arith.select %40, %38, %45 : vector<8x128xi1>, vector<8x128xf32>
    %c2 = arith.constant 2 : index
    %c0_26 = arith.constant 0 : index
    %c0_27 = arith.constant 0 : index
    %47 = vector.load %arg4[%c2, %c0_26, %c0_27] : memref<9x128x128xf32, #tpu.memory_space<vmem>>, vector<1x128x128xf32>
    %48 = vector.shape_cast %47 : vector<1x128x128xf32> to vector<128x128xf32>
    %cst_28 = arith.constant dense<0.000000e+00> : vector<8x128xf32>
    %49 = tpu.matmul %46, %48, %cst_28 {dimension_numbers = #tpu.dot_dimension_numbers<[1], [0], [0], [1], [0, 0, 1, 1], [], []>} : vector<8x128xf32>, vector<128x128xf32>, vector<8x128xf32> -> vector<8x128xf32>
    %50 = arith.addf %34, %49 : vector<8x128xf32>
    %c0_29 = arith.constant 0 : index
    %c1536 = arith.constant 1536 : index
    %51 = vector.load %arg1[%c0_29, %c1536] : memref<8x4608xf32, #tpu.memory_space<vmem>>, vector<8x512xf32>
    %cst_30 = arith.constant dense<0.000000e+00> : vector<8x128xf32>
    %52 = tpu.matmul %51, %0, %cst_30 {dimension_numbers = #tpu.dot_dimension_numbers<[1], [0], [0], [1], [0, 0, 1, 1], [], []>} : vector<8x512xf32>, vector<512x128xf32>, vector<8x128xf32> -> vector<8x128xf32>
    %53 = vector.broadcast %1 : vector<1x128xf32> to vector<8x128xf32>
    %54 = arith.addf %52, %53 : vector<8x128xf32>
    %cst_31 = arith.constant 0.000000e+00 : f32
    %55 = vector.broadcast %cst_31 : f32 to vector<8x128xf32>
    %56 = arith.cmpf ogt, %54, %55 : vector<8x128xf32>
    %cst_32 = arith.constant 0.000000e+00 : f32
    %57 = vector.broadcast %cst_32 : f32 to vector<8x128xf32>
    %58 = arith.minimumf %54, %57 : vector<8x128xf32>
    %59 = math.exp %58 : vector<8x128xf32>
    %cst_33 = arith.constant 1.000000e+00 : f32
    %60 = vector.broadcast %cst_33 : f32 to vector<8x128xf32>
    %61 = arith.subf %59, %60 : vector<8x128xf32>
    %62 = arith.select %56, %54, %61 : vector<8x128xi1>, vector<8x128xf32>
    %c3 = arith.constant 3 : index
    %c0_34 = arith.constant 0 : index
    %c0_35 = arith.constant 0 : index
    %63 = vector.load %arg4[%c3, %c0_34, %c0_35] : memref<9x128x128xf32, #tpu.memory_space<vmem>>, vector<1x128x128xf32>
    %64 = vector.shape_cast %63 : vector<1x128x128xf32> to vector<128x128xf32>
    %cst_36 = arith.constant dense<0.000000e+00> : vector<8x128xf32>
    %65 = tpu.matmul %62, %64, %cst_36 {dimension_numbers = #tpu.dot_dimension_numbers<[1], [0], [0], [1], [0, 0, 1, 1], [], []>} : vector<8x128xf32>, vector<128x128xf32>, vector<8x128xf32> -> vector<8x128xf32>
    %66 = arith.addf %50, %65 : vector<8x128xf32>
    %c0_37 = arith.constant 0 : index
    %c2048 = arith.constant 2048 : index
    %67 = vector.load %arg1[%c0_37, %c2048] : memref<8x4608xf32, #tpu.memory_space<vmem>>, vector<8x512xf32>
    %cst_38 = arith.constant dense<0.000000e+00> : vector<8x128xf32>
    %68 = tpu.matmul %67, %0, %cst_38 {dimension_numbers = #tpu.dot_dimension_numbers<[1], [0], [0], [1], [0, 0, 1, 1], [], []>} : vector<8x512xf32>, vector<512x128xf32>, vector<8x128xf32> -> vector<8x128xf32>
    %69 = vector.broadcast %1 : vector<1x128xf32> to vector<8x128xf32>
    %70 = arith.addf %68, %69 : vector<8x128xf32>
    %cst_39 = arith.constant 0.000000e+00 : f32
    %71 = vector.broadcast %cst_39 : f32 to vector<8x128xf32>
    %72 = arith.cmpf ogt, %70, %71 : vector<8x128xf32>
    %cst_40 = arith.constant 0.000000e+00 : f32
    %73 = vector.broadcast %cst_40 : f32 to vector<8x128xf32>
    %74 = arith.minimumf %70, %73 : vector<8x128xf32>
    %75 = math.exp %74 : vector<8x128xf32>
    %cst_41 = arith.constant 1.000000e+00 : f32
    %76 = vector.broadcast %cst_41 : f32 to vector<8x128xf32>
    %77 = arith.subf %75, %76 : vector<8x128xf32>
    %78 = arith.select %72, %70, %77 : vector<8x128xi1>, vector<8x128xf32>
    %c4 = arith.constant 4 : index
    %c0_42 = arith.constant 0 : index
    %c0_43 = arith.constant 0 : index
    %79 = vector.load %arg4[%c4, %c0_42, %c0_43] : memref<9x128x128xf32, #tpu.memory_space<vmem>>, vector<1x128x128xf32>
    %80 = vector.shape_cast %79 : vector<1x128x128xf32> to vector<128x128xf32>
    %cst_44 = arith.constant dense<0.000000e+00> : vector<8x128xf32>
    %81 = tpu.matmul %78, %80, %cst_44 {dimension_numbers = #tpu.dot_dimension_numbers<[1], [0], [0], [1], [0, 0, 1, 1], [], []>} : vector<8x128xf32>, vector<128x128xf32>, vector<8x128xf32> -> vector<8x128xf32>
    %82 = arith.addf %66, %81 : vector<8x128xf32>
    %c0_45 = arith.constant 0 : index
    %c2560 = arith.constant 2560 : index
    %83 = vector.load %arg1[%c0_45, %c2560] : memref<8x4608xf32, #tpu.memory_space<vmem>>, vector<8x512xf32>
    %cst_46 = arith.constant dense<0.000000e+00> : vector<8x128xf32>
    %84 = tpu.matmul %83, %0, %cst_46 {dimension_numbers = #tpu.dot_dimension_numbers<[1], [0], [0], [1], [0, 0, 1, 1], [], []>} : vector<8x512xf32>, vector<512x128xf32>, vector<8x128xf32> -> vector<8x128xf32>
    %85 = vector.broadcast %1 : vector<1x128xf32> to vector<8x128xf32>
    %86 = arith.addf %84, %85 : vector<8x128xf32>
    %cst_47 = arith.constant 0.000000e+00 : f32
    %87 = vector.broadcast %cst_47 : f32 to vector<8x128xf32>
    %88 = arith.cmpf ogt, %86, %87 : vector<8x128xf32>
    %cst_48 = arith.constant 0.000000e+00 : f32
    %89 = vector.broadcast %cst_48 : f32 to vector<8x128xf32>
    %90 = arith.minimumf %86, %89 : vector<8x128xf32>
    %91 = math.exp %90 : vector<8x128xf32>
    %cst_49 = arith.constant 1.000000e+00 : f32
    %92 = vector.broadcast %cst_49 : f32 to vector<8x128xf32>
    %93 = arith.subf %91, %92 : vector<8x128xf32>
    %94 = arith.select %88, %86, %93 : vector<8x128xi1>, vector<8x128xf32>
    %c5 = arith.constant 5 : index
    %c0_50 = arith.constant 0 : index
    %c0_51 = arith.constant 0 : index
    %95 = vector.load %arg4[%c5, %c0_50, %c0_51] : memref<9x128x128xf32, #tpu.memory_space<vmem>>, vector<1x128x128xf32>
    %96 = vector.shape_cast %95 : vector<1x128x128xf32> to vector<128x128xf32>
    %cst_52 = arith.constant dense<0.000000e+00> : vector<8x128xf32>
    %97 = tpu.matmul %94, %96, %cst_52 {dimension_numbers = #tpu.dot_dimension_numbers<[1], [0], [0], [1], [0, 0, 1, 1], [], []>} : vector<8x128xf32>, vector<128x128xf32>, vector<8x128xf32> -> vector<8x128xf32>
    %98 = arith.addf %82, %97 : vector<8x128xf32>
    %c0_53 = arith.constant 0 : index
    %c3072 = arith.constant 3072 : index
    %99 = vector.load %arg1[%c0_53, %c3072] : memref<8x4608xf32, #tpu.memory_space<vmem>>, vector<8x512xf32>
    %cst_54 = arith.constant dense<0.000000e+00> : vector<8x128xf32>
    %100 = tpu.matmul %99, %0, %cst_54 {dimension_numbers = #tpu.dot_dimension_numbers<[1], [0], [0], [1], [0, 0, 1, 1], [], []>} : vector<8x512xf32>, vector<512x128xf32>, vector<8x128xf32> -> vector<8x128xf32>
    %101 = vector.broadcast %1 : vector<1x128xf32> to vector<8x128xf32>
    %102 = arith.addf %100, %101 : vector<8x128xf32>
    %cst_55 = arith.constant 0.000000e+00 : f32
    %103 = vector.broadcast %cst_55 : f32 to vector<8x128xf32>
    %104 = arith.cmpf ogt, %102, %103 : vector<8x128xf32>
    %cst_56 = arith.constant 0.000000e+00 : f32
    %105 = vector.broadcast %cst_56 : f32 to vector<8x128xf32>
    %106 = arith.minimumf %102, %105 : vector<8x128xf32>
    %107 = math.exp %106 : vector<8x128xf32>
    %cst_57 = arith.constant 1.000000e+00 : f32
    %108 = vector.broadcast %cst_57 : f32 to vector<8x128xf32>
    %109 = arith.subf %107, %108 : vector<8x128xf32>
    %110 = arith.select %104, %102, %109 : vector<8x128xi1>, vector<8x128xf32>
    %c6 = arith.constant 6 : index
    %c0_58 = arith.constant 0 : index
    %c0_59 = arith.constant 0 : index
    %111 = vector.load %arg4[%c6, %c0_58, %c0_59] : memref<9x128x128xf32, #tpu.memory_space<vmem>>, vector<1x128x128xf32>
    %112 = vector.shape_cast %111 : vector<1x128x128xf32> to vector<128x128xf32>
    %cst_60 = arith.constant dense<0.000000e+00> : vector<8x128xf32>
    %113 = tpu.matmul %110, %112, %cst_60 {dimension_numbers = #tpu.dot_dimension_numbers<[1], [0], [0], [1], [0, 0, 1, 1], [], []>} : vector<8x128xf32>, vector<128x128xf32>, vector<8x128xf32> -> vector<8x128xf32>
    %114 = arith.addf %98, %113 : vector<8x128xf32>
    %c0_61 = arith.constant 0 : index
    %c3584 = arith.constant 3584 : index
    %115 = vector.load %arg1[%c0_61, %c3584] : memref<8x4608xf32, #tpu.memory_space<vmem>>, vector<8x512xf32>
    %cst_62 = arith.constant dense<0.000000e+00> : vector<8x128xf32>
    %116 = tpu.matmul %115, %0, %cst_62 {dimension_numbers = #tpu.dot_dimension_numbers<[1], [0], [0], [1], [0, 0, 1, 1], [], []>} : vector<8x512xf32>, vector<512x128xf32>, vector<8x128xf32> -> vector<8x128xf32>
    %117 = vector.broadcast %1 : vector<1x128xf32> to vector<8x128xf32>
    %118 = arith.addf %116, %117 : vector<8x128xf32>
    %cst_63 = arith.constant 0.000000e+00 : f32
    %119 = vector.broadcast %cst_63 : f32 to vector<8x128xf32>
    %120 = arith.cmpf ogt, %118, %119 : vector<8x128xf32>
    %cst_64 = arith.constant 0.000000e+00 : f32
    %121 = vector.broadcast %cst_64 : f32 to vector<8x128xf32>
    %122 = arith.minimumf %118, %121 : vector<8x128xf32>
    %123 = math.exp %122 : vector<8x128xf32>
    %cst_65 = arith.constant 1.000000e+00 : f32
    %124 = vector.broadcast %cst_65 : f32 to vector<8x128xf32>
    %125 = arith.subf %123, %124 : vector<8x128xf32>
    %126 = arith.select %120, %118, %125 : vector<8x128xi1>, vector<8x128xf32>
    %c7 = arith.constant 7 : index
    %c0_66 = arith.constant 0 : index
    %c0_67 = arith.constant 0 : index
    %127 = vector.load %arg4[%c7, %c0_66, %c0_67] : memref<9x128x128xf32, #tpu.memory_space<vmem>>, vector<1x128x128xf32>
    %128 = vector.shape_cast %127 : vector<1x128x128xf32> to vector<128x128xf32>
    %cst_68 = arith.constant dense<0.000000e+00> : vector<8x128xf32>
    %129 = tpu.matmul %126, %128, %cst_68 {dimension_numbers = #tpu.dot_dimension_numbers<[1], [0], [0], [1], [0, 0, 1, 1], [], []>} : vector<8x128xf32>, vector<128x128xf32>, vector<8x128xf32> -> vector<8x128xf32>
    %130 = arith.addf %114, %129 : vector<8x128xf32>
    %c0_69 = arith.constant 0 : index
    %c4096 = arith.constant 4096 : index
    %131 = vector.load %arg1[%c0_69, %c4096] : memref<8x4608xf32, #tpu.memory_space<vmem>>, vector<8x512xf32>
    %cst_70 = arith.constant dense<0.000000e+00> : vector<8x128xf32>
    %132 = tpu.matmul %131, %0, %cst_70 {dimension_numbers = #tpu.dot_dimension_numbers<[1], [0], [0], [1], [0, 0, 1, 1], [], []>} : vector<8x512xf32>, vector<512x128xf32>, vector<8x128xf32> -> vector<8x128xf32>
    %133 = vector.broadcast %1 : vector<1x128xf32> to vector<8x128xf32>
    %134 = arith.addf %132, %133 : vector<8x128xf32>
    %cst_71 = arith.constant 0.000000e+00 : f32
    %135 = vector.broadcast %cst_71 : f32 to vector<8x128xf32>
    %136 = arith.cmpf ogt, %134, %135 : vector<8x128xf32>
    %cst_72 = arith.constant 0.000000e+00 : f32
    %137 = vector.broadcast %cst_72 : f32 to vector<8x128xf32>
    %138 = arith.minimumf %134, %137 : vector<8x128xf32>
    %139 = math.exp %138 : vector<8x128xf32>
    %cst_73 = arith.constant 1.000000e+00 : f32
    %140 = vector.broadcast %cst_73 : f32 to vector<8x128xf32>
    %141 = arith.subf %139, %140 : vector<8x128xf32>
    %142 = arith.select %136, %134, %141 : vector<8x128xi1>, vector<8x128xf32>
    %c8 = arith.constant 8 : index
    %c0_74 = arith.constant 0 : index
    %c0_75 = arith.constant 0 : index
    %143 = vector.load %arg4[%c8, %c0_74, %c0_75] : memref<9x128x128xf32, #tpu.memory_space<vmem>>, vector<1x128x128xf32>
    %144 = vector.shape_cast %143 : vector<1x128x128xf32> to vector<128x128xf32>
    %cst_76 = arith.constant dense<0.000000e+00> : vector<8x128xf32>
    %145 = tpu.matmul %142, %144, %cst_76 {dimension_numbers = #tpu.dot_dimension_numbers<[1], [0], [0], [1], [0, 0, 1, 1], [], []>} : vector<8x128xf32>, vector<128x128xf32>, vector<8x128xf32> -> vector<8x128xf32>
    %146 = arith.addf %130, %145 : vector<8x128xf32>
    %c0_77 = arith.constant 0 : index
    %c0_78 = arith.constant 0 : index
    %147 = vector.load %arg5[%c0_77, %c0_78] : memref<1x128xf32, #tpu.memory_space<vmem>>, vector<1x128xf32>
    %148 = vector.broadcast %147 : vector<1x128xf32> to vector<8x128xf32>
    %149 = arith.addf %146, %148 : vector<8x128xf32>
    %cst_79 = arith.constant 0.000000e+00 : f32
    %150 = vector.broadcast %cst_79 : f32 to vector<8x128xf32>
    %151 = arith.cmpf ogt, %149, %150 : vector<8x128xf32>
    %cst_80 = arith.constant 0.000000e+00 : f32
    %152 = vector.broadcast %cst_80 : f32 to vector<8x128xf32>
    %153 = arith.minimumf %149, %152 : vector<8x128xf32>
    %154 = math.exp %153 : vector<8x128xf32>
    %cst_81 = arith.constant 1.000000e+00 : f32
    %155 = vector.broadcast %cst_81 : f32 to vector<8x128xf32>
    %156 = arith.subf %154, %155 : vector<8x128xf32>
    %157 = arith.select %151, %149, %156 : vector<8x128xi1>, vector<8x128xf32>
    %c0_82 = arith.constant 0 : index
    %c0_83 = arith.constant 0 : index
    %158 = vector.load %arg6[%c0_82, %c0_83] : memref<128x128xf32, #tpu.memory_space<vmem>>, vector<128x128xf32>
    %cst_84 = arith.constant dense<0.000000e+00> : vector<8x128xf32>
    %159 = tpu.matmul %157, %158, %cst_84 {dimension_numbers = #tpu.dot_dimension_numbers<[1], [0], [0], [1], [0, 0, 1, 1], [], []>} : vector<8x128xf32>, vector<128x128xf32>, vector<8x128xf32> -> vector<8x128xf32>
    %c0_85 = arith.constant 0 : index
    %c0_86 = arith.constant 0 : index
    %160 = vector.load %arg7[%c0_85, %c0_86] : memref<1x128xf32, #tpu.memory_space<vmem>>, vector<1x128xf32>
    %161 = vector.broadcast %160 : vector<1x128xf32> to vector<8x128xf32>
    %162 = arith.addf %159, %161 : vector<8x128xf32>
    %cst_87 = arith.constant 0.000000e+00 : f32
    %163 = vector.broadcast %cst_87 : f32 to vector<8x128xf32>
    %164 = arith.cmpf ogt, %162, %163 : vector<8x128xf32>
    %cst_88 = arith.constant 0.000000e+00 : f32
    %165 = vector.broadcast %cst_88 : f32 to vector<8x128xf32>
    %166 = arith.minimumf %162, %165 : vector<8x128xf32>
    %167 = math.exp %166 : vector<8x128xf32>
    %cst_89 = arith.constant 1.000000e+00 : f32
    %168 = vector.broadcast %cst_89 : f32 to vector<8x128xf32>
    %169 = arith.subf %167, %168 : vector<8x128xf32>
    %170 = arith.select %164, %162, %169 : vector<8x128xi1>, vector<8x128xf32>
    %c0_90 = arith.constant 0 : index
    %c0_91 = arith.constant 0 : index
    %171 = vector.load %arg8[%c0_90, %c0_91] : memref<128x128xf32, #tpu.memory_space<vmem>>, vector<128x128xf32>
    %cst_92 = arith.constant dense<0.000000e+00> : vector<8x128xf32>
    %172 = tpu.matmul %170, %171, %cst_92 {dimension_numbers = #tpu.dot_dimension_numbers<[1], [0], [0], [1], [0, 0, 1, 1], [], []>} : vector<8x128xf32>, vector<128x128xf32>, vector<8x128xf32> -> vector<8x128xf32>
    %c0_93 = arith.constant 0 : index
    %c0_94 = arith.constant 0 : index
    %173 = vector.load %arg9[%c0_93, %c0_94] : memref<1x128xf32, #tpu.memory_space<vmem>>, vector<1x128xf32>
    %174 = vector.broadcast %173 : vector<1x128xf32> to vector<8x128xf32>
    %175 = arith.addf %172, %174 : vector<8x128xf32>
    %cst_95 = arith.constant 0.000000e+00 : f32
    %176 = vector.broadcast %cst_95 : f32 to vector<8x128xf32>
    %177 = arith.cmpf ogt, %175, %176 : vector<8x128xf32>
    %cst_96 = arith.constant 0.000000e+00 : f32
    %178 = vector.broadcast %cst_96 : f32 to vector<8x128xf32>
    %179 = arith.minimumf %175, %178 : vector<8x128xf32>
    %180 = math.exp %179 : vector<8x128xf32>
    %cst_97 = arith.constant 1.000000e+00 : f32
    %181 = vector.broadcast %cst_97 : f32 to vector<8x128xf32>
    %182 = arith.subf %180, %181 : vector<8x128xf32>
    %183 = arith.select %177, %175, %182 : vector<8x128xi1>, vector<8x128xf32>
    %c0_98 = arith.constant 0 : index
    %c0_99 = arith.constant 0 : index
    %184 = vector.load %arg10[%c0_98, %c0_99] : memref<128x128xf32, #tpu.memory_space<vmem>>, vector<128x128xf32>
    %cst_100 = arith.constant dense<0.000000e+00> : vector<8x128xf32>
    %185 = tpu.matmul %183, %184, %cst_100 {dimension_numbers = #tpu.dot_dimension_numbers<[1], [0], [0], [1], [0, 0, 1, 1], [], []>} : vector<8x128xf32>, vector<128x128xf32>, vector<8x128xf32> -> vector<8x128xf32>
    %c0_101 = arith.constant 0 : index
    %c0_102 = arith.constant 0 : index
    %186 = vector.load %arg11[%c0_101, %c0_102] : memref<1x128xf32, #tpu.memory_space<vmem>>, vector<1x128xf32>
    %187 = vector.broadcast %186 : vector<1x128xf32> to vector<8x128xf32>
    %188 = arith.addf %185, %187 : vector<8x128xf32>
    %cst_103 = arith.constant 0.000000e+00 : f32
    %189 = vector.broadcast %cst_103 : f32 to vector<8x128xf32>
    %190 = arith.cmpf ogt, %188, %189 : vector<8x128xf32>
    %cst_104 = arith.constant 0.000000e+00 : f32
    %191 = vector.broadcast %cst_104 : f32 to vector<8x128xf32>
    %192 = arith.minimumf %188, %191 : vector<8x128xf32>
    %193 = math.exp %192 : vector<8x128xf32>
    %cst_105 = arith.constant 1.000000e+00 : f32
    %194 = vector.broadcast %cst_105 : f32 to vector<8x128xf32>
    %195 = arith.subf %193, %194 : vector<8x128xf32>
    %196 = arith.select %190, %188, %195 : vector<8x128xi1>, vector<8x128xf32>
    %c0_106 = arith.constant 0 : index
    %c0_107 = arith.constant 0 : index
    %197 = vector.load %arg12[%c0_106, %c0_107] : memref<128x128xf32, #tpu.memory_space<vmem>>, vector<128x128xf32>
    %cst_108 = arith.constant dense<0.000000e+00> : vector<8x128xf32>
    %198 = tpu.matmul %196, %197, %cst_108 {dimension_numbers = #tpu.dot_dimension_numbers<[1], [0], [0], [1], [0, 0, 1, 1], [], []>} : vector<8x128xf32>, vector<128x128xf32>, vector<8x128xf32> -> vector<8x128xf32>
    %c0_109 = arith.constant 0 : index
    %c0_110 = arith.constant 0 : index
    %199 = vector.load %arg13[%c0_109, %c0_110] : memref<1x128xf32, #tpu.memory_space<vmem>>, vector<1x128xf32>
    %200 = vector.broadcast %199 : vector<1x128xf32> to vector<8x128xf32>
    %201 = arith.addf %198, %200 : vector<8x128xf32>
    %202 = math.tanh %201 : vector<8x128xf32>
    %c0_111 = arith.constant 0 : index
    %c0_112 = arith.constant 0 : index
    %203 = vector.load %arg14[%c0_111, %c0_112] : memref<8x128xf32, #tpu.memory_space<vmem>>, vector<8x128xf32>
    tpu.vector_store %arg14[%c0_111, %c0_112], %202 {strides = array<i32>} : memref<8x128xf32, #tpu.memory_space<vmem>>, vector<8x128xf32>,
    return
  }
  func.func @transform_0(%arg0: i32) -> (i32, i32) {
    %c0_i32 = arith.constant 0 : i32
    %c0_i32_0 = arith.constant 0 : i32
    return %arg0, %c0_i32 : i32, i32
  }
  func.func @transform_1(%arg0: i32) -> (i32, i32) {
    %c0_i32 = arith.constant 0 : i32
    %c0_i32_0 = arith.constant 0 : i32
    %c0_i32_1 = arith.constant 0 : i32
    return %c0_i32, %c0_i32_0 : i32, i32
  }
  func.func @transform_2(%arg0: i32) -> (i32, i32) {
    %c0_i32 = arith.constant 0 : i32
    %c0_i32_0 = arith.constant 0 : i32
    %c0_i32_1 = arith.constant 0 : i32
    return %c0_i32, %c0_i32_0 : i32, i32
  }
  func.func @transform_3(%arg0: i32) -> (i32, i32, i32) {
    %c0_i32 = arith.constant 0 : i32
    %c0_i32_0 = arith.constant 0 : i32
    %c0_i32_1 = arith.constant 0 : i32
    %c0_i32_2 = arith.constant 0 : i32
    return %c0_i32, %c0_i32_0, %c0_i32_1 : i32, i32, i32
  }
  func.func @transform_4(%arg0: i32) -> (i32, i32) {
    %c0_i32 = arith.constant 0 : i32
    %c0_i32_0 = arith.constant 0 : i32
    %c0_i32_1 = arith.constant 0 : i32
    return %c0_i32, %c0_i32_0 : i32, i32
  }
  func.func @transform_5(%arg0: i32) -> (i32, i32) {
    %c0_i32 = arith.constant 0 : i32
    %c0_i32_0 = arith.constant 0 : i32
    %c0_i32_1 = arith.constant 0 : i32
    return %c0_i32, %c0_i32_0 : i32, i32
  }
  func.func @transform_6(%arg0: i32) -> (i32, i32) {
    %c0_i32 = arith.constant 0 : i32
    %c0_i32_0 = arith.constant 0 : i32
    %c0_i32_1 = arith.constant 0 : i32
    return %c0_i32, %c0_i32_0 : i32, i32
  }
  func.func @transform_7(%arg0: i32) -> (i32, i32) {
    %c0_i32 = arith.constant 0 : i32
    %c0_i32_0 = arith.constant 0 : i32
    %c0_i32_1 = arith.constant 0 : i32
    return %c0_i32, %c0_i32_0 : i32, i32
  }
  func.func @transform_8(%arg0: i32) -> (i32, i32) {
    %c0_i32 = arith.constant 0 : i32
    %c0_i32_0 = arith.constant 0 : i32
    %c0_i32_1 = arith.constant 0 : i32
    return %c0_i32, %c0_i32_0 : i32, i32
  }
  func.func @transform_9(%arg0: i32) -> (i32, i32) {
    %c0_i32 = arith.constant 0 : i32
    %c0_i32_0 = arith.constant 0 : i32
    %c0_i32_1 = arith.constant 0 : i32
    return %c0_i32, %c0_i32_0 : i32, i32
  }
  func.func @transform_10(%arg0: i32) -> (i32, i32) {
    %c0_i32 = arith.constant 0 : i32
    %c0_i32_0 = arith.constant 0 : i32
    %c0_i32_1 = arith.constant 0 : i32
    return %c0_i32, %c0_i32_0 : i32, i32
  }
  func.func @transform_11(%arg0: i32) -> (i32, i32) {
    %c0_i32 = arith.constant 0 : i32
    %c0_i32_0 = arith.constant 0 : i32
    %c0_i32_1 = arith.constant 0 : i32
    return %c0_i32, %c0_i32_0 : i32, i32
  }
  func.func @transform_12(%arg0: i32) -> (i32, i32) {
    %c0_i32 = arith.constant 0 : i32
    %c0_i32_0 = arith.constant 0 : i32
    %c0_i32_1 = arith.constant 0 : i32
    return %c0_i32, %c0_i32_0 : i32, i32
  }
  func.func @transform_13(%arg0: i32) -> (i32, i32) {
    %c0_i32 = arith.constant 0 : i32
    %c0_i32_0 = arith.constant 0 : i32
    return %arg0, %c0_i32 : i32, i32
  }
}

</mosaic_0001>

<bundles_post_ra>
// kernel: cnn_actor_forward.4
= control target key start
LH: loop header
LB: loop body
LE: loop exit
PB: predicated region body
PF: predicated region fallthrough
CT: control target
= control target key end

     0   :  { %s1692_s12 = smov 0   ;;  %s2408_s0 = inlined_call_operand.vmem [shape: f32[1696,75], index: 0, kind: input, shape index: {}]   ;;  %s2409_s1 = inlined_call_operand.vmem [shape: f32[75,24], index: 1, kind: input, shape index: {}]   ;;  %s2410_s2 = inlined_call_operand.vmem [shape: f32[1,24], index: 2, kind: input, shape index: {}]   ;;  %s2411_s3 = inlined_call_operand.vmem [shape: f32[1696,24], index: 3, kind: output, shape index: {}]  }
   0x1 LB: > { %s1166_s13 = sadd.s32 4294967295, %s1668_s12   ;;  %p1170_p0 = scmp.ge.s32.totalorder %s1668_s12, 1  ;;  %s1668_s12 = sphi %s1692_s12, %s13_s12  }
   0x2   : > { %p138_p1 = scmp.lt.s32.totalorder %s1668_s12, 5 }
   0x4   : > { %p139_p2 = pnand %p1170_p0, %p138_p1 }
   0x5   : > { %s162_s18 = smul.u32 (!%p139_p2), 53, %s1166_s13 }
   0x6   : > { %142 = sbr.rel (%p139_p2) target bundleno = 354 (0x162), region = 32 }
   0x7   : > { %p163_p3 = scmp.lt.s32.totalorder (!%p139_p2), %s162_s18, 211 }
   0xb   : > { %v236_v0 = vld [vmem:[%s2409_s1 + $0x48] sm:$0x7]  ;;  %vm404_vm0 = vcmask 1042432   ;;  %v1670_v1 = vmov 0.0   ;;  %v235_v2 = vld [vmem:[%s2409_s1 + $0x40] sm:$0xff]  ;;  %v234_v3 = vld [vmem:[%s2409_s1 + $0x38] sm:$0xff] }
   0xc   : > { %1346 = vmatprep.subr.mxu0 %v1670_v1  ;;  %1525 = vmatprep.subr.mxu1 %v1670_v1  ;;  %v233_v4 = vld [vmem:[%s2409_s1 + $0x30] sm:$0xff]  ;;  %v232_v5 = vld [vmem:[%s2409_s1 + $0x28] sm:$0xff]  ;;  %v231_v6 = vld [vmem:[%s2409_s1 + $0x20] sm:$0xff]  ;;  %s2413_s18 = smov (!%p163_p3, %s162_s18), 211  ;;  %vm244_vm1 = vcmask 613376   ;;  %vm1671_vm2 = vmmov 0  }
   0xd   : > { %1347 = vmatpush3.msk.msra.mxu0 %vm404_vm0, %v236_v0  ;;  %1535 = vmatpush3.msk.msra.mxu1 %vm404_vm0, %v236_v0  ;;  %v230_v7 = vld [vmem:[%s2409_s1 + $0x18] sm:$0xff]  ;;  %v229_v8 = vld [vmem:[%s2409_s1 + $0x10] sm:$0xff]  ;;  %s1171_s4 = sshll.u32 %s2413_s18, 3  ;;  %v228_v9 = vld [vmem:[%s2409_s1 + $0x8] sm:$0xff]  ;;  %vm1056_vm3 = vcmask 195584  }
   0xe   : > { %1348 = vmatprep.subr.mxu0 %v1670_v1  ;;  %1526 = vmatprep.subr.mxu1 %v1670_v1  ;;  %s1751_s9 = scalar_lea.vmem %s2408_s0, %s1171_s4  ;;  %v227_v10 = vld [vmem:[%s2409_s1] sm:$0xff]  ;;  %s2022_s17 = scalar_lea.vmem %s2411_s3, %s1171_s4 }
   0xf   : > { %1349 = vmatpush3.msra.mxu0 %v235_v2  ;;  %1536 = vmatpush3.msra.mxu1 %v235_v2  ;;  %v174_v11 = vld [vmem:[%s1751_s9] sm:$0xff]  ;;  %v201_v12 = vld [vmem:[%s1751_s9 + $0xd8] sm:$0xff]  ;;  %v175_v13 = vld [vmem:[%s1751_s9 + $0x8] sm:$0xff] }
  0x10   : > { %1350 = vmatprep.subr.mxu0 %v1670_v1  ;;  %1527 = vmatprep.subr.mxu1 %v1670_v1  ;;  %v202_v14 = vld [vmem:[%s1751_s9 + $0xe0] sm:$0xff]  ;;  %v176_v15 = vld [vmem:[%s1751_s9 + $0x10] sm:$0xff]  ;;  %v203_v16 = vld [vmem:[%s1751_s9 + $0xe8] sm:$0xff] }
  0x11   : > { %1351 = vmatpush3.msra.mxu0 %v234_v3  ;;  %1537 = vmatpush3.msra.mxu1 %v234_v3  ;;  %v177_v17 = vld [vmem:[%s1751_s9 + $0x18] sm:$0xff]  ;;  %v204_v18 = vld [vmem:[%s1751_s9 + $0xf0] sm:$0xff]  ;;  %v178_v19 = vld [vmem:[%s1751_s9 + $0x20] sm:$0xff] }
  0x12   : > { %1352 = vmatprep.subr.mxu0 %v1670_v1  ;;  %1528 = vmatprep.subr.mxu1 %v1670_v1  ;;  %v205_v20 = vld [vmem:[%s1751_s9 + $0xf8] sm:$0xff]  ;;  %v179_v21 = vld [vmem:[%s1751_s9 + $0x28] sm:$0xff]  ;;  %v206_v22 = vld [vmem:[%s1751_s9 + $0x100] sm:$0xff] }
  0x13   : > { %1353 = vmatpush3.msra.mxu0 %v233_v4  ;;  %1538 = vmatpush3.msra.mxu1 %v233_v4  ;;  %v180_v23 = vld [vmem:[%s1751_s9 + $0x30] sm:$0xff]  ;;  %v207_v24 = vld [vmem:[%s1751_s9 + $0x108] sm:$0xff]  ;;  %v181_v25 = vld [vmem:[%s1751_s9 + $0x38] sm:$0xff] }
  0x14   : > { %1354 = vmatprep.subr.mxu0 %v1670_v1  ;;  %1529 = vmatprep.subr.mxu1 %v1670_v1  ;;  %v208_v26 = vld [vmem:[%s1751_s9 + $0x110] sm:$0xff]  ;;  %v182_v27 = vld [vmem:[%s1751_s9 + $0x40] sm:$0xff]  ;;  %v209_v28 = vld [vmem:[%s1751_s9 + $0x118] sm:$0xff] }
  0x15   : > { %1355 = vmatpush3.msra.mxu0 %v232_v5  ;;  %1539 = vmatpush3.msra.mxu1 %v232_v5  ;;  %v183_v29 = vld [vmem:[%s1751_s9 + $0x48] sm:$0xff]  ;;  %v210_v30 = vld [vmem:[%s1751_s9 + $0x120] sm:$0xff]  ;;  %v184_v31 = vld [vmem:[%s1751_s9 + $0x50] sm:$0xff] }
  0x16   : > { %1356 = vmatprep.subr.mxu0 %v1670_v1  ;;  %1530 = vmatprep.subr.mxu1 %v1670_v1  ;;  %v211_v32 = vld [vmem:[%s1751_s9 + $0x128] sm:$0xff]  ;;  %v185_v33 = vld [vmem:[%s1751_s9 + $0x58] sm:$0xff]  ;;  %v212_v34 = vld [vmem:[%s1751_s9 + $0x130] sm:$0xff] }
  0x17   : > { %1357 = vmatpush3.msra.mxu0 %v231_v6  ;;  %1540 = vmatpush3.msra.mxu1 %v231_v6  ;;  %v186_v35 = vld [vmem:[%s1751_s9 + $0x60] sm:$0xff]  ;;  %v213_v36 = vld [vmem:[%s1751_s9 + $0x138] sm:$0xff]  ;;  %v187_v37 = vld [vmem:[%s1751_s9 + $0x68] sm:$0xff] }
  0x18   : > { %1358 = vmatprep.subr.mxu0 %v1670_v1  ;;  %1531 = vmatprep.subr.mxu1 %v1670_v1  ;;  %v214_v38 = vld [vmem:[%s1751_s9 + $0x140] sm:$0xff]  ;;  %v188_v39 = vld [vmem:[%s1751_s9 + $0x70] sm:$0xff]  ;;  %v215_v40 = vld [vmem:[%s1751_s9 + $0x148] sm:$0xff] }
  0x19   : > { %1359 = vmatpush3.msra.mxu0 %v230_v7  ;;  %1541 = vmatpush3.msra.mxu1 %v230_v7  ;;  %v189_v41 = vld [vmem:[%s1751_s9 + $0x78] sm:$0xff]  ;;  %v216_v42 = vld [vmem:[%s1751_s9 + $0x150] sm:$0xff]  ;;  %v190_v43 = vld [vmem:[%s1751_s9 + $0x80] sm:$0xff] }
  0x1a   : > { %1360 = vmatprep.subr.mxu0 %v1670_v1  ;;  %1532 = vmatprep.subr.mxu1 %v1670_v1  ;;  %v217_v44 = vld [vmem:[%s1751_s9 + $0x158] sm:$0xff]  ;;  %v191_v45 = vld [vmem:[%s1751_s9 + $0x88] sm:$0xff]  ;;  %v218_v46 = vld [vmem:[%s1751_s9 + $0x160] sm:$0xff] }
  0x1b   : > { %1361 = vmatpush3.msra.mxu0 %v229_v8  ;;  %1542 = vmatpush3.msra.mxu1 %v229_v8  ;;  %v192_v47 = vld [vmem:[%s1751_s9 + $0x90] sm:$0xff]  ;;  %v219_v48 = vld [vmem:[%s1751_s9 + $0x168] sm:$0xff]  ;;  %v193_v49 = vld [vmem:[%s1751_s9 + $0x98] sm:$0xff] }
  0x1c   : > { %1362 = vmatprep.subr.mxu0 %v1670_v1  ;;  %1533 = vmatprep.subr.mxu1 %v1670_v1  ;;  %v220_v50 = vld [vmem:[%s1751_s9 + $0x170] sm:$0xff]  ;;  %v194_v51 = vld [vmem:[%s1751_s9 + $0xa0] sm:$0xff]  ;;  %v221_v52 = vld [vmem:[%s1751_s9 + $0x178] sm:$0xff] }
  0x1d   : > { %1363 = vmatpush3.msra.mxu0 %v228_v9  ;;  %1543 = vmatpush3.msra.mxu1 %v228_v9  ;;  %v195_v53 = vld [vmem:[%s1751_s9 + $0xa8] sm:$0xff]  ;;  %v222_v54 = vld [vmem:[%s1751_s9 + $0x180] sm:$0xff]  ;;  %v196_v55 = vld [vmem:[%s1751_s9 + $0xb0] sm:$0xff] }
  0x1e   : > { %1364 = vmatprep.subr.mxu0 %v1670_v1  ;;  %1534 = vmatprep.subr.mxu1 %v1670_v1  ;;  %v223_v56 = vld [vmem:[%s1751_s9 + $0x188] sm:$0xff]  ;;  %v197_v57 = vld [vmem:[%s1751_s9 + $0xb8] sm:$0xff]  ;;  %v224_v58 = vld [vmem:[%s1751_s9 + $0x190] sm:$0xff] }
  0x1f   : > { %1365 = vmatpush3.msra.mxu0 %v227_v10  ;;  %1544 = vmatpush3.msra.mxu1 %v227_v10  ;;  %v198_v59 = vld [vmem:[%s1751_s9 + $0xc0] sm:$0xff]  ;;  %v225_v60 = vld [vmem:[%s1751_s9 + $0x198] sm:$0xff]  ;;  %v199_v61 = vld [vmem:[%s1751_s9 + $0xc8] sm:$0xff] }
  0x20   : > { %1366 = vmatprep.mubr.msk.f32.mxu0 %vm1671_vm2, %v1670_v1  ;;  %1447 = vmatprep.mubr.msk.f32.mxu1 %vm1671_vm2, %v1670_v1  ;;  %v226_v62 = vld [vmem:[%s1751_s9 + $0x1a0] sm:$0xff]  ;;  %v200_v63 = vld [vmem:[%s1751_s9 + $0xd0] sm:$0xff] }
  0x21   : > { %1367 = vmatmul.mubr.msk.f32.vlgmr.msra.gmra.mxu0 %vm244_vm1, %v174_v11  ;;  %1448 = vmatmul.mubr.msk.f32.vlgmr.msra.gmra.mxu1 %vm244_vm1, %v201_v12  ;;  %v1975_v0 = vld [vmem:[%s2410_s2] ss:$0 sm:$0xff] }
  0x22   : > { %1369 = vmatprep.mubr.msk.f32.mxu0 %vm1671_vm2, %v1670_v1  ;;  %1450 = vmatprep.mubr.msk.f32.mxu1 %vm1671_vm2, %v1670_v1 }
  0x25   : > { %1370 = vmatmul.mubr.msk.f32.gmra.mxu0 %vm244_vm1, %v175_v13  ;;  %1451 = vmatmul.mubr.msk.f32.gmra.mxu1 %vm244_vm1, %v202_v14 }
  0x26   : > { %1372 = vmatprep.mubr.msk.f32.mxu0 %vm1671_vm2, %v1670_v1  ;;  %1453 = vmatprep.mubr.msk.f32.mxu1 %vm1671_vm2, %v1670_v1 }
  0x29   : > { %1373 = vmatmul.mubr.msk.f32.gmra.mxu0 %vm244_vm1, %v176_v15  ;;  %1454 = vmatmul.mubr.msk.f32.gmra.mxu1 %vm244_vm1, %v203_v16 }
  0x2a   : > { %1375 = vmatprep.mubr.msk.f32.mxu0 %vm1671_vm2, %v1670_v1  ;;  %1456 = vmatprep.mubr.msk.f32.mxu1 %vm1671_vm2, %v1670_v1 }
  0x2d   : > { %1376 = vmatmul.mubr.msk.f32.gmra.mxu0 %vm244_vm1, %v177_v17  ;;  %1457 = vmatmul.mubr.msk.f32.gmra.mxu1 %vm244_vm1, %v204_v18 }
  0x2e   : > { %1378 = vmatprep.mubr.msk.f32.mxu0 %vm1671_vm2, %v1670_v1  ;;  %1459 = vmatprep.mubr.msk.f32.mxu1 %vm1671_vm2, %v1670_v1 }
  0x31   : > { %1379 = vmatmul.mubr.msk.f32.gmra.mxu0 %vm244_vm1, %v178_v19  ;;  %1460 = vmatmul.mubr.msk.f32.gmra.mxu1 %vm244_vm1, %v205_v20 }
  0x32   : > { %1381 = vmatprep.mubr.msk.f32.mxu0 %vm1671_vm2, %v1670_v1  ;;  %1462 = vmatprep.mubr.msk.f32.mxu1 %vm1671_vm2, %v1670_v1 }
  0x35   : > { %1382 = vmatmul.mubr.msk.f32.gmra.mxu0 %vm244_vm1, %v179_v21  ;;  %1463 = vmatmul.mubr.msk.f32.gmra.mxu1 %vm244_vm1, %v206_v22 }
  0x36   : > { %1384 = vmatprep.mubr.msk.f32.mxu0 %vm1671_vm2, %v1670_v1  ;;  %1465 = vmatprep.mubr.msk.f32.mxu1 %vm1671_vm2, %v1670_v1 }
  0x39   : > { %1385 = vmatmul.mubr.msk.f32.gmra.mxu0 %vm244_vm1, %v180_v23  ;;  %1466 = vmatmul.mubr.msk.f32.gmra.mxu1 %vm244_vm1, %v207_v24 }
  0x3a   : > { %1387 = vmatprep.mubr.msk.f32.mxu0 %vm1671_vm2, %v1670_v1  ;;  %1468 = vmatprep.mubr.msk.f32.mxu1 %vm1671_vm2, %v1670_v1 }
  0x3d   : > { %1388 = vmatmul.mubr.msk.f32.gmra.mxu0 %vm244_vm1, %v181_v25  ;;  %1469 = vmatmul.mubr.msk.f32.gmra.mxu1 %vm244_vm1, %v208_v26 }
  0x3e   : > { %1390 = vmatprep.mubr.msk.f32.mxu0 %vm1671_vm2, %v1670_v1  ;;  %1471 = vmatprep.mubr.msk.f32.mxu1 %vm1671_vm2, %v1670_v1 }
  0x41   : > { %1391 = vmatmul.mubr.msk.f32.gmra.mxu0 %vm244_vm1, %v182_v27  ;;  %1472 = vmatmul.mubr.msk.f32.gmra.mxu1 %vm244_vm1, %v209_v28 }
  0x42   : > { %1393 = vmatprep.mubr.msk.f32.mxu0 %vm1671_vm2, %v1670_v1  ;;  %1474 = vmatprep.mubr.msk.f32.mxu1 %vm1671_vm2, %v1670_v1 }
  0x45   : > { %1394 = vmatmul.mubr.msk.f32.gmra.mxu0 %vm244_vm1, %v183_v29  ;;  %1475 = vmatmul.mubr.msk.f32.gmra.mxu1 %vm244_vm1, %v210_v30 }
  0x46   : > { %1396 = vmatprep.mubr.msk.f32.mxu0 %vm1671_vm2, %v1670_v1  ;;  %1477 = vmatprep.mubr.msk.f32.mxu1 %vm1671_vm2, %v1670_v1 }
  0x49   : > { %1397 = vmatmul.mubr.msk.f32.gmra.mxu0 %vm244_vm1, %v184_v31  ;;  %1478 = vmatmul.mubr.msk.f32.gmra.mxu1 %vm244_vm1, %v211_v32 }
  0x4a   : > { %1399 = vmatprep.mubr.msk.f32.mxu0 %vm1671_vm2, %v1670_v1  ;;  %1480 = vmatprep.mubr.msk.f32.mxu1 %vm1671_vm2, %v1670_v1 }
  0x4d   : > { %1400 = vmatmul.mubr.msk.f32.gmra.mxu0 %vm244_vm1, %v185_v33  ;;  %1481 = vmatmul.mubr.msk.f32.gmra.mxu1 %vm244_vm1, %v212_v34 }
  0x4e   : > { %1402 = vmatprep.mubr.msk.f32.mxu0 %vm1671_vm2, %v1670_v1  ;;  %1483 = vmatprep.mubr.msk.f32.mxu1 %vm1671_vm2, %v1670_v1 }
  0x51   : > { %1403 = vmatmul.mubr.msk.f32.gmra.mxu0 %vm244_vm1, %v186_v35  ;;  %1484 = vmatmul.mubr.msk.f32.gmra.mxu1 %vm244_vm1, %v213_v36 }
  0x52   : > { %1405 = vmatprep.mubr.msk.f32.mxu0 %vm1671_vm2, %v1670_v1  ;;  %1486 = vmatprep.mubr.msk.f32.mxu1 %vm1671_vm2, %v1670_v1 }
  0x55   : > { %1406 = vmatmul.mubr.msk.f32.gmra.mxu0 %vm244_vm1, %v187_v37  ;;  %1487 = vmatmul.mubr.msk.f32.gmra.mxu1 %vm244_vm1, %v214_v38 }
  0x56   : > { %1408 = vmatprep.mubr.msk.f32.mxu0 %vm1671_vm2, %v1670_v1  ;;  %1489 = vmatprep.mubr.msk.f32.mxu1 %vm1671_vm2, %v1670_v1 }
  0x59   : > { %1409 = vmatmul.mubr.msk.f32.gmra.mxu0 %vm244_vm1, %v188_v39  ;;  %1490 = vmatmul.mubr.msk.f32.gmra.mxu1 %vm244_vm1, %v215_v40 }
  0x5a   : > { %1411 = vmatprep.mubr.msk.f32.mxu0 %vm1671_vm2, %v1670_v1  ;;  %1492 = vmatprep.mubr.msk.f32.mxu1 %vm1671_vm2, %v1670_v1 }
  0x5d   : > { %1412 = vmatmul.mubr.msk.f32.gmra.mxu0 %vm244_vm1, %v189_v41  ;;  %1493 = vmatmul.mubr.msk.f32.gmra.mxu1 %vm244_vm1, %v216_v42 }
  0x5e   : > { %1414 = vmatprep.mubr.msk.f32.mxu0 %vm1671_vm2, %v1670_v1  ;;  %1495 = vmatprep.mubr.msk.f32.mxu1 %vm1671_vm2, %v1670_v1 }
  0x61   : > { %1415 = vmatmul.mubr.msk.f32.gmra.mxu0 %vm244_vm1, %v190_v43  ;;  %1496 = vmatmul.mubr.msk.f32.gmra.mxu1 %vm244_vm1, %v217_v44 }
  0x62   : > { %1417 = vmatprep.mubr.msk.f32.mxu0 %vm1671_vm2, %v1670_v1  ;;  %1498 = vmatprep.mubr.msk.f32.mxu1 %vm1671_vm2, %v1670_v1 }
  0x65   : > { %1418 = vmatmul.mubr.msk.f32.gmra.mxu0 %vm244_vm1, %v191_v45  ;;  %1499 = vmatmul.mubr.msk.f32.gmra.mxu1 %vm244_vm1, %v218_v46 }
  0x66   : > { %1420 = vmatprep.mubr.msk.f32.mxu0 %vm1671_vm2, %v1670_v1  ;;  %1501 = vmatprep.mubr.msk.f32.mxu1 %vm1671_vm2, %v1670_v1 }
  0x69   : > { %1421 = vmatmul.mubr.msk.f32.gmra.mxu0 %vm244_vm1, %v192_v47  ;;  %1502 = vmatmul.mubr.msk.f32.gmra.mxu1 %vm244_vm1, %v219_v48 }
  0x6a   : > { %1423 = vmatprep.mubr.msk.f32.mxu0 %vm1671_vm2, %v1670_v1  ;;  %1504 = vmatprep.mubr.msk.f32.mxu1 %vm1671_vm2, %v1670_v1 }
  0x6d   : > { %1424 = vmatmul.mubr.msk.f32.gmra.mxu0 %vm244_vm1, %v193_v49  ;;  %1505 = vmatmul.mubr.msk.f32.gmra.mxu1 %vm244_vm1, %v220_v50 }
  0x6e   : > { %1426 = vmatprep.mubr.msk.f32.mxu0 %vm1671_vm2, %v1670_v1  ;;  %1507 = vmatprep.mubr.msk.f32.mxu1 %vm1671_vm2, %v1670_v1 }
  0x71   : > { %1427 = vmatmul.mubr.msk.f32.gmra.mxu0 %vm244_vm1, %v194_v51  ;;  %1508 = vmatmul.mubr.msk.f32.gmra.mxu1 %vm244_vm1, %v221_v52 }
  0x72   : > { %1429 = vmatprep.mubr.msk.f32.mxu0 %vm1671_vm2, %v1670_v1  ;;  %1510 = vmatprep.mubr.msk.f32.mxu1 %vm1671_vm2, %v1670_v1 }
  0x75   : > { %1430 = vmatmul.mubr.msk.f32.gmra.mxu0 %vm244_vm1, %v195_v53  ;;  %1511 = vmatmul.mubr.msk.f32.gmra.mxu1 %vm244_vm1, %v222_v54 }
  0x76   : > { %1432 = vmatprep.mubr.msk.f32.mxu0 %vm1671_vm2, %v1670_v1  ;;  %1513 = vmatprep.mubr.msk.f32.mxu1 %vm1671_vm2, %v1670_v1 }
  0x79   : > { %1433 = vmatmul.mubr.msk.f32.gmra.mxu0 %vm244_vm1, %v196_v55  ;;  %1514 = vmatmul.mubr.msk.f32.gmra.mxu1 %vm244_vm1, %v223_v56 }
  0x7a   : > { %1435 = vmatprep.mubr.msk.f32.mxu0 %vm1671_vm2, %v1670_v1  ;;  %1516 = vmatprep.mubr.msk.f32.mxu1 %vm1671_vm2, %v1670_v1 }
  0x7d   : > { %1436 = vmatmul.mubr.msk.f32.gmra.mxu0 %vm244_vm1, %v197_v57  ;;  %1517 = vmatmul.mubr.msk.f32.gmra.mxu1 %vm244_vm1, %v224_v58 }
  0x7e   : > { %1438 = vmatprep.mubr.msk.f32.mxu0 %vm1671_vm2, %v1670_v1  ;;  %1519 = vmatprep.mubr.msk.f32.mxu1 %vm1671_vm2, %v1670_v1 }
  0x81   : > { %1439 = vmatmul.mubr.msk.f32.gmra.mxu0 %vm244_vm1, %v198_v59  ;;  %1520 = vmatmul.mubr.msk.f32.gmra.mxu1 %vm244_vm1, %v225_v60 }
  0x82   : > { %1441 = vmatprep.mubr.msk.f32.mxu0 %vm1671_vm2, %v1670_v1  ;;  %1522 = vmatprep.mubr.msk.f32.mxu1 %vm1671_vm2, %v1670_v1 }
  0x85   : > { %1442 = vmatmul.mubr.msk.f32.gmra.mxu0 %vm244_vm1, %v199_v61  ;;  %1523 = vmatmul.mubr.msk.f32.gmra.mxu1 %vm244_vm1, %v226_v62 }
  0x86   : > { %1444 = vmatprep.mubr.msk.f32.mxu0 %vm1671_vm2, %v1670_v1 }
  0x89   : > { %1445 = vmatmul.mubr.msk.f32.gmra.mxu0 %vm244_vm1, %v200_v63 }
  0xe1   : > { %v474_v2 = vpop.f32.mrf.mxu0  ;;  %v609_v3 = vpop.f32.mrf.mxu1 }
  0xe2   : > { %v1978_v4 = vadd.f32 %v1975_v0, %v474_v2  ;;  %v1981_v5 = vadd.f32 %v1975_v0, %v609_v3 }
  0xe3   : > { %v1368_v6 = vpop.f32.mrf.mxu0  ;;  %v1449_v7 = vpop.f32.mrf.mxu1 }
  0xe4   : > { %v791_v1 = vmin.f32 %v1978_v4, 0.0  ;;  %v818_v8 = vmin.f32 %v1981_v5, 0.0  ;;  %vm738_vm4 = vcmp.gt.f32.partialorder %v1978_v4, 0.0  ;;  %vm765_vm5 = vcmp.gt.f32.partialorder %v1981_v5, 0.0 }
  0xe5   : > { %v479_v9 = vpop.f32.mrf.mxu0  ;;  %v614_v10 = vpop.f32.mrf.mxu1 }
  0xe6   : > { %v844_v11 = vmul.f32 1.442695, %v791_v1  ;;  %v898_v12 = vmul.f32 1.442695, %v818_v8  ;;  %v1986_v13 = vadd.f32 %v1975_v0, %v479_v9  ;;  %v1989_v14 = vadd.f32 %v1975_v0, %v614_v10 }
  0xe7   : > { %v1371_v15 = vpop.f32.mrf.mxu0  ;;  %v1452_v16 = vpop.f32.mrf.mxu1 }
  0xe8   : > { %1555 = vpow2.f32 %v844_v11  ;;  %v792_v17 = vmin.f32 %v1986_v13, 0.0  ;;  %v819_v18 = vmin.f32 %v1989_v14, 0.0  ;;  %vm739_vm6 = vcmp.gt.f32.partialorder %v1986_v13, 0.0 }
  0xe9   : > { %1557 = vpow2.f32 %v898_v12  ;;  %v484_v19 = vpop.f32.mrf.mxu0  ;;  %v619_v20 = vpop.f32.mrf.mxu1  ;;  %vm766_vm7 = vcmp.gt.f32.partialorder %v1989_v14, 0.0 }
  0xea   : > { %v846_v21 = vmul.f32 1.442695, %v792_v17  ;;  %v1994_v22 = vadd.f32 %v1975_v0, %v484_v19  ;;  %v1997_v23 = vadd.f32 %v1975_v0, %v619_v20  ;;  %v900_v24 = vmul.f32 1.442695, %v819_v18 }
  0xeb   : > { %v1374_v25 = vpop.f32.mrf.mxu0  ;;  %v1455_v26 = vpop.f32.mrf.mxu1 }
  0xec   : > { %1559 = vpow2.f32 %v846_v21  ;;  %v793_v27 = vmin.f32 %v1994_v22, 0.0  ;;  %v820_v28 = vmin.f32 %v1997_v23, 0.0  ;;  %vm740_vm8 = vcmp.gt.f32.partialorder %v1994_v22, 0.0 }
  0xed   : > { %1561 = vpow2.f32 %v900_v24  ;;  %v489_v29 = vpop.f32.mrf.mxu0  ;;  %v624_v30 = vpop.f32.mrf.mxu1  ;;  %vm767_vm9 = vcmp.gt.f32.partialorder %v1997_v23, 0.0 }
  0xee   : > { %v848_v31 = vmul.f32 1.442695, %v793_v27  ;;  %v2002_v32 = vadd.f32 %v1975_v0, %v489_v29  ;;  %v2005_v33 = vadd.f32 %v1975_v0, %v624_v30  ;;  %v902_v34 = vmul.f32 1.442695, %v820_v28 }
  0xef   : > { %v1377_v35 = vpop.f32.mrf.mxu0  ;;  %v1458_v36 = vpop.f32.mrf.mxu1 }
  0xf0   : > { %1563 = vpow2.f32 %v848_v31  ;;  %v794_v37 = vmin.f32 %v2002_v32, 0.0  ;;  %v821_v38 = vmin.f32 %v2005_v33, 0.0  ;;  %vm741_vm10 = vcmp.gt.f32.partialorder %v2002_v32, 0.0 }
  0xf1   : > { %1565 = vpow2.f32 %v902_v34  ;;  %v494_v39 = vpop.f32.mrf.mxu0  ;;  %v629_v40 = vpop.f32.mrf.mxu1  ;;  %vm768_vm11 = vcmp.gt.f32.partialorder %v2005_v33, 0.0 }
  0xf2   : > { %v850_v41 = vmul.f32 1.442695, %v794_v37  ;;  %v2010_v42 = vadd.f32 %v1975_v0, %v494_v39  ;;  %v2013_v43 = vadd.f32 %v1975_v0, %v629_v40  ;;  %v904_v44 = vmul.f32 1.442695, %v821_v38 }
  0xf3   : > { %v1380_v45 = vpop.f32.mrf.mxu0  ;;  %v1461_v46 = vpop.f32.mrf.mxu1 }
  0xf4   : > { %1567 = vpow2.f32 %v850_v41  ;;  %v795_v47 = vmin.f32 %v2010_v42, 0.0  ;;  %v822_v49 = vmin.f32 %v2013_v43, 0.0  ;;  %vm742_vm12 = vcmp.gt.f32.partialorder %v2010_v42, 0.0 }
  0xf5   : > { %v1556_v48 = vpop.eup %1555  ;;  %1569 = vpow2.f32 %v904_v44  ;;  %v499_v50 = vpop.f32.mrf.mxu0  ;;  %vm769_vm13 = vcmp.gt.f32.partialorder %v2013_v43, 0.0 }
  0xf6   : > { %v634_v51 = vpop.f32.mrf.mxu1  ;;  %v1558_v52 = vpop.eup %1557  ;;  %v1228_v53 = vadd.f32 -1.0, %v1556_v48  ;;  %v852_v54 = vmul.f32 1.442695, %v795_v47  ;;  %v2025_v55 = vadd.f32 %v1975_v0, %v499_v50  ;;  %v906_v58 = vmul.f32 1.442695, %v822_v49 }
  0xf7   : > { %v2028_v56 = vadd.f32 %v1975_v0, %v634_v51  ;;  %v1255_v57 = vadd.f32 -1.0, %v1558_v52  ;;  %v1383_v59 = vpop.f32.mrf.mxu0 }
  0xf8   : > { %v1464_v60 = vpop.f32.mrf.mxu1  ;;  %v1003_v61 = vsel %vm738_vm4, %v1978_v4, %v1228_v53  ;;  %1571 = vpow2.f32 %v852_v54  ;;  %v796_v62 = vmin.f32 %v2025_v55, 0.0  ;;  %vm743_vm14 = vcmp.gt.f32.partialorder %v2025_v55, 0.0 }
  0xf9   : > { %v1560_v63 = vpop.eup %1559  ;;  %1057 = vst.msk [vmem:[%s2022_s17] sm:$0xff] %vm1056_vm3, %v1003_v61  ;;  %v1030_v2 = vsel %vm765_vm5, %v1981_v5, %v1255_v57  ;;  %1573 = vpow2.f32 %v906_v58  ;;  %v823_v3 = vmin.f32 %v2028_v56, 0.0  ;;  %v504_v6 = vpop.f32.mrf.mxu0  ;;  %vm770_vm15 = vcmp.gt.f32.partialorder %v2028_v56, 0.0 }
  0xfa   : > { %v639_v7 = vpop.f32.mrf.mxu1  ;;  %v1562_v1 = vpop.eup %1561  ;;  %1084 = vst.msk [vmem:[%s2022_s17 + $0xd8] sm:$0xff] %vm1056_vm3, %v1030_v2  ;;  %v1229_v4 = vadd.f32 -1.0, %v1560_v63  ;;  %v854_v8 = vmul.f32 1.442695, %v796_v62  ;;  %v2041_v9 = vadd.f32 %v1975_v0, %v504_v6 }
  0xfb   : > { %v2044_v10 = vadd.f32 %v1975_v0, %v639_v7  ;;  %v1256_v5 = vadd.f32 -1.0, %v1562_v1  ;;  %v908_v11 = vmul.f32 1.442695, %v823_v3  ;;  %v1386_v12 = vpop.f32.mrf.mxu0 }
  0xfc   : > { %v1467_v15 = vpop.f32.mrf.mxu1  ;;  %v1004_v16 = vsel %vm739_vm6, %v1986_v13, %v1229_v4  ;;  %1575 = vpow2.f32 %v854_v8  ;;  %v797_v17 = vmin.f32 %v2041_v9, 0.0  ;;  %vm744_vm0 = vcmp.gt.f32.partialorder %v2041_v9, 0.0 }
  0xfd   : > { %v1564_v18 = vpop.eup %1563  ;;  %1058 = vst.msk [vmem:[%s2022_s17 + $0x8] sm:$0xff] %vm1056_vm3, %v1004_v16  ;;  %v1031_v19 = vsel %vm766_vm7, %v1989_v14, %v1256_v5  ;;  %1577 = vpow2.f32 %v908_v11  ;;  %v824_v20 = vmin.f32 %v2044_v10, 0.0  ;;  %v509_v21 = vpop.f32.mrf.mxu0  ;;  %vm771_vm1 = vcmp.gt.f32.partialorder %v2044_v10, 0.0 }
  0xfe   : > { %v644_v24 = vpop.f32.mrf.mxu1  ;;  %v1566_v25 = vpop.eup %1565  ;;  %1085 = vst.msk [vmem:[%s2022_s17 + $0xe0] sm:$0xff] %vm1056_vm3, %v1031_v19  ;;  %v1230_v13 = vadd.f32 -1.0, %v1564_v18  ;;  %v856_v26 = vmul.f32 1.442695, %v797_v17  ;;  %v2057_v27 = vadd.f32 %v1975_v0, %v509_v21 }
  0xff   : > { %v2060_v28 = vadd.f32 %v1975_v0, %v644_v24  ;;  %v1257_v14 = vadd.f32 -1.0, %v1566_v25  ;;  %v910_v29 = vmul.f32 1.442695, %v824_v20  ;;  %v1389_v30 = vpop.f32.mrf.mxu0 }
 0x100   : > { %v1470_v31 = vpop.f32.mrf.mxu1  ;;  %v1005_v34 = vsel %vm740_vm8, %v1994_v22, %v1230_v13  ;;  %1579 = vpow2.f32 %v856_v26  ;;  %v798_v35 = vmin.f32 %v2057_v27, 0.0  ;;  %vm745_vm2 = vcmp.gt.f32.partialorder %v2057_v27, 0.0 }
 0x101   : > { %v1568_v36 = vpop.eup %1567  ;;  %1059 = vst.msk [vmem:[%s2022_s17 + $0x10] sm:$0xff] %vm1056_vm3, %v1005_v34  ;;  %v1032_v37 = vsel %vm767_vm9, %v1997_v23, %v1257_v14  ;;  %1581 = vpow2.f32 %v910_v29  ;;  %v825_v38 = vmin.f32 %v2060_v28, 0.0  ;;  %v514_v39 = vpop.f32.mrf.mxu0  ;;  %vm772_vm4 = vcmp.gt.f32.partialorder %v2060_v28, 0.0 }
 0x102   : > { %v649_v40 = vpop.f32.mrf.mxu1  ;;  %v1570_v41 = vpop.eup %1569  ;;  %1086 = vst.msk [vmem:[%s2022_s17 + $0xe8] sm:$0xff] %vm1056_vm3, %v1032_v37  ;;  %v1231_v22 = vadd.f32 -1.0, %v1568_v36  ;;  %v858_v44 = vmul.f32 1.442695, %v798_v35  ;;  %v2073_v45 = vadd.f32 %v1975_v0, %v514_v39 }
 0x103   : > { %v2076_v46 = vadd.f32 %v1975_v0, %v649_v40  ;;  %v1258_v23 = vadd.f32 -1.0, %v1570_v41  ;;  %v912_v47 = vmul.f32 1.442695, %v825_v38  ;;  %v1392_v48 = vpop.f32.mrf.mxu0 }
 0x104   : > { %v1473_v49 = vpop.f32.mrf.mxu1  ;;  %v1006_v50 = vsel %vm741_vm10, %v2002_v32, %v1231_v22  ;;  %1583 = vpow2.f32 %v858_v44  ;;  %v799_v51 = vmin.f32 %v2073_v45, 0.0  ;;  %vm746_vm5 = vcmp.gt.f32.partialorder %v2073_v45, 0.0 }
 0x105   : > { %v1572_v52 = vpop.eup %1571  ;;  %1060 = vst.msk [vmem:[%s2022_s17 + $0x18] sm:$0xff] %vm1056_vm3, %v1006_v50  ;;  %v1033_v53 = vsel %vm768_vm11, %v2005_v33, %v1258_v23  ;;  %1585 = vpow2.f32 %v912_v47  ;;  %v826_v54 = vmin.f32 %v2076_v46, 0.0  ;;  %v519_v57 = vpop.f32.mrf.mxu0  ;;  %vm773_vm6 = vcmp.gt.f32.partialorder %v2076_v46, 0.0 }
 0x106   : > { %v654_v58 = vpop.f32.mrf.mxu1  ;;  %v1574_v59 = vpop.eup %1573  ;;  %1087 = vst.msk [vmem:[%s2022_s17 + $0xf0] sm:$0xff] %vm1056_vm3, %v1033_v53  ;;  %v1232_v32 = vadd.f32 -1.0, %v1572_v52  ;;  %v860_v60 = vmul.f32 1.442695, %v799_v51  ;;  %v2089_v61 = vadd.f32 %v1975_v0, %v519_v57 }
 0x107   : > { %v2092_v62 = vadd.f32 %v1975_v0, %v654_v58  ;;  %v1259_v33 = vadd.f32 -1.0, %v1574_v59  ;;  %v914_v63 = vmul.f32 1.442695, %v826_v54  ;;  %v1395_v2 = vpop.f32.mrf.mxu0 }
 0x108   : > { %v1476_v3 = vpop.f32.mrf.mxu1  ;;  %v1007_v6 = vsel %vm742_vm12, %v2010_v42, %v1232_v32  ;;  %1587 = vpow2.f32 %v860_v60  ;;  %v800_v7 = vmin.f32 %v2089_v61, 0.0  ;;  %vm747_vm7 = vcmp.gt.f32.partialorder %v2089_v61, 0.0 }
 0x109   : > { %v1576_v1 = vpop.eup %1575  ;;  %1061 = vst.msk [vmem:[%s2022_s17 + $0x20] sm:$0xff] %vm1056_vm3, %v1007_v6  ;;  %v1034_v4 = vsel %vm769_vm13, %v2013_v43, %v1259_v33  ;;  %1589 = vpow2.f32 %v914_v63  ;;  %v827_v8 = vmin.f32 %v2092_v62, 0.0  ;;  %v524_v5 = vpop.f32.mrf.mxu0  ;;  %vm774_vm8 = vcmp.gt.f32.partialorder %v2092_v62, 0.0 }
 0x10a   : > { %v659_v11 = vpop.f32.mrf.mxu1  ;;  %v1578_v12 = vpop.eup %1577  ;;  %1088 = vst.msk [vmem:[%s2022_s17 + $0xf8] sm:$0xff] %vm1056_vm3, %v1034_v4  ;;  %v1233_v42 = vadd.f32 -1.0, %v1576_v1  ;;  %v862_v15 = vmul.f32 1.442695, %v800_v7  ;;  %v2105_v16 = vadd.f32 %v1975_v0, %v524_v5 }
 0x10b   : > { %v2108_v17 = vadd.f32 %v1975_v0, %v659_v11  ;;  %v1260_v43 = vadd.f32 -1.0, %v1578_v12  ;;  %v916_v18 = vmul.f32 1.442695, %v827_v8  ;;  %v1398_v19 = vpop.f32.mrf.mxu0 }
 0x10c   : > { %v1479_v20 = vpop.f32.mrf.mxu1  ;;  %v1008_v21 = vsel %vm743_vm14, %v2025_v55, %v1233_v42  ;;  %1591 = vpow2.f32 %v862_v15  ;;  %v801_v24 = vmin.f32 %v2105_v16, 0.0  ;;  %vm748_vm9 = vcmp.gt.f32.partialorder %v2105_v16, 0.0 }
 0x10d   : > { %v1580_v25 = vpop.eup %1579  ;;  %1062 = vst.msk [vmem:[%s2022_s17 + $0x28] sm:$0xff] %vm1056_vm3, %v1008_v21  ;;  %v1035_v13 = vsel %vm770_vm15, %v2028_v56, %v1260_v43  ;;  %1593 = vpow2.f32 %v916_v18  ;;  %v828_v26 = vmin.f32 %v2108_v17, 0.0  ;;  %v529_v14 = vpop.f32.mrf.mxu0  ;;  %vm775_vm10 = vcmp.gt.f32.partialorder %v2108_v17, 0.0 }
 0x10e   : > { %v664_v29 = vpop.f32.mrf.mxu1  ;;  %v1582_v30 = vpop.eup %1581  ;;  %1089 = vst.msk [vmem:[%s2022_s17 + $0x100] sm:$0xff] %vm1056_vm3, %v1035_v13  ;;  %v1234_v55 = vadd.f32 -1.0, %v1580_v25  ;;  %v864_v31 = vmul.f32 1.442695, %v801_v24  ;;  %v2121_v34 = vadd.f32 %v1975_v0, %v529_v14 }
 0x10f   : > { %v2124_v35 = vadd.f32 %v1975_v0, %v664_v29  ;;  %v1261_v56 = vadd.f32 -1.0, %v1582_v30  ;;  %v918_v36 = vmul.f32 1.442695, %v828_v26  ;;  %v1401_v37 = vpop.f32.mrf.mxu0 }
 0x110   : > { %v1482_v38 = vpop.f32.mrf.mxu1  ;;  %v1009_v39 = vsel %vm744_vm0, %v2041_v9, %v1234_v55  ;;  %1595 = vpow2.f32 %v864_v31  ;;  %v802_v40 = vmin.f32 %v2121_v34, 0.0  ;;  %vm749_vm11 = vcmp.gt.f32.partialorder %v2121_v34, 0.0 }
 0x111   : > { %v1584_v41 = vpop.eup %1583  ;;  %1063 = vst.msk [vmem:[%s2022_s17 + $0x30] sm:$0xff] %vm1056_vm3, %v1009_v39  ;;  %v1036_v22 = vsel %vm771_vm1, %v2044_v10, %v1261_v56  ;;  %1597 = vpow2.f32 %v918_v36  ;;  %v829_v44 = vmin.f32 %v2124_v35, 0.0  ;;  %v534_v23 = vpop.f32.mrf.mxu0  ;;  %vm776_vm12 = vcmp.gt.f32.partialorder %v2124_v35, 0.0 }
 0x112   : > { %v669_v47 = vpop.f32.mrf.mxu1  ;;  %v1586_v48 = vpop.eup %1585  ;;  %1090 = vst.msk [vmem:[%s2022_s17 + $0x108] sm:$0xff] %vm1056_vm3, %v1036_v22  ;;  %v1235_v9 = vadd.f32 -1.0, %v1584_v41  ;;  %v866_v49 = vmul.f32 1.442695, %v802_v40  ;;  %v2137_v50 = vadd.f32 %v1975_v0, %v534_v23 }
 0x113   : > { %v2140_v51 = vadd.f32 %v1975_v0, %v669_v47  ;;  %v1262_v10 = vadd.f32 -1.0, %v1586_v48  ;;  %v920_v52 = vmul.f32 1.442695, %v829_v44  ;;  %v1404_v53 = vpop.f32.mrf.mxu0 }
 0x114   : > { %v1485_v54 = vpop.f32.mrf.mxu1  ;;  %v1010_v57 = vsel %vm745_vm2, %v2057_v27, %v1235_v9  ;;  %1599 = vpow2.f32 %v866_v49  ;;  %v803_v58 = vmin.f32 %v2137_v50, 0.0  ;;  %vm750_vm13 = vcmp.gt.f32.partialorder %v2137_v50, 0.0 }
 0x115   : > { %v1588_v59 = vpop.eup %1587  ;;  %1064 = vst.msk [vmem:[%s2022_s17 + $0x38] sm:$0xff] %vm1056_vm3, %v1010_v57  ;;  %v1037_v32 = vsel %vm772_vm4, %v2060_v28, %v1262_v10  ;;  %1601 = vpow2.f32 %v920_v52  ;;  %v830_v60 = vmin.f32 %v2140_v51, 0.0  ;;  %v539_v33 = vpop.f32.mrf.mxu0  ;;  %vm777_vm14 = vcmp.gt.f32.partialorder %v2140_v51, 0.0 }
 0x116   : > { %v674_v63 = vpop.f32.mrf.mxu1  ;;  %v1590_v2 = vpop.eup %1589  ;;  %1091 = vst.msk [vmem:[%s2022_s17 + $0x110] sm:$0xff] %vm1056_vm3, %v1037_v32  ;;  %v1236_v27 = vadd.f32 -1.0, %v1588_v59  ;;  %v868_v3 = vmul.f32 1.442695, %v803_v58  ;;  %v2153_v6 = vadd.f32 %v1975_v0, %v539_v33 }
 0x117   : > { %v2156_v7 = vadd.f32 %v1975_v0, %v674_v63  ;;  %v1263_v28 = vadd.f32 -1.0, %v1590_v2  ;;  %v922_v1 = vmul.f32 1.442695, %v830_v60  ;;  %v1407_v4 = vpop.f32.mrf.mxu0 }
 0x118   : > { %v1488_v8 = vpop.f32.mrf.mxu1  ;;  %v1011_v5 = vsel %vm746_vm5, %v2073_v45, %v1236_v27  ;;  %1603 = vpow2.f32 %v868_v3  ;;  %v804_v11 = vmin.f32 %v2153_v6, 0.0  ;;  %vm751_vm15 = vcmp.gt.f32.partialorder %v2153_v6, 0.0 }
 0x119   : > { %v1592_v12 = vpop.eup %1591  ;;  %1065 = vst.msk [vmem:[%s2022_s17 + $0x40] sm:$0xff] %vm1056_vm3, %v1011_v5  ;;  %v1038_v42 = vsel %vm773_vm6, %v2076_v46, %v1263_v28  ;;  %1605 = vpow2.f32 %v922_v1  ;;  %v831_v15 = vmin.f32 %v2156_v7, 0.0  ;;  %v544_v43 = vpop.f32.mrf.mxu0  ;;  %vm778_vm0 = vcmp.gt.f32.partialorder %v2156_v7, 0.0 }
 0x11a   : > { %v679_v18 = vpop.f32.mrf.mxu1  ;;  %v1594_v19 = vpop.eup %1593  ;;  %1092 = vst.msk [vmem:[%s2022_s17 + $0x118] sm:$0xff] %vm1056_vm3, %v1038_v42  ;;  %v1237_v45 = vadd.f32 -1.0, %v1592_v12  ;;  %v870_v20 = vmul.f32 1.442695, %v804_v11  ;;  %v2169_v21 = vadd.f32 %v1975_v0, %v544_v43 }
 0x11b   : > { %v2172_v24 = vadd.f32 %v1975_v0, %v679_v18  ;;  %v1264_v46 = vadd.f32 -1.0, %v1594_v19  ;;  %v924_v25 = vmul.f32 1.442695, %v831_v15  ;;  %v1410_v13 = vpop.f32.mrf.mxu0 }
 0x11c   : > { %v1491_v26 = vpop.f32.mrf.mxu1  ;;  %v1012_v14 = vsel %vm747_vm7, %v2089_v61, %v1237_v45  ;;  %1607 = vpow2.f32 %v870_v20  ;;  %v805_v29 = vmin.f32 %v2169_v21, 0.0  ;;  %vm752_vm1 = vcmp.gt.f32.partialorder %v2169_v21, 0.0 }
 0x11d   : > { %v1596_v30 = vpop.eup %1595  ;;  %1066 = vst.msk [vmem:[%s2022_s17 + $0x48] sm:$0xff] %vm1056_vm3, %v1012_v14  ;;  %v1039_v55 = vsel %vm774_vm8, %v2092_v62, %v1264_v46  ;;  %1609 = vpow2.f32 %v924_v25  ;;  %v832_v31 = vmin.f32 %v2172_v24, 0.0  ;;  %v549_v56 = vpop.f32.mrf.mxu0  ;;  %vm779_vm2 = vcmp.gt.f32.partialorder %v2172_v24, 0.0 }
 0x11e   : > { %v684_v36 = vpop.f32.mrf.mxu1  ;;  %v1598_v37 = vpop.eup %1597  ;;  %1093 = vst.msk [vmem:[%s2022_s17 + $0x120] sm:$0xff] %vm1056_vm3, %v1039_v55  ;;  %v1238_v61 = vadd.f32 -1.0, %v1596_v30  ;;  %v872_v38 = vmul.f32 1.442695, %v805_v29  ;;  %v2185_v39 = vadd.f32 %v1975_v0, %v549_v56 }
 0x11f   : > { %v2188_v40 = vadd.f32 %v1975_v0, %v684_v36  ;;  %v1265_v62 = vadd.f32 -1.0, %v1598_v37  ;;  %v926_v41 = vmul.f32 1.442695, %v832_v31  ;;  %v1413_v22 = vpop.f32.mrf.mxu0 }
 0x120   : > { %v1494_v44 = vpop.f32.mrf.mxu1  ;;  %v1013_v23 = vsel %vm748_vm9, %v2105_v16, %v1238_v61  ;;  %1611 = vpow2.f32 %v872_v38  ;;  %v806_v47 = vmin.f32 %v2185_v39, 0.0  ;;  %vm753_vm4 = vcmp.gt.f32.partialorder %v2185_v39, 0.0 }
 0x121   : > { %v1600_v48 = vpop.eup %1599  ;;  %1067 = vst.msk [vmem:[%s2022_s17 + $0x50] sm:$0xff] %vm1056_vm3, %v1013_v23  ;;  %v1040_v9 = vsel %vm775_vm10, %v2108_v17, %v1265_v62  ;;  %1613 = vpow2.f32 %v926_v41  ;;  %v833_v49 = vmin.f32 %v2188_v40, 0.0  ;;  %v554_v10 = vpop.f32.mrf.mxu0  ;;  %vm780_vm5 = vcmp.gt.f32.partialorder %v2188_v40, 0.0 }
 0x122   : > { %v689_v52 = vpop.f32.mrf.mxu1  ;;  %v1602_v53 = vpop.eup %1601  ;;  %1094 = vst.msk [vmem:[%s2022_s17 + $0x128] sm:$0xff] %vm1056_vm3, %v1040_v9  ;;  %v1239_v16 = vadd.f32 -1.0, %v1600_v48  ;;  %v874_v54 = vmul.f32 1.442695, %v806_v47  ;;  %v2201_v57 = vadd.f32 %v1975_v0, %v554_v10 }
 0x123   : > { %v2204_v58 = vadd.f32 %v1975_v0, %v689_v52  ;;  %v1266_v17 = vadd.f32 -1.0, %v1602_v53  ;;  %v928_v59 = vmul.f32 1.442695, %v833_v49  ;;  %v1416_v32 = vpop.f32.mrf.mxu0 }
 0x124   : > { %v1497_v60 = vpop.f32.mrf.mxu1  ;;  %v1014_v33 = vsel %vm749_vm11, %v2121_v34, %v1239_v16  ;;  %1615 = vpow2.f32 %v874_v54  ;;  %v807_v63 = vmin.f32 %v2201_v57, 0.0  ;;  %vm754_vm6 = vcmp.gt.f32.partialorder %v2201_v57, 0.0 }
 0x125   : > { %v1604_v2 = vpop.eup %1603  ;;  %1068 = vst.msk [vmem:[%s2022_s17 + $0x58] sm:$0xff] %vm1056_vm3, %v1014_v33  ;;  %v1041_v27 = vsel %vm776_vm12, %v2124_v35, %v1266_v17  ;;  %1617 = vpow2.f32 %v928_v59  ;;  %v834_v3 = vmin.f32 %v2204_v58, 0.0  ;;  %v559_v28 = vpop.f32.mrf.mxu0  ;;  %vm781_vm7 = vcmp.gt.f32.partialorder %v2204_v58, 0.0 }
 0x126   : > { %v694_v1 = vpop.f32.mrf.mxu1  ;;  %v1606_v4 = vpop.eup %1605  ;;  %1095 = vst.msk [vmem:[%s2022_s17 + $0x130] sm:$0xff] %vm1056_vm3, %v1041_v27  ;;  %v1240_v34 = vadd.f32 -1.0, %v1604_v2  ;;  %v876_v8 = vmul.f32 1.442695, %v807_v63  ;;  %v2217_v5 = vadd.f32 %v1975_v0, %v559_v28 }
 0x127   : > { %v2220_v11 = vadd.f32 %v1975_v0, %v694_v1  ;;  %v1267_v35 = vadd.f32 -1.0, %v1606_v4  ;;  %v930_v12 = vmul.f32 1.442695, %v834_v3  ;;  %v1419_v42 = vpop.f32.mrf.mxu0 }
 0x128   : > { %v1500_v15 = vpop.f32.mrf.mxu1  ;;  %v1015_v43 = vsel %vm750_vm13, %v2137_v50, %v1240_v34  ;;  %1619 = vpow2.f32 %v876_v8  ;;  %v808_v18 = vmin.f32 %v2217_v5, 0.0  ;;  %vm755_vm8 = vcmp.gt.f32.partialorder %v2217_v5, 0.0 }
 0x129   : > { %v1608_v19 = vpop.eup %1607  ;;  %1069 = vst.msk [vmem:[%s2022_s17 + $0x60] sm:$0xff] %vm1056_vm3, %v1015_v43  ;;  %v1042_v45 = vsel %vm777_vm14, %v2140_v51, %v1267_v35  ;;  %1621 = vpow2.f32 %v930_v12  ;;  %v835_v20 = vmin.f32 %v2220_v11, 0.0  ;;  %v564_v46 = vpop.f32.mrf.mxu0  ;;  %vm782_vm9 = vcmp.gt.f32.partialorder %v2220_v11, 0.0 }
 0x12a   : > { %v699_v25 = vpop.f32.mrf.mxu1  ;;  %v1610_v13 = vpop.eup %1609  ;;  %1096 = vst.msk [vmem:[%s2022_s17 + $0x138] sm:$0xff] %vm1056_vm3, %v1042_v45  ;;  %v1241_v50 = vadd.f32 -1.0, %v1608_v19  ;;  %v878_v26 = vmul.f32 1.442695, %v808_v18  ;;  %v2233_v14 = vadd.f32 %v1975_v0, %v564_v46 }
 0x12b   : > { %v2236_v29 = vadd.f32 %v1975_v0, %v699_v25  ;;  %v1268_v51 = vadd.f32 -1.0, %v1610_v13  ;;  %v932_v30 = vmul.f32 1.442695, %v835_v20  ;;  %v1422_v55 = vpop.f32.mrf.mxu0 }
 0x12c   : > { %v1503_v31 = vpop.f32.mrf.mxu1  ;;  %v1016_v56 = vsel %vm751_vm15, %v2153_v6, %v1241_v50  ;;  %1623 = vpow2.f32 %v878_v26  ;;  %v809_v36 = vmin.f32 %v2233_v14, 0.0  ;;  %vm756_vm10 = vcmp.gt.f32.partialorder %v2233_v14, 0.0 }
 0x12d   : > { %v1612_v37 = vpop.eup %1611  ;;  %1070 = vst.msk [vmem:[%s2022_s17 + $0x68] sm:$0xff] %vm1056_vm3, %v1016_v56  ;;  %v1043_v61 = vsel %vm778_vm0, %v2156_v7, %v1268_v51  ;;  %1625 = vpow2.f32 %v932_v30  ;;  %v836_v38 = vmin.f32 %v2236_v29, 0.0  ;;  %v569_v62 = vpop.f32.mrf.mxu0  ;;  %vm783_vm11 = vcmp.gt.f32.partialorder %v2236_v29, 0.0 }
 0x12e   : > { %v704_v41 = vpop.f32.mrf.mxu1  ;;  %v1614_v22 = vpop.eup %1613  ;;  %1097 = vst.msk [vmem:[%s2022_s17 + $0x140] sm:$0xff] %vm1056_vm3, %v1043_v61  ;;  %v1242_v6 = vadd.f32 -1.0, %v1612_v37  ;;  %v880_v44 = vmul.f32 1.442695, %v809_v36  ;;  %v2249_v23 = vadd.f32 %v1975_v0, %v569_v62 }
 0x12f   : > { %v2252_v47 = vadd.f32 %v1975_v0, %v704_v41  ;;  %v1269_v7 = vadd.f32 -1.0, %v1614_v22  ;;  %v934_v48 = vmul.f32 1.442695, %v836_v38  ;;  %v1425_v9 = vpop.f32.mrf.mxu0 }
 0x130   : > { %v1506_v49 = vpop.f32.mrf.mxu1  ;;  %v1017_v10 = vsel %vm752_vm1, %v2169_v21, %v1242_v6  ;;  %1627 = vpow2.f32 %v880_v44  ;;  %v810_v52 = vmin.f32 %v2249_v23, 0.0  ;;  %vm757_vm12 = vcmp.gt.f32.partialorder %v2249_v23, 0.0 }
 0x131   : > { %v1616_v53 = vpop.eup %1615  ;;  %1071 = vst.msk [vmem:[%s2022_s17 + $0x70] sm:$0xff] %vm1056_vm3, %v1017_v10  ;;  %v1044_v16 = vsel %vm779_vm2, %v2172_v24, %v1269_v7  ;;  %1629 = vpow2.f32 %v934_v48  ;;  %v837_v54 = vmin.f32 %v2252_v47, 0.0  ;;  %v574_v17 = vpop.f32.mrf.mxu0  ;;  %vm784_vm13 = vcmp.gt.f32.partialorder %v2252_v47, 0.0 }
 0x132   : > { %v709_v59 = vpop.f32.mrf.mxu1  ;;  %v1618_v32 = vpop.eup %1617  ;;  %1098 = vst.msk [vmem:[%s2022_s17 + $0x148] sm:$0xff] %vm1056_vm3, %v1044_v16  ;;  %v1243_v21 = vadd.f32 -1.0, %v1616_v53  ;;  %v882_v60 = vmul.f32 1.442695, %v810_v52  ;;  %v2265_v33 = vadd.f32 %v1975_v0, %v574_v17 }
 0x133   : > { %v2268_v63 = vadd.f32 %v1975_v0, %v709_v59  ;;  %v1270_v24 = vadd.f32 -1.0, %v1618_v32  ;;  %v936_v2 = vmul.f32 1.442695, %v837_v54  ;;  %v1428_v27 = vpop.f32.mrf.mxu0 }
 0x134   : > { %v1509_v3 = vpop.f32.mrf.mxu1  ;;  %v1018_v28 = vsel %vm753_vm4, %v2185_v39, %v1243_v21  ;;  %1631 = vpow2.f32 %v882_v60  ;;  %v811_v1 = vmin.f32 %v2265_v33, 0.0  ;;  %vm758_vm14 = vcmp.gt.f32.partialorder %v2265_v33, 0.0 }
 0x135   : > { %v1620_v4 = vpop.eup %1619  ;;  %1072 = vst.msk [vmem:[%s2022_s17 + $0x78] sm:$0xff] %vm1056_vm3, %v1018_v28  ;;  %v1045_v34 = vsel %vm780_vm5, %v2188_v40, %v1270_v24  ;;  %1633 = vpow2.f32 %v936_v2  ;;  %v838_v8 = vmin.f32 %v2268_v63, 0.0  ;;  %v579_v35 = vpop.f32.mrf.mxu0  ;;  %vm785_vm15 = vcmp.gt.f32.partialorder %v2268_v63, 0.0 }
 0x136   : > { %v714_v12 = vpop.f32.mrf.mxu1  ;;  %v1622_v42 = vpop.eup %1621  ;;  %1099 = vst.msk [vmem:[%s2022_s17 + $0x150] sm:$0xff] %vm1056_vm3, %v1045_v34  ;;  %v1244_v39 = vadd.f32 -1.0, %v1620_v4  ;;  %v884_v15 = vmul.f32 1.442695, %v811_v1  ;;  %v2281_v43 = vadd.f32 %v1975_v0, %v579_v35 }
 0x137   : > { %v2284_v18 = vadd.f32 %v1975_v0, %v714_v12  ;;  %v1271_v40 = vadd.f32 -1.0, %v1622_v42  ;;  %v938_v19 = vmul.f32 1.442695, %v838_v8  ;;  %v1431_v45 = vpop.f32.mrf.mxu0 }
 0x138   : > { %v1512_v20 = vpop.f32.mrf.mxu1  ;;  %v1019_v46 = vsel %vm754_vm6, %v2201_v57, %v1244_v39  ;;  %1635 = vpow2.f32 %v884_v15  ;;  %v812_v25 = vmin.f32 %v2281_v43, 0.0  ;;  %vm759_vm0 = vcmp.gt.f32.partialorder %v2281_v43, 0.0 }
 0x139   : > { %v1624_v13 = vpop.eup %1623  ;;  %1073 = vst.msk [vmem:[%s2022_s17 + $0x80] sm:$0xff] %vm1056_vm3, %v1019_v46  ;;  %v1046_v50 = vsel %vm781_vm7, %v2204_v58, %v1271_v40  ;;  %1637 = vpow2.f32 %v938_v19  ;;  %v839_v26 = vmin.f32 %v2284_v18, 0.0  ;;  %v584_v51 = vpop.f32.mrf.mxu0  ;;  %vm786_vm1 = vcmp.gt.f32.partialorder %v2284_v18, 0.0 }
 0x13a   : > { %v719_v30 = vpop.f32.mrf.mxu1  ;;  %v1626_v55 = vpop.eup %1625  ;;  %1100 = vst.msk [vmem:[%s2022_s17 + $0x158] sm:$0xff] %vm1056_vm3, %v1046_v50  ;;  %v1245_v57 = vadd.f32 -1.0, %v1624_v13  ;;  %v886_v31 = vmul.f32 1.442695, %v812_v25  ;;  %v2297_v56 = vadd.f32 %v1975_v0, %v584_v51 }
 0x13b   : > { %v2300_v36 = vadd.f32 %v1975_v0, %v719_v30  ;;  %v1272_v58 = vadd.f32 -1.0, %v1626_v55  ;;  %v940_v37 = vmul.f32 1.442695, %v839_v26  ;;  %v1434_v61 = vpop.f32.mrf.mxu0 }
 0x13c   : > { %v1515_v38 = vpop.f32.mrf.mxu1  ;;  %v1020_v62 = vsel %vm755_vm8, %v2217_v5, %v1245_v57  ;;  %1639 = vpow2.f32 %v886_v31  ;;  %v813_v41 = vmin.f32 %v2297_v56, 0.0  ;;  %v1661_v61 = vld [vmem:[%s2410_s2] ss:$0 sm:$0xff]  ;;  %vm760_vm2 = vcmp.gt.f32.partialorder %v2297_v56, 0.0 }
 0x13d   : > { %v1628_v22 = vpop.eup %1627  ;;  %1074 = vst.msk [vmem:[%s2022_s17 + $0x88] sm:$0xff] %vm1056_vm3, %v1020_v62  ;;  %v1047_v6 = vsel %vm782_vm9, %v2220_v11, %v1272_v58  ;;  %1641 = vpow2.f32 %v940_v37  ;;  %v840_v44 = vmin.f32 %v2300_v36, 0.0  ;;  %v589_v7 = vpop.f32.mrf.mxu0  ;;  %vm787_vm4 = vcmp.gt.f32.partialorder %v2300_v36, 0.0 }
 0x13e   : > { %v724_v48 = vpop.f32.mrf.mxu1  ;;  %v1630_v9 = vpop.eup %1629  ;;  %1101 = vst.msk [vmem:[%s2022_s17 + $0x160] sm:$0xff] %vm1056_vm3, %v1047_v6  ;;  %v1246_v5 = vadd.f32 -1.0, %v1628_v22  ;;  %v888_v49 = vmul.f32 1.442695, %v813_v41  ;;  %v2313_v10 = vadd.f32 %v1975_v0, %v589_v7 }
 0x13f   : > { %v2316_v52 = vadd.f32 %v1975_v0, %v724_v48  ;;  %v1273_v11 = vadd.f32 -1.0, %v1630_v9  ;;  %v942_v53 = vmul.f32 1.442695, %v840_v44  ;;  %v1437_v16 = vpop.f32.mrf.mxu0 }
 0x140   : > { %v1518_v54 = vpop.f32.mrf.mxu1  ;;  %v1021_v17 = vsel %vm756_vm10, %v2233_v14, %v1246_v5  ;;  %1643 = vpow2.f32 %v888_v49  ;;  %v814_v59 = vmin.f32 %v2313_v10, 0.0  ;;  %vm761_vm5 = vcmp.gt.f32.partialorder %v2313_v10, 0.0 }
 0x141   : > { %v1632_v32 = vpop.eup %1631  ;;  %1075 = vst.msk [vmem:[%s2022_s17 + $0x90] sm:$0xff] %vm1056_vm3, %v1021_v17  ;;  %v1048_v21 = vsel %vm783_vm11, %v2236_v29, %v1273_v11  ;;  %1645 = vpow2.f32 %v942_v53  ;;  %v841_v60 = vmin.f32 %v2316_v52, 0.0  ;;  %v594_v24 = vpop.f32.mrf.mxu0  ;;  %vm788_vm6 = vcmp.gt.f32.partialorder %v2316_v52, 0.0 }
 0x142   : > { %v729_v2 = vpop.f32.mrf.mxu1  ;;  %v1634_v27 = vpop.eup %1633  ;;  %1102 = vst.msk [vmem:[%s2022_s17 + $0x168] sm:$0xff] %vm1056_vm3, %v1048_v21  ;;  %v1247_v14 = vadd.f32 -1.0, %v1632_v32  ;;  %v890_v3 = vmul.f32 1.442695, %v814_v59  ;;  %v2329_v28 = vadd.f32 %v1975_v0, %v594_v24 }
 0x143   : > { %v2332_v1 = vadd.f32 %v1975_v0, %v729_v2  ;;  %v1274_v29 = vadd.f32 -1.0, %v1634_v27  ;;  %v944_v4 = vmul.f32 1.442695, %v841_v60  ;;  %v1440_v34 = vpop.f32.mrf.mxu0 }
 0x144   : > { %v1521_v8 = vpop.f32.mrf.mxu1  ;;  %v1022_v35 = vsel %vm757_vm12, %v2249_v23, %v1247_v14  ;;  %1647 = vpow2.f32 %v890_v3  ;;  %v815_v12 = vmin.f32 %v2329_v28, 0.0  ;;  %vm762_vm7 = vcmp.gt.f32.partialorder %v2329_v28, 0.0 }
 0x145   : > { %v1636_v42 = vpop.eup %1635  ;;  %1076 = vst.msk [vmem:[%s2022_s17 + $0x98] sm:$0xff] %vm1056_vm3, %v1022_v35  ;;  %v1049_v39 = vsel %vm784_vm13, %v2252_v47, %v1274_v29  ;;  %1649 = vpow2.f32 %v944_v4  ;;  %v842_v15 = vmin.f32 %v2332_v1, 0.0  ;;  %v599_v40 = vpop.f32.mrf.mxu0  ;;  %vm789_vm8 = vcmp.gt.f32.partialorder %v2332_v1, 0.0 }
 0x146   : > { %v734_v19 = vpop.f32.mrf.mxu1  ;;  %v1638_v45 = vpop.eup %1637  ;;  %1103 = vst.msk [vmem:[%s2022_s17 + $0x170] sm:$0xff] %vm1056_vm3, %v1049_v39  ;;  %v1248_v23 = vadd.f32 -1.0, %v1636_v42  ;;  %v892_v20 = vmul.f32 1.442695, %v815_v12  ;;  %v2345_v46 = vadd.f32 %v1975_v0, %v599_v40 }
 0x147   : > { %v2348_v25 = vadd.f32 %v1975_v0, %v734_v19  ;;  %v1275_v47 = vadd.f32 -1.0, %v1638_v45  ;;  %v946_v13 = vmul.f32 1.442695, %v842_v15  ;;  %v1443_v50 = vpop.f32.mrf.mxu0 }
 0x148   : > { %v1524_v26 = vpop.f32.mrf.mxu1  ;;  %v1023_v51 = vsel %vm758_vm14, %v2265_v33, %v1248_v23  ;;  %1651 = vpow2.f32 %v892_v20  ;;  %v816_v30 = vmin.f32 %v2345_v46, 0.0  ;;  %vm763_vm9 = vcmp.gt.f32.partialorder %v2345_v46, 0.0 }
 0x149   : > { %v1640_v55 = vpop.eup %1639  ;;  %1077 = vst.msk [vmem:[%s2022_s17 + $0xa0] sm:$0xff] %vm1056_vm3, %v1023_v51  ;;  %v1050_v0 = vsel %vm785_vm15, %v2268_v63, %v1275_v47  ;;  %1653 = vpow2.f32 %v946_v13  ;;  %v843_v57 = vmin.f32 %v2348_v25, 0.0  ;;  %v604_v31 = vpop.f32.mrf.mxu0  ;;  %vm790_vm10 = vcmp.gt.f32.partialorder %v2348_v25, 0.0 }
 0x14a   : > { %v1642_v58 = vpop.eup %1641  ;;  %1104 = vst.msk [vmem:[%s2022_s17 + $0x178] sm:$0xff] %vm1056_vm3, %v1050_v0  ;;  %v1249_v37 = vadd.f32 -1.0, %v1640_v55  ;;  %v894_v33 = vmul.f32 1.442695, %v816_v30  ;;  %v605_v38 = vadd.f32 %v1661_v61, %v604_v31 }
 0x14b   : > { %v1276_v62 = vadd.f32 -1.0, %v1642_v58  ;;  %v948_v63 = vmul.f32 1.442695, %v843_v57  ;;  %v1446_v41 = vpop.f32.mrf.mxu0 }
 0x14c   : > { %v1024_v22 = vsel %vm759_vm0, %v2281_v43, %v1249_v37  ;;  %1655 = vpow2.f32 %v894_v33  ;;  %v817_v6 = vmin.f32 %v605_v38, 0.0  ;;  %vm764_vm11 = vcmp.gt.f32.partialorder %v605_v38, 0.0 }
 0x14d   : > { %v1644_v44 = vpop.eup %1643  ;;  %1078 = vst.msk [vmem:[%s2022_s17 + $0xa8] sm:$0xff] %vm1056_vm3, %v1024_v22  ;;  %v1051_v7 = vsel %vm786_vm1, %v2284_v18, %v1276_v62  ;;  %1657 = vpow2.f32 %v948_v63 }
 0x14e   : > { %v1646_v48 = vpop.eup %1645  ;;  %1105 = vst.msk [vmem:[%s2022_s17 + $0x180] sm:$0xff] %vm1056_vm3, %v1051_v7  ;;  %v1250_v9 = vadd.f32 -1.0, %v1644_v44  ;;  %v896_v5 = vmul.f32 1.442695, %v817_v6 }
 0x14f   : > { %v1277_v43 = vadd.f32 -1.0, %v1646_v48 }
 0x150   : > { %v1025_v49 = vsel %vm760_vm2, %v2297_v56, %v1250_v9  ;;  %1659 = vpow2.f32 %v896_v5 }
 0x151   : > { %v1648_v11 = vpop.eup %1647  ;;  %1079 = vst.msk [vmem:[%s2022_s17 + $0xb0] sm:$0xff] %vm1056_vm3, %v1025_v49  ;;  %v1052_v18 = vsel %vm787_vm4, %v2300_v36, %v1277_v43 }
 0x152   : > { %v1650_v53 = vpop.eup %1649  ;;  %1106 = vst.msk [vmem:[%s2022_s17 + $0x188] sm:$0xff] %vm1056_vm3, %v1052_v18  ;;  %v1251_v16 = vadd.f32 -1.0, %v1648_v11 }
 0x153   : > { %v1278_v54 = vadd.f32 -1.0, %v1650_v53 }
 0x154   : > { %v1026_v17 = vsel %vm761_vm5, %v2313_v10, %v1251_v16 }
 0x155   : > { %v1652_v56 = vpop.eup %1651  ;;  %1080 = vst.msk [vmem:[%s2022_s17 + $0xb8] sm:$0xff] %vm1056_vm3, %v1026_v17  ;;  %v1053_v59 = vsel %vm788_vm6, %v2316_v52, %v1278_v54 }
 0x156   : > { %v1654_v32 = vpop.eup %1653  ;;  %1107 = vst.msk [vmem:[%s2022_s17 + $0x190] sm:$0xff] %vm1056_vm3, %v1053_v59  ;;  %v1252_v36 = vadd.f32 -1.0, %v1652_v56 }
 0x157   : > { %v1279_v21 = vadd.f32 -1.0, %v1654_v32 }
 0x158   : > { %v1027_v60 = vsel %vm762_vm7, %v2329_v28, %v1252_v36 }
 0x159   : > { %v1656_v10 = vpop.eup %1655  ;;  %1081 = vst.msk [vmem:[%s2022_s17 + $0xc0] sm:$0xff] %vm1056_vm3, %v1027_v60  ;;  %v1054_v24 = vsel %vm789_vm8, %v2332_v1, %v1279_v21 }
 0x15a   : > { %v1658_v52 = vpop.eup %1657  ;;  %1108 = vst.msk [vmem:[%s2022_s17 + $0x198] sm:$0xff] %vm1056_vm3, %v1054_v24  ;;  %v1253_v2 = vadd.f32 -1.0, %v1656_v10 }
 0x15b   : > { %v1280_v27 = vadd.f32 -1.0, %v1658_v52 }
 0x15c   : > { %v1028_v14 = vsel %vm763_vm9, %v2345_v46, %v1253_v2 }
 0x15d   : > { %v1660_v3 = vpop.eup %1659  ;;  %1082 = vst.msk [vmem:[%s2022_s17 + $0xc8] sm:$0xff] %vm1056_vm3, %v1028_v14  ;;  %v1055_v28 = vsel %vm790_vm10, %v2348_v25, %v1280_v27 }
 0x15e   : > { %1109 = vst.msk [vmem:[%s2022_s17 + $0x1a0] sm:$0xff] %vm1056_vm3, %v1055_v28  ;;  %v1254_v29 = vadd.f32 -1.0, %v1660_v3 }
 0x160   : > { %v1029_v1 = vsel %vm764_vm11, %v605_v38, %v1254_v29 }
 0x161   : > { %1083 = vst.msk [vmem:[%s2022_s17 + $0xd0] sm:$0xff] %vm1056_vm3, %v1029_v1 }
 0x162 PF: > { %s13_s12 = sadd.s32 1, %s1668_s12  }
 0x163   : > { %p10_p4 = scmp.ge.s32.totalorder %s13_s12, 6  }
 0x165   :  { %12 = sbr.rel (!%p10_p4) target bundleno = 1 (0x1), region = 62 }

// kernel: cnn_actor_forward.5
= control target key start
LH: loop header
LB: loop body
LE: loop exit
PB: predicated region body
PF: predicated region fallthrough
CT: control target
= control target key end

     0   :  { %v2032_v0 = vmov 0.0   ;;  %vm2033_vm0 = vmmov 0   ;;  %vm311_vm1 = vcmask 719872   ;;  %vm1539_vm2 = vcmask 293888   ;;  %s3704_s1 = inlined_call_operand.vmem [shape: f32[600,36], index: 1, kind: input, shape index: {}]   ;;  %s3705_s0 = inlined_call_operand.vmem [shape: f32[344,600], index: 0, kind: input, shape index: {}]   ;;  %s3706_s2 = inlined_call_operand.vmem [shape: f32[1,36], index: 2, kind: input, shape index: {}]   ;;  %s3707_s3 = inlined_call_operand.vmem [shape: f32[344,36], index: 3, kind: output, shape index: {}]  }
   0x1   :  { %441 = vmatprep.subr.mxu0 %v2032_v0  ;;  %1879 = vmatprep.subr.mxu1 %v2032_v0  ;;  %v244_v1 = vld [vmem:[%s3704_s1 + $0x78] sm:$0xff]  ;;  %v243_v2 = vld [vmem:[%s3704_s1 + $0x70] sm:$0xff]  ;;  %v242_v3 = vld [vmem:[%s3704_s1 + $0x68] sm:$0xff] }
   0x2   :  { %442 = vmatpush1.msra.mxu0 %v244_v1  ;;  %1911 = vmatpush1.msra.mxu1 %v244_v1  ;;  %v241_v4 = vld [vmem:[%s3704_s1 + $0x60] sm:$0xff]  ;;  %v240_v5 = vld [vmem:[%s3704_s1 + $0x58] sm:$0xff]  ;;  %v239_v6 = vld [vmem:[%s3704_s1 + $0x50] sm:$0xff] }
   0x3   :  { %443 = vmatprep.subr.mxu0 %v2032_v0  ;;  %1880 = vmatprep.subr.mxu1 %v2032_v0  ;;  %v238_v7 = vld [vmem:[%s3704_s1 + $0x48] sm:$0xff]  ;;  %v237_v8 = vld [vmem:[%s3704_s1 + $0x40] sm:$0xff]  ;;  %v236_v9 = vld [vmem:[%s3704_s1 + $0x38] sm:$0xff] }
   0x4   :  { %444 = vmatpush1.msra.mxu0 %v243_v2  ;;  %1912 = vmatpush1.msra.mxu1 %v243_v2  ;;  %v235_v10 = vld [vmem:[%s3704_s1 + $0x30] sm:$0xff]  ;;  %v234_v11 = vld [vmem:[%s3704_s1 + $0x28] sm:$0xff]  ;;  %v233_v12 = vld [vmem:[%s3704_s1 + $0x20] sm:$0xff] }
   0x5   :  { %445 = vmatprep.subr.mxu0 %v2032_v0  ;;  %1881 = vmatprep.subr.mxu1 %v2032_v0  ;;  %v232_v13 = vld [vmem:[%s3704_s1 + $0x18] sm:$0xff]  ;;  %v231_v14 = vld [vmem:[%s3704_s1 + $0x10] sm:$0xff]  ;;  %v230_v15 = vld [vmem:[%s3704_s1 + $0x8] sm:$0xff] }
   0x6   :  { %446 = vmatpush1.msra.mxu0 %v242_v3  ;;  %1913 = vmatpush1.msra.mxu1 %v242_v3  ;;  %v229_v16 = vld [vmem:[%s3704_s1] sm:$0xff]  ;;  %v260_v17 = vld [vmem:[%s3704_s1 + $0xf8] sm:$0xff]  ;;  %v259_v18 = vld [vmem:[%s3704_s1 + $0xf0] sm:$0xff] }
   0x7   :  { %447 = vmatprep.subr.mxu0 %v2032_v0  ;;  %1882 = vmatprep.subr.mxu1 %v2032_v0  ;;  %v258_v19 = vld [vmem:[%s3704_s1 + $0xe8] sm:$0xff]  ;;  %v257_v20 = vld [vmem:[%s3704_s1 + $0xe0] sm:$0xff]  ;;  %v256_v21 = vld [vmem:[%s3704_s1 + $0xd8] sm:$0xff] }
   0x8   :  { %448 = vmatpush1.msra.mxu0 %v241_v4  ;;  %1914 = vmatpush1.msra.mxu1 %v241_v4  ;;  %v255_v22 = vld [vmem:[%s3704_s1 + $0xd0] sm:$0xff]  ;;  %v254_v23 = vld [vmem:[%s3704_s1 + $0xc8] sm:$0xff]  ;;  %v253_v24 = vld [vmem:[%s3704_s1 + $0xc0] sm:$0xff] }
   0x9   :  { %449 = vmatprep.subr.mxu0 %v2032_v0  ;;  %1883 = vmatprep.subr.mxu1 %v2032_v0  ;;  %v252_v25 = vld [vmem:[%s3704_s1 + $0xb8] sm:$0xff]  ;;  %v251_v26 = vld [vmem:[%s3704_s1 + $0xb0] sm:$0xff]  ;;  %v250_v27 = vld [vmem:[%s3704_s1 + $0xa8] sm:$0xff] }
   0xa   :  { %450 = vmatpush1.msra.mxu0 %v240_v5  ;;  %1915 = vmatpush1.msra.mxu1 %v240_v5  ;;  %v249_v28 = vld [vmem:[%s3704_s1 + $0xa0] sm:$0xff]  ;;  %v248_v29 = vld [vmem:[%s3704_s1 + $0x98] sm:$0xff]  ;;  %v247_v30 = vld [vmem:[%s3704_s1 + $0x90] sm:$0xff] }
   0xb   :  { %451 = vmatprep.subr.mxu0 %v2032_v0  ;;  %1884 = vmatprep.subr.mxu1 %v2032_v0  ;;  %v246_v31 = vld [vmem:[%s3704_s1 + $0x88] sm:$0xff]  ;;  %v245_v32 = vld [vmem:[%s3704_s1 + $0x80] sm:$0xff]  ;;  %v125_v34 = vld [vmem:[%s3705_s0 + $0x378] sm:$0xff] }
   0xc   :  { %452 = vmatpush1.msra.mxu0 %v239_v6  ;;  %1916 = vmatpush1.msra.mxu1 %v239_v6  ;;  %v15_v33 = vld [vmem:[%s3705_s0 + $0x8] sm:$0xff]  ;;  %v14_v35 = vld [vmem:[%s3705_s0] sm:$0xff]  ;;  %v124_v36 = vld [vmem:[%s3705_s0 + $0x370] sm:$0xff] }
   0xd   :  { %453 = vmatprep.subr.mxu0 %v2032_v0  ;;  %1885 = vmatprep.subr.mxu1 %v2032_v0  ;;  %v303_v37 = vld [vmem:[%s3704_s1 + $0x250] sm:$0xff]  ;;  %v130_v39 = vld [vmem:[%s3705_s0 + $0x3a0] sm:$0xff]  ;;  %v276_v40 = vld [vmem:[%s3704_s1 + $0x178] sm:$0xff] }
   0xe   :  { %454 = vmatpush1.msra.mxu0 %v238_v7  ;;  %1917 = vmatpush1.msra.mxu1 %v238_v7  ;;  %v20_v38 = vld [vmem:[%s3705_s0 + $0x30] sm:$0xff]  ;;  %v19_v41 = vld [vmem:[%s3705_s0 + $0x28] sm:$0xff]  ;;  %v129_v42 = vld [vmem:[%s3705_s0 + $0x398] sm:$0xff] }
   0xf   :  { %455 = vmatprep.subr.mxu0 %v2032_v0  ;;  %1886 = vmatprep.subr.mxu1 %v2032_v0  ;;  %v25_v43 = vld [vmem:[%s3705_s0 + $0x58] sm:$0xff]  ;;  %v275_v44 = vld [vmem:[%s3704_s1 + $0x170] sm:$0xff]  ;;  %v135_v45 = vld [vmem:[%s3705_s0 + $0x3c8] sm:$0xff] }
  0x10   :  { %456 = vmatpush1.msra.mxu0 %v237_v8  ;;  %1918 = vmatpush1.msra.mxu1 %v237_v8  ;;  %v24_v46 = vld [vmem:[%s3705_s0 + $0x50] sm:$0xff]  ;;  %v134_v47 = vld [vmem:[%s3705_s0 + $0x3c0] sm:$0xff]  ;;  %v274_v48 = vld [vmem:[%s3704_s1 + $0x168] sm:$0xff] }
  0x11   :  { %457 = vmatprep.subr.mxu0 %v2032_v0  ;;  %1887 = vmatprep.subr.mxu1 %v2032_v0  ;;  %v302_v49 = vld [vmem:[%s3704_s1 + $0x248] sm:$0xff]  ;;  %v30_v50 = vld [vmem:[%s3705_s0 + $0x80] sm:$0xff]  ;;  %v140_v51 = vld [vmem:[%s3705_s0 + $0x3f0] sm:$0xff] }
  0x12   :  { %458 = vmatpush1.msra.mxu0 %v236_v9  ;;  %1919 = vmatpush1.msra.mxu1 %v236_v9  ;;  %v273_v52 = vld [vmem:[%s3704_s1 + $0x160] sm:$0xff]  ;;  %v29_v53 = vld [vmem:[%s3705_s0 + $0x78] sm:$0xff]  ;;  %v139_v54 = vld [vmem:[%s3705_s0 + $0x3e8] sm:$0xff] }
  0x13   :  { %459 = vmatprep.subr.mxu0 %v2032_v0  ;;  %1888 = vmatprep.subr.mxu1 %v2032_v0  ;;  %v35_v55 = vld [vmem:[%s3705_s0 + $0xa8] sm:$0xff]  ;;  %v272_v56 = vld [vmem:[%s3704_s1 + $0x158] sm:$0xff]  ;;  %v34_v58 = vld [vmem:[%s3705_s0 + $0xa0] sm:$0xff] }
  0x14   :  { %460 = vmatpush1.msra.mxu0 %v235_v10  ;;  %1920 = vmatpush1.msra.mxu1 %v235_v10  ;;  %v145_v57 = vld [vmem:[%s3705_s0 + $0x418] sm:$0xff]  ;;  %v144_v59 = vld [vmem:[%s3705_s0 + $0x410] sm:$0xff]  ;;  %v301_v61 = vld [vmem:[%s3704_s1 + $0x240] sm:$0xff] }
  0x15   :  { %461 = vmatprep.subr.mxu0 %v2032_v0  ;;  %1889 = vmatprep.subr.mxu1 %v2032_v0  ;;  %v271_v60 = vld [vmem:[%s3704_s1 + $0x150] sm:$0xff]  ;;  %v150_v63 = vld [vmem:[%s3705_s0 + $0x440] sm:$0xff]  ;;  %v270_v1 = vld [vmem:[%s3704_s1 + $0x148] sm:$0xff] }
  0x16   :  { %462 = vmatpush1.msra.mxu0 %v234_v11  ;;  %1921 = vmatpush1.msra.mxu1 %v234_v11  ;;  %v40_v62 = vld [vmem:[%s3705_s0 + $0xd0] sm:$0xff]  ;;  %v39_v2 = vld [vmem:[%s3705_s0 + $0xc8] sm:$0xff]  ;;  %v149_v3 = vld [vmem:[%s3705_s0 + $0x438] sm:$0xff] }
  0x17   :  { %463 = vmatprep.subr.mxu0 %v2032_v0  ;;  %1890 = vmatprep.subr.mxu1 %v2032_v0  ;;  %v45_v4 = vld [vmem:[%s3705_s0 + $0xf8] sm:$0xff]  ;;  %v269_v5 = vld [vmem:[%s3704_s1 + $0x140] sm:$0xff]  ;;  %v155_v6 = vld [vmem:[%s3705_s0 + $0x468] sm:$0xff] }
  0x18   :  { %464 = vmatpush1.msra.mxu0 %v233_v12  ;;  %1922 = vmatpush1.msra.mxu1 %v233_v12  ;;  %v44_v7 = vld [vmem:[%s3705_s0 + $0xf0] sm:$0xff]  ;;  %v154_v8 = vld [vmem:[%s3705_s0 + $0x460] sm:$0xff]  ;;  %v268_v9 = vld [vmem:[%s3704_s1 + $0x138] sm:$0xff] }
  0x19   :  { %465 = vmatprep.subr.mxu0 %v2032_v0  ;;  %1891 = vmatprep.subr.mxu1 %v2032_v0  ;;  %v300_v10 = vld [vmem:[%s3704_s1 + $0x238] sm:$0xff]  ;;  %v50_v11 = vld [vmem:[%s3705_s0 + $0x120] sm:$0xff]  ;;  %v160_v12 = vld [vmem:[%s3705_s0 + $0x490] sm:$0xff] }
  0x1a   :  { %466 = vmatpush1.msra.mxu0 %v232_v13  ;;  %1923 = vmatpush1.msra.mxu1 %v232_v13  ;;  %v267_v13 = vld [vmem:[%s3704_s1 + $0x130] sm:$0xff] }
  0x1b   :  { %467 = vmatprep.subr.mxu0 %v2032_v0  ;;  %1892 = vmatprep.subr.mxu1 %v2032_v0 }
  0x1c   :  { %468 = vmatpush1.msra.mxu0 %v231_v14  ;;  %1924 = vmatpush1.msra.mxu1 %v231_v14  ;;  %v49_v14 = vld [vmem:[%s3705_s0 + $0x118] sm:$0xff] }
  0x1d   :  { %469 = vmatprep.subr.mxu0 %v2032_v0  ;;  %1893 = vmatprep.subr.mxu1 %v2032_v0 }
  0x1e   :  { %470 = vmatpush1.msra.mxu0 %v230_v15  ;;  %1925 = vmatpush1.msra.mxu1 %v230_v15  ;;  %v159_v15 = vld [vmem:[%s3705_s0 + $0x488] sm:$0xff] }
  0x1f   :  { %471 = vmatprep.subr.mxu0 %v2032_v0  ;;  %1894 = vmatprep.subr.mxu1 %v2032_v0 }
  0x20   :  { %472 = vmatpush1.msra.mxu0 %v229_v16  ;;  %1926 = vmatpush1.msra.mxu1 %v229_v16  ;;  %v55_v16 = vld [vmem:[%s3705_s0 + $0x148] sm:$0xff] }
  0x21   :  { %473 = vmatprep.subr.mxu0 %v2032_v0  ;;  %1895 = vmatprep.subr.mxu1 %v2032_v0 }
  0x22   :  { %474 = vmatpush2.msra.mxu0 %v260_v17  ;;  %1927 = vmatpush2.msra.mxu1 %v260_v17  ;;  %v266_v17 = vld [vmem:[%s3704_s1 + $0x128] sm:$0xff] }
  0x23   :  { %475 = vmatprep.subr.mxu0 %v2032_v0  ;;  %1896 = vmatprep.subr.mxu1 %v2032_v0 }
  0x24   :  { %476 = vmatpush2.msra.mxu0 %v259_v18  ;;  %1928 = vmatpush2.msra.mxu1 %v259_v18  ;;  %v165_v18 = vld [vmem:[%s3705_s0 + $0x4b8] sm:$0xff] }
  0x25   :  { %477 = vmatprep.subr.mxu0 %v2032_v0  ;;  %1897 = vmatprep.subr.mxu1 %v2032_v0 }
  0x26   :  { %478 = vmatpush2.msra.mxu0 %v258_v19  ;;  %1929 = vmatpush2.msra.mxu1 %v258_v19  ;;  %v54_v19 = vld [vmem:[%s3705_s0 + $0x140] sm:$0xff] }
  0x27   :  { %479 = vmatprep.subr.mxu0 %v2032_v0  ;;  %1898 = vmatprep.subr.mxu1 %v2032_v0 }
  0x28   :  { %480 = vmatpush2.msra.mxu0 %v257_v20  ;;  %1930 = vmatpush2.msra.mxu1 %v257_v20  ;;  %v164_v20 = vld [vmem:[%s3705_s0 + $0x4b0] sm:$0xff] }
  0x29   :  { %481 = vmatprep.subr.mxu0 %v2032_v0  ;;  %1899 = vmatprep.subr.mxu1 %v2032_v0 }
  0x2a   :  { %482 = vmatpush2.msra.mxu0 %v256_v21  ;;  %1931 = vmatpush2.msra.mxu1 %v256_v21  ;;  %v265_v21 = vld [vmem:[%s3704_s1 + $0x120] sm:$0xff] }
  0x2b   :  { %483 = vmatprep.subr.mxu0 %v2032_v0  ;;  %1900 = vmatprep.subr.mxu1 %v2032_v0 }
  0x2c   :  { %484 = vmatpush2.msra.mxu0 %v255_v22  ;;  %1932 = vmatpush2.msra.mxu1 %v255_v22  ;;  %v299_v22 = vld [vmem:[%s3704_s1 + $0x230] sm:$0xff] }
  0x2d   :  { %485 = vmatprep.subr.mxu0 %v2032_v0  ;;  %1901 = vmatprep.subr.mxu1 %v2032_v0 }
  0x2e   :  { %486 = vmatpush2.msra.mxu0 %v254_v23  ;;  %1933 = vmatpush2.msra.mxu1 %v254_v23  ;;  %v60_v23 = vld [vmem:[%s3705_s0 + $0x170] sm:$0xff] }
  0x2f   :  { %487 = vmatprep.subr.mxu0 %v2032_v0  ;;  %1902 = vmatprep.subr.mxu1 %v2032_v0 }
  0x30   :  { %488 = vmatpush2.msra.mxu0 %v253_v24  ;;  %1934 = vmatpush2.msra.mxu1 %v253_v24  ;;  %v170_v24 = vld [vmem:[%s3705_s0 + $0x4e0] sm:$0xff] }
  0x31   :  { %489 = vmatprep.subr.mxu0 %v2032_v0  ;;  %1903 = vmatprep.subr.mxu1 %v2032_v0 }
  0x32   :  { %490 = vmatpush2.msra.mxu0 %v252_v25  ;;  %1935 = vmatpush2.msra.mxu1 %v252_v25  ;;  %v264_v25 = vld [vmem:[%s3704_s1 + $0x118] sm:$0xff] }
  0x33   :  { %491 = vmatprep.subr.mxu0 %v2032_v0  ;;  %1904 = vmatprep.subr.mxu1 %v2032_v0 }
  0x34   :  { %492 = vmatpush2.msra.mxu0 %v251_v26  ;;  %1936 = vmatpush2.msra.mxu1 %v251_v26  ;;  %v59_v26 = vld [vmem:[%s3705_s0 + $0x168] sm:$0xff] }
  0x35   :  { %493 = vmatprep.subr.mxu0 %v2032_v0  ;;  %1905 = vmatprep.subr.mxu1 %v2032_v0 }
  0x36   :  { %494 = vmatpush2.msra.mxu0 %v250_v27  ;;  %1937 = vmatpush2.msra.mxu1 %v250_v27  ;;  %v169_v27 = vld [vmem:[%s3705_s0 + $0x4d8] sm:$0xff] }
  0x37   :  { %495 = vmatprep.subr.mxu0 %v2032_v0  ;;  %1906 = vmatprep.subr.mxu1 %v2032_v0 }
  0x38   :  { %496 = vmatpush2.msra.mxu0 %v249_v28  ;;  %1938 = vmatpush2.msra.mxu1 %v249_v28  ;;  %v65_v28 = vld [vmem:[%s3705_s0 + $0x198] sm:$0xff] }
  0x39   :  { %497 = vmatprep.subr.mxu0 %v2032_v0  ;;  %1907 = vmatprep.subr.mxu1 %v2032_v0 }
  0x3a   :  { %498 = vmatpush2.msra.mxu0 %v248_v29  ;;  %1939 = vmatpush2.msra.mxu1 %v248_v29  ;;  %v263_v29 = vld [vmem:[%s3704_s1 + $0x110] sm:$0xff] }
  0x3b   :  { %499 = vmatprep.subr.mxu0 %v2032_v0  ;;  %1908 = vmatprep.subr.mxu1 %v2032_v0 }
  0x3c   :  { %500 = vmatpush2.msra.mxu0 %v247_v30  ;;  %1940 = vmatpush2.msra.mxu1 %v247_v30  ;;  %v175_v30 = vld [vmem:[%s3705_s0 + $0x508] sm:$0xff] }
  0x3d   :  { %501 = vmatprep.subr.mxu0 %v2032_v0  ;;  %1909 = vmatprep.subr.mxu1 %v2032_v0 }
  0x3e   :  { %502 = vmatpush2.msra.mxu0 %v246_v31  ;;  %1941 = vmatpush2.msra.mxu1 %v246_v31  ;;  %v64_v31 = vld [vmem:[%s3705_s0 + $0x190] sm:$0xff] }
  0x3f   :  { %503 = vmatprep.subr.mxu0 %v2032_v0  ;;  %1910 = vmatprep.subr.mxu1 %v2032_v0 }
  0x40   :  { %504 = vmatpush2.msra.mxu0 %v245_v32  ;;  %1942 = vmatpush2.msra.mxu1 %v245_v32  ;;  %v174_v32 = vld [vmem:[%s3705_s0 + $0x500] sm:$0xff] }
  0x41   :  { %505 = vmatprep.mubr.f32.mxu0 %v15_v33  ;;  %615 = vmatprep.mubr.f32.mxu1 %v125_v34  ;;  %v262_v33 = vld [vmem:[%s3704_s1 + $0x108] sm:$0xff] }
  0x42   :  { %506 = vmatmul.mubr.f32.vlgmr.msra.gmra.mxu0 %v14_v35  ;;  %616 = vmatmul.mubr.f32.vlgmr.msra.gmra.mxu1 %v124_v36  ;;  %v298_v34 = vld [vmem:[%s3704_s1 + $0x228] sm:$0xff]  ;;  %v70_v35 = vld [vmem:[%s3705_s0 + $0x1c0] sm:$0xff]  ;;  %v180_v36 = vld [vmem:[%s3705_s0 + $0x530] sm:$0xff] }
  0x43   :  { %1728 = vmatprep.subr.mxu0 %v2032_v0  ;;  %721 = vmatprep.subr.mxu1 %v2032_v0 }
  0x44   :  { %1729 = vmatpush3.msra.mxu0 %v303_v37  ;;  %510 = vmatprep.mubr.f32.mxu0 %v20_v38  ;;  %v261_v37 = vld [vmem:[%s3704_s1 + $0x100] sm:$0xff]  ;;  %v69_v38 = vld [vmem:[%s3705_s0 + $0x1b8] sm:$0xff] }
  0x45   :  { %620 = vmatprep.mubr.f32.mxu1 %v130_v39  ;;  %722 = vmatpush1.msra.mxu1 %v276_v40  ;;  %v179_v39 = vld [vmem:[%s3705_s0 + $0x528] sm:$0xff] }
  0x46   :  { %511 = vmatmul.mubr.f32.gmra.mxu0 %v19_v41  ;;  %621 = vmatmul.mubr.f32.gmra.mxu1 %v129_v42  ;;  %v75_v40 = vld [vmem:[%s3705_s0 + $0x1e8] sm:$0xff]  ;;  %v292_v41 = vld [vmem:[%s3704_s1 + $0x1f8] sm:$0xff] }
  0x47   :  { %723 = vmatprep.subr.mxu1 %v2032_v0  ;;  %515 = vmatprep.mubr.f32.mxu0 %v25_v43  ;;  %v185_v42 = vld [vmem:[%s3705_s0 + $0x558] sm:$0xff]  ;;  %v74_v43 = vld [vmem:[%s3705_s0 + $0x1e0] sm:$0xff] }
  0x48   :  { %724 = vmatpush1.msra.mxu1 %v275_v44  ;;  %625 = vmatprep.mubr.f32.mxu1 %v135_v45  ;;  %v184_v44 = vld [vmem:[%s3705_s0 + $0x550] sm:$0xff] }
  0x49   :  { %725 = vmatprep.subr.mxu1 %v2032_v0  ;;  %1730 = vmatprep.subr.mxu0 %v2032_v0  ;;  %v291_v45 = vld [vmem:[%s3704_s1 + $0x1f0] sm:$0xff] }
  0x4a   :  { %516 = vmatmul.mubr.f32.gmra.mxu0 %v24_v46  ;;  %626 = vmatmul.mubr.f32.gmra.mxu1 %v134_v47  ;;  %v297_v46 = vld [vmem:[%s3704_s1 + $0x220] sm:$0xff]  ;;  %v80_v47 = vld [vmem:[%s3705_s0 + $0x210] sm:$0xff] }
  0x4b   :  { %726 = vmatpush1.msra.mxu1 %v274_v48  ;;  %1731 = vmatpush3.msra.mxu0 %v302_v49  ;;  %v190_v48 = vld [vmem:[%s3705_s0 + $0x580] sm:$0xff]  ;;  %v290_v49 = vld [vmem:[%s3704_s1 + $0x1e8] sm:$0xff] }
  0x4c   :  { %727 = vmatprep.subr.mxu1 %v2032_v0  ;;  %520 = vmatprep.mubr.f32.mxu0 %v30_v50  ;;  %v79_v50 = vld [vmem:[%s3705_s0 + $0x208] sm:$0xff] }
  0x4d   :  { %630 = vmatprep.mubr.f32.mxu1 %v140_v51  ;;  %728 = vmatpush1.msra.mxu1 %v273_v52  ;;  %v189_v51 = vld [vmem:[%s3705_s0 + $0x578] sm:$0xff] }
  0x4e   :  { %521 = vmatmul.mubr.f32.gmra.mxu0 %v29_v53  ;;  %631 = vmatmul.mubr.f32.gmra.mxu1 %v139_v54  ;;  %v85_v52 = vld [vmem:[%s3705_s0 + $0x238] sm:$0xff]  ;;  %v289_v53 = vld [vmem:[%s3704_s1 + $0x1e0] sm:$0xff]  ;;  %v195_v54 = vld [vmem:[%s3705_s0 + $0x5a8] sm:$0xff] }
  0x4f   :  { %729 = vmatprep.subr.mxu1 %v2032_v0  ;;  %525 = vmatprep.mubr.f32.mxu0 %v35_v55  ;;  %v84_v55 = vld [vmem:[%s3705_s0 + $0x230] sm:$0xff] }
  0x50   :  { %730 = vmatpush1.msra.mxu1 %v272_v56  ;;  %635 = vmatprep.mubr.f32.mxu1 %v145_v57  ;;  %v194_v56 = vld [vmem:[%s3705_s0 + $0x5a0] sm:$0xff]  ;;  %v288_v57 = vld [vmem:[%s3704_s1 + $0x1d8] sm:$0xff] }
  0x51   :  { %731 = vmatprep.subr.mxu1 %v2032_v0  ;;  %1732 = vmatprep.subr.mxu0 %v2032_v0 }
  0x52   :  { %526 = vmatmul.mubr.f32.gmra.mxu0 %v34_v58  ;;  %636 = vmatmul.mubr.f32.gmra.mxu1 %v144_v59  ;;  %v296_v58 = vld [vmem:[%s3704_s1 + $0x218] sm:$0xff]  ;;  %v90_v59 = vld [vmem:[%s3705_s0 + $0x260] sm:$0xff] }
  0x53   :  { %732 = vmatpush1.msra.mxu1 %v271_v60  ;;  %1733 = vmatpush3.msra.mxu0 %v301_v61  ;;  %v200_v60 = vld [vmem:[%s3705_s0 + $0x5d0] sm:$0xff] }
  0x54   :  { %733 = vmatprep.subr.mxu1 %v2032_v0  ;;  %530 = vmatprep.mubr.f32.mxu0 %v40_v62  ;;  %v287_v61 = vld [vmem:[%s3704_s1 + $0x1d0] sm:$0xff]  ;;  %v89_v62 = vld [vmem:[%s3705_s0 + $0x258] sm:$0xff] }
  0x55   :  { %640 = vmatprep.mubr.f32.mxu1 %v150_v63  ;;  %734 = vmatpush1.msra.mxu1 %v270_v1  ;;  %v199_v63 = vld [vmem:[%s3705_s0 + $0x5c8] sm:$0xff] }
  0x56   :  { %531 = vmatmul.mubr.f32.gmra.mxu0 %v39_v2  ;;  %641 = vmatmul.mubr.f32.gmra.mxu1 %v149_v3  ;;  %v95_v1 = vld [vmem:[%s3705_s0 + $0x288] sm:$0xff]  ;;  %v205_v3 = vld [vmem:[%s3705_s0 + $0x5f8] sm:$0xff] }
  0x57   :  { %735 = vmatprep.subr.mxu1 %v2032_v0  ;;  %535 = vmatprep.mubr.f32.mxu0 %v45_v4  ;;  %v286_v2 = vld [vmem:[%s3704_s1 + $0x1c8] sm:$0xff]  ;;  %v94_v4 = vld [vmem:[%s3705_s0 + $0x280] sm:$0xff] }
  0x58   :  { %736 = vmatpush1.msra.mxu1 %v269_v5  ;;  %645 = vmatprep.mubr.f32.mxu1 %v155_v6  ;;  %v204_v5 = vld [vmem:[%s3705_s0 + $0x5f0] sm:$0xff]  ;;  %v285_v6 = vld [vmem:[%s3704_s1 + $0x1c0] sm:$0xff] }
  0x59   :  { %737 = vmatprep.subr.mxu1 %v2032_v0  ;;  %1734 = vmatprep.subr.mxu0 %v2032_v0 }
  0x5a   :  { %536 = vmatmul.mubr.f32.gmra.mxu0 %v44_v7  ;;  %646 = vmatmul.mubr.f32.gmra.mxu1 %v154_v8  ;;  %v295_v7 = vld [vmem:[%s3704_s1 + $0x210] sm:$0xff] }
  0x5b   :  { %738 = vmatpush1.msra.mxu1 %v268_v9  ;;  %1735 = vmatpush3.msra.mxu0 %v300_v10  ;;  %v100_v8 = vld [vmem:[%s3705_s0 + $0x2b0] sm:$0xff]  ;;  %v284_v9 = vld [vmem:[%s3704_s1 + $0x1b8] sm:$0xff]  ;;  %v210_v10 = vld [vmem:[%s3705_s0 + $0x620] sm:$0xff] }
  0x5c   :  { %739 = vmatprep.subr.mxu1 %v2032_v0  ;;  %540 = vmatprep.mubr.f32.mxu0 %v50_v11  ;;  %v99_v11 = vld [vmem:[%s3705_s0 + $0x2a8] sm:$0xff] }
  0x5d   :  { %650 = vmatprep.mubr.f32.mxu1 %v160_v12  ;;  %740 = vmatpush1.msra.mxu1 %v267_v13  ;;  %v209_v12 = vld [vmem:[%s3705_s0 + $0x618] sm:$0xff] }
  0x5e   :  { %541 = vmatmul.mubr.f32.gmra.mxu0 %v49_v14  ;;  %651 = vmatmul.mubr.f32.gmra.mxu1 %v159_v15  ;;  %v105_v13 = vld [vmem:[%s3705_s0 + $0x2d8] sm:$0xff]  ;;  %v283_v14 = vld [vmem:[%s3704_s1 + $0x1b0] sm:$0xff]  ;;  %v215_v15 = vld [vmem:[%s3705_s0 + $0x648] sm:$0xff] }
  0x5f   :  { %741 = vmatprep.subr.mxu1 %v2032_v0  ;;  %545 = vmatprep.mubr.f32.mxu0 %v55_v16  ;;  %v104_v16 = vld [vmem:[%s3705_s0 + $0x2d0] sm:$0xff] }
  0x60   :  { %742 = vmatpush1.msra.mxu1 %v266_v17  ;;  %655 = vmatprep.mubr.f32.mxu1 %v165_v18  ;;  %v214_v17 = vld [vmem:[%s3705_s0 + $0x640] sm:$0xff]  ;;  %v282_v18 = vld [vmem:[%s3704_s1 + $0x1a8] sm:$0xff] }
  0x61   :  { %743 = vmatprep.subr.mxu1 %v2032_v0  ;;  %1736 = vmatprep.subr.mxu0 %v2032_v0 }
  0x62   :  { %546 = vmatmul.mubr.f32.gmra.mxu0 %v54_v19  ;;  %656 = vmatmul.mubr.f32.gmra.mxu1 %v164_v20  ;;  %v294_v19 = vld [vmem:[%s3704_s1 + $0x208] sm:$0xff]  ;;  %v110_v20 = vld [vmem:[%s3705_s0 + $0x300] sm:$0xff] }
  0x63   :  { %744 = vmatpush1.msra.mxu1 %v265_v21  ;;  %1737 = vmatpush3.msra.mxu0 %v299_v22  ;;  %v281_v21 = vld [vmem:[%s3704_s1 + $0x1a0] sm:$0xff]  ;;  %v220_v22 = vld [vmem:[%s3705_s0 + $0x670] sm:$0xff] }
  0x64   :  { %745 = vmatprep.subr.mxu1 %v2032_v0  ;;  %550 = vmatprep.mubr.f32.mxu0 %v60_v23  ;;  %v109_v23 = vld [vmem:[%s3705_s0 + $0x2f8] sm:$0xff] }
  0x65   :  { %660 = vmatprep.mubr.f32.mxu1 %v170_v24  ;;  %746 = vmatpush1.msra.mxu1 %v264_v25  ;;  %v219_v24 = vld [vmem:[%s3705_s0 + $0x668] sm:$0xff] }
  0x66   :  { %551 = vmatmul.mubr.f32.gmra.mxu0 %v59_v26  ;;  %661 = vmatmul.mubr.f32.gmra.mxu1 %v169_v27  ;;  %v115_v25 = vld [vmem:[%s3705_s0 + $0x328] sm:$0xff]  ;;  %v280_v26 = vld [vmem:[%s3704_s1 + $0x198] sm:$0xff] }
  0x67   :  { %747 = vmatprep.subr.mxu1 %v2032_v0  ;;  %555 = vmatprep.mubr.f32.mxu0 %v65_v28  ;;  %v225_v27 = vld [vmem:[%s3705_s0 + $0x698] sm:$0xff]  ;;  %v279_v28 = vld [vmem:[%s3704_s1 + $0x190] sm:$0xff] }
  0x68   :  { %748 = vmatpush1.msra.mxu1 %v263_v29  ;;  %665 = vmatprep.mubr.f32.mxu1 %v175_v30  ;;  %v114_v29 = vld [vmem:[%s3705_s0 + $0x320] sm:$0xff]  ;;  %v224_v30 = vld [vmem:[%s3705_s0 + $0x690] sm:$0xff] }
  0x69   :  { %749 = vmatprep.subr.mxu1 %v2032_v0  ;;  %1738 = vmatprep.subr.mxu0 %v2032_v0 }
  0x6a   :  { %556 = vmatmul.mubr.f32.gmra.mxu0 %v64_v31  ;;  %666 = vmatmul.mubr.f32.gmra.mxu1 %v174_v32  ;;  %v278_v31 = vld [vmem:[%s3704_s1 + $0x188] sm:$0xff]  ;;  %v293_v32 = vld [vmem:[%s3704_s1 + $0x200] sm:$0xff] }
  0x6b   :  { %750 = vmatpush1.msra.mxu1 %v262_v33  ;;  %1739 = vmatpush3.msra.mxu0 %v298_v34  ;;  %v120_v33 = vld [vmem:[%s3705_s0 + $0x350] sm:$0xff]  ;;  %v277_v34 = vld [vmem:[%s3704_s1 + $0x180] sm:$0xff] }
  0x6c   :  { %751 = vmatprep.subr.mxu1 %v2032_v0  ;;  %560 = vmatprep.mubr.f32.mxu0 %v70_v35  ;;  %v17_v35 = vld [vmem:[%s3705_s0 + $0x18] sm:$0xff] }
  0x6d   :  { %670 = vmatprep.mubr.f32.mxu1 %v180_v36  ;;  %752 = vmatpush1.msra.mxu1 %v261_v37  ;;  %v119_v36 = vld [vmem:[%s3705_s0 + $0x348] sm:$0xff]  ;;  %v16_v37 = vld [vmem:[%s3705_s0 + $0x10] sm:$0xff] }
  0x6e   :  { %561 = vmatmul.mubr.f32.gmra.mxu0 %v69_v38  ;;  %671 = vmatmul.mubr.f32.gmra.mxu1 %v179_v39  ;;  %v22_v38 = vld [vmem:[%s3705_s0 + $0x40] sm:$0xff]  ;;  %v21_v39 = vld [vmem:[%s3705_s0 + $0x38] sm:$0xff] }
  0x6f   :  { %753 = vmatprep.subr.mxu1 %v2032_v0  ;;  %565 = vmatprep.mubr.f32.mxu0 %v75_v40  ;;  %v18_v40 = vld [vmem:[%s3705_s0 + $0x20] sm:$0xff] }
  0x70   :  { %754 = vmatpush2.msra.mxu1 %v292_v41  ;;  %675 = vmatprep.mubr.f32.mxu1 %v185_v42  ;;  %v27_v41 = vld [vmem:[%s3705_s0 + $0x68] sm:$0xff]  ;;  %v26_v42 = vld [vmem:[%s3705_s0 + $0x60] sm:$0xff] }
  0x71   :  { %755 = vmatprep.subr.mxu1 %v2032_v0  ;;  %1740 = vmatprep.subr.mxu0 %v2032_v0 }
  0x72   :  { %566 = vmatmul.mubr.f32.gmra.mxu0 %v74_v43  ;;  %676 = vmatmul.mubr.f32.gmra.mxu1 %v184_v44  ;;  %v23_v43 = vld [vmem:[%s3705_s0 + $0x48] sm:$0xff]  ;;  %v32_v44 = vld [vmem:[%s3705_s0 + $0x90] sm:$0xff] }
  0x73   :  { %756 = vmatpush2.msra.mxu1 %v291_v45  ;;  %1741 = vmatpush3.msra.mxu0 %v297_v46  ;;  %v31_v45 = vld [vmem:[%s3705_s0 + $0x88] sm:$0xff]  ;;  %v28_v46 = vld [vmem:[%s3705_s0 + $0x70] sm:$0xff] }
  0x74   :  { %757 = vmatprep.subr.mxu1 %v2032_v0  ;;  %570 = vmatprep.mubr.f32.mxu0 %v80_v47  ;;  %v37_v47 = vld [vmem:[%s3705_s0 + $0xb8] sm:$0xff] }
  0x75   :  { %680 = vmatprep.mubr.f32.mxu1 %v190_v48  ;;  %758 = vmatpush2.msra.mxu1 %v290_v49  ;;  %v36_v48 = vld [vmem:[%s3705_s0 + $0xb0] sm:$0xff]  ;;  %v33_v49 = vld [vmem:[%s3705_s0 + $0x98] sm:$0xff] }
  0x76   :  { %571 = vmatmul.mubr.f32.gmra.mxu0 %v79_v50  ;;  %681 = vmatmul.mubr.f32.gmra.mxu1 %v189_v51  ;;  %v42_v50 = vld [vmem:[%s3705_s0 + $0xe0] sm:$0xff]  ;;  %v41_v51 = vld [vmem:[%s3705_s0 + $0xd8] sm:$0xff] }
  0x77   :  { %759 = vmatprep.subr.mxu1 %v2032_v0  ;;  %575 = vmatprep.mubr.f32.mxu0 %v85_v52  ;;  %v38_v52 = vld [vmem:[%s3705_s0 + $0xc0] sm:$0xff] }
  0x78   :  { %760 = vmatpush2.msra.mxu1 %v289_v53  ;;  %685 = vmatprep.mubr.f32.mxu1 %v195_v54  ;;  %v47_v53 = vld [vmem:[%s3705_s0 + $0x108] sm:$0xff]  ;;  %v46_v54 = vld [vmem:[%s3705_s0 + $0x100] sm:$0xff] }
  0x79   :  { %761 = vmatprep.subr.mxu1 %v2032_v0  ;;  %1742 = vmatprep.subr.mxu0 %v2032_v0 }
  0x7a   :  { %576 = vmatmul.mubr.f32.gmra.mxu0 %v84_v55  ;;  %686 = vmatmul.mubr.f32.gmra.mxu1 %v194_v56  ;;  %v43_v55 = vld [vmem:[%s3705_s0 + $0xe8] sm:$0xff]  ;;  %v52_v56 = vld [vmem:[%s3705_s0 + $0x130] sm:$0xff] }
  0x7b   :  { %762 = vmatpush2.msra.mxu1 %v288_v57  ;;  %1743 = vmatpush3.msra.mxu0 %v296_v58  ;;  %v51_v57 = vld [vmem:[%s3705_s0 + $0x128] sm:$0xff]  ;;  %v48_v58 = vld [vmem:[%s3705_s0 + $0x110] sm:$0xff] }
  0x7c   :  { %763 = vmatprep.subr.mxu1 %v2032_v0  ;;  %580 = vmatprep.mubr.f32.mxu0 %v90_v59  ;;  %v57_v59 = vld [vmem:[%s3705_s0 + $0x158] sm:$0xff] }
  0x7d   :  { %690 = vmatprep.mubr.f32.mxu1 %v200_v60  ;;  %764 = vmatpush2.msra.mxu1 %v287_v61  ;;  %v56_v60 = vld [vmem:[%s3705_s0 + $0x150] sm:$0xff]  ;;  %v53_v61 = vld [vmem:[%s3705_s0 + $0x138] sm:$0xff] }
  0x7e   :  { %581 = vmatmul.mubr.f32.gmra.mxu0 %v89_v62  ;;  %691 = vmatmul.mubr.f32.gmra.mxu1 %v199_v63  ;;  %v62_v62 = vld [vmem:[%s3705_s0 + $0x180] sm:$0xff]  ;;  %v61_v63 = vld [vmem:[%s3705_s0 + $0x178] sm:$0xff] }
  0x7f   :  { %765 = vmatprep.subr.mxu1 %v2032_v0  ;;  %585 = vmatprep.mubr.f32.mxu0 %v95_v1  ;;  %v58_v1 = vld [vmem:[%s3705_s0 + $0x160] sm:$0xff] }
  0x80   :  { %766 = vmatpush2.msra.mxu1 %v286_v2  ;;  %695 = vmatprep.mubr.f32.mxu1 %v205_v3  ;;  %v67_v2 = vld [vmem:[%s3705_s0 + $0x1a8] sm:$0xff]  ;;  %v66_v3 = vld [vmem:[%s3705_s0 + $0x1a0] sm:$0xff] }
  0x81   :  { %767 = vmatprep.subr.mxu1 %v2032_v0  ;;  %1744 = vmatprep.subr.mxu0 %v2032_v0 }
  0x82   :  { %586 = vmatmul.mubr.f32.gmra.mxu0 %v94_v4  ;;  %696 = vmatmul.mubr.f32.gmra.mxu1 %v204_v5  ;;  %v63_v4 = vld [vmem:[%s3705_s0 + $0x188] sm:$0xff]  ;;  %v72_v5 = vld [vmem:[%s3705_s0 + $0x1d0] sm:$0xff] }
  0x83   :  { %768 = vmatpush2.msra.mxu1 %v285_v6  ;;  %1745 = vmatpush3.msra.mxu0 %v295_v7  ;;  %v71_v6 = vld [vmem:[%s3705_s0 + $0x1c8] sm:$0xff]  ;;  %v68_v7 = vld [vmem:[%s3705_s0 + $0x1b0] sm:$0xff] }
  0x84   :  { %769 = vmatprep.subr.mxu1 %v2032_v0  ;;  %590 = vmatprep.mubr.f32.mxu0 %v100_v8  ;;  %v77_v8 = vld [vmem:[%s3705_s0 + $0x1f8] sm:$0xff] }
  0x85   :  { %770 = vmatpush2.msra.mxu1 %v284_v9  ;;  %700 = vmatprep.mubr.f32.mxu1 %v210_v10  ;;  %v76_v9 = vld [vmem:[%s3705_s0 + $0x1f0] sm:$0xff]  ;;  %v73_v10 = vld [vmem:[%s3705_s0 + $0x1d8] sm:$0xff] }
  0x86   :  { %591 = vmatmul.mubr.f32.gmra.mxu0 %v99_v11  ;;  %701 = vmatmul.mubr.f32.gmra.mxu1 %v209_v12  ;;  %v82_v11 = vld [vmem:[%s3705_s0 + $0x220] sm:$0xff]  ;;  %v81_v12 = vld [vmem:[%s3705_s0 + $0x218] sm:$0xff] }
  0x87   :  { %771 = vmatprep.subr.mxu1 %v2032_v0  ;;  %595 = vmatprep.mubr.f32.mxu0 %v105_v13  ;;  %v78_v13 = vld [vmem:[%s3705_s0 + $0x200] sm:$0xff] }
  0x88   :  { %772 = vmatpush2.msra.mxu1 %v283_v14  ;;  %705 = vmatprep.mubr.f32.mxu1 %v215_v15  ;;  %v87_v14 = vld [vmem:[%s3705_s0 + $0x248] sm:$0xff]  ;;  %v86_v15 = vld [vmem:[%s3705_s0 + $0x240] sm:$0xff] }
  0x89   :  { %773 = vmatprep.subr.mxu1 %v2032_v0  ;;  %1746 = vmatprep.subr.mxu0 %v2032_v0 }
  0x8a   :  { %596 = vmatmul.mubr.f32.gmra.mxu0 %v104_v16  ;;  %706 = vmatmul.mubr.f32.gmra.mxu1 %v214_v17  ;;  %v83_v16 = vld [vmem:[%s3705_s0 + $0x228] sm:$0xff]  ;;  %v92_v17 = vld [vmem:[%s3705_s0 + $0x270] sm:$0xff] }
  0x8b   :  { %774 = vmatpush2.msra.mxu1 %v282_v18  ;;  %1747 = vmatpush3.msra.mxu0 %v294_v19  ;;  %v91_v18 = vld [vmem:[%s3705_s0 + $0x268] sm:$0xff]  ;;  %v88_v19 = vld [vmem:[%s3705_s0 + $0x250] sm:$0xff] }
  0x8c   :  { %775 = vmatprep.subr.mxu1 %v2032_v0  ;;  %600 = vmatprep.mubr.f32.mxu0 %v110_v20  ;;  %v97_v20 = vld [vmem:[%s3705_s0 + $0x298] sm:$0xff] }
  0x8d   :  { %776 = vmatpush2.msra.mxu1 %v281_v21  ;;  %710 = vmatprep.mubr.f32.mxu1 %v220_v22  ;;  %v96_v21 = vld [vmem:[%s3705_s0 + $0x290] sm:$0xff]  ;;  %v93_v22 = vld [vmem:[%s3705_s0 + $0x278] sm:$0xff] }
  0x8e   :  { %601 = vmatmul.mubr.f32.gmra.mxu0 %v109_v23  ;;  %711 = vmatmul.mubr.f32.gmra.mxu1 %v219_v24  ;;  %v102_v23 = vld [vmem:[%s3705_s0 + $0x2c0] sm:$0xff]  ;;  %v101_v24 = vld [vmem:[%s3705_s0 + $0x2b8] sm:$0xff] }
  0x8f   :  { %777 = vmatprep.subr.mxu1 %v2032_v0  ;;  %605 = vmatprep.mubr.f32.mxu0 %v115_v25  ;;  %v98_v25 = vld [vmem:[%s3705_s0 + $0x2a0] sm:$0xff] }
  0x90   :  { %778 = vmatpush2.msra.mxu1 %v280_v26  ;;  %715 = vmatprep.mubr.f32.mxu1 %v225_v27  ;;  %v107_v26 = vld [vmem:[%s3705_s0 + $0x2e8] sm:$0xff]  ;;  %v106_v27 = vld [vmem:[%s3705_s0 + $0x2e0] sm:$0xff] }
  0x91   :  { %779 = vmatprep.subr.mxu1 %v2032_v0  ;;  %1748 = vmatprep.subr.mxu0 %v2032_v0 }
  0x92   :  { %780 = vmatpush2.msra.mxu1 %v279_v28  ;;  %606 = vmatmul.mubr.f32.gmra.mxu0 %v114_v29  ;;  %v103_v28 = vld [vmem:[%s3705_s0 + $0x2c8] sm:$0xff]  ;;  %v112_v29 = vld [vmem:[%s3705_s0 + $0x310] sm:$0xff] }
  0x93   :  { %716 = vmatmul.mubr.f32.gmra.mxu1 %v224_v30  ;;  %781 = vmatprep.subr.mxu1 %v2032_v0  ;;  %v111_v30 = vld [vmem:[%s3705_s0 + $0x308] sm:$0xff] }
  0x94   :  { %782 = vmatpush2.msra.mxu1 %v278_v31  ;;  %1749 = vmatpush3.msra.mxu0 %v293_v32  ;;  %v108_v31 = vld [vmem:[%s3705_s0 + $0x2f0] sm:$0xff]  ;;  %v117_v32 = vld [vmem:[%s3705_s0 + $0x338] sm:$0xff] }
  0x95   :  { %783 = vmatprep.subr.mxu1 %v2032_v0  ;;  %610 = vmatprep.mubr.f32.mxu0 %v120_v33  ;;  %v116_v33 = vld [vmem:[%s3705_s0 + $0x330] sm:$0xff] }
  0x96   :  { %784 = vmatpush2.msra.mxu1 %v277_v34  ;;  %785 = vmatprep.mubr.f32.mxu1 %v17_v35  ;;  %v113_v34 = vld [vmem:[%s3705_s0 + $0x318] sm:$0xff]  ;;  %v122_v35 = vld [vmem:[%s3705_s0 + $0x360] sm:$0xff] }
  0x97   :  { %611 = vmatmul.mubr.f32.gmra.mxu0 %v119_v36  ;;  %786 = vmatmul.mubr.f32.vlgmr.msra.gmra.mxu1 %v16_v37  ;;  %v121_v36 = vld [vmem:[%s3705_s0 + $0x358] sm:$0xff]  ;;  %v118_v37 = vld [vmem:[%s3705_s0 + $0x340] sm:$0xff] }
  0x98   :  { %790 = vmatprep.mubr.f32.mxu1 %v22_v38  ;;  %1750 = vmatprep.mubr.msk.f32.mxu0 %vm2033_vm0, %v2032_v0  ;;  %v127_v38 = vld [vmem:[%s3705_s0 + $0x388] sm:$0xff] }
  0x9b   :  { %791 = vmatmul.mubr.f32.gmra.mxu1 %v21_v39  ;;  %1751 = vmatmul.mubr.msk.f32.vlgmr.msra.gmra.mxu0 %vm311_vm1, %v18_v40  ;;  %v126_v39 = vld [vmem:[%s3705_s0 + $0x380] sm:$0xff]  ;;  %v123_v40 = vld [vmem:[%s3705_s0 + $0x368] sm:$0xff] }
  0x9c   :  { %795 = vmatprep.mubr.f32.mxu1 %v27_v41  ;;  %1753 = vmatprep.mubr.msk.f32.mxu0 %vm2033_vm0, %v2032_v0  ;;  %v132_v41 = vld [vmem:[%s3705_s0 + $0x3b0] sm:$0xff] }
  0x9f   :  { %796 = vmatmul.mubr.f32.gmra.mxu1 %v26_v42  ;;  %1754 = vmatmul.mubr.msk.f32.gmra.mxu0 %vm311_vm1, %v23_v43  ;;  %v131_v42 = vld [vmem:[%s3705_s0 + $0x3a8] sm:$0xff]  ;;  %v128_v43 = vld [vmem:[%s3705_s0 + $0x390] sm:$0xff] }
  0xa0   :  { %800 = vmatprep.mubr.f32.mxu1 %v32_v44  ;;  %1756 = vmatprep.mubr.msk.f32.mxu0 %vm2033_vm0, %v2032_v0  ;;  %v137_v44 = vld [vmem:[%s3705_s0 + $0x3d8] sm:$0xff] }
  0xa3   :  { %801 = vmatmul.mubr.f32.gmra.mxu1 %v31_v45  ;;  %1757 = vmatmul.mubr.msk.f32.gmra.mxu0 %vm311_vm1, %v28_v46  ;;  %v136_v45 = vld [vmem:[%s3705_s0 + $0x3d0] sm:$0xff]  ;;  %v133_v46 = vld [vmem:[%s3705_s0 + $0x3b8] sm:$0xff] }
  0xa4   :  { %805 = vmatprep.mubr.f32.mxu1 %v37_v47  ;;  %1759 = vmatprep.mubr.msk.f32.mxu0 %vm2033_vm0, %v2032_v0  ;;  %v142_v47 = vld [vmem:[%s3705_s0 + $0x400] sm:$0xff] }
  0xa7   :  { %806 = vmatmul.mubr.f32.gmra.mxu1 %v36_v48  ;;  %1760 = vmatmul.mubr.msk.f32.gmra.mxu0 %vm311_vm1, %v33_v49  ;;  %v141_v48 = vld [vmem:[%s3705_s0 + $0x3f8] sm:$0xff]  ;;  %v138_v49 = vld [vmem:[%s3705_s0 + $0x3e0] sm:$0xff] }
  0xa8   :  { %810 = vmatprep.mubr.f32.mxu1 %v42_v50  ;;  %1762 = vmatprep.mubr.msk.f32.mxu0 %vm2033_vm0, %v2032_v0  ;;  %v147_v50 = vld [vmem:[%s3705_s0 + $0x428] sm:$0xff] }
  0xab   :  { %811 = vmatmul.mubr.f32.gmra.mxu1 %v41_v51  ;;  %1763 = vmatmul.mubr.msk.f32.gmra.mxu0 %vm311_vm1, %v38_v52  ;;  %v146_v51 = vld [vmem:[%s3705_s0 + $0x420] sm:$0xff]  ;;  %v143_v52 = vld [vmem:[%s3705_s0 + $0x408] sm:$0xff] }
  0xac   :  { %815 = vmatprep.mubr.f32.mxu1 %v47_v53  ;;  %1765 = vmatprep.mubr.msk.f32.mxu0 %vm2033_vm0, %v2032_v0  ;;  %v152_v53 = vld [vmem:[%s3705_s0 + $0x450] sm:$0xff] }
  0xaf   :  { %816 = vmatmul.mubr.f32.gmra.mxu1 %v46_v54  ;;  %1766 = vmatmul.mubr.msk.f32.gmra.mxu0 %vm311_vm1, %v43_v55  ;;  %v151_v54 = vld [vmem:[%s3705_s0 + $0x448] sm:$0xff]  ;;  %v148_v55 = vld [vmem:[%s3705_s0 + $0x430] sm:$0xff] }
  0xb0   :  { %820 = vmatprep.mubr.f32.mxu1 %v52_v56  ;;  %1768 = vmatprep.mubr.msk.f32.mxu0 %vm2033_vm0, %v2032_v0  ;;  %v157_v56 = vld [vmem:[%s3705_s0 + $0x478] sm:$0xff] }
  0xb3   :  { %821 = vmatmul.mubr.f32.gmra.mxu1 %v51_v57  ;;  %1769 = vmatmul.mubr.msk.f32.gmra.mxu0 %vm311_vm1, %v48_v58 }
  0xb4   :  { %825 = vmatprep.mubr.f32.mxu1 %v57_v59  ;;  %1771 = vmatprep.mubr.msk.f32.mxu0 %vm2033_vm0, %v2032_v0 }
  0xb7   :  { %826 = vmatmul.mubr.f32.gmra.mxu1 %v56_v60  ;;  %1772 = vmatmul.mubr.msk.f32.gmra.mxu0 %vm311_vm1, %v53_v61  ;;  %v156_v61 = vld [vmem:[%s3705_s0 + $0x470] sm:$0xff] }
  0xb8   :  { %830 = vmatprep.mubr.f32.mxu1 %v62_v62  ;;  %1774 = vmatprep.mubr.msk.f32.mxu0 %vm2033_vm0, %v2032_v0  ;;  %v153_v62 = vld [vmem:[%s3705_s0 + $0x458] sm:$0xff] }
  0xbb   :  { %831 = vmatmul.mubr.f32.gmra.mxu1 %v61_v63  ;;  %1775 = vmatmul.mubr.msk.f32.gmra.mxu0 %vm311_vm1, %v58_v1  ;;  %v162_v63 = vld [vmem:[%s3705_s0 + $0x4a0] sm:$0xff] }
  0xbc   :  { %835 = vmatprep.mubr.f32.mxu1 %v67_v2  ;;  %1777 = vmatprep.mubr.msk.f32.mxu0 %vm2033_vm0, %v2032_v0 }
  0xbf   :  { %836 = vmatmul.mubr.f32.gmra.mxu1 %v66_v3  ;;  %1778 = vmatmul.mubr.msk.f32.gmra.mxu0 %vm311_vm1, %v63_v4 }
  0xc0   :  { %840 = vmatprep.mubr.f32.mxu1 %v72_v5  ;;  %1780 = vmatprep.mubr.msk.f32.mxu0 %vm2033_vm0, %v2032_v0  ;;  %v161_v5 = vld [vmem:[%s3705_s0 + $0x498] sm:$0xff] }
  0xc3   :  { %841 = vmatmul.mubr.f32.gmra.mxu1 %v71_v6  ;;  %1781 = vmatmul.mubr.msk.f32.gmra.mxu0 %vm311_vm1, %v68_v7  ;;  %v158_v6 = vld [vmem:[%s3705_s0 + $0x480] sm:$0xff]  ;;  %v167_v7 = vld [vmem:[%s3705_s0 + $0x4c8] sm:$0xff] }
  0xc4   :  { %845 = vmatprep.mubr.f32.mxu1 %v77_v8  ;;  %1783 = vmatprep.mubr.msk.f32.mxu0 %vm2033_vm0, %v2032_v0 }
  0xc7   :  { %846 = vmatmul.mubr.f32.gmra.mxu1 %v76_v9  ;;  %1784 = vmatmul.mubr.msk.f32.gmra.mxu0 %vm311_vm1, %v73_v10 }
  0xc8   :  { %850 = vmatprep.mubr.f32.mxu1 %v82_v11  ;;  %1786 = vmatprep.mubr.msk.f32.mxu0 %vm2033_vm0, %v2032_v0 }
  0xcb   :  { %851 = vmatmul.mubr.f32.gmra.mxu1 %v81_v12  ;;  %1787 = vmatmul.mubr.msk.f32.gmra.mxu0 %vm311_vm1, %v78_v13  ;;  %v166_v12 = vld [vmem:[%s3705_s0 + $0x4c0] sm:$0xff]  ;;  %v163_v13 = vld [vmem:[%s3705_s0 + $0x4a8] sm:$0xff] }
  0xcc   :  { %855 = vmatprep.mubr.f32.mxu1 %v87_v14  ;;  %1789 = vmatprep.mubr.msk.f32.mxu0 %vm2033_vm0, %v2032_v0  ;;  %v172_v14 = vld [vmem:[%s3705_s0 + $0x4f0] sm:$0xff] }
  0xcf   :  { %856 = vmatmul.mubr.f32.gmra.mxu1 %v86_v15  ;;  %1790 = vmatmul.mubr.msk.f32.gmra.mxu0 %vm311_vm1, %v83_v16 }
  0xd0   :  { %860 = vmatprep.mubr.f32.mxu1 %v92_v17  ;;  %1792 = vmatprep.mubr.msk.f32.mxu0 %vm2033_vm0, %v2032_v0 }
  0xd3   :  { %861 = vmatmul.mubr.f32.gmra.mxu1 %v91_v18  ;;  %1793 = vmatmul.mubr.msk.f32.gmra.mxu0 %vm311_vm1, %v88_v19  ;;  %v171_v19 = vld [vmem:[%s3705_s0 + $0x4e8] sm:$0xff] }
  0xd4   :  { %865 = vmatprep.mubr.f32.mxu1 %v97_v20  ;;  %1795 = vmatprep.mubr.msk.f32.mxu0 %vm2033_vm0, %v2032_v0  ;;  %v168_v20 = vld [vmem:[%s3705_s0 + $0x4d0] sm:$0xff] }
  0xd7   :  { %866 = vmatmul.mubr.f32.gmra.mxu1 %v96_v21  ;;  %1796 = vmatmul.mubr.msk.f32.gmra.mxu0 %vm311_vm1, %v93_v22  ;;  %v177_v21 = vld [vmem:[%s3705_s0 + $0x518] sm:$0xff] }
  0xd8   :  { %870 = vmatprep.mubr.f32.mxu1 %v102_v23  ;;  %1798 = vmatprep.mubr.msk.f32.mxu0 %vm2033_vm0, %v2032_v0 }
  0xdb   :  { %871 = vmatmul.mubr.f32.gmra.mxu1 %v101_v24  ;;  %1799 = vmatmul.mubr.msk.f32.gmra.mxu0 %vm311_vm1, %v98_v25 }
  0xdc   :  { %875 = vmatprep.mubr.f32.mxu1 %v107_v26  ;;  %1801 = vmatprep.mubr.msk.f32.mxu0 %vm2033_vm0, %v2032_v0  ;;  %v176_v26 = vld [vmem:[%s3705_s0 + $0x510] sm:$0xff] }
  0xdf   :  { %876 = vmatmul.mubr.f32.gmra.mxu1 %v106_v27  ;;  %1802 = vmatmul.mubr.msk.f32.gmra.mxu0 %vm311_vm1, %v103_v28  ;;  %v173_v27 = vld [vmem:[%s3705_s0 + $0x4f8] sm:$0xff]  ;;  %v182_v28 = vld [vmem:[%s3705_s0 + $0x540] sm:$0xff] }
  0xe0   :  { %880 = vmatprep.mubr.f32.mxu1 %v112_v29  ;;  %1804 = vmatprep.mubr.msk.f32.mxu0 %vm2033_vm0, %v2032_v0 }
  0xe3   :  { %881 = vmatmul.mubr.f32.gmra.mxu1 %v111_v30  ;;  %1805 = vmatmul.mubr.msk.f32.gmra.mxu0 %vm311_vm1, %v108_v31 }
  0xe4   :  { %885 = vmatprep.mubr.f32.mxu1 %v117_v32  ;;  %1807 = vmatprep.mubr.msk.f32.mxu0 %vm2033_vm0, %v2032_v0 }
  0xe7   :  { %886 = vmatmul.mubr.f32.gmra.mxu1 %v116_v33  ;;  %1808 = vmatmul.mubr.msk.f32.gmra.mxu0 %vm311_vm1, %v113_v34  ;;  %v181_v33 = vld [vmem:[%s3705_s0 + $0x538] sm:$0xff]  ;;  %v178_v34 = vld [vmem:[%s3705_s0 + $0x520] sm:$0xff] }
  0xe8   :  { %890 = vmatprep.mubr.f32.mxu1 %v122_v35  ;;  %1810 = vmatprep.mubr.msk.f32.mxu0 %vm2033_vm0, %v2032_v0  ;;  %v187_v35 = vld [vmem:[%s3705_s0 + $0x568] sm:$0xff] }
  0xeb   :  { %891 = vmatmul.mubr.f32.gmra.mxu1 %v121_v36  ;;  %1811 = vmatmul.mubr.msk.f32.gmra.mxu0 %vm311_vm1, %v118_v37 }
  0xec   :  { %895 = vmatprep.mubr.f32.mxu1 %v127_v38  ;;  %1813 = vmatprep.mubr.msk.f32.mxu0 %vm2033_vm0, %v2032_v0 }
  0xef   :  { %896 = vmatmul.mubr.f32.gmra.mxu1 %v126_v39  ;;  %1814 = vmatmul.mubr.msk.f32.gmra.mxu0 %vm311_vm1, %v123_v40  ;;  %v186_v40 = vld [vmem:[%s3705_s0 + $0x560] sm:$0xff] }
  0xf0   :  { %900 = vmatprep.mubr.f32.mxu1 %v132_v41  ;;  %1816 = vmatprep.mubr.msk.f32.mxu0 %vm2033_vm0, %v2032_v0  ;;  %v183_v41 = vld [vmem:[%s3705_s0 + $0x548] sm:$0xff] }
  0xf3   :  { %901 = vmatmul.mubr.f32.gmra.mxu1 %v131_v42  ;;  %1817 = vmatmul.mubr.msk.f32.gmra.mxu0 %vm311_vm1, %v128_v43  ;;  %v192_v42 = vld [vmem:[%s3705_s0 + $0x590] sm:$0xff] }
  0xf4   :  { %905 = vmatprep.mubr.f32.mxu1 %v137_v44  ;;  %1819 = vmatprep.mubr.msk.f32.mxu0 %vm2033_vm0, %v2032_v0 }
  0xf7   :  { %906 = vmatmul.mubr.f32.gmra.mxu1 %v136_v45  ;;  %1820 = vmatmul.mubr.msk.f32.gmra.mxu0 %vm311_vm1, %v133_v46 }
  0xf8   :  { %910 = vmatprep.mubr.f32.mxu1 %v142_v47  ;;  %1822 = vmatprep.mubr.msk.f32.mxu0 %vm2033_vm0, %v2032_v0  ;;  %v191_v47 = vld [vmem:[%s3705_s0 + $0x588] sm:$0xff] }
  0xfb   :  { %911 = vmatmul.mubr.f32.gmra.mxu1 %v141_v48  ;;  %1823 = vmatmul.mubr.msk.f32.gmra.mxu0 %vm311_vm1, %v138_v49  ;;  %v188_v48 = vld [vmem:[%s3705_s0 + $0x570] sm:$0xff]  ;;  %v197_v49 = vld [vmem:[%s3705_s0 + $0x5b8] sm:$0xff] }
  0xfc   :  { %915 = vmatprep.mubr.f32.mxu1 %v147_v50  ;;  %1825 = vmatprep.mubr.msk.f32.mxu0 %vm2033_vm0, %v2032_v0 }
  0xff   :  { %916 = vmatmul.mubr.f32.gmra.mxu1 %v146_v51  ;;  %1826 = vmatmul.mubr.msk.f32.gmra.mxu0 %vm311_vm1, %v143_v52 }
 0x100   :  { %920 = vmatprep.mubr.f32.mxu1 %v152_v53  ;;  %1828 = vmatprep.mubr.msk.f32.mxu0 %vm2033_vm0, %v2032_v0 }
 0x102   :  { %v2976_v57 = vpop.f32.mrf.mxu0  ;;  %v2978_v58 = vpop.f32.mrf.mxu1 }
 0x103   :  { %921 = vmatmul.mubr.f32.gmra.mxu1 %v151_v54  ;;  %1829 = vmatmul.mubr.msk.f32.gmra.mxu0 %vm311_vm1, %v148_v55  ;;  %v196_v54 = vld [vmem:[%s3705_s0 + $0x5b0] sm:$0xff]  ;;  %v193_v55 = vld [vmem:[%s3705_s0 + $0x598] sm:$0xff] }
 0x104   :  { %v509_v59 = vpop.f32.mrf.mxu0  ;;  %v619_v60 = vpop.f32.mrf.mxu1  ;;  %925 = vmatprep.mubr.f32.mxu1 %v157_v56  ;;  %1831 = vmatprep.mubr.msk.f32.mxu0 %vm2033_vm0, %v2032_v0  ;;  %v202_v56 = vld [vmem:[%s3705_s0 + $0x5e0] sm:$0xff] }
 0x106   :  { %v2992_v1 = vpop.f32.mrf.mxu0  ;;  %v2994_v2 = vpop.f32.mrf.mxu1 }
 0x107   :  { %926 = vmatmul.mubr.f32.gmra.mxu1 %v156_v61  ;;  %1832 = vmatmul.mubr.msk.f32.gmra.mxu0 %vm311_vm1, %v153_v62 }
 0x108   :  { %v514_v3 = vpop.f32.mrf.mxu0  ;;  %v624_v4 = vpop.f32.mrf.mxu1  ;;  %930 = vmatprep.mubr.f32.mxu1 %v162_v63  ;;  %1834 = vmatprep.mubr.msk.f32.mxu0 %vm2033_vm0, %v2032_v0  ;;  %v201_v63 = vld [vmem:[%s3705_s0 + $0x5d8] sm:$0xff] }
 0x109   :  { %v198_v3 = vld [vmem:[%s3705_s0 + $0x5c0] sm:$0xff]  ;;  %v207_v4 = vld [vmem:[%s3705_s0 + $0x608] sm:$0xff] }
 0x10a   :  { %v3008_v8 = vpop.f32.mrf.mxu0  ;;  %v3010_v9 = vpop.f32.mrf.mxu1 }
 0x10b   :  { %931 = vmatmul.mubr.f32.gmra.mxu1 %v161_v5  ;;  %1835 = vmatmul.mubr.msk.f32.gmra.mxu0 %vm311_vm1, %v158_v6 }
 0x10c   :  { %v519_v10 = vpop.f32.mrf.mxu0  ;;  %v629_v11 = vpop.f32.mrf.mxu1  ;;  %935 = vmatprep.mubr.f32.mxu1 %v167_v7  ;;  %1837 = vmatprep.mubr.msk.f32.mxu0 %vm2033_vm0, %v2032_v0 }
 0x10d   :  { %v206_v11 = vld [vmem:[%s3705_s0 + $0x600] sm:$0xff] }
 0x10e   :  { %v3024_v15 = vpop.f32.mrf.mxu0  ;;  %v3026_v16 = vpop.f32.mrf.mxu1 }
 0x10f   :  { %936 = vmatmul.mubr.f32.gmra.mxu1 %v166_v12  ;;  %1838 = vmatmul.mubr.msk.f32.gmra.mxu0 %vm311_vm1, %v163_v13  ;;  %v203_v12 = vld [vmem:[%s3705_s0 + $0x5e8] sm:$0xff]  ;;  %v212_v13 = vld [vmem:[%s3705_s0 + $0x630] sm:$0xff] }
 0x110   :  { %v524_v17 = vpop.f32.mrf.mxu0  ;;  %v634_v18 = vpop.f32.mrf.mxu1  ;;  %940 = vmatprep.mubr.f32.mxu1 %v172_v14  ;;  %1840 = vmatprep.mubr.msk.f32.mxu0 %vm2033_vm0, %v2032_v0 }
 0x112   :  { %v3040_v22 = vpop.f32.mrf.mxu0  ;;  %v3042_v23 = vpop.f32.mrf.mxu1 }
 0x113   :  { %941 = vmatmul.mubr.f32.gmra.mxu1 %v171_v19  ;;  %1841 = vmatmul.mubr.msk.f32.gmra.mxu0 %vm311_vm1, %v168_v20  ;;  %v211_v20 = vld [vmem:[%s3705_s0 + $0x628] sm:$0xff] }
 0x114   :  { %v529_v24 = vpop.f32.mrf.mxu0  ;;  %v639_v25 = vpop.f32.mrf.mxu1  ;;  %945 = vmatprep.mubr.f32.mxu1 %v177_v21  ;;  %1843 = vmatprep.mubr.msk.f32.mxu0 %vm2033_vm0, %v2032_v0  ;;  %v208_v21 = vld [vmem:[%s3705_s0 + $0x610] sm:$0xff] }
 0x115   :  { %v217_v24 = vld [vmem:[%s3705_s0 + $0x658] sm:$0xff] }
 0x116   :  { %v3056_v29 = vpop.f32.mrf.mxu0  ;;  %v3058_v30 = vpop.f32.mrf.mxu1 }
 0x117   :  { %946 = vmatmul.mubr.f32.gmra.mxu1 %v176_v26  ;;  %1844 = vmatmul.mubr.msk.f32.gmra.mxu0 %vm311_vm1, %v173_v27 }
 0x118   :  { %v534_v31 = vpop.f32.mrf.mxu0  ;;  %v644_v32 = vpop.f32.mrf.mxu1  ;;  %950 = vmatprep.mubr.f32.mxu1 %v182_v28  ;;  %1846 = vmatprep.mubr.msk.f32.mxu0 %vm2033_vm0, %v2032_v0 }
 0x119   :  { %v216_v31 = vld [vmem:[%s3705_s0 + $0x650] sm:$0xff]  ;;  %v213_v32 = vld [vmem:[%s3705_s0 + $0x638] sm:$0xff] }
 0x11a   :  { %v3072_v36 = vpop.f32.mrf.mxu0  ;;  %v3074_v37 = vpop.f32.mrf.mxu1 }
 0x11b   :  { %951 = vmatmul.mubr.f32.gmra.mxu1 %v181_v33  ;;  %1847 = vmatmul.mubr.msk.f32.gmra.mxu0 %vm311_vm1, %v178_v34  ;;  %v222_v33 = vld [vmem:[%s3705_s0 + $0x680] sm:$0xff] }
 0x11c   :  { %v539_v38 = vpop.f32.mrf.mxu0  ;;  %v649_v39 = vpop.f32.mrf.mxu1  ;;  %955 = vmatprep.mubr.f32.mxu1 %v187_v35  ;;  %1849 = vmatprep.mubr.msk.f32.mxu0 %vm2033_vm0, %v2032_v0 }
 0x11e   :  { %v3088_v43 = vpop.f32.mrf.mxu0  ;;  %v3090_v44 = vpop.f32.mrf.mxu1 }
 0x11f   :  { %956 = vmatmul.mubr.f32.gmra.mxu1 %v186_v40  ;;  %1850 = vmatmul.mubr.msk.f32.gmra.mxu0 %vm311_vm1, %v183_v41  ;;  %v221_v40 = vld [vmem:[%s3705_s0 + $0x678] sm:$0xff]  ;;  %v218_v41 = vld [vmem:[%s3705_s0 + $0x660] sm:$0xff] }
 0x120   :  { %v544_v45 = vpop.f32.mrf.mxu0  ;;  %v654_v46 = vpop.f32.mrf.mxu1  ;;  %960 = vmatprep.mubr.f32.mxu1 %v192_v42  ;;  %1852 = vmatprep.mubr.msk.f32.mxu0 %vm2033_vm0, %v2032_v0  ;;  %v227_v42 = vld [vmem:[%s3705_s0 + $0x6a8] sm:$0xff] }
 0x122   :  { %v3104_v50 = vpop.f32.mrf.mxu0  ;;  %v3106_v51 = vpop.f32.mrf.mxu1 }
 0x123   :  { %961 = vmatmul.mubr.f32.gmra.mxu1 %v191_v47  ;;  %1853 = vmatmul.mubr.msk.f32.gmra.mxu0 %vm311_vm1, %v188_v48 }
 0x124   :  { %v549_v52 = vpop.f32.mrf.mxu0  ;;  %v659_v53 = vpop.f32.mrf.mxu1  ;;  %965 = vmatprep.mubr.f32.mxu1 %v197_v49  ;;  %1855 = vmatprep.mubr.msk.f32.mxu0 %vm2033_vm0, %v2032_v0  ;;  %v226_v49 = vld [vmem:[%s3705_s0 + $0x6a0] sm:$0xff] }
 0x125   :  { %v223_v52 = vld [vmem:[%s3705_s0 + $0x688] sm:$0xff] }
 0x126   :  { %v3120_v59 = vpop.f32.mrf.mxu0  ;;  %v3122_v60 = vpop.f32.mrf.mxu1 }
 0x127   :  { %966 = vmatmul.mubr.f32.gmra.mxu1 %v196_v54  ;;  %1856 = vmatmul.mubr.msk.f32.gmra.mxu0 %vm311_vm1, %v193_v55 }
 0x128   :  { %v554_v61 = vpop.f32.mrf.mxu0  ;;  %v664_v62 = vpop.f32.mrf.mxu1  ;;  %970 = vmatprep.mubr.f32.mxu1 %v202_v56  ;;  %1858 = vmatprep.mubr.msk.f32.mxu0 %vm2033_vm0, %v2032_v0 }
 0x129   :  { %v228_v61 = vld [vmem:[%s3705_s0 + $0x6b0] sm:$0xff] }
 0x12a   :  { %v3136_v5 = vpop.f32.mrf.mxu0  ;;  %v3138_v6 = vpop.f32.mrf.mxu1 }
 0x12b   :  { %971 = vmatmul.mubr.f32.gmra.mxu1 %v201_v63  ;;  %1859 = vmatmul.mubr.msk.f32.gmra.mxu0 %vm311_vm1, %v198_v3 }
 0x12c   :  { %v559_v7 = vpop.f32.mrf.mxu0  ;;  %v669_v10 = vpop.f32.mrf.mxu1  ;;  %975 = vmatprep.mubr.f32.mxu1 %v207_v4  ;;  %1861 = vmatprep.mubr.msk.f32.mxu0 %vm2033_vm0, %v2032_v0 }
 0x12e   :  { %v3152_v14 = vpop.f32.mrf.mxu0  ;;  %v3154_v17 = vpop.f32.mrf.mxu1 }
 0x12f   :  { %976 = vmatmul.mubr.f32.gmra.mxu1 %v206_v11  ;;  %1862 = vmatmul.mubr.msk.f32.gmra.mxu0 %vm311_vm1, %v203_v12 }
 0x130   :  { %v564_v18 = vpop.f32.mrf.mxu0  ;;  %v674_v19 = vpop.f32.mrf.mxu1  ;;  %980 = vmatprep.mubr.f32.mxu1 %v212_v13  ;;  %1864 = vmatprep.mubr.msk.f32.mxu0 %vm2033_vm0, %v2032_v0 }
 0x132   :  { %v3168_v25 = vpop.f32.mrf.mxu0  ;;  %v3170_v26 = vpop.f32.mrf.mxu1 }
 0x133   :  { %981 = vmatmul.mubr.f32.gmra.mxu1 %v211_v20  ;;  %1865 = vmatmul.mubr.msk.f32.gmra.mxu0 %vm311_vm1, %v208_v21 }
 0x134   :  { %v569_v27 = vpop.f32.mrf.mxu0  ;;  %v679_v28 = vpop.f32.mrf.mxu1  ;;  %985 = vmatprep.mubr.f32.mxu1 %v217_v24  ;;  %1867 = vmatprep.mubr.msk.f32.mxu0 %vm2033_vm0, %v2032_v0 }
 0x136   :  { %v3184_v34 = vpop.f32.mrf.mxu0  ;;  %v3186_v35 = vpop.f32.mrf.mxu1 }
 0x137   :  { %986 = vmatmul.mubr.f32.gmra.mxu1 %v216_v31  ;;  %1868 = vmatmul.mubr.msk.f32.gmra.mxu0 %vm311_vm1, %v213_v32 }
 0x138   :  { %v574_v38 = vpop.f32.mrf.mxu0  ;;  %v684_v39 = vpop.f32.mrf.mxu1  ;;  %990 = vmatprep.mubr.f32.mxu1 %v222_v33  ;;  %1870 = vmatprep.mubr.msk.f32.mxu0 %vm2033_vm0, %v2032_v0  ;;  %v3247_v33 = vld [vmem:[%s3706_s2] ss:$0 sm:$0xff] }
 0x13a   :  { %v3200_v45 = vpop.f32.mrf.mxu0  ;;  %v3202_v46 = vpop.f32.mrf.mxu1 }
 0x13b   :  { %991 = vmatmul.mubr.f32.gmra.mxu1 %v221_v40  ;;  %1871 = vmatmul.mubr.msk.f32.gmra.mxu0 %vm311_vm1, %v218_v41  ;;  %v508_v41 = vadd.f32 %v3247_v33, %v2976_v57 }
 0x13c   :  { %v579_v47 = vpop.f32.mrf.mxu0  ;;  %v689_v48 = vpop.f32.mrf.mxu1  ;;  %995 = vmatprep.mubr.f32.mxu1 %v227_v42  ;;  %1873 = vmatprep.mubr.msk.f32.mxu0 %vm2033_vm0, %v2032_v0 }
 0x13e   :  { %v3213_v53 = vpop.f32.mrf.mxu0  ;;  %v3215_v54 = vpop.f32.mrf.mxu1 }
 0x13f   :  { %996 = vmatmul.mubr.f32.gmra.mxu1 %v226_v49  ;;  %1874 = vmatmul.mubr.msk.f32.gmra.mxu0 %vm311_vm1, %v223_v52 }
 0x140   :  { %v584_v55 = vpop.f32.mrf.mxu0  ;;  %v694_v56 = vpop.f32.mrf.mxu1  ;;  %1876 = vmatprep.mubr.msk.f32.mxu0 %vm2033_vm0, %v2032_v0 }
 0x141   :  { %v513_v55 = vadd.f32 %v3247_v33, %v2992_v1 }
 0x142   :  { %v3223_v62 = vpop.f32.mrf.mxu0  ;;  %v3225_v63 = vpop.f32.mrf.mxu1 }
 0x143   :  { %1877 = vmatmul.mubr.msk.f32.gmra.mxu0 %vm311_vm1, %v228_v61 }
 0x144   :  { %v589_v3 = vpop.f32.mrf.mxu0  ;;  %v699_v4 = vpop.f32.mrf.mxu1 }
 0x146   :  { %v3228_v7 = vpop.f32.mrf.mxu0  ;;  %v3230_v10 = vpop.f32.mrf.mxu1 }
 0x148   :  { %v594_v11 = vpop.f32.mrf.mxu0  ;;  %v704_v12 = vpop.f32.mrf.mxu1 }
 0x14a   :  { %v3232_v13 = vpop.f32.mrf.mxu0  ;;  %v3234_v0 = vpop.f32.mrf.mxu1 }
 0x14c   :  { %v599_v18 = vpop.f32.mrf.mxu0  ;;  %v709_v19 = vpop.f32.mrf.mxu1 }
 0x14d   :  { %v518_v19 = vadd.f32 %v3247_v33, %v3008_v8 }
 0x14e   :  { %v3236_v20 = vpop.f32.mrf.mxu0  ;;  %v3238_v21 = vpop.f32.mrf.mxu1 }
 0x150   :  { %v604_v24 = vpop.f32.mrf.mxu0  ;;  %v714_v27 = vpop.f32.mrf.mxu1 }
 0x152   :  { %v3240_v28 = vpop.f32.mrf.mxu0 }
 0x153   :  { %v3242_v31 = vpop.f32.mrf.mxu1 }
 0x154   :  { %v609_v32 = vpop.f32.mrf.mxu0 }
 0x155   :  { %v719_v38 = vpop.f32.mrf.mxu1 }
 0x157   :  { %v3249_v39 = vpop.f32.mrf.mxu0  ;;  %v787_v40 = vpop.f32.mrf.mxu1 }
 0x158   :  { %v788_v48 = vadd.f32 %v787_v40, %v508_v41 }
 0x159   :  { %v614_v42 = vpop.f32.mrf.mxu0  ;;  %v789_v47 = vpop.f32.mrf.mxu1 }
 0x15a   :  { %v523_v42 = vadd.f32 %v3247_v33, %v3024_v15 }
 0x15b   :  { %v792_v49 = vpop.f32.mrf.mxu1  ;;  %v1067_v52 = vpop.f32.mrf.mxu0 }
 0x15c   :  { %v1068_v56 = vadd.f32 %v1067_v52, %v788_v48  ;;  %v793_v4 = vadd.f32 %v792_v49, %v513_v55 }
 0x15d   :  { %v794_v61 = vpop.f32.mrf.mxu1  ;;  %v1752_v3 = vpop.f32.mrf.mxu0 }
 0x15e   :  { %v1324_v11 = vmin.f32 %v1068_v56, 0.0  ;;  %vm1281_vm3 = vcmp.gt.f32.partialorder %v1068_v56, 0.0 }
 0x15f   :  { %v797_v12 = vpop.f32.mrf.mxu1  ;;  %v1072_v18 = vpop.f32.mrf.mxu0 }
 0x160   :  { %v1367_v24 = vmul.f32 1.442695, %v1324_v11  ;;  %v3257_v57 = vadd.f32 %v1072_v18, %v793_v4  ;;  %v798_v38 = vadd.f32 %v797_v12, %v518_v19  ;;  %v528_v4 = vadd.f32 %v3247_v33, %v3040_v22 }
 0x161   :  { %v799_v27 = vpop.f32.mrf.mxu1  ;;  %v1755_v32 = vpop.f32.mrf.mxu0 }
 0x162   :  { %1945 = vpow2.f32 %v1367_v24  ;;  %v1325_v40 = vmin.f32 %v3257_v57, 0.0  ;;  %vm1282_vm4 = vcmp.gt.f32.partialorder %v3257_v57, 0.0 }
 0x163   :  { %v802_v1 = vpop.f32.mrf.mxu1  ;;  %v1077_v41 = vpop.f32.mrf.mxu0 }
 0x164   :  { %v1369_v47 = vmul.f32 1.442695, %v1325_v40  ;;  %v3262_v48 = vadd.f32 %v1077_v41, %v798_v38  ;;  %v803_v8 = vadd.f32 %v802_v1, %v523_v42  ;;  %v533_v38 = vadd.f32 %v3247_v33, %v3056_v29 }
 0x165   :  { %v804_v49 = vpop.f32.mrf.mxu1  ;;  %v1758_v52 = vpop.f32.mrf.mxu0 }
 0x166   :  { %1947 = vpow2.f32 %v1369_v47  ;;  %v1326_v55 = vmin.f32 %v3262_v48, 0.0  ;;  %vm1283_vm5 = vcmp.gt.f32.partialorder %v3262_v48, 0.0 }
 0x167   :  { %v807_v61 = vpop.f32.mrf.mxu1  ;;  %v1082_v3 = vpop.f32.mrf.mxu0 }
 0x168   :  { %v1371_v11 = vmul.f32 1.442695, %v1326_v55  ;;  %v3267_v12 = vadd.f32 %v1082_v3, %v803_v8  ;;  %v808_v15 = vadd.f32 %v807_v61, %v528_v4  ;;  %v538_v55 = vadd.f32 %v3247_v33, %v3072_v36 }
 0x169   :  { %v809_v18 = vpop.f32.mrf.mxu1  ;;  %v1761_v19 = vpop.f32.mrf.mxu0 }
 0x16a   :  { %1949 = vpow2.f32 %v1371_v11  ;;  %v1327_v24 = vmin.f32 %v3267_v12, 0.0  ;;  %vm1284_vm6 = vcmp.gt.f32.partialorder %v3267_v12, 0.0 }
 0x16b   :  { %v812_v27 = vpop.f32.mrf.mxu1  ;;  %v1087_v32 = vpop.f32.mrf.mxu0 }
 0x16c   :  { %v1373_v40 = vmul.f32 1.442695, %v1327_v24  ;;  %v3272_v1 = vadd.f32 %v1087_v32, %v808_v15  ;;  %v813_v22 = vadd.f32 %v812_v27, %v533_v38  ;;  %v543_v32 = vadd.f32 %v3247_v33, %v3088_v43 }
 0x16d   :  { %v814_v41 = vpop.f32.mrf.mxu1  ;;  %v1764_v42 = vpop.f32.mrf.mxu0 }
 0x16e   :  { %1951 = vpow2.f32 %v1373_v40  ;;  %v1328_v47 = vmin.f32 %v3272_v1, 0.0  ;;  %vm1285_vm7 = vcmp.gt.f32.partialorder %v3272_v1, 0.0 }
 0x16f   :  { %v1946_v49 = vpop.eup %1945  ;;  %v817_v52 = vpop.f32.mrf.mxu1 }
 0x170   :  { %v1092_v8 = vpop.f32.mrf.mxu0  ;;  %v1631_v61 = vadd.f32 -1.0, %v1946_v49  ;;  %v1375_v3 = vmul.f32 1.442695, %v1328_v47  ;;  %v818_v19 = vadd.f32 %v817_v52, %v538_v55  ;;  %v548_v55 = vadd.f32 %v3247_v33, %v3104_v50 }
 0x171   :  { %v3277_v4 = vadd.f32 %v1092_v8, %v813_v22  ;;  %v819_v29 = vpop.f32.mrf.mxu1 }
 0x172   :  { %v1767_v11 = vpop.f32.mrf.mxu0  ;;  %v1496_v18 = vsel %vm1281_vm3, %v1068_v56, %v1631_v61  ;;  %1953 = vpow2.f32 %v1375_v3 }
 0x173   :  { %v1329_v15 = vmin.f32 %v3277_v4, 0.0  ;;  %v1948_v24 = vpop.eup %1947  ;;  %1540 = vst.msk [vmem:[%s3707_s3] sm:$0xff] %vm1539_vm2, %v1496_v18  ;;  %v822_v27 = vpop.f32.mrf.mxu1  ;;  %vm1286_vm8 = vcmp.gt.f32.partialorder %v3277_v4, 0.0 }
 0x174   :  { %v1097_v36 = vpop.f32.mrf.mxu0  ;;  %v1632_v38 = vadd.f32 -1.0, %v1948_v24  ;;  %v823_v47 = vadd.f32 %v822_v27, %v543_v32 }
 0x175   :  { %v1377_v40 = vmul.f32 1.442695, %v1329_v15  ;;  %v3286_v41 = vadd.f32 %v1097_v36, %v818_v19  ;;  %v824_v56 = vpop.f32.mrf.mxu1  ;;  %v553_v36 = vadd.f32 %v3247_v33, %v3120_v59 }
 0x176   :  { %v1770_v42 = vpop.f32.mrf.mxu0  ;;  %v1497_v22 = vsel %vm1282_vm4, %v3257_v57, %v1632_v38 }
 0x177   :  { %1955 = vpow2.f32 %v1377_v40  ;;  %v1330_v49 = vmin.f32 %v3286_v41, 0.0  ;;  %v1950_v52 = vpop.eup %1949  ;;  %1541 = vst.msk [vmem:[%s3707_s3 + $0x8] sm:$0xff] %vm1539_vm2, %v1497_v22  ;;  %v827_v43 = vpop.f32.mrf.mxu1  ;;  %vm1287_vm9 = vcmp.gt.f32.partialorder %v3286_v41, 0.0 }
 0x178   :  { %v1102_v8 = vpop.f32.mrf.mxu0  ;;  %v1633_v61 = vadd.f32 -1.0, %v1950_v52  ;;  %v828_v19 = vadd.f32 %v827_v43, %v548_v55  ;;  %v558_v43 = vadd.f32 %v3247_v33, %v3136_v5 }
 0x179   :  { %v1379_v3 = vmul.f32 1.442695, %v1330_v49  ;;  %v3297_v29 = vadd.f32 %v1102_v8, %v823_v47  ;;  %v829_v57 = vpop.f32.mrf.mxu1 }
 0x17a   :  { %v1773_v11 = vpop.f32.mrf.mxu0  ;;  %v1498_v18 = vsel %vm1283_vm5, %v3262_v48, %v1633_v61 }
 0x17b   :  { %1957 = vpow2.f32 %v1379_v3  ;;  %v1331_v15 = vmin.f32 %v3297_v29, 0.0  ;;  %v1952_v24 = vpop.eup %1951  ;;  %1542 = vst.msk [vmem:[%s3707_s3 + $0x10] sm:$0xff] %vm1539_vm2, %v1498_v18  ;;  %v832_v50 = vpop.f32.mrf.mxu1  ;;  %vm1288_vm10 = vcmp.gt.f32.partialorder %v3297_v29, 0.0 }
 0x17c   :  { %v1107_v27 = vpop.f32.mrf.mxu0  ;;  %v1634_v32 = vadd.f32 -1.0, %v1952_v24  ;;  %v833_v22 = vadd.f32 %v832_v50, %v553_v36  ;;  %v563_v24 = vadd.f32 %v3247_v33, %v3152_v14 }
 0x17d   :  { %v1381_v38 = vmul.f32 1.442695, %v1331_v15  ;;  %v3308_v40 = vadd.f32 %v1107_v27, %v828_v19  ;;  %v834_v48 = vpop.f32.mrf.mxu1 }
 0x17e   :  { %v1776_v56 = vpop.f32.mrf.mxu0  ;;  %v1499_v42 = vsel %vm1284_vm6, %v3267_v12, %v1634_v32 }
 0x17f   :  { %1959 = vpow2.f32 %v1381_v38  ;;  %v1332_v47 = vmin.f32 %v3308_v40, 0.0  ;;  %v1954_v49 = vpop.eup %1953  ;;  %1543 = vst.msk [vmem:[%s3707_s3 + $0x18] sm:$0xff] %vm1539_vm2, %v1499_v42  ;;  %v837_v59 = vpop.f32.mrf.mxu1  ;;  %vm1289_vm11 = vcmp.gt.f32.partialorder %v3308_v40, 0.0 }
 0x180   :  { %v1112_v52 = vpop.f32.mrf.mxu0  ;;  %v1635_v8 = vadd.f32 -1.0, %v1954_v49  ;;  %v838_v11 = vadd.f32 %v837_v59, %v558_v43 }
 0x181   :  { %v1383_v55 = vmul.f32 1.442695, %v1332_v47  ;;  %v3319_v61 = vadd.f32 %v1112_v52, %v833_v22  ;;  %v839_v12 = vpop.f32.mrf.mxu1  ;;  %v568_v47 = vadd.f32 %v3247_v33, %v3168_v25 }
 0x182   :  { %v1779_v3 = vpop.f32.mrf.mxu0  ;;  %v1500_v57 = vsel %vm1285_vm7, %v3272_v1, %v1635_v8 }
 0x183   :  { %1961 = vpow2.f32 %v1383_v55  ;;  %v1333_v18 = vmin.f32 %v3319_v61, 0.0  ;;  %1544 = vst.msk [vmem:[%s3707_s3 + $0x20] sm:$0xff] %vm1539_vm2, %v1500_v57  ;;  %v842_v5 = vpop.f32.mrf.mxu1  ;;  %vm1290_vm12 = vcmp.gt.f32.partialorder %v3319_v61, 0.0 }
 0x184   :  { %v1956_v19 = vpop.eup %1955  ;;  %v1117_v15 = vpop.f32.mrf.mxu0  ;;  %v843_v48 = vadd.f32 %v842_v5, %v563_v24 }
 0x185   :  { %v1636_v50 = vadd.f32 -1.0, %v1956_v19  ;;  %v1385_v27 = vmul.f32 1.442695, %v1333_v18  ;;  %v3330_v36 = vadd.f32 %v1117_v15, %v838_v11  ;;  %v844_v1 = vpop.f32.mrf.mxu1  ;;  %v573_v11 = vadd.f32 %v3247_v33, %v3184_v34 }
 0x186   :  { %v1782_v32 = vpop.f32.mrf.mxu0 }
 0x187   :  { %v1501_v38 = vsel %vm1286_vm8, %v3277_v4, %v1636_v50  ;;  %1963 = vpow2.f32 %v1385_v27  ;;  %v1334_v56 = vmin.f32 %v3330_v36, 0.0  ;;  %v847_v14 = vpop.f32.mrf.mxu1  ;;  %vm1291_vm13 = vcmp.gt.f32.partialorder %v3330_v36, 0.0 }
 0x188   :  { %v1958_v42 = vpop.eup %1957  ;;  %1545 = vst.msk [vmem:[%s3707_s3 + $0x28] sm:$0xff] %vm1539_vm2, %v1501_v38  ;;  %v1122_v22 = vpop.f32.mrf.mxu0  ;;  %v848_v55 = vadd.f32 %v847_v14, %v568_v47  ;;  %v578_v38 = vadd.f32 %v3247_v33, %v3200_v45 }
 0x189   :  { %v1637_v49 = vadd.f32 -1.0, %v1958_v42  ;;  %v1387_v59 = vmul.f32 1.442695, %v1334_v56  ;;  %v3341_v52 = vadd.f32 %v1122_v22, %v843_v48  ;;  %v849_v4 = vpop.f32.mrf.mxu1 }
 0x18a   :  { %v1785_v43 = vpop.f32.mrf.mxu0 }
 0x18b   :  { %v1502_v8 = vsel %vm1287_vm9, %v3286_v41, %v1637_v49  ;;  %1965 = vpow2.f32 %v1387_v59  ;;  %v1335_v12 = vmin.f32 %v3341_v52, 0.0  ;;  %v852_v25 = vpop.f32.mrf.mxu1  ;;  %v583_v43 = vadd.f32 %v3247_v33, %v3213_v53 }
 0x18c   :  { %v1960_v3 = vpop.eup %1959  ;;  %1546 = vst.msk [vmem:[%s3707_s3 + $0x30] sm:$0xff] %vm1539_vm2, %v1502_v8  ;;  %v1127_v57 = vpop.f32.mrf.mxu0  ;;  %v853_v50 = vadd.f32 %v852_v25, %v573_v11  ;;  %vm1292_vm14 = vcmp.gt.f32.partialorder %v3341_v52, 0.0 }
 0x18d   :  { %v1638_v18 = vadd.f32 -1.0, %v1960_v3  ;;  %v1389_v19 = vmul.f32 1.442695, %v1335_v12  ;;  %v3352_v5 = vadd.f32 %v1127_v57, %v848_v55  ;;  %v854_v41 = vpop.f32.mrf.mxu1 }
 0x18e   :  { %v1788_v15 = vpop.f32.mrf.mxu0  ;;  %v588_v41 = vadd.f32 %v3247_v33, %v3223_v62 }
 0x18f   :  { %v1503_v24 = vsel %vm1288_vm10, %v3297_v29, %v1638_v18  ;;  %1967 = vpow2.f32 %v1389_v19  ;;  %v1336_v27 = vmin.f32 %v3352_v5, 0.0  ;;  %v857_v34 = vpop.f32.mrf.mxu1  ;;  %vm1293_vm15 = vcmp.gt.f32.partialorder %v3352_v5, 0.0 }
 0x190   :  { %v1962_v1 = vpop.eup %1961  ;;  %1547 = vst.msk [vmem:[%s3707_s3 + $0x38] sm:$0xff] %vm1539_vm2, %v1503_v24  ;;  %v1132_v32 = vpop.f32.mrf.mxu0  ;;  %v858_v47 = vadd.f32 %v857_v34, %v578_v38 }
 0x191   :  { %v1639_v48 = vadd.f32 -1.0, %v1962_v1  ;;  %v1391_v56 = vmul.f32 1.442695, %v1336_v27  ;;  %v3363_v42 = vadd.f32 %v1132_v32, %v853_v50  ;;  %v859_v29 = vpop.f32.mrf.mxu1 }
 0x192   :  { %v1791_v14 = vpop.f32.mrf.mxu0 }
 0x193   :  { %v1504_v22 = vsel %vm1289_vm11, %v3308_v40, %v1639_v48  ;;  %1969 = vpow2.f32 %v1391_v56  ;;  %v1337_v49 = vmin.f32 %v3363_v42, 0.0  ;;  %v862_v45 = vpop.f32.mrf.mxu1  ;;  %v593_v56 = vadd.f32 %v3247_v33, %v3228_v7 }
 0x194   :  { %v1964_v59 = vpop.eup %1963  ;;  %1548 = vst.msk [vmem:[%s3707_s3 + $0x40] sm:$0xff] %vm1539_vm2, %v1504_v22  ;;  %v1137_v4 = vpop.f32.mrf.mxu0  ;;  %v863_v57 = vadd.f32 %v862_v45, %v583_v43  ;;  %vm1294_vm0 = vcmp.gt.f32.partialorder %v3363_v42, 0.0 }
 0x195   :  { %v1640_v8 = vadd.f32 -1.0, %v1964_v59  ;;  %v1393_v55 = vmul.f32 1.442695, %v1337_v49  ;;  %v3374_v12 = vadd.f32 %v1137_v4, %v858_v47  ;;  %v864_v40 = vpop.f32.mrf.mxu1 }
 0x196   :  { %v1794_v3 = vpop.f32.mrf.mxu0 }
 0x197   :  { %v1505_v25 = vsel %vm1290_vm12, %v3319_v61, %v1640_v8  ;;  %1971 = vpow2.f32 %v1393_v55  ;;  %v1338_v11 = vmin.f32 %v3374_v12, 0.0  ;;  %v867_v53 = vpop.f32.mrf.mxu1  ;;  %v598_v8 = vadd.f32 %v3247_v33, %v3232_v13 }
 0x198   :  { %v1966_v18 = vpop.eup %1965  ;;  %1549 = vst.msk [vmem:[%s3707_s3 + $0x48] sm:$0xff] %vm1539_vm2, %v1505_v25  ;;  %v1142_v19 = vpop.f32.mrf.mxu0  ;;  %v868_v34 = vadd.f32 %v867_v53, %v588_v41  ;;  %v603_v41 = vadd.f32 %v3247_v33, %v3236_v20  ;;  %vm1295_vm1 = vcmp.gt.f32.partialorder %v3374_v12, 0.0 }
 0x199   :  { %v1641_v15 = vadd.f32 -1.0, %v1966_v18  ;;  %v1395_v24 = vmul.f32 1.442695, %v1338_v11  ;;  %v3385_v50 = vadd.f32 %v1142_v19, %v863_v57  ;;  %v869_v61 = vpop.f32.mrf.mxu1 }
 0x19a   :  { %v1797_v27 = vpop.f32.mrf.mxu0 }
 0x19b   :  { %v1506_v1 = vsel %vm1291_vm13, %v3330_v36, %v1641_v15  ;;  %1973 = vpow2.f32 %v1395_v24  ;;  %v1339_v32 = vmin.f32 %v3385_v50, 0.0  ;;  %v872_v62 = vpop.f32.mrf.mxu1  ;;  %vm1296_vm3 = vcmp.gt.f32.partialorder %v3385_v50, 0.0 }
 0x19c   :  { %v1968_v38 = vpop.eup %1967  ;;  %1550 = vst.msk [vmem:[%s3707_s3 + $0x50] sm:$0xff] %vm1539_vm2, %v1506_v1  ;;  %v1147_v48 = vpop.f32.mrf.mxu0  ;;  %v873_v59 = vadd.f32 %v872_v62, %v593_v56 }
 0x19d   :  { %v1642_v29 = vadd.f32 -1.0, %v1968_v38  ;;  %v1397_v14 = vmul.f32 1.442695, %v1339_v32  ;;  %v3396_v22 = vadd.f32 %v1147_v48, %v868_v34  ;;  %v874_v36 = vpop.f32.mrf.mxu1  ;;  %v608_v48 = vadd.f32 %v3247_v33, %v3240_v28 }
 0x19e   :  { %v1800_v47 = vpop.f32.mrf.mxu0 }
 0x19f   :  { %v1507_v49 = vsel %vm1292_vm14, %v3341_v52, %v1642_v29  ;;  %1975 = vpow2.f32 %v1397_v14  ;;  %v1340_v45 = vmin.f32 %v3396_v22, 0.0  ;;  %v877_v7 = vpop.f32.mrf.mxu1  ;;  %vm1297_vm4 = vcmp.gt.f32.partialorder %v3396_v22, 0.0 }
 0x1a0   :  { %v1970_v4 = vpop.eup %1969  ;;  %1551 = vst.msk [vmem:[%s3707_s3 + $0x58] sm:$0xff] %vm1539_vm2, %v1507_v49  ;;  %v1152_v43 = vpop.f32.mrf.mxu0  ;;  %v878_v11 = vadd.f32 %v877_v7, %v598_v8  ;;  %v613_v7 = vadd.f32 %v3247_v33, %v3249_v39 }
 0x1a1   :  { %v1643_v55 = vadd.f32 -1.0, %v1970_v4  ;;  %v1399_v40 = vmul.f32 1.442695, %v1340_v45  ;;  %v3407_v3 = vadd.f32 %v1152_v43, %v873_v59  ;;  %v879_v52 = vpop.f32.mrf.mxu1 }
 0x1a2   :  { %v1803_v25 = vpop.f32.mrf.mxu0 }
 0x1a3   :  { %v1508_v57 = vsel %vm1293_vm15, %v3352_v5, %v1643_v55  ;;  %1977 = vpow2.f32 %v1399_v40  ;;  %v1341_v18 = vmin.f32 %v3407_v3, 0.0  ;;  %v882_v13 = vpop.f32.mrf.mxu1  ;;  %vm1298_vm5 = vcmp.gt.f32.partialorder %v3407_v3, 0.0 }
 0x1a4   :  { %v1972_v53 = vpop.eup %1971  ;;  %1552 = vst.msk [vmem:[%s3707_s3 + $0x60] sm:$0xff] %vm1539_vm2, %v1508_v57  ;;  %v1157_v19 = vpop.f32.mrf.mxu0  ;;  %v883_v34 = vadd.f32 %v882_v13, %v603_v41 }
 0x1a5   :  { %v1644_v15 = vadd.f32 -1.0, %v1972_v53  ;;  %v1401_v24 = vmul.f32 1.442695, %v1341_v18  ;;  %v3418_v61 = vadd.f32 %v1157_v19, %v878_v11  ;;  %v884_v5 = vpop.f32.mrf.mxu1  ;;  %v618_v53 = vadd.f32 %v3247_v33, %v2978_v58 }
 0x1a6   :  { %v1806_v27 = vpop.f32.mrf.mxu0 }
 0x1a7   :  { %v1509_v1 = vsel %vm1294_vm0, %v3363_v42, %v1644_v15  ;;  %1979 = vpow2.f32 %v1401_v24  ;;  %v1342_v32 = vmin.f32 %v3418_v61, 0.0  ;;  %v887_v20 = vpop.f32.mrf.mxu1  ;;  %vm1299_vm6 = vcmp.gt.f32.partialorder %v3418_v61, 0.0 }
 0x1a8   :  { %v1974_v38 = vpop.eup %1973  ;;  %1553 = vst.msk [vmem:[%s3707_s3 + $0x68] sm:$0xff] %vm1539_vm2, %v1509_v1  ;;  %v1162_v62 = vpop.f32.mrf.mxu0  ;;  %v888_v49 = vadd.f32 %v887_v20, %v608_v48 }
 0x1a9   :  { %v1645_v56 = vadd.f32 -1.0, %v1974_v38  ;;  %v1403_v29 = vmul.f32 1.442695, %v1342_v32  ;;  %v3429_v14 = vadd.f32 %v1162_v62, %v883_v34  ;;  %v889_v42 = vpop.f32.mrf.mxu1  ;;  %v623_v32 = vadd.f32 %v3247_v33, %v2994_v2 }
 0x1aa   :  { %v1809_v36 = vpop.f32.mrf.mxu0 }
 0x1ab   :  { %v1510_v47 = vsel %vm1295_vm1, %v3374_v12, %v1645_v56  ;;  %1981 = vpow2.f32 %v1403_v29  ;;  %v1343_v59 = vmin.f32 %v3429_v14, 0.0  ;;  %v892_v28 = vpop.f32.mrf.mxu1  ;;  %vm1300_vm7 = vcmp.gt.f32.partialorder %v3429_v14, 0.0 }
 0x1ac   :  { %v1976_v45 = vpop.eup %1975  ;;  %1554 = vst.msk [vmem:[%s3707_s3 + $0x70] sm:$0xff] %vm1539_vm2, %v1510_v47  ;;  %v1167_v4 = vpop.f32.mrf.mxu0  ;;  %v893_v25 = vadd.f32 %v892_v28, %v613_v7 }
 0x1ad   :  { %v1646_v43 = vadd.f32 -1.0, %v1976_v45  ;;  %v1405_v8 = vmul.f32 1.442695, %v1343_v59  ;;  %v3440_v55 = vadd.f32 %v1167_v4, %v888_v49  ;;  %v894_v12 = vpop.f32.mrf.mxu1  ;;  %v628_v49 = vadd.f32 %v3247_v33, %v3010_v9 }
 0x1ae   :  { %v1812_v40 = vpop.f32.mrf.mxu0 }
 0x1af   :  { %v1511_v52 = vsel %vm1296_vm3, %v3385_v50, %v1646_v43  ;;  %1983 = vpow2.f32 %v1405_v8  ;;  %v1344_v57 = vmin.f32 %v3440_v55, 0.0  ;;  %v897_v39 = vpop.f32.mrf.mxu1  ;;  %vm1301_vm8 = vcmp.gt.f32.partialorder %v3440_v55, 0.0 }
 0x1b0   :  { %v1978_v11 = vpop.eup %1977  ;;  %1555 = vst.msk [vmem:[%s3707_s3 + $0x78] sm:$0xff] %vm1539_vm2, %v1511_v52  ;;  %v1172_v18 = vpop.f32.mrf.mxu0  ;;  %v898_v5 = vadd.f32 %v897_v39, %v618_v53  ;;  %v633_v52 = vadd.f32 %v3247_v33, %v3026_v16 }
 0x1b1   :  { %v1647_v13 = vadd.f32 -1.0, %v1978_v11  ;;  %v1407_v19 = vmul.f32 1.442695, %v1344_v57  ;;  %v3451_v41 = vadd.f32 %v1172_v18, %v893_v25  ;;  %v899_v50 = vpop.f32.mrf.mxu1 }
 0x1b2   :  { %v1815_v15 = vpop.f32.mrf.mxu0 }
 0x1b3   :  { %v1512_v24 = vsel %vm1297_vm4, %v3396_v22, %v1647_v13  ;;  %1985 = vpow2.f32 %v1407_v19  ;;  %v1345_v27 = vmin.f32 %v3451_v41, 0.0  ;;  %v902_v58 = vpop.f32.mrf.mxu1  ;;  %v638_v15 = vadd.f32 %v3247_v33, %v3042_v23 }
 0x1b4   :  { %v1980_v1 = vpop.eup %1979  ;;  %1556 = vst.msk [vmem:[%s3707_s3 + $0x80] sm:$0xff] %vm1539_vm2, %v1512_v24  ;;  %v1177_v34 = vpop.f32.mrf.mxu0  ;;  %v903_v29 = vadd.f32 %v902_v58, %v623_v32  ;;  %vm1302_vm9 = vcmp.gt.f32.partialorder %v3451_v41, 0.0 }
 0x1b5   :  { %v1648_v38 = vadd.f32 -1.0, %v1980_v1  ;;  %v1409_v20 = vmul.f32 1.442695, %v1345_v27  ;;  %v3462_v62 = vadd.f32 %v1177_v34, %v898_v5  ;;  %v904_v22 = vpop.f32.mrf.mxu1 }
 0x1b6   :  { %v1818_v48 = vpop.f32.mrf.mxu0  ;;  %v643_v22 = vadd.f32 %v3247_v33, %v3058_v30 }
 0x1b7   :  { %v1513_v56 = vsel %vm1298_vm5, %v3407_v3, %v1648_v38  ;;  %1987 = vpow2.f32 %v1409_v20  ;;  %v1346_v42 = vmin.f32 %v3462_v62, 0.0  ;;  %v907_v2 = vpop.f32.mrf.mxu1  ;;  %vm1303_vm10 = vcmp.gt.f32.partialorder %v3462_v62, 0.0 }
 0x1b8   :  { %v1982_v36 = vpop.eup %1981  ;;  %1557 = vst.msk [vmem:[%s3707_s3 + $0x88] sm:$0xff] %vm1539_vm2, %v1513_v56  ;;  %v1182_v47 = vpop.f32.mrf.mxu0  ;;  %v908_v43 = vadd.f32 %v907_v2, %v628_v49 }
 0x1b9   :  { %v1649_v59 = vadd.f32 -1.0, %v1982_v36  ;;  %v1411_v45 = vmul.f32 1.442695, %v1346_v42  ;;  %v3473_v28 = vadd.f32 %v1182_v47, %v903_v29  ;;  %v909_v3 = vpop.f32.mrf.mxu1 }
 0x1ba   :  { %v1821_v4 = vpop.f32.mrf.mxu0 }
 0x1bb   :  { %v1514_v7 = vsel %vm1299_vm6, %v3418_v61, %v1649_v59  ;;  %1989 = vpow2.f32 %v1411_v45  ;;  %v1347_v8 = vmin.f32 %v3473_v28, 0.0  ;;  %v912_v9 = vpop.f32.mrf.mxu1  ;;  %v648_v45 = vadd.f32 %v3247_v33, %v3074_v37 }
 0x1bc   :  { %v1984_v12 = vpop.eup %1983  ;;  %1558 = vst.msk [vmem:[%s3707_s3 + $0x90] sm:$0xff] %vm1539_vm2, %v1514_v7  ;;  %v1187_v40 = vpop.f32.mrf.mxu0  ;;  %v913_v53 = vadd.f32 %v912_v9, %v633_v52  ;;  %vm1304_vm11 = vcmp.gt.f32.partialorder %v3473_v28, 0.0 }
 0x1bd   :  { %v1650_v25 = vadd.f32 -1.0, %v1984_v12  ;;  %v1413_v57 = vmul.f32 1.442695, %v1347_v8  ;;  %v3484_v11 = vadd.f32 %v1187_v40, %v908_v43  ;;  %v914_v61 = vpop.f32.mrf.mxu1 }
 0x1be   :  { %v1824_v39 = vpop.f32.mrf.mxu0 }
 0x1bf   :  { %v1515_v18 = vsel %vm1300_vm7, %v3429_v14, %v1650_v25  ;;  %1991 = vpow2.f32 %v1413_v57  ;;  %v1348_v13 = vmin.f32 %v3484_v11, 0.0  ;;  %v917_v16 = vpop.f32.mrf.mxu1  ;;  %v653_v25 = vadd.f32 %v3247_v33, %v3090_v44 }
 0x1c0   :  { %v1986_v19 = vpop.eup %1985  ;;  %1559 = vst.msk [vmem:[%s3707_s3 + $0x98] sm:$0xff] %vm1539_vm2, %v1515_v18  ;;  %v1192_v50 = vpop.f32.mrf.mxu0  ;;  %v918_v34 = vadd.f32 %v917_v16, %v638_v15  ;;  %v658_v15 = vadd.f32 %v3247_v33, %v3106_v51  ;;  %vm1305_vm12 = vcmp.gt.f32.partialorder %v3484_v11, 0.0 }
 0x1c1   :  { %v1651_v24 = vadd.f32 -1.0, %v1986_v19  ;;  %v1415_v5 = vmul.f32 1.442695, %v1348_v13  ;;  %v3495_v27 = vadd.f32 %v1192_v50, %v913_v53  ;;  %v919_v14 = vpop.f32.mrf.mxu1 }
 0x1c2   :  { %v1827_v1 = vpop.f32.mrf.mxu0 }
 0x1c3   :  { %v1516_v58 = vsel %vm1301_vm8, %v3440_v55, %v1651_v24  ;;  %1993 = vpow2.f32 %v1415_v5  ;;  %v1349_v32 = vmin.f32 %v3495_v27, 0.0  ;;  %v922_v23 = vpop.f32.mrf.mxu1  ;;  %vm1306_vm13 = vcmp.gt.f32.partialorder %v3495_v27, 0.0 }
 0x1c4   :  { %v1988_v38 = vpop.eup %1987  ;;  %1560 = vst.msk [vmem:[%s3707_s3 + $0xa0] sm:$0xff] %vm1539_vm2, %v1516_v58  ;;  %v1197_v20 = vpop.f32.mrf.mxu0  ;;  %v923_v2 = vadd.f32 %v922_v23, %v643_v22 }
 0x1c5   :  { %v1652_v48 = vadd.f32 -1.0, %v1988_v38  ;;  %v1417_v56 = vmul.f32 1.442695, %v1349_v32  ;;  %v3506_v29 = vadd.f32 %v1197_v20, %v918_v34  ;;  %v924_v55 = vpop.f32.mrf.mxu1  ;;  %v663_v20 = vadd.f32 %v3247_v33, %v3122_v60 }
 0x1c6   :  { %v1830_v42 = vpop.f32.mrf.mxu0 }
 0x1c7   :  { %v1517_v36 = vsel %vm1302_vm9, %v3451_v41, %v1652_v48  ;;  %1995 = vpow2.f32 %v1417_v56  ;;  %v1350_v47 = vmin.f32 %v3506_v29, 0.0  ;;  %v927_v30 = vpop.f32.mrf.mxu1  ;;  %vm1307_vm14 = vcmp.gt.f32.partialorder %v3506_v29, 0.0 }
 0x1c8   :  { %v1990_v49 = vpop.eup %1989  ;;  %1561 = vst.msk [vmem:[%s3707_s3 + $0xa8] sm:$0xff] %vm1539_vm2, %v1517_v36  ;;  %v1202_v59 = vpop.f32.mrf.mxu0  ;;  %v928_v12 = vadd.f32 %v927_v30, %v648_v45  ;;  %v668_v30 = vadd.f32 %v3247_v33, %v3138_v6 }
 0x1c9   :  { %v1653_v3 = vadd.f32 -1.0, %v1990_v49  ;;  %v1419_v4 = vmul.f32 1.442695, %v1350_v47  ;;  %v3517_v7 = vadd.f32 %v1202_v59, %v923_v2  ;;  %v929_v41 = vpop.f32.mrf.mxu1 }
 0x1ca   :  { %v1833_v43 = vpop.f32.mrf.mxu0 }
 0x1cb   :  { %v1518_v8 = vsel %vm1303_vm10, %v3462_v62, %v1653_v3  ;;  %1997 = vpow2.f32 %v1419_v4  ;;  %v1351_v9 = vmin.f32 %v3517_v7, 0.0  ;;  %v932_v37 = vpop.f32.mrf.mxu1  ;;  %vm1308_vm15 = vcmp.gt.f32.partialorder %v3517_v7, 0.0 }
 0x1cc   :  { %v1992_v40 = vpop.eup %1991  ;;  %1562 = vst.msk [vmem:[%s3707_s3 + $0xb0] sm:$0xff] %vm1539_vm2, %v1518_v8  ;;  %v1207_v52 = vpop.f32.mrf.mxu0  ;;  %v933_v13 = vadd.f32 %v932_v37, %v653_v25 }
 0x1cd   :  { %v1654_v57 = vadd.f32 -1.0, %v1992_v40  ;;  %v1421_v61 = vmul.f32 1.442695, %v1351_v9  ;;  %v3528_v39 = vadd.f32 %v1207_v52, %v928_v12  ;;  %v934_v62 = vpop.f32.mrf.mxu1  ;;  %v673_v40 = vadd.f32 %v3247_v33, %v3154_v17 }
 0x1ce   :  { %v1836_v18 = vpop.f32.mrf.mxu0 }
 0x1cf   :  { %v1519_v53 = vsel %vm1304_vm11, %v3473_v28, %v1654_v57  ;;  %1999 = vpow2.f32 %v1421_v61  ;;  %v1352_v19 = vmin.f32 %v3528_v39, 0.0  ;;  %v937_v44 = vpop.f32.mrf.mxu1  ;;  %vm1309_vm0 = vcmp.gt.f32.partialorder %v3528_v39, 0.0 }
 0x1d0   :  { %v1994_v16 = vpop.eup %1993  ;;  %1563 = vst.msk [vmem:[%s3707_s3 + $0xb8] sm:$0xff] %vm1539_vm2, %v1519_v53  ;;  %v1212_v50 = vpop.f32.mrf.mxu0  ;;  %v938_v34 = vadd.f32 %v937_v44, %v658_v15 }
 0x1d1   :  { %v1655_v24 = vadd.f32 -1.0, %v1994_v16  ;;  %v1423_v5 = vmul.f32 1.442695, %v1352_v19  ;;  %v3539_v14 = vadd.f32 %v1212_v50, %v933_v13  ;;  %v939_v28 = vpop.f32.mrf.mxu1  ;;  %v678_v19 = vadd.f32 %v3247_v33, %v3170_v26 }
 0x1d2   :  { %v1839_v1 = vpop.f32.mrf.mxu0 }
 0x1d3   :  { %v1520_v58 = vsel %vm1305_vm12, %v3484_v11, %v1655_v24  ;;  %2001 = vpow2.f32 %v1423_v5  ;;  %v1353_v32 = vmin.f32 %v3539_v14, 0.0  ;;  %v942_v51 = vpop.f32.mrf.mxu1  ;;  %vm1310_vm1 = vcmp.gt.f32.partialorder %v3539_v14, 0.0 }
 0x1d4   :  { %v1996_v38 = vpop.eup %1995  ;;  %1564 = vst.msk [vmem:[%s3707_s3 + $0xc0] sm:$0xff] %vm1539_vm2, %v1520_v58  ;;  %v1217_v23 = vpop.f32.mrf.mxu0  ;;  %v943_v36 = vadd.f32 %v942_v51, %v663_v20 }
 0x1d5   :  { %v1656_v22 = vadd.f32 -1.0, %v1996_v38  ;;  %v1425_v48 = vmul.f32 1.442695, %v1353_v32  ;;  %v3550_v56 = vadd.f32 %v1217_v23, %v938_v34  ;;  %v944_v11 = vpop.f32.mrf.mxu1  ;;  %v683_v34 = vadd.f32 %v3247_v33, %v3186_v35 }
 0x1d6   :  { %v1842_v55 = vpop.f32.mrf.mxu0 }
 0x1d7   :  { %v1521_v42 = vsel %vm1306_vm13, %v3495_v27, %v1656_v22  ;;  %2003 = vpow2.f32 %v1425_v48  ;;  %v1354_v2 = vmin.f32 %v3550_v56, 0.0  ;;  %v947_v60 = vpop.f32.mrf.mxu1  ;;  %vm1311_vm3 = vcmp.gt.f32.partialorder %v3550_v56, 0.0 }
 0x1d8   :  { %v1998_v47 = vpop.eup %1997  ;;  %1565 = vst.msk [vmem:[%s3707_s3 + $0xc8] sm:$0xff] %vm1539_vm2, %v1521_v42  ;;  %v1222_v49 = vpop.f32.mrf.mxu0  ;;  %v948_v43 = vadd.f32 %v947_v60, %v668_v30  ;;  %v688_v42 = vadd.f32 %v3247_v33, %v3202_v46 }
 0x1d9   :  { %v1657_v59 = vadd.f32 -1.0, %v1998_v47  ;;  %v1427_v45 = vmul.f32 1.442695, %v1354_v2  ;;  %v3561_v3 = vadd.f32 %v1222_v49, %v943_v36  ;;  %v949_v27 = vpop.f32.mrf.mxu1 }
 0x1da   :  { %v1845_v4 = vpop.f32.mrf.mxu0  ;;  %v3617_v27 = vld [vmem:[%s3706_s2] ss:$0 sm:$0xff] }
 0x1db   :  { %v1522_v41 = vsel %vm1307_vm14, %v3506_v29, %v1657_v59  ;;  %2005 = vpow2.f32 %v1427_v45  ;;  %v1355_v8 = vmin.f32 %v3561_v3, 0.0  ;;  %v952_v6 = vpop.f32.mrf.mxu1  ;;  %vm1312_vm4 = vcmp.gt.f32.partialorder %v3561_v3, 0.0 }
 0x1dc   :  { %v2000_v12 = vpop.eup %1999  ;;  %1566 = vst.msk [vmem:[%s3707_s3 + $0xd0] sm:$0xff] %vm1539_vm2, %v1522_v41  ;;  %v1227_v9 = vpop.f32.mrf.mxu0  ;;  %v953_v62 = vadd.f32 %v952_v6, %v673_v40 }
 0x1dd   :  { %v1658_v37 = vadd.f32 -1.0, %v2000_v12  ;;  %v1429_v52 = vmul.f32 1.442695, %v1355_v8  ;;  %v3572_v25 = vadd.f32 %v1227_v9, %v948_v43  ;;  %v954_v29 = vpop.f32.mrf.mxu1 }
 0x1de   :  { %v1848_v57 = vpop.f32.mrf.mxu0  ;;  %v698_v29 = vadd.f32 %v3617_v27, %v3225_v63 }
 0x1df   :  { %v1523_v61 = vsel %vm1308_vm15, %v3517_v7, %v1658_v37  ;;  %2007 = vpow2.f32 %v1429_v52  ;;  %v1356_v18 = vmin.f32 %v3572_v25, 0.0  ;;  %v957_v17 = vpop.f32.mrf.mxu1  ;;  %vm1313_vm5 = vcmp.gt.f32.partialorder %v3572_v25, 0.0 }
 0x1e0   :  { %v2002_v53 = vpop.eup %2001  ;;  %1567 = vst.msk [vmem:[%s3707_s3 + $0xd8] sm:$0xff] %vm1539_vm2, %v1523_v61  ;;  %v1232_v13 = vpop.f32.mrf.mxu0  ;;  %v958_v5 = vadd.f32 %v957_v17, %v678_v19 }
 0x1e1   :  { %v1659_v16 = vadd.f32 -1.0, %v2002_v53  ;;  %v1431_v44 = vmul.f32 1.442695, %v1356_v18  ;;  %v3583_v50 = vadd.f32 %v1232_v13, %v953_v62  ;;  %v959_v7 = vpop.f32.mrf.mxu1 }
 0x1e2   :  { %v1851_v15 = vpop.f32.mrf.mxu0 }
 0x1e3   :  { %v1524_v24 = vsel %vm1309_vm0, %v3528_v39, %v1659_v16  ;;  %2009 = vpow2.f32 %v1431_v44  ;;  %v1357_v28 = vmin.f32 %v3583_v50, 0.0  ;;  %v962_v26 = vpop.f32.mrf.mxu1  ;;  %v703_v44 = vadd.f32 %v3617_v27, %v3230_v10 }
 0x1e4   :  { %v2004_v1 = vpop.eup %2003  ;;  %1568 = vst.msk [vmem:[%s3707_s3 + $0xe0] sm:$0xff] %vm1539_vm2, %v1524_v24  ;;  %v1237_v58 = vpop.f32.mrf.mxu0  ;;  %v963_v22 = vadd.f32 %v962_v26, %v683_v34  ;;  %vm1314_vm6 = vcmp.gt.f32.partialorder %v3583_v50, 0.0 }
 0x1e5   :  { %v1660_v32 = vadd.f32 -1.0, %v2004_v1  ;;  %v1433_v38 = vmul.f32 1.442695, %v1357_v28  ;;  %v3594_v51 = vadd.f32 %v1237_v58, %v958_v5  ;;  %v964_v39 = vpop.f32.mrf.mxu1 }
 0x1e6   :  { %v1854_v23 = vpop.f32.mrf.mxu0 }
 0x1e7   :  { %v1525_v20 = vsel %vm1310_vm1, %v3539_v14, %v1660_v32  ;;  %2011 = vpow2.f32 %v1433_v38  ;;  %v1358_v48 = vmin.f32 %v3594_v51, 0.0  ;;  %v967_v35 = vpop.f32.mrf.mxu1  ;;  %v708_v32 = vadd.f32 %v3617_v27, %v3234_v0 }
 0x1e8   :  { %v2006_v11 = vpop.eup %2005  ;;  %1569 = vst.msk [vmem:[%s3707_s3 + $0xe8] sm:$0xff] %vm1539_vm2, %v1525_v20  ;;  %v1242_v55 = vpop.f32.mrf.mxu0  ;;  %v968_v30 = vadd.f32 %v967_v35, %v688_v42  ;;  %vm1315_vm7 = vcmp.gt.f32.partialorder %v3594_v51, 0.0  ;;  %v713_v42 = vadd.f32 %v3617_v27, %v3238_v21 }
 0x1e9   :  { %v1661_v36 = vadd.f32 -1.0, %v2006_v11  ;;  %v1435_v2 = vmul.f32 1.442695, %v1358_v48  ;;  %v3605_v47 = vadd.f32 %v1242_v55, %v963_v22  ;;  %v969_v14 = vpop.f32.mrf.mxu1 }
 0x1ea   :  { %v1857_v60 = vpop.f32.mrf.mxu0 }
 0x1eb   :  { %v1526_v49 = vsel %vm1311_vm3, %v3550_v56, %v1661_v36  ;;  %2013 = vpow2.f32 %v1435_v2  ;;  %v1359_v59 = vmin.f32 %v3605_v47, 0.0  ;;  %v972_v46 = vpop.f32.mrf.mxu1  ;;  %v693_v56 = vadd.f32 %v3617_v27, %v3215_v54 }
 0x1ec   :  { %v2008_v45 = vpop.eup %2007  ;;  %1570 = vst.msk [vmem:[%s3707_s3 + $0xf0] sm:$0xff] %vm1539_vm2, %v1526_v49  ;;  %v1247_v33 = vpop.f32.mrf.mxu0  ;;  %vm1316_vm8 = vcmp.gt.f32.partialorder %v3605_v47, 0.0 }
 0x1ed   :  { %v1662_v4 = vadd.f32 -1.0, %v2008_v45  ;;  %v1437_v41 = vmul.f32 1.442695, %v1359_v59  ;;  %v3621_v43 = vadd.f32 %v1247_v33, %v968_v30  ;;  %v974_v8 = vpop.f32.mrf.mxu1  ;;  %v973_v9 = vadd.f32 %v972_v46, %v693_v56 }
 0x1ee   :  { %v1860_v12 = vpop.f32.mrf.mxu0  ;;  %v718_v33 = vadd.f32 %v3617_v27, %v3242_v31 }
 0x1ef   :  { %v1527_v6 = vsel %vm1312_vm4, %v3561_v3, %v1662_v4  ;;  %2015 = vpow2.f32 %v1437_v41  ;;  %v1360_v40 = vmin.f32 %v3621_v43, 0.0  ;;  %v977_v54 = vpop.f32.mrf.mxu1  ;;  %vm1317_vm9 = vcmp.gt.f32.partialorder %v3621_v43, 0.0 }
 0x1f0   :  { %v2010_v37 = vpop.eup %2009  ;;  %1571 = vst.msk [vmem:[%s3707_s3 + $0xf8] sm:$0xff] %vm1539_vm2, %v1527_v6  ;;  %v1252_v52 = vpop.f32.mrf.mxu0  ;;  %v978_v17 = vadd.f32 %v977_v54, %v698_v29 }
 0x1f1   :  { %v1663_v57 = vadd.f32 -1.0, %v2010_v37  ;;  %v1439_v61 = vmul.f32 1.442695, %v1360_v40  ;;  %v3632_v62 = vadd.f32 %v1252_v52, %v973_v9  ;;  %v979_v3 = vpop.f32.mrf.mxu1 }
 0x1f2   :  { %v1863_v18 = vpop.f32.mrf.mxu0 }
 0x1f3   :  { %v1528_v53 = vsel %vm1313_vm5, %v3572_v25, %v1663_v57  ;;  %2017 = vpow2.f32 %v1439_v61  ;;  %v1361_v13 = vmin.f32 %v3632_v62, 0.0  ;;  %v982_v63 = vpop.f32.mrf.mxu1  ;;  %vm1318_vm10 = vcmp.gt.f32.partialorder %v3632_v62, 0.0 }
 0x1f4   :  { %v2012_v19 = vpop.eup %2011  ;;  %1572 = vst.msk [vmem:[%s3707_s3 + $0x100] sm:$0xff] %vm1539_vm2, %v1528_v53  ;;  %v1257_v16 = vpop.f32.mrf.mxu0  ;;  %v983_v1 = vadd.f32 %v982_v63, %v703_v44 }
 0x1f5   :  { %v1664_v7 = vadd.f32 -1.0, %v2012_v19  ;;  %v1441_v15 = vmul.f32 1.442695, %v1361_v13  ;;  %v3643_v24 = vadd.f32 %v1257_v16, %v978_v17  ;;  %v984_v25 = vpop.f32.mrf.mxu1 }
 0x1f6   :  { %v1866_v5 = vpop.f32.mrf.mxu0 }
 0x1f7   :  { %v1529_v28 = vsel %vm1314_vm6, %v3583_v50, %v1664_v7  ;;  %2019 = vpow2.f32 %v1441_v15  ;;  %v1362_v26 = vmin.f32 %v3643_v24, 0.0  ;;  %v987_v10 = vpop.f32.mrf.mxu1  ;;  %vm1319_vm11 = vcmp.gt.f32.partialorder %v3643_v24, 0.0 }
 0x1f8   :  { %v2014_v58 = vpop.eup %2013  ;;  %1573 = vst.msk [vmem:[%s3707_s3 + $0x108] sm:$0xff] %vm1539_vm2, %v1529_v28  ;;  %v1262_v34 = vpop.f32.mrf.mxu0  ;;  %v988_v48 = vadd.f32 %v987_v10, %v708_v32 }
 0x1f9   :  { %v1665_v38 = vadd.f32 -1.0, %v2014_v58  ;;  %v1443_v39 = vmul.f32 1.442695, %v1362_v26  ;;  %v1263_v23 = vadd.f32 %v1262_v34, %v983_v1  ;;  %v989_v50 = vpop.f32.mrf.mxu1 }
 0x1fa   :  { %v1869_v20 = vpop.f32.mrf.mxu0 }
 0x1fb   :  { %v1530_v22 = vsel %vm1315_vm7, %v3594_v51, %v1665_v38  ;;  %2021 = vpow2.f32 %v1443_v39  ;;  %v1363_v11 = vmin.f32 %v1263_v23, 0.0  ;;  %v992_v55 = vpop.f32.mrf.mxu1  ;;  %vm1320_vm12 = vcmp.gt.f32.partialorder %v1263_v23, 0.0 }
 0x1fc   :  { %v2016_v35 = vpop.eup %2015  ;;  %1574 = vst.msk [vmem:[%s3707_s3 + $0x110] sm:$0xff] %vm1539_vm2, %v1530_v22  ;;  %v1267_v0 = vpop.f32.mrf.mxu0  ;;  %v993_v30 = vadd.f32 %v992_v55, %v713_v42 }
 0x1fd   :  { %v1666_v36 = vadd.f32 -1.0, %v2016_v35  ;;  %v1445_v2 = vmul.f32 1.442695, %v1363_v11  ;;  %v1268_v14 = vadd.f32 %v1267_v0, %v988_v48  ;;  %v994_v51 = vpop.f32.mrf.mxu1 }
 0x1fe   :  { %v1872_v60 = vpop.f32.mrf.mxu0 }
 0x1ff   :  { %v1531_v49 = vsel %vm1316_vm8, %v3605_v47, %v1666_v36  ;;  %2023 = vpow2.f32 %v1445_v2  ;;  %v1364_v59 = vmin.f32 %v1268_v14, 0.0  ;;  %v997_v46 = vpop.f32.mrf.mxu1  ;;  %vm1321_vm13 = vcmp.gt.f32.partialorder %v1268_v14, 0.0 }
 0x200   :  { %v2018_v45 = vpop.eup %2017  ;;  %1575 = vst.msk [vmem:[%s3707_s3 + $0x118] sm:$0xff] %vm1539_vm2, %v1531_v49  ;;  %v1272_v21 = vpop.f32.mrf.mxu0  ;;  %v998_v6 = vadd.f32 %v997_v46, %v718_v33 }
 0x201   :  { %v1667_v56 = vadd.f32 -1.0, %v2018_v45  ;;  %v1447_v4 = vmul.f32 1.442695, %v1364_v59  ;;  %v1273_v41 = vadd.f32 %v1272_v21, %v993_v30  ;;  %v999_v8 = vpop.f32.mrf.mxu1 }
 0x202   :  { %v1875_v47 = vpop.f32.mrf.mxu0 }
 0x203   :  { %v1532_v12 = vsel %vm1317_vm9, %v3621_v43, %v1667_v56  ;;  %2025 = vpow2.f32 %v1447_v4  ;;  %v1365_v9 = vmin.f32 %v1273_v41, 0.0  ;;  %vm1322_vm14 = vcmp.gt.f32.partialorder %v1273_v41, 0.0 }
 0x204   :  { %v2020_v40 = vpop.eup %2019  ;;  %1576 = vst.msk [vmem:[%s3707_s3 + $0x120] sm:$0xff] %vm1539_vm2, %v1532_v12  ;;  %v1277_v37 = vpop.f32.mrf.mxu0 }
 0x205   :  { %v1668_v31 = vadd.f32 -1.0, %v2020_v40  ;;  %v1449_v27 = vmul.f32 1.442695, %v1365_v9  ;;  %v1278_v54 = vadd.f32 %v1277_v37, %v998_v6 }
 0x206   :  { %v1878_v52 = vpop.f32.mrf.mxu0 }
 0x207   :  { %v1533_v29 = vsel %vm1318_vm10, %v3632_v62, %v1668_v31  ;;  %2027 = vpow2.f32 %v1449_v27  ;;  %v1366_v43 = vmin.f32 %v1278_v54, 0.0  ;;  %vm1323_vm15 = vcmp.gt.f32.partialorder %v1278_v54, 0.0 }
 0x208   :  { %v2022_v57 = vpop.eup %2021  ;;  %1577 = vst.msk [vmem:[%s3707_s3 + $0x128] sm:$0xff] %vm1539_vm2, %v1533_v29 }
 0x209   :  { %v1669_v61 = vadd.f32 -1.0, %v2022_v57  ;;  %v1451_v3 = vmul.f32 1.442695, %v1366_v43 }
 0x20b   :  { %v1534_v18 = vsel %vm1319_vm11, %v3643_v24, %v1669_v61  ;;  %2029 = vpow2.f32 %v1451_v3 }
 0x20c   :  { %v2024_v53 = vpop.eup %2023  ;;  %1578 = vst.msk [vmem:[%s3707_s3 + $0x130] sm:$0xff] %vm1539_vm2, %v1534_v18 }
 0x20d   :  { %v1670_v62 = vadd.f32 -1.0, %v2024_v53 }
 0x20f   :  { %v1535_v17 = vsel %vm1320_vm12, %v1263_v23, %v1670_v62 }
 0x210   :  { %v2026_v13 = vpop.eup %2025  ;;  %1579 = vst.msk [vmem:[%s3707_s3 + $0x138] sm:$0xff] %vm1539_vm2, %v1535_v17 }
 0x211   :  { %v1671_v19 = vadd.f32 -1.0, %v2026_v13 }
 0x213   :  { %v1536_v63 = vsel %vm1321_vm13, %v1268_v14, %v1671_v19 }
 0x214   :  { %v2028_v16 = vpop.eup %2027  ;;  %1580 = vst.msk [vmem:[%s3707_s3 + $0x140] sm:$0xff] %vm1539_vm2, %v1536_v63 }
 0x215   :  { %v1672_v44 = vadd.f32 -1.0, %v2028_v16 }
 0x217   :  { %v1537_v7 = vsel %vm1322_vm14, %v1273_v41, %v1672_v44 }
 0x218   :  { %v2030_v15 = vpop.eup %2029  ;;  %1581 = vst.msk [vmem:[%s3707_s3 + $0x148] sm:$0xff] %vm1539_vm2, %v1537_v7 }
 0x219   :  { %v1673_v24 = vadd.f32 -1.0, %v2030_v15 }
 0x21b   :  { %v1538_v25 = vsel %vm1323_vm15, %v1278_v54, %v1673_v24 }
 0x21c   :  { %1582 = vst.msk [vmem:[%s3707_s3 + $0x150] sm:$0xff] %vm1539_vm2, %v1538_v25 }

// kernel: cnn_actor_forward.6
= control target key start
LH: loop header
LB: loop body
LE: loop exit
PB: predicated region body
PF: predicated region fallthrough
CT: control target
= control target key end

     0   :  { %vm190_vm0 = vcmask 31744   ;;  %vm212_vm1 = vcmask 1043456   ;;  %vm658_vm2 = vcmask 392192   ;;  %s1485_s1 = inlined_call_operand.vmem [shape: f32[900,48], index: 1, kind: input, shape index: {}]   ;;  %s1486_s0 = inlined_call_operand.vmem [shape: f32[56,900], index: 0, kind: input, shape index: {}]   ;;  %s1487_s2 = inlined_call_operand.vmem [shape: f32[1,48], index: 2, kind: input, shape index: {}]   ;;  %s1488_s3 = inlined_call_operand.vmem [shape: f32[56,48], index: 3, kind: output, shape index: {}]  }
   0x1   :  { %v101_v0 = vld [vmem:[%s1485_s1 + $0xf8] sm:$0xff]  ;;  %v100_v2 = vld [vmem:[%s1485_s1 + $0xf0] sm:$0xff]  ;;  %v99_v6 = vld [vmem:[%s1485_s1 + $0xe8] sm:$0xff] }
   0x2   :  { %v85_v1 = vld [vmem:[%s1485_s1 + $0x78] sm:$0xff]  ;;  %686 = vmatprep.subr.mxu0 %v101_v0  ;;  %v84_v4 = vld [vmem:[%s1485_s1 + $0x70] sm:$0xff]  ;;  %v83_v8 = vld [vmem:[%s1485_s1 + $0x68] sm:$0xff] }
   0x3   :  { %v133_v3 = vld [vmem:[%s1485_s1 + $0x1f8] sm:$0xff]  ;;  %687 = vmatpush3.msra.mxu0 %v85_v1  ;;  %v132_v7 = vld [vmem:[%s1485_s1 + $0x1f0] sm:$0xff]  ;;  %v131_v10 = vld [vmem:[%s1485_s1 + $0x1e8] sm:$0xff] }
   0x4   :  { %v117_v5 = vld [vmem:[%s1485_s1 + $0x178] sm:$0xff]  ;;  %739 = vmatprep.subr.mxu1 %v133_v3  ;;  %688 = vmatprep.subr.mxu0 %v100_v2  ;;  %v116_v9 = vld [vmem:[%s1485_s1 + $0x170] sm:$0xff]  ;;  %v98_v11 = vld [vmem:[%s1485_s1 + $0xe0] sm:$0xff] }
   0x5   :  { %740 = vmatpush3.msra.mxu1 %v117_v5  ;;  %689 = vmatpush3.msra.mxu0 %v84_v4  ;;  %v115_v12 = vld [vmem:[%s1485_s1 + $0x168] sm:$0xff]  ;;  %v82_v13 = vld [vmem:[%s1485_s1 + $0x60] sm:$0xff]  ;;  %v97_v15 = vld [vmem:[%s1485_s1 + $0xd8] sm:$0xff] }
   0x6   :  { %741 = vmatprep.subr.mxu1 %v132_v7  ;;  %690 = vmatprep.subr.mxu0 %v99_v6  ;;  %v130_v14 = vld [vmem:[%s1485_s1 + $0x1e0] sm:$0xff]  ;;  %v81_v17 = vld [vmem:[%s1485_s1 + $0x58] sm:$0xff]  ;;  %v96_v19 = vld [vmem:[%s1485_s1 + $0xd0] sm:$0xff] }
   0x7   :  { %742 = vmatpush3.msra.mxu1 %v116_v9  ;;  %691 = vmatpush3.msra.mxu0 %v83_v8  ;;  %v114_v16 = vld [vmem:[%s1485_s1 + $0x160] sm:$0xff]  ;;  %v129_v18 = vld [vmem:[%s1485_s1 + $0x1d8] sm:$0xff]  ;;  %v80_v21 = vld [vmem:[%s1485_s1 + $0x50] sm:$0xff] }
   0x8   :  { %743 = vmatprep.subr.mxu1 %v131_v10  ;;  %692 = vmatprep.subr.mxu0 %v98_v11  ;;  %v113_v20 = vld [vmem:[%s1485_s1 + $0x158] sm:$0xff]  ;;  %v128_v22 = vld [vmem:[%s1485_s1 + $0x1d0] sm:$0xff]  ;;  %v95_v23 = vld [vmem:[%s1485_s1 + $0xc8] sm:$0xff]  ;;  %v860_v11 = vmov 0.0  }
   0x9   :  { %744 = vmatpush3.msra.mxu1 %v115_v12  ;;  %693 = vmatpush3.msra.mxu0 %v82_v13  ;;  %v112_v24 = vld [vmem:[%s1485_s1 + $0x150] sm:$0xff]  ;;  %v79_v25 = vld [vmem:[%s1485_s1 + $0x48] sm:$0xff]  ;;  %v94_v27 = vld [vmem:[%s1485_s1 + $0xc0] sm:$0xff] }
   0xa   :  { %745 = vmatprep.subr.mxu1 %v130_v14  ;;  %694 = vmatprep.subr.mxu0 %v97_v15  ;;  %v127_v26 = vld [vmem:[%s1485_s1 + $0x1c8] sm:$0xff]  ;;  %v78_v29 = vld [vmem:[%s1485_s1 + $0x40] sm:$0xff]  ;;  %v93_v31 = vld [vmem:[%s1485_s1 + $0xb8] sm:$0xff] }
   0xb   :  { %746 = vmatpush3.msra.mxu1 %v114_v16  ;;  %695 = vmatpush3.msra.mxu0 %v81_v17  ;;  %v111_v28 = vld [vmem:[%s1485_s1 + $0x148] sm:$0xff]  ;;  %v126_v30 = vld [vmem:[%s1485_s1 + $0x1c0] sm:$0xff]  ;;  %v77_v33 = vld [vmem:[%s1485_s1 + $0x38] sm:$0xff] }
   0xc   :  { %747 = vmatprep.subr.mxu1 %v129_v18  ;;  %696 = vmatprep.subr.mxu0 %v96_v19  ;;  %v110_v32 = vld [vmem:[%s1485_s1 + $0x140] sm:$0xff]  ;;  %v125_v34 = vld [vmem:[%s1485_s1 + $0x1b8] sm:$0xff]  ;;  %v92_v35 = vld [vmem:[%s1485_s1 + $0xb0] sm:$0xff] }
   0xd   :  { %748 = vmatpush3.msra.mxu1 %v113_v20  ;;  %697 = vmatpush3.msra.mxu0 %v80_v21  ;;  %v109_v36 = vld [vmem:[%s1485_s1 + $0x138] sm:$0xff]  ;;  %v76_v37 = vld [vmem:[%s1485_s1 + $0x30] sm:$0xff]  ;;  %v91_v39 = vld [vmem:[%s1485_s1 + $0xa8] sm:$0xff] }
   0xe   :  { %749 = vmatprep.subr.mxu1 %v128_v22  ;;  %698 = vmatprep.subr.mxu0 %v95_v23  ;;  %v124_v38 = vld [vmem:[%s1485_s1 + $0x1b0] sm:$0xff]  ;;  %v75_v41 = vld [vmem:[%s1485_s1 + $0x28] sm:$0xff]  ;;  %v90_v43 = vld [vmem:[%s1485_s1 + $0xa0] sm:$0xff] }
   0xf   :  { %750 = vmatpush3.msra.mxu1 %v112_v24  ;;  %699 = vmatpush3.msra.mxu0 %v79_v25  ;;  %v108_v40 = vld [vmem:[%s1485_s1 + $0x130] sm:$0xff]  ;;  %v123_v42 = vld [vmem:[%s1485_s1 + $0x1a8] sm:$0xff]  ;;  %v74_v45 = vld [vmem:[%s1485_s1 + $0x20] sm:$0xff] }
  0x10   :  { %751 = vmatprep.subr.mxu1 %v127_v26  ;;  %700 = vmatprep.subr.mxu0 %v94_v27  ;;  %v107_v44 = vld [vmem:[%s1485_s1 + $0x128] sm:$0xff]  ;;  %v122_v46 = vld [vmem:[%s1485_s1 + $0x1a0] sm:$0xff]  ;;  %v89_v47 = vld [vmem:[%s1485_s1 + $0x98] sm:$0xff] }
  0x11   :  { %752 = vmatpush3.msra.mxu1 %v111_v28  ;;  %701 = vmatpush3.msra.mxu0 %v78_v29  ;;  %v106_v48 = vld [vmem:[%s1485_s1 + $0x120] sm:$0xff]  ;;  %v73_v49 = vld [vmem:[%s1485_s1 + $0x18] sm:$0xff]  ;;  %v88_v51 = vld [vmem:[%s1485_s1 + $0x90] sm:$0xff] }
  0x12   :  { %753 = vmatprep.subr.mxu1 %v126_v30  ;;  %702 = vmatprep.subr.mxu0 %v93_v31  ;;  %v121_v50 = vld [vmem:[%s1485_s1 + $0x198] sm:$0xff]  ;;  %v72_v53 = vld [vmem:[%s1485_s1 + $0x10] sm:$0xff]  ;;  %v87_v55 = vld [vmem:[%s1485_s1 + $0x88] sm:$0xff] }
  0x13   :  { %754 = vmatpush3.msra.mxu1 %v110_v32  ;;  %703 = vmatpush3.msra.mxu0 %v77_v33  ;;  %v105_v52 = vld [vmem:[%s1485_s1 + $0x118] sm:$0xff]  ;;  %v120_v54 = vld [vmem:[%s1485_s1 + $0x190] sm:$0xff]  ;;  %v71_v57 = vld [vmem:[%s1485_s1 + $0x8] sm:$0xff] }
  0x14   :  { %755 = vmatprep.subr.mxu1 %v125_v34  ;;  %704 = vmatprep.subr.mxu0 %v92_v35  ;;  %v104_v56 = vld [vmem:[%s1485_s1 + $0x110] sm:$0xff]  ;;  %v119_v58 = vld [vmem:[%s1485_s1 + $0x188] sm:$0xff]  ;;  %v86_v59 = vld [vmem:[%s1485_s1 + $0x80] sm:$0xff] }
  0x15   :  { %756 = vmatpush3.msra.mxu1 %v109_v36  ;;  %705 = vmatpush3.msra.mxu0 %v76_v37  ;;  %v15_v60 = vld [vmem:[%s1486_s0 + $0x8] sm:$0xff]  ;;  %v70_v61 = vld [vmem:[%s1485_s1] sm:$0xff]  ;;  %v165_v1 = vld [vmem:[%s1485_s1 + $0x2f8] sm:$0xff] }
  0x16   :  { %757 = vmatprep.subr.mxu1 %v124_v38  ;;  %706 = vmatprep.subr.mxu0 %v91_v39  ;;  %v103_v62 = vld [vmem:[%s1485_s1 + $0x108] sm:$0xff]  ;;  %v14_v63 = vld [vmem:[%s1486_s0] sm:$0xff]  ;;  %v17_v3 = vld [vmem:[%s1486_s0 + $0x18] sm:$0xff] }
  0x17   :  { %758 = vmatpush3.msra.mxu1 %v108_v40  ;;  %707 = vmatpush3.msra.mxu0 %v75_v41  ;;  %v118_v0 = vld [vmem:[%s1485_s1 + $0x180] sm:$0xff]  ;;  %v149_v4 = vld [vmem:[%s1485_s1 + $0x278] sm:$0xff]  ;;  %v16_v5 = vld [vmem:[%s1486_s0 + $0x10] sm:$0xff] }
  0x18   :  { %759 = vmatprep.subr.mxu1 %v123_v42  ;;  %708 = vmatprep.subr.mxu0 %v90_v43  ;;  %v102_v2 = vld [vmem:[%s1485_s1 + $0x100] sm:$0xff]  ;;  %v164_v6 = vld [vmem:[%s1485_s1 + $0x2f0] sm:$0xff]  ;;  %v181_v8 = vld [vmem:[%s1485_s1 + $0x378] sm:$0xff] }
  0x19   :  { %760 = vmatpush3.msra.mxu1 %v107_v44  ;;  %709 = vmatpush3.msra.mxu0 %v74_v45  ;;  %v148_v7 = vld [vmem:[%s1485_s1 + $0x270] sm:$0xff]  ;;  %v163_v9 = vld [vmem:[%s1485_s1 + $0x2e8] sm:$0xff]  ;;  %v22_v14 = vld [vmem:[%s1486_s0 + $0x40] sm:$0xff] }
  0x1a   :  { %761 = vmatprep.subr.mxu1 %v122_v46  ;;  %710 = vmatprep.subr.mxu0 %v89_v47  ;;  %v23_v10 = vld [vmem:[%s1486_s0 + $0x48] sm:$0xff]  ;;  %v180_v13 = vld [vmem:[%s1485_s1 + $0x370] sm:$0xff]  ;;  %v162_v15 = vld [vmem:[%s1485_s1 + $0x2e0] sm:$0xff] }
  0x1b   :  { %762 = vmatpush3.msra.mxu1 %v106_v48  ;;  %711 = vmatpush3.msra.mxu0 %v73_v49  ;;  %v147_v12 = vld [vmem:[%s1485_s1 + $0x268] sm:$0xff]  ;;  %v25_v16 = vld [vmem:[%s1486_s0 + $0x58] sm:$0xff]  ;;  %v146_v17 = vld [vmem:[%s1485_s1 + $0x260] sm:$0xff] }
  0x1c   :  { %763 = vmatprep.subr.mxu1 %v121_v50  ;;  %712 = vmatprep.subr.mxu0 %v88_v51  ;;  %v179_v18 = vld [vmem:[%s1485_s1 + $0x368] sm:$0xff]  ;;  %v24_v19 = vld [vmem:[%s1486_s0 + $0x50] sm:$0xff]  ;;  %v161_v20 = vld [vmem:[%s1485_s1 + $0x2d8] sm:$0xff] }
  0x1d   :  { %764 = vmatpush3.msra.mxu1 %v105_v52  ;;  %713 = vmatpush3.msra.mxu0 %v72_v53  ;;  %v31_v21 = vld [vmem:[%s1486_s0 + $0x88] sm:$0xff]  ;;  %v145_v22 = vld [vmem:[%s1485_s1 + $0x258] sm:$0xff]  ;;  %v178_v23 = vld [vmem:[%s1485_s1 + $0x360] sm:$0xff] }
  0x1e   :  { %765 = vmatprep.subr.mxu1 %v120_v54  ;;  %714 = vmatprep.subr.mxu0 %v87_v55  ;;  %v30_v24 = vld [vmem:[%s1486_s0 + $0x80] sm:$0xff]  ;;  %v160_v25 = vld [vmem:[%s1485_s1 + $0x2d0] sm:$0xff]  ;;  %v33_v26 = vld [vmem:[%s1486_s0 + $0x98] sm:$0xff] }
  0x1f   :  { %766 = vmatpush3.msra.mxu1 %v104_v56  ;;  %715 = vmatpush3.msra.mxu0 %v71_v57  ;;  %v144_v27 = vld [vmem:[%s1485_s1 + $0x250] sm:$0xff]  ;;  %v177_v28 = vld [vmem:[%s1485_s1 + $0x358] sm:$0xff]  ;;  %v159_v30 = vld [vmem:[%s1485_s1 + $0x2c8] sm:$0xff] }
  0x20   :  { %767 = vmatprep.subr.mxu1 %v119_v58  ;;  %716 = vmatprep.subr.mxu0 %v86_v59  ;;  %v32_v29 = vld [vmem:[%s1486_s0 + $0x90] sm:$0xff]  ;;  %v39_v31 = vld [vmem:[%s1486_s0 + $0xc8] sm:$0xff]  ;;  %v38_v34 = vld [vmem:[%s1486_s0 + $0xc0] sm:$0xff] }
  0x21   :  { %280 = vmatprep.mubr.f32.mxu0 %v15_v60  ;;  %717 = vmatpush3.msra.mxu0 %v70_v61  ;;  %v143_v32 = vld [vmem:[%s1485_s1 + $0x248] sm:$0xff]  ;;  %v176_v33 = vld [vmem:[%s1485_s1 + $0x350] sm:$0xff]  ;;  %v158_v35 = vld [vmem:[%s1485_s1 + $0x2c0] sm:$0xff] }
  0x22   :  { %768 = vmatpush3.msra.mxu1 %v103_v62  ;;  %281 = vmatmul.mubr.f32.vlgmr.msra.gmra.mxu0 %v14_v63  ;;  %v41_v36 = vld [vmem:[%s1486_s0 + $0xd8] sm:$0xff]  ;;  %v142_v37 = vld [vmem:[%s1485_s1 + $0x240] sm:$0xff]  ;;  %v175_v38 = vld [vmem:[%s1485_s1 + $0x348] sm:$0xff] }
  0x23   :  { %769 = vmatprep.subr.mxu1 %v118_v0  ;;  %792 = vmatprep.subr.mxu0 %v165_v1  ;;  %v40_v39 = vld [vmem:[%s1486_s0 + $0xd0] sm:$0xff]  ;;  %v157_v40 = vld [vmem:[%s1485_s1 + $0x2b8] sm:$0xff]  ;;  %v47_v41 = vld [vmem:[%s1486_s0 + $0x108] sm:$0xff] }
  0x24   :  { %770 = vmatpush3.msra.mxu1 %v102_v2  ;;  %380 = vmatprep.mubr.f32.mxu1 %v17_v3  ;;  %v141_v42 = vld [vmem:[%s1485_s1 + $0x238] sm:$0xff]  ;;  %v174_v43 = vld [vmem:[%s1485_s1 + $0x340] sm:$0xff]  ;;  %v156_v45 = vld [vmem:[%s1485_s1 + $0x2b0] sm:$0xff] }
  0x25   :  { %793 = vmatpush3.msra.mxu0 %v149_v4  ;;  %381 = vmatmul.mubr.f32.vlgmr.msra.gmra.mxu1 %v16_v5  ;;  %v46_v44 = vld [vmem:[%s1486_s0 + $0x100] sm:$0xff]  ;;  %v49_v46 = vld [vmem:[%s1486_s0 + $0x118] sm:$0xff]  ;;  %v140_v47 = vld [vmem:[%s1485_s1 + $0x230] sm:$0xff] }
  0x26   :  { %794 = vmatprep.subr.mxu0 %v164_v6  ;;  %516 = vmatprep.subr.mxu1 %v860_v11  ;;  %v173_v48 = vld [vmem:[%s1485_s1 + $0x338] sm:$0xff]  ;;  %v48_v49 = vld [vmem:[%s1486_s0 + $0x110] sm:$0xff]  ;;  %v155_v50 = vld [vmem:[%s1485_s1 + $0x2a8] sm:$0xff] }
  0x27   :  { %795 = vmatpush3.msra.mxu0 %v148_v7  ;;  %517 = vmatpush1.msra.mxu1 %v181_v8  ;;  %v55_v51 = vld [vmem:[%s1486_s0 + $0x148] sm:$0xff]  ;;  %v172_v53 = vld [vmem:[%s1485_s1 + $0x330] sm:$0xff]  ;;  %v54_v54 = vld [vmem:[%s1486_s0 + $0x140] sm:$0xff] }
  0x28   :  { %796 = vmatprep.subr.mxu0 %v163_v9  ;;  %518 = vmatprep.subr.mxu1 %v860_v11  ;;  %v139_v52 = vld [vmem:[%s1485_s1 + $0x228] sm:$0xff]  ;;  %v154_v55 = vld [vmem:[%s1485_s1 + $0x2a0] sm:$0xff]  ;;  %v57_v56 = vld [vmem:[%s1486_s0 + $0x158] sm:$0xff] }
  0x29   :  { %285 = vmatprep.mubr.f32.mxu0 %v23_v10  ;;  %797 = vmatpush3.msra.mxu0 %v147_v12  ;;  %v138_v57 = vld [vmem:[%s1485_s1 + $0x220] sm:$0xff]  ;;  %v171_v58 = vld [vmem:[%s1485_s1 + $0x328] sm:$0xff]  ;;  %v56_v59 = vld [vmem:[%s1486_s0 + $0x150] sm:$0xff] }
  0x2a   :  { %519 = vmatpush1.msra.mxu1 %v180_v13  ;;  %286 = vmatmul.mubr.f32.gmra.mxu0 %v22_v14  ;;  %v153_v60 = vld [vmem:[%s1485_s1 + $0x298] sm:$0xff]  ;;  %v63_v61 = vld [vmem:[%s1486_s0 + $0x188] sm:$0xff]  ;;  %v170_v63 = vld [vmem:[%s1485_s1 + $0x320] sm:$0xff] }
  0x2b   :  { %798 = vmatprep.subr.mxu0 %v162_v15  ;;  %520 = vmatprep.subr.mxu1 %v860_v11  ;;  %v137_v62 = vld [vmem:[%s1485_s1 + $0x218] sm:$0xff]  ;;  %v62_v0 = vld [vmem:[%s1486_s0 + $0x180] sm:$0xff]  ;;  %v152_v1 = vld [vmem:[%s1485_s1 + $0x290] sm:$0xff] }
  0x2c   :  { %385 = vmatprep.mubr.f32.mxu1 %v25_v16  ;;  %799 = vmatpush3.msra.mxu0 %v146_v17  ;;  %v65_v2 = vld [vmem:[%s1486_s0 + $0x198] sm:$0xff]  ;;  %v136_v3 = vld [vmem:[%s1485_s1 + $0x210] sm:$0xff]  ;;  %v151_v6 = vld [vmem:[%s1485_s1 + $0x288] sm:$0xff] }
  0x2d   :  { %521 = vmatpush1.msra.mxu1 %v179_v18  ;;  %800 = vmatprep.subr.mxu0 %v161_v20  ;;  %v169_v4 = vld [vmem:[%s1485_s1 + $0x318] sm:$0xff]  ;;  %v64_v5 = vld [vmem:[%s1486_s0 + $0x190] sm:$0xff]  ;;  %v135_v7 = vld [vmem:[%s1485_s1 + $0x208] sm:$0xff] }
  0x2e   :  { %386 = vmatmul.mubr.f32.gmra.mxu1 %v24_v19  ;;  %522 = vmatprep.subr.mxu1 %v860_v11  ;;  %v168_v8 = vld [vmem:[%s1485_s1 + $0x310] sm:$0xff]  ;;  %v150_v9 = vld [vmem:[%s1485_s1 + $0x280] sm:$0xff]  ;;  %v19_v12 = vld [vmem:[%s1486_s0 + $0x28] sm:$0xff] }
  0x2f   :  { %290 = vmatprep.mubr.f32.mxu0 %v31_v21  ;;  %801 = vmatpush3.msra.mxu0 %v145_v22  ;;  %v134_v10 = vld [vmem:[%s1485_s1 + $0x200] sm:$0xff]  ;;  %v167_v13 = vld [vmem:[%s1485_s1 + $0x308] sm:$0xff]  ;;  %v21_v17 = vld [vmem:[%s1486_s0 + $0x38] sm:$0xff] }
  0x30   :  { %523 = vmatpush1.msra.mxu1 %v178_v23  ;;  %291 = vmatmul.mubr.f32.gmra.mxu0 %v30_v24  ;;  %v18_v14 = vld [vmem:[%s1486_s0 + $0x20] sm:$0xff]  ;;  %v27_v16 = vld [vmem:[%s1486_s0 + $0x68] sm:$0xff]  ;;  %v20_v20 = vld [vmem:[%s1486_s0 + $0x30] sm:$0xff] }
  0x31   :  { %802 = vmatprep.subr.mxu0 %v160_v25  ;;  %524 = vmatprep.subr.mxu1 %v860_v11  ;;  %v166_v15 = vld [vmem:[%s1485_s1 + $0x300] sm:$0xff]  ;;  %v35_v21 = vld [vmem:[%s1486_s0 + $0xa8] sm:$0xff]  ;;  %v29_v22 = vld [vmem:[%s1486_s0 + $0x78] sm:$0xff] }
  0x32   :  { %390 = vmatprep.mubr.f32.mxu1 %v33_v26  ;;  %803 = vmatpush3.msra.mxu0 %v144_v27  ;;  %v182_v18 = vld [vmem:[%s1485_s1 + $0x380] sm:$0xf]  ;;  %v28_v23 = vld [vmem:[%s1486_s0 + $0x70] sm:$0xff]  ;;  %v43_v24 = vld [vmem:[%s1486_s0 + $0xe8] sm:$0xff] }
  0x33   :  { %525 = vmatpush1.msra.mxu1 %v177_v28  ;;  %804 = vmatprep.subr.mxu0 %v159_v30  ;;  %v26_v19 = vld [vmem:[%s1486_s0 + $0x60] sm:$0xff]  ;;  %v37_v25 = vld [vmem:[%s1486_s0 + $0xb8] sm:$0xff]  ;;  %v36_v27 = vld [vmem:[%s1486_s0 + $0xb0] sm:$0xff] }
  0x34   :  { %391 = vmatmul.mubr.f32.gmra.mxu1 %v32_v29  ;;  %526 = vmatprep.subr.mxu1 %v860_v11  ;;  %v42_v26 = vld [vmem:[%s1486_s0 + $0xe0] sm:$0xff]  ;;  %v51_v28 = vld [vmem:[%s1486_s0 + $0x128] sm:$0xff]  ;;  %v45_v29 = vld [vmem:[%s1486_s0 + $0xf8] sm:$0xff] }
  0x35   :  { %295 = vmatprep.mubr.f32.mxu0 %v39_v31  ;;  %805 = vmatpush3.msra.mxu0 %v143_v32  ;;  %v50_v30 = vld [vmem:[%s1486_s0 + $0x120] sm:$0xff]  ;;  %v44_v31 = vld [vmem:[%s1486_s0 + $0xf0] sm:$0xff]  ;;  %v59_v32 = vld [vmem:[%s1486_s0 + $0x168] sm:$0xff] }
  0x36   :  { %527 = vmatpush1.msra.mxu1 %v176_v33  ;;  %296 = vmatmul.mubr.f32.gmra.mxu0 %v38_v34  ;;  %v53_v33 = vld [vmem:[%s1486_s0 + $0x138] sm:$0xff]  ;;  %v58_v34 = vld [vmem:[%s1486_s0 + $0x160] sm:$0xff] }
  0x37   :  { %806 = vmatprep.subr.mxu0 %v158_v35  ;;  %528 = vmatprep.subr.mxu1 %v860_v11  ;;  %v52_v35 = vld [vmem:[%s1486_s0 + $0x130] sm:$0xff] }
  0x38   :  { %395 = vmatprep.mubr.f32.mxu1 %v41_v36  ;;  %807 = vmatpush3.msra.mxu0 %v142_v37  ;;  %v67_v36 = vld [vmem:[%s1486_s0 + $0x1a8] sm:$0xff]  ;;  %v61_v37 = vld [vmem:[%s1486_s0 + $0x178] sm:$0xff] }
  0x39   :  { %529 = vmatpush1.msra.mxu1 %v175_v38  ;;  %808 = vmatprep.subr.mxu0 %v157_v40  ;;  %v66_v38 = vld [vmem:[%s1486_s0 + $0x1a0] sm:$0xff]  ;;  %v69_v40 = vld [vmem:[%s1486_s0 + $0x1b8] sm:$0xff] }
  0x3a   :  { %396 = vmatmul.mubr.f32.gmra.mxu1 %v40_v39  ;;  %530 = vmatprep.subr.mxu1 %v860_v11  ;;  %v60_v39 = vld [vmem:[%s1486_s0 + $0x170] sm:$0xff] }
  0x3b   :  { %300 = vmatprep.mubr.f32.mxu0 %v47_v41  ;;  %809 = vmatpush3.msra.mxu0 %v141_v42  ;;  %v68_v41 = vld [vmem:[%s1486_s0 + $0x1b0] sm:$0xff] }
  0x3c   :  { %531 = vmatpush1.msra.mxu1 %v174_v43  ;;  %301 = vmatmul.mubr.f32.gmra.mxu0 %v46_v44 }
  0x3d   :  { %810 = vmatprep.subr.mxu0 %v156_v45  ;;  %532 = vmatprep.subr.mxu1 %v860_v11 }
  0x3e   :  { %400 = vmatprep.mubr.f32.mxu1 %v49_v46  ;;  %811 = vmatpush3.msra.mxu0 %v140_v47 }
  0x3f   :  { %533 = vmatpush1.msra.mxu1 %v173_v48  ;;  %812 = vmatprep.subr.mxu0 %v155_v50 }
  0x40   :  { %401 = vmatmul.mubr.f32.gmra.mxu1 %v48_v49  ;;  %534 = vmatprep.subr.mxu1 %v860_v11 }
  0x41   :  { %305 = vmatprep.mubr.f32.mxu0 %v55_v51  ;;  %813 = vmatpush3.msra.mxu0 %v139_v52 }
  0x42   :  { %535 = vmatpush1.msra.mxu1 %v172_v53  ;;  %306 = vmatmul.mubr.f32.gmra.mxu0 %v54_v54 }
  0x43   :  { %814 = vmatprep.subr.mxu0 %v154_v55  ;;  %536 = vmatprep.subr.mxu1 %v860_v11 }
  0x44   :  { %405 = vmatprep.mubr.f32.mxu1 %v57_v56  ;;  %815 = vmatpush3.msra.mxu0 %v138_v57 }
  0x45   :  { %537 = vmatpush1.msra.mxu1 %v171_v58  ;;  %816 = vmatprep.subr.mxu0 %v153_v60 }
  0x46   :  { %406 = vmatmul.mubr.f32.gmra.mxu1 %v56_v59  ;;  %538 = vmatprep.subr.mxu1 %v860_v11 }
  0x47   :  { %310 = vmatprep.mubr.f32.mxu0 %v63_v61  ;;  %817 = vmatpush3.msra.mxu0 %v137_v62 }
  0x48   :  { %539 = vmatpush1.msra.mxu1 %v170_v63  ;;  %311 = vmatmul.mubr.f32.gmra.mxu0 %v62_v0 }
  0x49   :  { %818 = vmatprep.subr.mxu0 %v152_v1  ;;  %540 = vmatprep.subr.mxu1 %v860_v11 }
  0x4a   :  { %410 = vmatprep.mubr.f32.mxu1 %v65_v2  ;;  %819 = vmatpush3.msra.mxu0 %v136_v3 }
  0x4b   :  { %541 = vmatpush1.msra.mxu1 %v169_v4  ;;  %820 = vmatprep.subr.mxu0 %v151_v6  ;;  %v1421_v4 = vld [vmem:[%s1487_s2] ss:$0 sm:$0xff] }
  0x4c   :  { %411 = vmatmul.mubr.f32.gmra.mxu1 %v64_v5  ;;  %542 = vmatprep.subr.mxu1 %v860_v11 }
  0x4d   :  { %821 = vmatpush3.msra.mxu0 %v135_v7  ;;  %543 = vmatpush1.msra.mxu1 %v168_v8 }
  0x4e   :  { %822 = vmatprep.subr.mxu0 %v150_v9  ;;  %544 = vmatprep.subr.mxu1 %v860_v11 }
  0x4f   :  { %823 = vmatpush3.msra.mxu0 %v134_v10  ;;  %480 = vmatprep.mubr.f32.mxu0 %v19_v12 }
  0x50   :  { %545 = vmatpush1.msra.mxu1 %v167_v13  ;;  %481 = vmatmul.mubr.f32.vlgmr.msra.gmra.mxu0 %v18_v14 }
  0x51   :  { %546 = vmatprep.subr.mxu1 %v860_v11  ;;  %485 = vmatprep.mubr.f32.mxu0 %v27_v16 }
  0x52   :  { %547 = vmatpush1.msra.mxu1 %v166_v15  ;;  %672 = vmatprep.mubr.msk.f32.mxu1 %vm190_vm0, %v21_v17 }
  0x53   :  { %578 = vmatprep.subr.mxu1 %v860_v11  ;;  %v34_v11 = vld [vmem:[%s1486_s0 + $0xa0] sm:$0xff] }
  0x54   :  { %671 = vmatpush2.msk.msra.mxu1 %vm212_vm1, %v182_v18  ;;  %486 = vmatmul.mubr.f32.gmra.mxu0 %v26_v19 }
  0x55   :  { %581 = vmatmul.mubr.f32.vlgmr.msra.gmra.mxu1 %v20_v20  ;;  %490 = vmatprep.mubr.f32.mxu0 %v35_v21 }
  0x56   :  { %673 = vmatprep.mubr.msk.f32.mxu1 %vm190_vm0, %v29_v22 }
  0x58   :  { %491 = vmatmul.mubr.f32.gmra.mxu0 %v34_v11 }
  0x59   :  { %586 = vmatmul.mubr.f32.gmra.mxu1 %v28_v23  ;;  %495 = vmatprep.mubr.f32.mxu0 %v43_v24 }
  0x5a   :  { %674 = vmatprep.mubr.msk.f32.mxu1 %vm190_vm0, %v37_v25 }
  0x5c   :  { %496 = vmatmul.mubr.f32.gmra.mxu0 %v42_v26 }
  0x5d   :  { %591 = vmatmul.mubr.f32.gmra.mxu1 %v36_v27  ;;  %500 = vmatprep.mubr.f32.mxu0 %v51_v28 }
  0x5e   :  { %675 = vmatprep.mubr.msk.f32.mxu1 %vm190_vm0, %v45_v29 }
  0x60   :  { %501 = vmatmul.mubr.f32.gmra.mxu0 %v50_v30 }
  0x61   :  { %596 = vmatmul.mubr.f32.gmra.mxu1 %v44_v31  ;;  %505 = vmatprep.mubr.f32.mxu0 %v59_v32 }
  0x62   :  { %676 = vmatprep.mubr.msk.f32.mxu1 %vm190_vm0, %v53_v33 }
  0x64   :  { %506 = vmatmul.mubr.f32.gmra.mxu0 %v58_v34 }
  0x65   :  { %601 = vmatmul.mubr.f32.gmra.mxu1 %v52_v35  ;;  %510 = vmatprep.mubr.f32.mxu0 %v67_v36 }
  0x66   :  { %677 = vmatprep.mubr.msk.f32.mxu1 %vm190_vm0, %v61_v37 }
  0x68   :  { %511 = vmatmul.mubr.f32.gmra.mxu0 %v66_v38 }
  0x69   :  { %606 = vmatmul.mubr.f32.gmra.mxu1 %v60_v39 }
  0x6a   :  { %678 = vmatprep.mubr.msk.f32.mxu1 %vm190_vm0, %v69_v40 }
  0x6d   :  { %611 = vmatmul.mubr.f32.gmra.mxu1 %v68_v41 }
  0xe2   :  { %v718_v42 = vpop.f32.mrf.mxu0 }
  0xe4   :  { %v719_v44 = vpop.f32.mrf.mxu0 }
  0xe5   :  { %v771_v43 = vpop.f32.mrf.mxu1  ;;  %v720_v3 = vadd.f32 %v719_v44, %v718_v42 }
  0xe7   :  { %v772_v46 = vpop.f32.mrf.mxu1  ;;  %v283_v7 = vadd.f32 %v720_v3, %v1421_v4 }
  0xe8   :  { %v773_v8 = vadd.f32 %v772_v46, %v771_v43 }
  0xea   :  { %v721_v45 = vpop.f32.mrf.mxu0  ;;  %v383_v15 = vadd.f32 %v773_v8, %v283_v7 }
  0xec   :  { %v722_v47 = vpop.f32.mrf.mxu0 }
  0xed   :  { %v723_v9 = vadd.f32 %v722_v47, %v721_v45 }
  0xee   :  { %v774_v48 = vpop.f32.mrf.mxu1 }
  0xef   :  { %v288_v16 = vadd.f32 %v723_v9, %v1421_v4 }
  0xf0   :  { %v775_v49 = vpop.f32.mrf.mxu1  ;;  %v724_v50 = vpop.f32.mrf.mxu0 }
  0xf1   :  { %v776_v17 = vadd.f32 %v775_v49, %v774_v48 }
  0xf2   :  { %v725_v51 = vpop.f32.mrf.mxu0 }
  0xf3   :  { %v726_v12 = vadd.f32 %v725_v51, %v724_v50  ;;  %v388_v26 = vadd.f32 %v776_v17, %v288_v16 }
  0xf4   :  { %v777_v52 = vpop.f32.mrf.mxu1 }
  0xf5   :  { %v293_v22 = vadd.f32 %v726_v12, %v1421_v4 }
  0xf6   :  { %v778_v53 = vpop.f32.mrf.mxu1  ;;  %v727_v54 = vpop.f32.mrf.mxu0 }
  0xf7   :  { %v779_v11 = vadd.f32 %v778_v53, %v777_v52 }
  0xf8   :  { %v728_v55 = vpop.f32.mrf.mxu0 }
  0xf9   :  { %v729_v23 = vadd.f32 %v728_v55, %v727_v54  ;;  %v393_v33 = vadd.f32 %v779_v11, %v293_v22 }
  0xfa   :  { %v780_v56 = vpop.f32.mrf.mxu1 }
  0xfb   :  { %v298_v34 = vadd.f32 %v729_v23, %v1421_v4 }
  0xfc   :  { %v781_v57 = vpop.f32.mrf.mxu1  ;;  %v730_v58 = vpop.f32.mrf.mxu0 }
  0xfd   :  { %v782_v38 = vadd.f32 %v781_v57, %v780_v56 }
  0xfe   :  { %v731_v59 = vpop.f32.mrf.mxu0 }
  0xff   :  { %v732_v35 = vadd.f32 %v731_v59, %v730_v58  ;;  %v398_v51 = vadd.f32 %v782_v38, %v298_v34 }
 0x100   :  { %v783_v60 = vpop.f32.mrf.mxu1 }
 0x101   :  { %v303_v46 = vadd.f32 %v732_v35, %v1421_v4 }
 0x102   :  { %v733_v61 = vpop.f32.mrf.mxu0  ;;  %v784_v62 = vpop.f32.mrf.mxu1 }
 0x103   :  { %v785_v47 = vadd.f32 %v784_v62, %v783_v60 }
 0x104   :  { %v734_v63 = vpop.f32.mrf.mxu0 }
 0x105   :  { %v735_v48 = vadd.f32 %v734_v63, %v733_v61  ;;  %v403_v59 = vadd.f32 %v785_v47, %v303_v46 }
 0x106   :  { %v1412_v0 = vpop.f32.mrf.mxu1 }
 0x107   :  { %v308_v3 = vadd.f32 %v735_v48, %v1421_v4 }
 0x108   :  { %v1414_v1 = vpop.f32.mrf.mxu0  ;;  %v1416_v2 = vpop.f32.mrf.mxu1 }
 0x109   :  { %v788_v60 = vadd.f32 %v1416_v2, %v1412_v0 }
 0x10a   :  { %v1423_v5 = vpop.f32.mrf.mxu0 }
 0x10b   :  { %v738_v9 = vadd.f32 %v1423_v5, %v1414_v1 }
 0x10c   :  { %v1425_v6 = vpop.f32.mrf.mxu1 }
 0x10d   :  { %v313_v22 = vadd.f32 %v738_v9, %v1421_v4 }
 0x10e   :  { %v1428_v13 = vpop.f32.mrf.mxu1 }
 0x10f   :  { %v791_v0 = vadd.f32 %v1428_v13, %v1425_v6 }
 0x110   :  { %v824_v10 = vpop.f32.mrf.mxu0 }
 0x112   :  { %v825_v14 = vpop.f32.mrf.mxu0 }
 0x113   :  { %v826_v18 = vadd.f32 %v825_v14, %v824_v10 }
 0x114   :  { %v827_v19 = vpop.f32.mrf.mxu0 }
 0x115   :  { %v582_v20 = vpop.f32.mrf.mxu1  ;;  %v483_v21 = vadd.f32 %v826_v18, %v383_v15  ;;  %v408_v18 = vadd.f32 %v788_v60, %v308_v3 }
 0x116   :  { %v828_v24 = vpop.f32.mrf.mxu0 }
 0x117   :  { %v584_v25 = vpop.f32.mrf.mxu1  ;;  %v1432_v27 = vadd.f32 %v582_v20, %v483_v21  ;;  %v829_v28 = vadd.f32 %v828_v24, %v827_v19 }
 0x118   :  { %v830_v29 = vpop.f32.mrf.mxu0 }
 0x119   :  { %v587_v30 = vpop.f32.mrf.mxu1  ;;  %v623_v31 = vmin.f32 %v1432_v27, 0.0  ;;  %v488_v32 = vadd.f32 %v829_v28, %v388_v26  ;;  %vm616_vm3 = vcmp.gt.f32.partialorder %v1432_v27, 0.0 }
 0x11a   :  { %v831_v36 = vpop.f32.mrf.mxu0 }
 0x11b   :  { %v589_v37 = vpop.f32.mrf.mxu1  ;;  %v630_v39 = vmul.f32 1.442695, %v623_v31  ;;  %v1436_v40 = vadd.f32 %v587_v30, %v488_v32  ;;  %v832_v41 = vadd.f32 %v831_v36, %v830_v29  ;;  %v413_v31 = vadd.f32 %v791_v0, %v313_v22 }
 0x11c   :  { %v833_v42 = vpop.f32.mrf.mxu0 }
 0x11d   :  { %v592_v43 = vpop.f32.mrf.mxu1  ;;  %846 = vpow2.f32 %v630_v39  ;;  %v624_v44 = vmin.f32 %v1436_v40, 0.0  ;;  %v493_v45 = vadd.f32 %v832_v41, %v393_v33  ;;  %vm617_vm4 = vcmp.gt.f32.partialorder %v1436_v40, 0.0 }
 0x11e   :  { %v834_v49 = vpop.f32.mrf.mxu0 }
 0x11f   :  { %v594_v50 = vpop.f32.mrf.mxu1  ;;  %v632_v52 = vmul.f32 1.442695, %v624_v44  ;;  %v1440_v53 = vadd.f32 %v592_v43, %v493_v45  ;;  %v835_v54 = vadd.f32 %v834_v49, %v833_v42 }
 0x120   :  { %v836_v55 = vpop.f32.mrf.mxu0 }
 0x121   :  { %v597_v56 = vpop.f32.mrf.mxu1  ;;  %848 = vpow2.f32 %v632_v52  ;;  %v625_v57 = vmin.f32 %v1440_v53, 0.0  ;;  %v498_v58 = vadd.f32 %v835_v54, %v398_v51  ;;  %vm618_vm5 = vcmp.gt.f32.partialorder %v1440_v53, 0.0 }
 0x122   :  { %v837_v7 = vpop.f32.mrf.mxu0 }
 0x123   :  { %v599_v8 = vpop.f32.mrf.mxu1  ;;  %v634_v61 = vmul.f32 1.442695, %v625_v57  ;;  %v598_v62 = vadd.f32 %v597_v56, %v498_v58  ;;  %v838_v63 = vadd.f32 %v837_v7, %v836_v55 }
 0x124   :  { %v839_v10 = vpop.f32.mrf.mxu0 }
 0x125   :  { %v602_v12 = vpop.f32.mrf.mxu1  ;;  %850 = vpow2.f32 %v634_v61  ;;  %v626_v14 = vmin.f32 %v598_v62, 0.0  ;;  %v503_v15 = vadd.f32 %v838_v63, %v403_v59  ;;  %vm619_vm6 = vcmp.gt.f32.partialorder %v598_v62, 0.0 }
 0x126   :  { %v840_v16 = vpop.f32.mrf.mxu0 }
 0x127   :  { %v604_v17 = vpop.f32.mrf.mxu1  ;;  %v636_v19 = vmul.f32 1.442695, %v626_v14  ;;  %v603_v20 = vadd.f32 %v602_v12, %v503_v15  ;;  %v841_v21 = vadd.f32 %v840_v16, %v839_v10 }
 0x128   :  { %v842_v2 = vpop.f32.mrf.mxu0 }
 0x129   :  { %v607_v11 = vpop.f32.mrf.mxu1  ;;  %852 = vpow2.f32 %v636_v19  ;;  %v627_v1 = vmin.f32 %v603_v20, 0.0  ;;  %v508_v5 = vadd.f32 %v841_v21, %v408_v18  ;;  %vm620_vm7 = vcmp.gt.f32.partialorder %v603_v20, 0.0 }
 0x12a   :  { %v847_v23 = vpop.eup %846  ;;  %v843_v24 = vpop.f32.mrf.mxu0 }
 0x12b   :  { %v609_v25 = vpop.f32.mrf.mxu1  ;;  %v679_v26 = vadd.f32 -1.0, %v847_v23  ;;  %v638_v28 = vmul.f32 1.442695, %v627_v1  ;;  %v608_v29 = vadd.f32 %v607_v11, %v508_v5  ;;  %v844_v30 = vadd.f32 %v843_v24, %v842_v2 }
 0x12d   :  { %v612_v4 = vpop.f32.mrf.mxu1  ;;  %v651_v32 = vsel %vm616_vm3, %v1432_v27, %v679_v26  ;;  %854 = vpow2.f32 %v638_v28  ;;  %v628_v6 = vmin.f32 %v608_v29, 0.0  ;;  %v513_v33 = vadd.f32 %v844_v30, %v413_v31 }
 0x12e   :  { %v849_v13 = vpop.eup %848  ;;  %659 = vst.msk [vmem:[%s1488_s3] sm:$0xff] %vm658_vm2, %v651_v32  ;;  %vm621_vm8 = vcmp.gt.f32.partialorder %v608_v29, 0.0 }
 0x12f   :  { %v614_v34 = vpop.f32.mrf.mxu1  ;;  %v680_v35 = vadd.f32 -1.0, %v849_v13  ;;  %v640_v36 = vmul.f32 1.442695, %v628_v6  ;;  %v613_v37 = vadd.f32 %v612_v4, %v513_v33 }
 0x131   :  { %v652_v38 = vsel %vm617_vm4, %v1436_v40, %v680_v35  ;;  %856 = vpow2.f32 %v640_v36  ;;  %v629_v27 = vmin.f32 %v613_v37, 0.0  ;;  %vm622_vm9 = vcmp.gt.f32.partialorder %v613_v37, 0.0 }
 0x132   :  { %v851_v39 = vpop.eup %850  ;;  %660 = vst.msk [vmem:[%s1488_s3 + $0x8] sm:$0xff] %vm658_vm2, %v652_v38 }
 0x133   :  { %v681_v41 = vadd.f32 -1.0, %v851_v39  ;;  %v642_v42 = vmul.f32 1.442695, %v629_v27 }
 0x135   :  { %v653_v43 = vsel %vm618_vm5, %v1440_v53, %v681_v41  ;;  %858 = vpow2.f32 %v642_v42 }
 0x136   :  { %v853_v44 = vpop.eup %852  ;;  %661 = vst.msk [vmem:[%s1488_s3 + $0x10] sm:$0xff] %vm658_vm2, %v653_v43 }
 0x137   :  { %v682_v40 = vadd.f32 -1.0, %v853_v44 }
 0x139   :  { %v654_v45 = vsel %vm619_vm6, %v598_v62, %v682_v40 }
 0x13a   :  { %v855_v46 = vpop.eup %854  ;;  %662 = vst.msk [vmem:[%s1488_s3 + $0x18] sm:$0xff] %vm658_vm2, %v654_v45 }
 0x13b   :  { %v683_v47 = vadd.f32 -1.0, %v855_v46 }
 0x13d   :  { %v655_v48 = vsel %vm620_vm7, %v603_v20, %v683_v47 }
 0x13e   :  { %v857_v49 = vpop.eup %856  ;;  %663 = vst.msk [vmem:[%s1488_s3 + $0x20] sm:$0xff] %vm658_vm2, %v655_v48 }
 0x13f   :  { %v684_v50 = vadd.f32 -1.0, %v857_v49 }
 0x141   :  { %v656_v51 = vsel %vm621_vm8, %v608_v29, %v684_v50 }
 0x142   :  { %664 = vst.msk [vmem:[%s1488_s3 + $0x28] sm:$0xff] %vm658_vm2, %v656_v51  ;;  %v859_v52 = vpop.eup %858 }
 0x143   :  { %v685_v53 = vadd.f32 -1.0, %v859_v52 }
 0x145   :  { %v657_v54 = vsel %vm622_vm9, %v613_v37, %v685_v53 }
 0x146   :  { %665 = vst.msk [vmem:[%s1488_s3 + $0x30] sm:$0xff] %vm658_vm2, %v657_v54 }

// kernel: cnn_actor_forward.7
= control target key start
LH: loop header
LB: loop body
LE: loop exit
PB: predicated region body
PF: predicated region fallthrough
CT: control target
= control target key end

     0   :  { %vm4263_vm0 = vmmov 0   ;;  %s6689_s1 = inlined_call_operand.vmem [shape: f32[512,128], index: 1, kind: input, shape index: {}]   ;;  %s6690_s0 = inlined_call_operand.vmem [shape: f32[8,4608], index: 0, kind: input, shape index: {}]   ;;  %s6691_s3 = inlined_call_operand.vmem [shape: f32[9,128,128], index: 3, kind: input, shape index: {}]   ;;  %s6692_s2 = inlined_call_operand.vmem [shape: f32[1,128], index: 2, kind: input, shape index: {}]   ;;  %s6693_s5 = inlined_call_operand.vmem [shape: f32[128,128], index: 5, kind: input, shape index: {}]   ;;  %s6694_s7 = inlined_call_operand.vmem [shape: f32[128,128], index: 7, kind: input, shape index: {}]   ;;  %s6695_s4 = inlined_call_operand.vmem [shape: f32[1,128], index: 4, kind: input, shape index: {}]   ;;  %s6696_s9 = inlined_call_operand.vmem [shape: f32[128,128], index: 9, kind: input, shape index: {}]   ;;  %s6697_s6 = inlined_call_operand.vmem [shape: f32[1,128], index: 6, kind: input, shape index: {}]   ;;  %s6698_s11 = inlined_call_operand.vmem [shape: f32[128,128], index: 11, kind: input, shape index: {}]   ;;  %s6699_s8 = inlined_call_operand.vmem [shape: f32[1,128], index: 8, kind: input, shape index: {}]   ;;  %s6700_s10 = inlined_call_operand.vmem [shape: f32[1,128], index: 10, kind: input, shape index: {}]   ;;  %s6701_s12 = inlined_call_operand.vmem [shape: f32[1,128], index: 12, kind: input, shape index: {}]   ;;  %s6702_s13 = inlined_call_operand.vmem [shape: f32[8,128], index: 13, kind: output, shape index: {}]  }
   0x1   :  { %v4337_v0 = vld [vmem:[%s6689_s1 + $0xf8] sm:$0xff]  ;;  %v4359_v4 = vld [vmem:[%s6689_s1 + $0xf0] sm:$0xff]  ;;  %v4381_v8 = vld [vmem:[%s6689_s1 + $0xe8] sm:$0xff] }
   0x2   :  { %v4342_v1 = vld [vmem:[%s6689_s1 + $0x1f8] sm:$0xff]  ;;  %2811 = vmatprep.subr.mxu0 %v4337_v0  ;;  %v4364_v5 = vld [vmem:[%s6689_s1 + $0x1f0] sm:$0xff]  ;;  %v4388_v9 = vld [vmem:[%s6689_s1 + $0x1e8] sm:$0xff] }
   0x3   :  { %6777 = vst [vmem:[#allocation2_spill] sm:$0xff] %v4342_v1  ;;  %v4347_v2 = vld [vmem:[%s6689_s1 + $0x78] sm:$0xff]  ;;  %2846 = vmatprep.subr.mxu1 %v4342_v1  ;;  %v4371_v6 = vld [vmem:[%s6689_s1 + $0x70] sm:$0xff]  ;;  %v4393_v10 = vld [vmem:[%s6689_s1 + $0x68] sm:$0xff] }
   0x4   :  { %v4354_v3 = vld [vmem:[%s6689_s1 + $0x178] sm:$0xff]  ;;  %2812 = vmatpush3.msra.mxu0 %v4347_v2  ;;  %v4376_v7 = vld [vmem:[%s6689_s1 + $0x170] sm:$0xff]  ;;  %v4398_v11 = vld [vmem:[%s6689_s1 + $0x168] sm:$0xff] }
   0x5   :  { %2847 = vmatpush3.msra.mxu1 %v4354_v3  ;;  %2813 = vmatprep.subr.mxu0 %v4359_v4  ;;  %v4405_v12 = vld [vmem:[%s6689_s1 + $0xe0] sm:$0xff]  ;;  %v4429_v16 = vld [vmem:[%s6689_s1 + $0xd8] sm:$0xff]  ;;  %v4453_v20 = vld [vmem:[%s6689_s1 + $0xd0] sm:$0xff] }
   0x6   :  { %2848 = vmatprep.subr.mxu1 %v4364_v5  ;;  %2814 = vmatpush3.msra.mxu0 %v4371_v6  ;;  %v4410_v13 = vld [vmem:[%s6689_s1 + $0x1e0] sm:$0xff]  ;;  %v4434_v17 = vld [vmem:[%s6689_s1 + $0x1d8] sm:$0xff]  ;;  %v4458_v21 = vld [vmem:[%s6689_s1 + $0x1d0] sm:$0xff] }
   0x7   :  { %2849 = vmatpush3.msra.mxu1 %v4376_v7  ;;  %2815 = vmatprep.subr.mxu0 %v4381_v8  ;;  %v4417_v14 = vld [vmem:[%s6689_s1 + $0x60] sm:$0xff]  ;;  %v4441_v18 = vld [vmem:[%s6689_s1 + $0x58] sm:$0xff]  ;;  %v4465_v22 = vld [vmem:[%s6689_s1 + $0x50] sm:$0xff] }
   0x8   :  { %2850 = vmatprep.subr.mxu1 %v4388_v9  ;;  %v4422_v15 = vld [vmem:[%s6689_s1 + $0x160] sm:$0xff]  ;;  %2816 = vmatpush3.msra.mxu0 %v4393_v10  ;;  %v4446_v19 = vld [vmem:[%s6689_s1 + $0x158] sm:$0xff]  ;;  %v4470_v23 = vld [vmem:[%s6689_s1 + $0x150] sm:$0xff] }
   0x9   :  { %2851 = vmatpush3.msra.mxu1 %v4398_v11  ;;  %2817 = vmatprep.subr.mxu0 %v4405_v12  ;;  %v4477_v24 = vld [vmem:[%s6689_s1 + $0xc8] sm:$0xff]  ;;  %v4501_v28 = vld [vmem:[%s6689_s1 + $0xc0] sm:$0xff]  ;;  %v4525_v32 = vld [vmem:[%s6689_s1 + $0xb8] sm:$0xff] }
   0xa   :  { %2852 = vmatprep.subr.mxu1 %v4410_v13  ;;  %2818 = vmatpush3.msra.mxu0 %v4417_v14  ;;  %v4482_v25 = vld [vmem:[%s6689_s1 + $0x1c8] sm:$0xff]  ;;  %v4506_v29 = vld [vmem:[%s6689_s1 + $0x1c0] sm:$0xff]  ;;  %v4530_v33 = vld [vmem:[%s6689_s1 + $0x1b8] sm:$0xff] }
   0xb   :  { %2853 = vmatpush3.msra.mxu1 %v4422_v15  ;;  %2819 = vmatprep.subr.mxu0 %v4429_v16  ;;  %v4489_v26 = vld [vmem:[%s6689_s1 + $0x48] sm:$0xff]  ;;  %v4513_v30 = vld [vmem:[%s6689_s1 + $0x40] sm:$0xff]  ;;  %v4537_v34 = vld [vmem:[%s6689_s1 + $0x38] sm:$0xff] }
   0xc   :  { %2854 = vmatprep.subr.mxu1 %v4434_v17  ;;  %2820 = vmatpush3.msra.mxu0 %v4441_v18  ;;  %v4494_v27 = vld [vmem:[%s6689_s1 + $0x148] sm:$0xff]  ;;  %v4518_v31 = vld [vmem:[%s6689_s1 + $0x140] sm:$0xff]  ;;  %v4542_v35 = vld [vmem:[%s6689_s1 + $0x138] sm:$0xff] }
   0xd   :  { %2855 = vmatpush3.msra.mxu1 %v4446_v19  ;;  %2821 = vmatprep.subr.mxu0 %v4453_v20  ;;  %v4549_v36 = vld [vmem:[%s6689_s1 + $0xb0] sm:$0xff]  ;;  %v4573_v40 = vld [vmem:[%s6689_s1 + $0xa8] sm:$0xff]  ;;  %v4597_v44 = vld [vmem:[%s6689_s1 + $0xa0] sm:$0xff] }
   0xe   :  { %2856 = vmatprep.subr.mxu1 %v4458_v21  ;;  %2822 = vmatpush3.msra.mxu0 %v4465_v22  ;;  %6778 = vst [vmem:[#allocation3_spill] sm:$0xff] %v4549_v36  ;;  %v4554_v37 = vld [vmem:[%s6689_s1 + $0x1b0] sm:$0xff]  ;;  %6780 = vst [vmem:[#allocation5_spill] sm:$0xff] %v4573_v40  ;;  %v4578_v41 = vld [vmem:[%s6689_s1 + $0x1a8] sm:$0xff] }
   0xf   :  { %2857 = vmatpush3.msra.mxu1 %v4470_v23  ;;  %2823 = vmatprep.subr.mxu0 %v4477_v24  ;;  %v4561_v38 = vld [vmem:[%s6689_s1 + $0x30] sm:$0xff]  ;;  %v4585_v42 = vld [vmem:[%s6689_s1 + $0x28] sm:$0xff]  ;;  %6782 = vst [vmem:[#allocation7_spill] sm:$0xff] %v4597_v44  ;;  %v4602_v45 = vld [vmem:[%s6689_s1 + $0x1a0] sm:$0xff] }
  0x10   :  { %2858 = vmatprep.subr.mxu1 %v4482_v25  ;;  %2824 = vmatpush3.msra.mxu0 %v4489_v26  ;;  %6779 = vst [vmem:[#allocation4_spill] sm:$0xff] %v4561_v38  ;;  %v4566_v39 = vld [vmem:[%s6689_s1 + $0x130] sm:$0xff]  ;;  %6781 = vst [vmem:[#allocation6_spill] sm:$0xff] %v4585_v42  ;;  %v4590_v43 = vld [vmem:[%s6689_s1 + $0x128] sm:$0xff] }
  0x11   :  { %2859 = vmatpush3.msra.mxu1 %v4494_v27  ;;  %2825 = vmatprep.subr.mxu0 %v4501_v28  ;;  %v4609_v46 = vld [vmem:[%s6689_s1 + $0x20] sm:$0xff]  ;;  %v4621_v48 = vld [vmem:[%s6689_s1 + $0x98] sm:$0xff]  ;;  %v4645_v52 = vld [vmem:[%s6689_s1 + $0x90] sm:$0xff] }
  0x12   :  { %2860 = vmatprep.subr.mxu1 %v4506_v29  ;;  %2826 = vmatpush3.msra.mxu0 %v4513_v30  ;;  %6783 = vst [vmem:[#allocation8_spill] sm:$0xff] %v4609_v46  ;;  %v4614_v47 = vld [vmem:[%s6689_s1 + $0x120] sm:$0xff]  ;;  %6784 = vst [vmem:[#allocation9_spill] sm:$0xff] %v4621_v48  ;;  %v4626_v49 = vld [vmem:[%s6689_s1 + $0x198] sm:$0xff] }
  0x13   :  { %2861 = vmatpush3.msra.mxu1 %v4518_v31  ;;  %2827 = vmatprep.subr.mxu0 %v4525_v32  ;;  %v4633_v50 = vld [vmem:[%s6689_s1 + $0x18] sm:$0xff]  ;;  %6786 = vst [vmem:[#allocation11_spill] sm:$0xff] %v4645_v52  ;;  %v4650_v53 = vld [vmem:[%s6689_s1 + $0x190] sm:$0xff]  ;;  %v4669_v56 = vld [vmem:[%s6689_s1 + $0x88] sm:$0xff] }
  0x14   :  { %2862 = vmatprep.subr.mxu1 %v4530_v33  ;;  %2828 = vmatpush3.msra.mxu0 %v4537_v34  ;;  %6785 = vst [vmem:[#allocation10_spill] sm:$0xff] %v4633_v50  ;;  %v4638_v51 = vld [vmem:[%s6689_s1 + $0x118] sm:$0xff]  ;;  %v4657_v54 = vld [vmem:[%s6689_s1 + $0x10] sm:$0xff]  ;;  %6789 = vst [vmem:[#allocation14_spill] sm:$0xff] %v4669_v56 }
  0x15   :  { %2863 = vmatpush3.msra.mxu1 %v4542_v35  ;;  %2829 = vmatprep.subr.mxu0 %v4549_v36  ;;  %6787 = vst [vmem:[#allocation12_spill] sm:$0xff] %v4657_v54  ;;  %v4662_v55 = vld [vmem:[%s6689_s1 + $0x110] sm:$0xff]  ;;  %v4674_v57 = vld [vmem:[%s6689_s1 + $0x188] sm:$0xff]  ;;  %v4693_v60 = vld [vmem:[%s6689_s1 + $0x80] sm:$0xff] }
  0x16   :  { %2864 = vmatprep.subr.mxu1 %v4554_v37  ;;  %2830 = vmatpush3.msra.mxu0 %v4561_v38  ;;  %6788 = vst [vmem:[#allocation13_spill] sm:$0xff] %v4662_v55  ;;  %6790 = vst [vmem:[#allocation15_spill] sm:$0xff] %v4674_v57  ;;  %v4681_v58 = vld [vmem:[%s6689_s1 + $0x8] sm:$0xff]  ;;  %v4698_v61 = vld [vmem:[%s6689_s1 + $0x180] sm:$0xff] }
  0x17   :  { %2865 = vmatpush3.msra.mxu1 %v4566_v39  ;;  %2831 = vmatprep.subr.mxu0 %v4573_v40  ;;  %6791 = vst [vmem:[#allocation16_spill] sm:$0xff] %v4681_v58  ;;  %v4686_v59 = vld [vmem:[%s6689_s1 + $0x108] sm:$0xff]  ;;  %6793 = vst [vmem:[#allocation18_spill] sm:$0xff] %v4693_v60  ;;  %v4705_v62 = vld [vmem:[%s6689_s1] sm:$0xff] }
  0x18   :  { %2866 = vmatprep.subr.mxu1 %v4578_v41  ;;  %2832 = vmatpush3.msra.mxu0 %v4585_v42  ;;  %6792 = vst [vmem:[#allocation17_spill] sm:$0xff] %v4686_v59  ;;  %6794 = vst [vmem:[#allocation19_spill] sm:$0xff] %v4705_v62  ;;  %v110_v63 = vld [vmem:[%s6690_s0 + $0x8] sm:$0xff] }
  0x19   :  { %2867 = vmatpush3.msra.mxu1 %v4590_v43  ;;  %2833 = vmatprep.subr.mxu0 %v4597_v44 }
  0x1a   :  { %2868 = vmatprep.subr.mxu1 %v4602_v45  ;;  %2834 = vmatpush3.msra.mxu0 %v4609_v46 }
  0x1b   :  { %2869 = vmatpush3.msra.mxu1 %v4614_v47  ;;  %2835 = vmatprep.subr.mxu0 %v4621_v48 }
  0x1c   :  { %2870 = vmatprep.subr.mxu1 %v4626_v49  ;;  %2836 = vmatpush3.msra.mxu0 %v4633_v50 }
  0x1d   :  { %2871 = vmatpush3.msra.mxu1 %v4638_v51  ;;  %2837 = vmatprep.subr.mxu0 %v4645_v52 }
  0x1e   :  { %2872 = vmatprep.subr.mxu1 %v4650_v53  ;;  %2838 = vmatpush3.msra.mxu0 %v4657_v54 }
  0x1f   :  { %2873 = vmatpush3.msra.mxu1 %v4662_v55  ;;  %2839 = vmatprep.subr.mxu0 %v4669_v56  ;;  %v4715_v55 = vld [vmem:[%s6689_s1 + $0x100] sm:$0xff]  ;;  %v112_v56 = vld [vmem:[%s6690_s0 + $0x18] sm:$0xff] }
  0x20   :  { %2874 = vmatprep.subr.mxu1 %v4674_v57  ;;  %2840 = vmatpush3.msra.mxu0 %v4681_v58  ;;  %v109_v57 = vld [vmem:[%s6690_s0] sm:$0xff] }
  0x21   :  { %2875 = vmatpush3.msra.mxu1 %v4686_v59  ;;  %2841 = vmatprep.subr.mxu0 %v4693_v60  ;;  %v111_v59 = vld [vmem:[%s6690_s0 + $0x10] sm:$0xff] }
  0x22   :  { %2876 = vmatprep.subr.mxu1 %v4698_v61  ;;  %2842 = vmatpush3.msra.mxu0 %v4705_v62 }
  0x23   :  { %183 = vmatprep.mubr.f32.mxu0 %v110_v63  ;;  %2877 = vmatpush3.msra.mxu1 %v4715_v55  ;;  %v282_v63 = vld [vmem:[%s6690_s0 + $0x28] sm:$0xff] }
  0x24   :  { %184 = vmatmul.mubr.f32.vlgmr.msra.gmra.mxu0 %v109_v57  ;;  %253 = vmatprep.mubr.f32.mxu1 %v112_v56  ;;  %v6795_v56 = vld [vmem:[#allocation13_spill] sm:$0xff]  ;;  %v6796_v57 = vld [vmem:[#allocation14_spill] sm:$0xff] }
  0x25   :  { %2881 = vmatprep.subr.mxu0 %v4337_v0  ;;  %2916 = vmatprep.subr.mxu1 %v4342_v1 }
  0x26   :  { %254 = vmatmul.mubr.f32.vlgmr.msra.gmra.mxu1 %v111_v59  ;;  %2882 = vmatpush3.msra.mxu0 %v4347_v2  ;;  %v6797_v59 = vld [vmem:[#allocation15_spill] sm:$0xff] }
  0x27   :  { %2917 = vmatpush3.msra.mxu1 %v4354_v3  ;;  %2883 = vmatprep.subr.mxu0 %v4359_v4 }
  0x28   :  { %2918 = vmatprep.subr.mxu1 %v4364_v5  ;;  %2884 = vmatpush3.msra.mxu0 %v4371_v6 }
  0x29   :  { %2919 = vmatpush3.msra.mxu1 %v4376_v7  ;;  %2885 = vmatprep.subr.mxu0 %v4381_v8 }
  0x2a   :  { %2920 = vmatprep.subr.mxu1 %v4388_v9  ;;  %2886 = vmatpush3.msra.mxu0 %v4393_v10 }
  0x2b   :  { %2921 = vmatpush3.msra.mxu1 %v4398_v11  ;;  %2887 = vmatprep.subr.mxu0 %v4405_v12 }
  0x2c   :  { %2922 = vmatprep.subr.mxu1 %v4410_v13  ;;  %2888 = vmatpush3.msra.mxu0 %v4417_v14 }
  0x2d   :  { %2923 = vmatpush3.msra.mxu1 %v4422_v15  ;;  %2889 = vmatprep.subr.mxu0 %v4429_v16 }
  0x2e   :  { %2924 = vmatprep.subr.mxu1 %v4434_v17  ;;  %2890 = vmatpush3.msra.mxu0 %v4441_v18 }
  0x2f   :  { %2925 = vmatpush3.msra.mxu1 %v4446_v19  ;;  %2891 = vmatprep.subr.mxu0 %v4453_v20 }
  0x30   :  { %2926 = vmatprep.subr.mxu1 %v4458_v21  ;;  %2892 = vmatpush3.msra.mxu0 %v4465_v22 }
  0x31   :  { %2927 = vmatpush3.msra.mxu1 %v4470_v23  ;;  %2893 = vmatprep.subr.mxu0 %v4477_v24 }
  0x32   :  { %2928 = vmatprep.subr.mxu1 %v4482_v25  ;;  %2894 = vmatpush3.msra.mxu0 %v4489_v26 }
  0x33   :  { %2929 = vmatpush3.msra.mxu1 %v4494_v27  ;;  %2895 = vmatprep.subr.mxu0 %v4501_v28 }
  0x34   :  { %2930 = vmatprep.subr.mxu1 %v4506_v29  ;;  %2896 = vmatpush3.msra.mxu0 %v4513_v30 }
  0x35   :  { %2931 = vmatpush3.msra.mxu1 %v4518_v31  ;;  %2897 = vmatprep.subr.mxu0 %v4525_v32 }
  0x36   :  { %2932 = vmatprep.subr.mxu1 %v4530_v33  ;;  %2898 = vmatpush3.msra.mxu0 %v4537_v34 }
  0x37   :  { %2933 = vmatpush3.msra.mxu1 %v4542_v35  ;;  %2899 = vmatprep.subr.mxu0 %v4549_v36 }
  0x38   :  { %2934 = vmatprep.subr.mxu1 %v4554_v37  ;;  %2900 = vmatpush3.msra.mxu0 %v4561_v38  ;;  %v591_v38 = vld [vmem:[%s6690_s0 + $0x58] sm:$0xff] }
  0x39   :  { %2935 = vmatpush3.msra.mxu1 %v4566_v39  ;;  %2901 = vmatprep.subr.mxu0 %v4573_v40 }
  0x3a   :  { %2936 = vmatprep.subr.mxu1 %v4578_v41  ;;  %2902 = vmatpush3.msra.mxu0 %v4585_v42 }
  0x3b   :  { %2937 = vmatpush3.msra.mxu1 %v4590_v43  ;;  %2903 = vmatprep.subr.mxu0 %v4597_v44 }
  0x3c   :  { %2938 = vmatprep.subr.mxu1 %v4602_v45  ;;  %2904 = vmatpush3.msra.mxu0 %v4609_v46 }
  0x3d   :  { %2939 = vmatpush3.msra.mxu1 %v4614_v47  ;;  %2905 = vmatprep.subr.mxu0 %v4621_v48 }
  0x3e   :  { %2940 = vmatprep.subr.mxu1 %v4626_v49  ;;  %2906 = vmatpush3.msra.mxu0 %v4633_v50  ;;  %v6798_v50 = vld [vmem:[#allocation17_spill] sm:$0xff] }
  0x3f   :  { %2941 = vmatpush3.msra.mxu1 %v4638_v51  ;;  %2907 = vmatprep.subr.mxu0 %v4645_v52  ;;  %v284_v52 = vld [vmem:[%s6690_s0 + $0x38] sm:$0xff] }
  0x40   :  { %2942 = vmatprep.subr.mxu1 %v4650_v53  ;;  %2908 = vmatpush3.msra.mxu0 %v4657_v54  ;;  %v283_v54 = vld [vmem:[%s6690_s0 + $0x30] sm:$0xff] }
  0x41   :  { %2943 = vmatpush3.msra.mxu1 %v6795_v56  ;;  %2909 = vmatprep.subr.mxu0 %v6796_v57  ;;  %v281_v57 = vld [vmem:[%s6690_s0 + $0x20] sm:$0xff] }
  0x42   :  { %2944 = vmatprep.subr.mxu1 %v6797_v59  ;;  %2910 = vmatpush3.msra.mxu0 %v4681_v58  ;;  %v6734_v58 = vmov 0.0  }
  0x43   :  { %2945 = vmatpush3.msra.mxu1 %v6798_v50  ;;  %2911 = vmatprep.subr.mxu0 %v4693_v60  ;;  %v280_v60 = vld [vmem:[%s6691_s3 + $0x78] sm:$0xff] }
  0x44   :  { %2946 = vmatprep.subr.mxu1 %v4698_v61  ;;  %2912 = vmatpush3.msra.mxu0 %v4705_v62 }
  0x45   :  { %349 = vmatprep.mubr.f32.mxu0 %v282_v63  ;;  %2947 = vmatpush3.msra.mxu1 %v4715_v55  ;;  %v279_v63 = vld [vmem:[%s6691_s3 + $0x70] sm:$0xff] }
  0x46   :  { %419 = vmatprep.mubr.f32.mxu1 %v284_v52  ;;  %350 = vmatmul.mubr.f32.vlgmr.msra.gmra.mxu0 %v281_v57  ;;  %v278_v52 = vld [vmem:[%s6691_s3 + $0x68] sm:$0xff]  ;;  %v275_v57 = vld [vmem:[%s6691_s3 + $0x50] sm:$0xff] }
  0x47   :  { %420 = vmatmul.mubr.f32.vlgmr.msra.gmra.mxu1 %v283_v54  ;;  %3697 = vmatprep.subr.mxu1 %v6734_v58  ;;  %v277_v54 = vld [vmem:[%s6691_s3 + $0x60] sm:$0xff] }
  0x48   :  { %3662 = vmatprep.subr.mxu0 %v6734_v58  ;;  %3698 = vmatpush3.msra.mxu1 %v280_v60  ;;  %v276_v60 = vld [vmem:[%s6691_s3 + $0x58] sm:$0xff] }
  0x49   :  { %3699 = vmatprep.subr.mxu1 %v6734_v58  ;;  %3729 = vmatprep.mubr.msk.f32.mxu1 %vm4263_vm0, %v6734_v58 }
  0x4a   :  { %3700 = vmatpush3.msra.mxu1 %v279_v63  ;;  %v274_v63 = vld [vmem:[%s6691_s3 + $0x48] sm:$0xff]  ;;  %3694 = vmatprep.mubr.msk.f32.mxu0 %vm4263_vm0, %v6734_v58 }
  0x4b   :  { %3701 = vmatprep.subr.mxu1 %v6734_v58 }
  0x4c   :  { %3702 = vmatpush3.msra.mxu1 %v278_v52  ;;  %v273_v52 = vld [vmem:[%s6691_s3 + $0x40] sm:$0xff] }
  0x4d   :  { %3703 = vmatprep.subr.mxu1 %v6734_v58 }
  0x4e   :  { %3704 = vmatpush3.msra.mxu1 %v277_v54  ;;  %v272_v54 = vld [vmem:[%s6691_s3 + $0x38] sm:$0xff] }
  0x4f   :  { %3705 = vmatprep.subr.mxu1 %v6734_v58 }
  0x50   :  { %3706 = vmatpush3.msra.mxu1 %v276_v60  ;;  %v2682_v60 = vld [vmem:[%s6691_s3 + $0xf8] sm:$0xff] }
  0x51   :  { %3707 = vmatprep.subr.mxu1 %v6734_v58  ;;  %3663 = vmatpush3.msra.mxu0 %v2682_v60  ;;  %v267_v60 = vld [vmem:[%s6691_s3 + $0x10] sm:$0xff] }
  0x52   :  { %3708 = vmatpush3.msra.mxu1 %v275_v57  ;;  %v271_v57 = vld [vmem:[%s6691_s3 + $0x30] sm:$0xff]  ;;  %3664 = vmatprep.subr.mxu0 %v6734_v58 }
  0x53   :  { %3709 = vmatprep.subr.mxu1 %v6734_v58 }
  0x54   :  { %3710 = vmatpush3.msra.mxu1 %v274_v63  ;;  %v270_v63 = vld [vmem:[%s6691_s3 + $0x28] sm:$0xff] }
  0x55   :  { %3711 = vmatprep.subr.mxu1 %v6734_v58 }
  0x56   :  { %3712 = vmatpush3.msra.mxu1 %v273_v52  ;;  %v269_v52 = vld [vmem:[%s6691_s3 + $0x20] sm:$0xff] }
  0x57   :  { %3713 = vmatprep.subr.mxu1 %v6734_v58 }
  0x58   :  { %3714 = vmatpush3.msra.mxu1 %v272_v54  ;;  %v268_v54 = vld [vmem:[%s6691_s3 + $0x18] sm:$0xff] }
  0x59   :  { %3715 = vmatprep.subr.mxu1 %v6734_v58 }
  0x5a   :  { %3716 = vmatpush3.msra.mxu1 %v271_v57  ;;  %v266_v57 = vld [vmem:[%s6691_s3 + $0x8] sm:$0xff] }
  0x5b   :  { %3717 = vmatprep.subr.mxu1 %v6734_v58 }
  0x5c   :  { %3718 = vmatpush3.msra.mxu1 %v270_v63  ;;  %v265_v63 = vld [vmem:[%s6691_s3] sm:$0xff] }
  0x5d   :  { %3719 = vmatprep.subr.mxu1 %v6734_v58 }
  0x5e   :  { %3720 = vmatpush3.msra.mxu1 %v269_v52  ;;  %v2681_v52 = vld [vmem:[%s6691_s3 + $0xf0] sm:$0xff] }
  0x5f   :  { %3721 = vmatprep.subr.mxu1 %v6734_v58  ;;  %3665 = vmatpush3.msra.mxu0 %v2681_v52  ;;  %v2676_v52 = vld [vmem:[%s6691_s3 + $0xc8] sm:$0xff] }
  0x60   :  { %3722 = vmatpush3.msra.mxu1 %v268_v54  ;;  %3666 = vmatprep.subr.mxu0 %v6734_v58  ;;  %v2680_v54 = vld [vmem:[%s6691_s3 + $0xe8] sm:$0xff] }
  0x61   :  { %3723 = vmatprep.subr.mxu1 %v6734_v58  ;;  %3667 = vmatpush3.msra.mxu0 %v2680_v54  ;;  %v2675_v54 = vld [vmem:[%s6691_s3 + $0xc0] sm:$0xff] }
  0x62   :  { %3724 = vmatpush3.msra.mxu1 %v267_v60  ;;  %3668 = vmatprep.subr.mxu0 %v6734_v58  ;;  %v2679_v60 = vld [vmem:[%s6691_s3 + $0xe0] sm:$0xff] }
  0x63   :  { %3725 = vmatprep.subr.mxu1 %v6734_v58  ;;  %3669 = vmatpush3.msra.mxu0 %v2679_v60  ;;  %v2674_v60 = vld [vmem:[%s6691_s3 + $0xb8] sm:$0xff] }
  0x64   :  { %3726 = vmatpush3.msra.mxu1 %v266_v57  ;;  %3670 = vmatprep.subr.mxu0 %v6734_v58  ;;  %v2678_v57 = vld [vmem:[%s6691_s3 + $0xd8] sm:$0xff] }
  0x65   :  { %3727 = vmatprep.subr.mxu1 %v6734_v58  ;;  %3671 = vmatpush3.msra.mxu0 %v2678_v57  ;;  %v2673_v57 = vld [vmem:[%s6691_s3 + $0xb0] sm:$0xff] }
  0x66   :  { %3728 = vmatpush3.msra.mxu1 %v265_v63  ;;  %3672 = vmatprep.subr.mxu0 %v6734_v58  ;;  %v2677_v63 = vld [vmem:[%s6691_s3 + $0xd0] sm:$0xff] }
  0x67   :  { %3020 = vmatprep.subr.mxu1 %v4342_v1  ;;  %3673 = vmatpush3.msra.mxu0 %v2677_v63  ;;  %v2672_v63 = vld [vmem:[%s6691_s3 + $0xa8] sm:$0xff]  ;;  %v4943_v1 = vld [vmem:[%s6692_s2] ss:$0 sm:$0xff] }
  0x68   :  { %3674 = vmatprep.subr.mxu0 %v6734_v58 }
  0x69   :  { %3675 = vmatpush3.msra.mxu0 %v2676_v52  ;;  %v2671_v52 = vld [vmem:[%s6691_s3 + $0xa0] sm:$0xff] }
  0x6a   :  { %3676 = vmatprep.subr.mxu0 %v6734_v58 }
  0x6b   :  { %3677 = vmatpush3.msra.mxu0 %v2675_v54  ;;  %v2670_v54 = vld [vmem:[%s6691_s3 + $0x98] sm:$0xff] }
  0x6c   :  { %3678 = vmatprep.subr.mxu0 %v6734_v58 }
  0x6d   :  { %3679 = vmatpush3.msra.mxu0 %v2674_v60  ;;  %v2669_v60 = vld [vmem:[%s6691_s3 + $0x90] sm:$0xff] }
  0x6e   :  { %3680 = vmatprep.subr.mxu0 %v6734_v58 }
  0x6f   :  { %3681 = vmatpush3.msra.mxu0 %v2673_v57  ;;  %v2668_v57 = vld [vmem:[%s6691_s3 + $0x88] sm:$0xff] }
  0x70   :  { %3682 = vmatprep.subr.mxu0 %v6734_v58 }
  0x71   :  { %3683 = vmatpush3.msra.mxu0 %v2672_v63  ;;  %v2667_v63 = vld [vmem:[%s6691_s3 + $0x80] sm:$0xff] }
  0x72   :  { %3684 = vmatprep.subr.mxu0 %v6734_v58 }
  0x73   :  { %3685 = vmatpush3.msra.mxu0 %v2671_v52 }
  0x74   :  { %3686 = vmatprep.subr.mxu0 %v6734_v58 }
  0x75   :  { %3687 = vmatpush3.msra.mxu0 %v2670_v54 }
  0x76   :  { %3688 = vmatprep.subr.mxu0 %v6734_v58 }
  0x77   :  { %3689 = vmatpush3.msra.mxu0 %v2669_v60 }
  0x78   :  { %3690 = vmatprep.subr.mxu0 %v6734_v58 }
  0x79   :  { %3691 = vmatpush3.msra.mxu0 %v2668_v57 }
  0x7a   :  { %3692 = vmatprep.subr.mxu0 %v6734_v58 }
  0x7b   :  { %3693 = vmatpush3.msra.mxu0 %v2667_v63 }
  0x7c   :  { %2985 = vmatprep.subr.mxu0 %v4337_v0 }
  0xe4   :  { %v2843_v52 = vpop.f32.mrf.mxu0 }
  0xe6   :  { %v2878_v54 = vpop.f32.mrf.mxu1  ;;  %v2844_v60 = vpop.f32.mrf.mxu0 }
  0xe7   :  { %v2845_v62 = vadd.f32 %v2844_v60, %v2843_v52  ;;  %v2696_v60 = vld [vmem:[%s6691_s3 + $0x160] sm:$0xff] }
  0xe8   :  { %v2879_v48 = vpop.f32.mrf.mxu1 }
  0xe9   :  { %v186_v46 = vadd.f32 %v2845_v62, %v4943_v1  ;;  %v2880_v44 = vadd.f32 %v2879_v48, %v2878_v54  ;;  %v589_v62 = vld [vmem:[%s6690_s0 + $0x48] sm:$0xff] }
  0xea   :  { %v2697_v54 = vld [vmem:[%s6691_s3 + $0x168] sm:$0xff] }
  0xeb   :  { %v256_v42 = vadd.f32 %v2880_v44, %v186_v46 }
  0xed   :  { %v260_v57 = vmin.f32 %v256_v42, 0.0  ;;  %vm259_vm1 = vcmp.gt.f32.partialorder %v256_v42, 0.0 }
  0xef   :  { %v261_v40 = vmul.f32 1.442695, %v260_v57  ;;  %v2695_v57 = vld [vmem:[%s6691_s3 + $0x158] sm:$0xff] }
  0xf1   :  { %4119 = vpow2.f32 %v261_v40 }
  0xfe   :  { %v4120_v63 = vpop.eup %4119 }
  0xff   :  { %v2665_v58 = vadd.f32 -1.0, %v4120_v63  ;;  %v2694_v63 = vld [vmem:[%s6691_s3 + $0x150] sm:$0xff] }
 0x101   :  { %v264_v36 = vsel %vm259_vm1, %v256_v42, %v2665_v58 }
 0x102   :  { %3730 = vmatmul.mubr.f32.vlgmr.msra.gmra.mxu1 %v264_v36 }
 0x103   :  { %3021 = vmatpush3.msra.mxu1 %v4354_v3  ;;  %726 = vmatprep.mubr.f32.mxu1 %v591_v38  ;;  %v590_v38 = vld [vmem:[%s6690_s0 + $0x50] sm:$0xff] }
 0x104   :  { %3022 = vmatprep.subr.mxu1 %v4364_v5 }
 0x105   :  { %3023 = vmatpush3.msra.mxu1 %v4376_v7 }
 0x106   :  { %3024 = vmatprep.subr.mxu1 %v4388_v9  ;;  %v2913_v44 = vpop.f32.mrf.mxu0 }
 0x107   :  { %v2948_v40 = vpop.f32.mrf.mxu1  ;;  %3025 = vmatpush3.msra.mxu1 %v4398_v11 }
 0x108   :  { %3026 = vmatprep.subr.mxu1 %v4410_v13  ;;  %v2914_v46 = vpop.f32.mrf.mxu0 }
 0x109   :  { %v2949_v48 = vpop.f32.mrf.mxu1  ;;  %3027 = vmatpush3.msra.mxu1 %v4422_v15  ;;  %v2915_v36 = vadd.f32 %v2914_v46, %v2913_v44  ;;  %v2693_v44 = vld [vmem:[%s6691_s3 + $0x148] sm:$0xff]  ;;  %v2691_v46 = vld [vmem:[%s6691_s3 + $0x138] sm:$0xff] }
 0x10a   :  { %3028 = vmatprep.subr.mxu1 %v4434_v17  ;;  %v2950_v5 = vadd.f32 %v2949_v48, %v2948_v40  ;;  %v2692_v40 = vld [vmem:[%s6691_s3 + $0x140] sm:$0xff]  ;;  %v2690_v48 = vld [vmem:[%s6691_s3 + $0x130] sm:$0xff] }
 0x10b   :  { %3029 = vmatpush3.msra.mxu1 %v4446_v19  ;;  %v352_v3 = vadd.f32 %v2915_v36, %v4943_v1  ;;  %v2689_v36 = vld [vmem:[%s6691_s3 + $0x128] sm:$0xff] }
 0x10c   :  { %3030 = vmatprep.subr.mxu1 %v4458_v21 }
 0x10d   :  { %3031 = vmatpush3.msra.mxu1 %v4470_v23  ;;  %v422_v7 = vadd.f32 %v2950_v5, %v352_v3  ;;  %v2688_v3 = vld [vmem:[%s6691_s3 + $0x120] sm:$0xff]  ;;  %v2687_v5 = vld [vmem:[%s6691_s3 + $0x118] sm:$0xff] }
 0x10e   :  { %3032 = vmatprep.subr.mxu1 %v4482_v25 }
 0x10f   :  { %3033 = vmatpush3.msra.mxu1 %v4494_v27  ;;  %v426_v9 = vmin.f32 %v422_v7, 0.0  ;;  %vm425_vm2 = vcmp.gt.f32.partialorder %v422_v7, 0.0 }
 0x110   :  { %3034 = vmatprep.subr.mxu1 %v4506_v29 }
 0x111   :  { %3035 = vmatpush3.msra.mxu1 %v4518_v31  ;;  %v427_v11 = vmul.f32 1.442695, %v426_v9  ;;  %v2685_v9 = vld [vmem:[%s6691_s3 + $0x108] sm:$0xff] }
 0x112   :  { %3036 = vmatprep.subr.mxu1 %v4530_v33 }
 0x113   :  { %3037 = vmatpush3.msra.mxu1 %v4542_v35  ;;  %4121 = vpow2.f32 %v427_v11  ;;  %v2684_v11 = vld [vmem:[%s6691_s3 + $0x100] sm:$0xff] }
 0x114   :  { %3038 = vmatprep.subr.mxu1 %v4554_v37 }
 0x115   :  { %3039 = vmatpush3.msra.mxu1 %v4566_v39 }
 0x116   :  { %3040 = vmatprep.subr.mxu1 %v4578_v41 }
 0x117   :  { %3041 = vmatpush3.msra.mxu1 %v4590_v43 }
 0x118   :  { %3042 = vmatprep.subr.mxu1 %v4602_v45 }
 0x119   :  { %3043 = vmatpush3.msra.mxu1 %v4614_v47 }
 0x11a   :  { %3044 = vmatprep.subr.mxu1 %v4626_v49 }
 0x11b   :  { %3045 = vmatpush3.msra.mxu1 %v4638_v51 }
 0x11c   :  { %3046 = vmatprep.subr.mxu1 %v4650_v53 }
 0x11d   :  { %3047 = vmatpush3.msra.mxu1 %v6795_v56 }
 0x11e   :  { %3048 = vmatprep.subr.mxu1 %v6797_v59 }
 0x11f   :  { %3049 = vmatpush3.msra.mxu1 %v6798_v50 }
 0x120   :  { %3050 = vmatprep.subr.mxu1 %v4698_v61  ;;  %v4122_v42 = vpop.eup %4121 }
 0x121   :  { %3051 = vmatpush3.msra.mxu1 %v4715_v55  ;;  %v2666_v58 = vadd.f32 -1.0, %v4122_v42  ;;  %v827_v42 = vld [vmem:[%s6690_s0 + $0x68] sm:$0xff] }
 0x122   :  { %727 = vmatmul.mubr.f32.vlgmr.msra.gmra.mxu1 %v590_v38  ;;  %3072 = vmatprep.subr.mxu1 %v4337_v0  ;;  %v6799_v0 = vld [vmem:[#allocation3_spill] sm:$0xff]  ;;  %v6814_v38 = vld [vmem:[#allocation2_spill] sm:$0xff] }
 0x123   :  { %3073 = vmatpush3.msra.mxu1 %v4347_v2  ;;  %v430_v52 = vsel %vm425_vm2, %v422_v7, %v2666_v58  ;;  %v2686_v7 = vld [vmem:[%s6691_s3 + $0x110] sm:$0xff]  ;;  %894 = vmatprep.mubr.f32.mxu1 %v827_v42  ;;  %v826_v58 = vld [vmem:[%s6690_s0 + $0x60] sm:$0xff] }
 0x124   :  { %3074 = vmatprep.subr.mxu1 %v4359_v4  ;;  %3695 = vmatmul.mubr.f32.vlgmr.msra.gmra.mxu0 %v430_v52  ;;  %v5144_v42 = vld [vmem:[%s6689_s1 + $0x1f0] sm:$0xff] }
 0x125   :  { %3075 = vmatpush3.msra.mxu1 %v4371_v6  ;;  %2986 = vmatpush3.msra.mxu0 %v4347_v2  ;;  %v6800_v2 = vld [vmem:[#allocation4_spill] sm:$0xff] }
 0x126   :  { %656 = vmatprep.mubr.f32.mxu0 %v589_v62  ;;  %2987 = vmatprep.subr.mxu0 %v4359_v4  ;;  %v6801_v4 = vld [vmem:[#allocation5_spill] sm:$0xff] }
 0x127   :  { %3076 = vmatprep.subr.mxu1 %v4381_v8  ;;  %2988 = vmatpush3.msra.mxu0 %v4371_v6  ;;  %v6802_v6 = vld [vmem:[#allocation6_spill] sm:$0xff] }
 0x128   :  { %3077 = vmatpush3.msra.mxu1 %v4393_v10  ;;  %2989 = vmatprep.subr.mxu0 %v4381_v8  ;;  %v6803_v8 = vld [vmem:[#allocation7_spill] sm:$0xff] }
 0x129   :  { %3078 = vmatprep.subr.mxu1 %v4405_v12  ;;  %2990 = vmatpush3.msra.mxu0 %v4393_v10  ;;  %v6804_v10 = vld [vmem:[#allocation8_spill] sm:$0xff] }
 0x12a   :  { %3079 = vmatpush3.msra.mxu1 %v4417_v14  ;;  %2991 = vmatprep.subr.mxu0 %v4405_v12  ;;  %v6805_v12 = vld [vmem:[#allocation9_spill] sm:$0xff] }
 0x12b   :  { %3080 = vmatprep.subr.mxu1 %v4429_v16  ;;  %2992 = vmatpush3.msra.mxu0 %v4417_v14  ;;  %v6806_v14 = vld [vmem:[#allocation10_spill] sm:$0xff] }
 0x12c   :  { %3081 = vmatpush3.msra.mxu1 %v4441_v18  ;;  %2993 = vmatprep.subr.mxu0 %v4429_v16  ;;  %v6807_v16 = vld [vmem:[#allocation11_spill] sm:$0xff] }
 0x12d   :  { %3082 = vmatprep.subr.mxu1 %v4453_v20  ;;  %2994 = vmatpush3.msra.mxu0 %v4441_v18  ;;  %v6808_v18 = vld [vmem:[#allocation12_spill] sm:$0xff] }
 0x12e   :  { %3083 = vmatpush3.msra.mxu1 %v4465_v22  ;;  %2995 = vmatprep.subr.mxu0 %v4453_v20  ;;  %v6809_v20 = vld [vmem:[#allocation14_spill] sm:$0xff] }
 0x12f   :  { %3084 = vmatprep.subr.mxu1 %v4477_v24  ;;  %2996 = vmatpush3.msra.mxu0 %v4465_v22  ;;  %v6810_v22 = vld [vmem:[#allocation16_spill] sm:$0xff] }
 0x130   :  { %3085 = vmatpush3.msra.mxu1 %v4489_v26  ;;  %2997 = vmatprep.subr.mxu0 %v4477_v24  ;;  %v6811_v24 = vld [vmem:[#allocation18_spill] sm:$0xff] }
 0x131   :  { %3086 = vmatprep.subr.mxu1 %v4501_v28  ;;  %2998 = vmatpush3.msra.mxu0 %v4489_v26  ;;  %v588_v26 = vld [vmem:[%s6690_s0 + $0x40] sm:$0xff] }
 0x132   :  { %3087 = vmatpush3.msra.mxu1 %v4513_v30  ;;  %2999 = vmatprep.subr.mxu0 %v4501_v28  ;;  %v6812_v28 = vld [vmem:[#allocation19_spill] sm:$0xff] }
 0x133   :  { %3088 = vmatprep.subr.mxu1 %v4525_v32  ;;  %3000 = vmatpush3.msra.mxu0 %v4513_v30  ;;  %v6813_v30 = vmov 0.0  }
 0x134   :  { %3089 = vmatpush3.msra.mxu1 %v4537_v34  ;;  %3001 = vmatprep.subr.mxu0 %v4525_v32  ;;  %v2699_v32 = vld [vmem:[%s6691_s3 + $0x178] sm:$0xff] }
 0x135   :  { %3090 = vmatprep.subr.mxu1 %v6799_v0  ;;  %3002 = vmatpush3.msra.mxu0 %v4537_v34  ;;  %v2698_v34 = vld [vmem:[%s6691_s3 + $0x170] sm:$0xff] }
 0x136   :  { %3091 = vmatpush3.msra.mxu1 %v6800_v2  ;;  %3003 = vmatprep.subr.mxu0 %v6799_v0 }
 0x137   :  { %3092 = vmatprep.subr.mxu1 %v6801_v4  ;;  %3004 = vmatpush3.msra.mxu0 %v6800_v2 }
 0x138   :  { %3093 = vmatpush3.msra.mxu1 %v6802_v6  ;;  %3005 = vmatprep.subr.mxu0 %v6801_v4 }
 0x139   :  { %3094 = vmatprep.subr.mxu1 %v6803_v8  ;;  %3006 = vmatpush3.msra.mxu0 %v6802_v6 }
 0x13a   :  { %3095 = vmatpush3.msra.mxu1 %v6804_v10  ;;  %3007 = vmatprep.subr.mxu0 %v6803_v8 }
 0x13b   :  { %3096 = vmatprep.subr.mxu1 %v6805_v12  ;;  %3008 = vmatpush3.msra.mxu0 %v6804_v10 }
 0x13c   :  { %3097 = vmatpush3.msra.mxu1 %v6806_v14  ;;  %3009 = vmatprep.subr.mxu0 %v6805_v12 }
 0x13d   :  { %3098 = vmatprep.subr.mxu1 %v6807_v16  ;;  %3010 = vmatpush3.msra.mxu0 %v6806_v14 }
 0x13e   :  { %3099 = vmatpush3.msra.mxu1 %v6808_v18  ;;  %3011 = vmatprep.subr.mxu0 %v6807_v16 }
 0x13f   :  { %3100 = vmatprep.subr.mxu1 %v6809_v20  ;;  %3012 = vmatpush3.msra.mxu0 %v6808_v18 }
 0x140   :  { %3101 = vmatpush3.msra.mxu1 %v6810_v22  ;;  %3013 = vmatprep.subr.mxu0 %v6809_v20 }
 0x141   :  { %3102 = vmatprep.subr.mxu1 %v6811_v24  ;;  %3014 = vmatpush3.msra.mxu0 %v6810_v22 }
 0x142   :  { %3103 = vmatpush3.msra.mxu1 %v6812_v28  ;;  %3015 = vmatprep.subr.mxu0 %v6811_v24 }
 0x143   :  { %3767 = vmatprep.subr.mxu1 %v6813_v30  ;;  %3016 = vmatpush3.msra.mxu0 %v6812_v28 }
 0x144   :  { %657 = vmatmul.mubr.f32.vlgmr.msra.gmra.mxu0 %v588_v26  ;;  %3732 = vmatprep.subr.mxu0 %v6813_v30 }
 0x145   :  { %3764 = vmatprep.mubr.msk.f32.mxu0 %vm4263_vm0, %v6813_v30  ;;  %3733 = vmatpush3.msra.mxu0 %v2699_v32 }
 0x146   :  { %3734 = vmatprep.subr.mxu0 %v6813_v30  ;;  %895 = vmatmul.mubr.f32.vlgmr.msra.gmra.mxu1 %v826_v58  ;;  %v5150_v58 = vld [vmem:[%s6689_s1 + $0x170] sm:$0xff] }
 0x147   :  { %3735 = vmatpush3.msra.mxu0 %v2698_v34  ;;  %3799 = vmatprep.mubr.msk.f32.mxu1 %vm4263_vm0, %v6813_v30 }
 0x148   :  { %3736 = vmatprep.subr.mxu0 %v6813_v30 }
 0x149   :  { %3737 = vmatpush3.msra.mxu0 %v2697_v54 }
 0x14a   :  { %3738 = vmatprep.subr.mxu0 %v6813_v30 }
 0x14b   :  { %3739 = vmatpush3.msra.mxu0 %v2696_v60 }
 0x14c   :  { %3740 = vmatprep.subr.mxu0 %v6813_v30 }
 0x14d   :  { %3741 = vmatpush3.msra.mxu0 %v2695_v57 }
 0x14e   :  { %3742 = vmatprep.subr.mxu0 %v6813_v30 }
 0x14f   :  { %3743 = vmatpush3.msra.mxu0 %v2694_v63 }
 0x150   :  { %3744 = vmatprep.subr.mxu0 %v6813_v30 }
 0x151   :  { %3745 = vmatpush3.msra.mxu0 %v2693_v44 }
 0x152   :  { %3746 = vmatprep.subr.mxu0 %v6813_v30 }
 0x153   :  { %3747 = vmatpush3.msra.mxu0 %v2692_v40 }
 0x154   :  { %3748 = vmatprep.subr.mxu0 %v6813_v30 }
 0x155   :  { %3749 = vmatpush3.msra.mxu0 %v2691_v46 }
 0x156   :  { %3750 = vmatprep.subr.mxu0 %v6813_v30 }
 0x157   :  { %3751 = vmatpush3.msra.mxu0 %v2690_v48 }
 0x158   :  { %3752 = vmatprep.subr.mxu0 %v6813_v30 }
 0x159   :  { %3753 = vmatpush3.msra.mxu0 %v2689_v36 }
 0x15a   :  { %3754 = vmatprep.subr.mxu0 %v6813_v30 }
 0x15b   :  { %3755 = vmatpush3.msra.mxu0 %v2688_v3 }
 0x15c   :  { %3756 = vmatprep.subr.mxu0 %v6813_v30 }
 0x15d   :  { %3757 = vmatpush3.msra.mxu0 %v2687_v5 }
 0x15e   :  { %3758 = vmatprep.subr.mxu0 %v6813_v30 }
 0x15f   :  { %3759 = vmatpush3.msra.mxu0 %v2686_v7 }
 0x160   :  { %3760 = vmatprep.subr.mxu0 %v6813_v30 }
 0x161   :  { %3761 = vmatpush3.msra.mxu0 %v2685_v9  ;;  %v829_v9 = vld [vmem:[%s6690_s0 + $0x78] sm:$0xff] }
 0x162   :  { %3762 = vmatprep.subr.mxu0 %v6813_v30 }
 0x163   :  { %3763 = vmatpush3.msra.mxu0 %v2684_v11 }
 0x164   :  { %3107 = vmatprep.subr.mxu0 %v6814_v38  ;;  %v5138_v38 = vld [vmem:[%s6689_s1 + $0x178] sm:$0xff] }
 0x1c2   :  { %v584_v62 = vpop.f32.mrf.mxu1 }
 0x1c4   :  { %v3731_v52 = vpop.f32.mrf.mxu1 }
 0x1c5   :  { %v5162_v52 = vld [vmem:[%s6689_s1 + $0x168] sm:$0xff] }
 0x1e2   :  { %v3052_v54 = vpop.f32.mrf.mxu1 }
 0x1e4   :  { %v514_v26 = vpop.f32.mrf.mxu0  ;;  %v3053_v63 = vpop.f32.mrf.mxu1 }
 0x1e5   :  { %v5129_v32 = vadd.f32 %v584_v62, %v514_v26  ;;  %v3054_v46 = vadd.f32 %v3053_v63, %v3052_v54  ;;  %v5156_v62 = vld [vmem:[%s6689_s1 + $0x1e8] sm:$0xff] }
 0x1e6   :  { %v3696_v34 = vpop.f32.mrf.mxu0 }
 0x204   :  { %v3017_v60 = vpop.f32.mrf.mxu0 }
 0x206   :  { %v3018_v57 = vpop.f32.mrf.mxu0  ;;  %v3104_v34 = vpop.f32.mrf.mxu1 }
 0x207   :  { %v3019_v44 = vadd.f32 %v3018_v57, %v3017_v60 }
 0x208   :  { %v3105_v54 = vpop.f32.mrf.mxu1 }
 0x209   :  { %v659_v40 = vadd.f32 %v3019_v44, %v4943_v1  ;;  %v3106_v60 = vadd.f32 %v3105_v54, %v3104_v34  ;;  %v5547_v34 = vld [vmem:[%s6689_s1 + $0x108] sm:$0xff]  ;;  %v1066_v54 = vld [vmem:[%s6690_s0 + $0x90] sm:$0xff] }
 0x20b   :  { %v729_v48 = vadd.f32 %v3054_v46, %v659_v40  ;;  %v897_v44 = vadd.f32 %v3106_v60, %v4943_v1  ;;  %v5556_v60 = vld [vmem:[%s6689_s1 + $0x180] sm:$0xff] }
 0x20d   :  { %v733_v36 = vmin.f32 %v729_v48, 0.0  ;;  %vm732_vm3 = vcmp.gt.f32.partialorder %v729_v48, 0.0 }
 0x20f   :  { %v734_v3 = vmul.f32 1.442695, %v733_v36 }
 0x211   :  { %4123 = vpow2.f32 %v734_v3 }
 0x21e   :  { %v4124_v5 = vpop.eup %4123 }
 0x21f   :  { %v2683_v7 = vadd.f32 -1.0, %v4124_v5 }
 0x221   :  { %v737_v11 = vsel %vm732_vm3, %v729_v48, %v2683_v7 }
 0x222   :  { %3765 = vmatmul.mubr.f32.vlgmr.msra.gmra.mxu0 %v737_v11  ;;  %v5415_v11 = vld [vmem:[%s6689_s1 + $0x160] sm:$0xff] }
 0x223   :  { %3108 = vmatpush3.msra.mxu0 %v5138_v38  ;;  %964 = vmatprep.mubr.f32.mxu0 %v829_v9  ;;  %v5409_v9 = vld [vmem:[%s6689_s1 + $0x1e0] sm:$0xff] }
 0x224   :  { %3109 = vmatprep.subr.mxu0 %v5144_v42 }
 0x225   :  { %3110 = vmatpush3.msra.mxu0 %v5150_v58 }
 0x226   :  { %3111 = vmatprep.subr.mxu0 %v5156_v62 }
 0x227   :  { %3112 = vmatpush3.msra.mxu0 %v5162_v52 }
 0x228   :  { %3113 = vmatprep.subr.mxu0 %v4410_v13  ;;  %v828_v13 = vld [vmem:[%s6690_s0 + $0x70] sm:$0xff] }
 0x229   :  { %3114 = vmatpush3.msra.mxu0 %v4422_v15  ;;  %v5197_v15 = vld [vmem:[%s6689_s1 + $0xf8] sm:$0xff] }
 0x22a   :  { %3115 = vmatprep.subr.mxu0 %v4434_v17  ;;  %v5203_v17 = vld [vmem:[%s6689_s1 + $0x78] sm:$0xff] }
 0x22b   :  { %3116 = vmatpush3.msra.mxu0 %v4446_v19  ;;  %v5209_v19 = vld [vmem:[%s6689_s1 + $0xf0] sm:$0xff] }
 0x22c   :  { %3117 = vmatprep.subr.mxu0 %v4458_v21  ;;  %v5215_v21 = vld [vmem:[%s6689_s1 + $0x70] sm:$0xff] }
 0x22d   :  { %3118 = vmatpush3.msra.mxu0 %v4470_v23  ;;  %v5221_v23 = vld [vmem:[%s6689_s1 + $0xe8] sm:$0xff] }
 0x22e   :  { %3119 = vmatprep.subr.mxu0 %v4482_v25  ;;  %v5227_v25 = vld [vmem:[%s6689_s1 + $0x68] sm:$0xff] }
 0x22f   :  { %3120 = vmatpush3.msra.mxu0 %v4494_v27  ;;  %v5233_v27 = vld [vmem:[%s6689_s1 + $0xe0] sm:$0xff] }
 0x230   :  { %3121 = vmatprep.subr.mxu0 %v4506_v29  ;;  %v5239_v29 = vld [vmem:[%s6689_s1 + $0x60] sm:$0xff] }
 0x231   :  { %3122 = vmatpush3.msra.mxu0 %v4518_v31  ;;  %v5245_v31 = vld [vmem:[%s6689_s1 + $0xd8] sm:$0xff] }
 0x232   :  { %3123 = vmatprep.subr.mxu0 %v4530_v33  ;;  %v5251_v33 = vld [vmem:[%s6689_s1 + $0x58] sm:$0xff] }
 0x233   :  { %3124 = vmatpush3.msra.mxu0 %v4542_v35  ;;  %v5257_v35 = vld [vmem:[%s6689_s1 + $0xd0] sm:$0xff] }
 0x234   :  { %3125 = vmatprep.subr.mxu0 %v4554_v37  ;;  %v5263_v37 = vld [vmem:[%s6689_s1 + $0x50] sm:$0xff] }
 0x235   :  { %3126 = vmatpush3.msra.mxu0 %v4566_v39  ;;  %v5269_v39 = vld [vmem:[%s6689_s1 + $0xc8] sm:$0xff] }
 0x236   :  { %3127 = vmatprep.subr.mxu0 %v4578_v41  ;;  %v5275_v41 = vld [vmem:[%s6689_s1 + $0x48] sm:$0xff] }
 0x237   :  { %3128 = vmatpush3.msra.mxu0 %v4590_v43  ;;  %v5281_v43 = vld [vmem:[%s6689_s1 + $0xc0] sm:$0xff] }
 0x238   :  { %3129 = vmatprep.subr.mxu0 %v4602_v45  ;;  %v5287_v45 = vld [vmem:[%s6689_s1 + $0x40] sm:$0xff] }
 0x239   :  { %3130 = vmatpush3.msra.mxu0 %v4614_v47  ;;  %6815 = vst [vmem:[#allocation13_spill] sm:$0xff] %v5287_v45  ;;  %v5293_v47 = vld [vmem:[%s6689_s1 + $0xb8] sm:$0xff] }
 0x23a   :  { %3131 = vmatprep.subr.mxu0 %v4626_v49  ;;  %6816 = vst [vmem:[#allocation15_spill] sm:$0xff] %v5293_v47  ;;  %v5299_v49 = vld [vmem:[%s6689_s1 + $0x38] sm:$0xff] }
 0x23b   :  { %3132 = vmatpush3.msra.mxu0 %v4638_v51  ;;  %6817 = vst [vmem:[#allocation17_spill] sm:$0xff] %v5299_v49  ;;  %v2715_v51 = vld [vmem:[%s6691_s3 + $0x1f0] sm:$0xff] }
 0x23c   :  { %3133 = vmatprep.subr.mxu0 %v4650_v53  ;;  %v2714_v53 = vld [vmem:[%s6691_s3 + $0x1e8] sm:$0xff] }
 0x23d   :  { %3134 = vmatpush3.msra.mxu0 %v6795_v56  ;;  %v2711_v56 = vld [vmem:[%s6691_s3 + $0x1d0] sm:$0xff] }
 0x23e   :  { %3135 = vmatprep.subr.mxu0 %v6797_v59  ;;  %v2710_v59 = vld [vmem:[%s6691_s3 + $0x1c8] sm:$0xff] }
 0x23f   :  { %3136 = vmatpush3.msra.mxu0 %v6798_v50  ;;  %v2716_v50 = vld [vmem:[%s6691_s3 + $0x1f8] sm:$0xff] }
 0x240   :  { %3137 = vmatprep.subr.mxu0 %v4698_v61  ;;  %3768 = vmatpush3.msra.mxu1 %v2716_v50  ;;  %v2712_v61 = vld [vmem:[%s6691_s3 + $0x1d8] sm:$0xff] }
 0x241   :  { %3138 = vmatpush3.msra.mxu0 %v4715_v55  ;;  %3769 = vmatprep.subr.mxu1 %v6813_v30  ;;  %v2713_v55 = vld [vmem:[%s6691_s3 + $0x1e0] sm:$0xff]  ;;  %v5427_v50 = vld [vmem:[%s6689_s1 + $0x158] sm:$0xff] }
 0x242   :  { %965 = vmatmul.mubr.f32.vlgmr.msra.gmra.mxu0 %v828_v13  ;;  %3159 = vmatprep.subr.mxu0 %v5197_v15  ;;  %v5421_v13 = vld [vmem:[%s6689_s1 + $0x1d8] sm:$0xff] }
 0x243   :  { %3160 = vmatpush3.msra.mxu0 %v5203_v17  ;;  %3770 = vmatpush3.msra.mxu1 %v2715_v51  ;;  %v5433_v51 = vld [vmem:[%s6689_s1 + $0x1d0] sm:$0xff] }
 0x244   :  { %3161 = vmatprep.subr.mxu0 %v5209_v19  ;;  %3771 = vmatprep.subr.mxu1 %v6813_v30 }
 0x245   :  { %3162 = vmatpush3.msra.mxu0 %v5215_v21  ;;  %3772 = vmatpush3.msra.mxu1 %v2714_v53  ;;  %v5439_v53 = vld [vmem:[%s6689_s1 + $0x150] sm:$0xff] }
 0x246   :  { %3163 = vmatprep.subr.mxu0 %v5221_v23  ;;  %3773 = vmatprep.subr.mxu1 %v6813_v30 }
 0x247   :  { %3164 = vmatpush3.msra.mxu0 %v5227_v25  ;;  %3774 = vmatpush3.msra.mxu1 %v2713_v55  ;;  %v5445_v55 = vld [vmem:[%s6689_s1 + $0x1c8] sm:$0xff] }
 0x248   :  { %3165 = vmatprep.subr.mxu0 %v5233_v27  ;;  %3775 = vmatprep.subr.mxu1 %v6813_v30 }
 0x249   :  { %3166 = vmatpush3.msra.mxu0 %v5239_v29  ;;  %3776 = vmatpush3.msra.mxu1 %v2712_v61  ;;  %v5451_v61 = vld [vmem:[%s6689_s1 + $0x148] sm:$0xff] }
 0x24a   :  { %3167 = vmatprep.subr.mxu0 %v5245_v31  ;;  %3777 = vmatprep.subr.mxu1 %v6813_v30 }
 0x24b   :  { %3168 = vmatpush3.msra.mxu0 %v5251_v33  ;;  %3778 = vmatpush3.msra.mxu1 %v2711_v56  ;;  %v5457_v56 = vld [vmem:[%s6689_s1 + $0x1c0] sm:$0xff] }
 0x24c   :  { %3169 = vmatprep.subr.mxu0 %v5257_v35  ;;  %3779 = vmatprep.subr.mxu1 %v6813_v30 }
 0x24d   :  { %3170 = vmatpush3.msra.mxu0 %v5263_v37  ;;  %3780 = vmatpush3.msra.mxu1 %v2710_v59  ;;  %v5463_v59 = vld [vmem:[%s6689_s1 + $0x140] sm:$0xff] }
 0x24e   :  { %3171 = vmatprep.subr.mxu0 %v5269_v39  ;;  %3781 = vmatprep.subr.mxu1 %v6813_v30 }
 0x24f   :  { %3172 = vmatpush3.msra.mxu0 %v5275_v41 }
 0x250   :  { %3173 = vmatprep.subr.mxu0 %v5281_v43 }
 0x251   :  { %3174 = vmatpush3.msra.mxu0 %v5287_v45 }
 0x252   :  { %3175 = vmatprep.subr.mxu0 %v5293_v47 }
 0x253   :  { %3176 = vmatpush3.msra.mxu0 %v5299_v49 }
 0x254   :  { %3177 = vmatprep.subr.mxu0 %v6799_v0  ;;  %v2709_v0 = vld [vmem:[%s6691_s3 + $0x1c0] sm:$0xff] }
 0x255   :  { %3178 = vmatpush3.msra.mxu0 %v6800_v2  ;;  %3782 = vmatpush3.msra.mxu1 %v2709_v0  ;;  %v2708_v2 = vld [vmem:[%s6691_s3 + $0x1b8] sm:$0xff] }
 0x256   :  { %3179 = vmatprep.subr.mxu0 %v6801_v4  ;;  %3783 = vmatprep.subr.mxu1 %v6813_v30  ;;  %v2707_v4 = vld [vmem:[%s6691_s3 + $0x1b0] sm:$0xff]  ;;  %v5469_v0 = vld [vmem:[%s6689_s1 + $0x1b8] sm:$0xff] }
 0x257   :  { %3180 = vmatpush3.msra.mxu0 %v6802_v6  ;;  %3784 = vmatpush3.msra.mxu1 %v2708_v2  ;;  %v2706_v6 = vld [vmem:[%s6691_s3 + $0x1a8] sm:$0xff]  ;;  %v5475_v2 = vld [vmem:[%s6689_s1 + $0x138] sm:$0xff] }
 0x258   :  { %3181 = vmatprep.subr.mxu0 %v6803_v8  ;;  %3785 = vmatprep.subr.mxu1 %v6813_v30  ;;  %v2705_v8 = vld [vmem:[%s6691_s3 + $0x1a0] sm:$0xff] }
 0x259   :  { %3182 = vmatpush3.msra.mxu0 %v6804_v10  ;;  %3786 = vmatpush3.msra.mxu1 %v2707_v4  ;;  %v2704_v10 = vld [vmem:[%s6691_s3 + $0x198] sm:$0xff]  ;;  %v5481_v4 = vld [vmem:[%s6689_s1 + $0x1b0] sm:$0xff] }
 0x25a   :  { %3183 = vmatprep.subr.mxu0 %v6805_v12  ;;  %3787 = vmatprep.subr.mxu1 %v6813_v30  ;;  %v2703_v12 = vld [vmem:[%s6691_s3 + $0x190] sm:$0xff] }
 0x25b   :  { %3184 = vmatpush3.msra.mxu0 %v6806_v14  ;;  %3788 = vmatpush3.msra.mxu1 %v2706_v6  ;;  %v2702_v14 = vld [vmem:[%s6691_s3 + $0x188] sm:$0xff]  ;;  %v5487_v6 = vld [vmem:[%s6689_s1 + $0x130] sm:$0xff] }
 0x25c   :  { %3185 = vmatprep.subr.mxu0 %v6807_v16  ;;  %3789 = vmatprep.subr.mxu1 %v6813_v30  ;;  %v2701_v16 = vld [vmem:[%s6691_s3 + $0x180] sm:$0xff] }
 0x25d   :  { %3186 = vmatpush3.msra.mxu0 %v6808_v18  ;;  %3790 = vmatpush3.msra.mxu1 %v2705_v8  ;;  %v5383_v18 = vld [vmem:[%s6689_s1 + $0x1f8] sm:$0xff]  ;;  %v5493_v8 = vld [vmem:[%s6689_s1 + $0x1a8] sm:$0xff] }
 0x25e   :  { %3187 = vmatprep.subr.mxu0 %v6809_v20  ;;  %3791 = vmatprep.subr.mxu1 %v6813_v30  ;;  %6818 = vst [vmem:[#allocation3_spill] sm:$0xff] %v5383_v18  ;;  %v1065_v20 = vld [vmem:[%s6690_s0 + $0x88] sm:$0xff] }
 0x25f   :  { %3188 = vmatpush3.msra.mxu0 %v6810_v22  ;;  %3792 = vmatpush3.msra.mxu1 %v2704_v10  ;;  %v1064_v22 = vld [vmem:[%s6690_s0 + $0x80] sm:$0xff]  ;;  %v5499_v10 = vld [vmem:[%s6689_s1 + $0x128] sm:$0xff] }
 0x260   :  { %3189 = vmatprep.subr.mxu0 %v6811_v24  ;;  %3793 = vmatprep.subr.mxu1 %v6813_v30 }
 0x261   :  { %3190 = vmatpush3.msra.mxu0 %v6812_v28  ;;  %3794 = vmatpush3.msra.mxu1 %v2703_v12  ;;  %v5505_v12 = vld [vmem:[%s6689_s1 + $0x1a0] sm:$0xff] }
 0x262   :  { %3802 = vmatprep.subr.mxu0 %v6813_v30  ;;  %3795 = vmatprep.subr.mxu1 %v6813_v30 }
 0x263   :  { %3796 = vmatpush3.msra.mxu1 %v2702_v14  ;;  %1132 = vmatprep.mubr.f32.mxu0 %v1065_v20  ;;  %v5511_v14 = vld [vmem:[%s6689_s1 + $0x120] sm:$0xff]  ;;  %v5523_v20 = vld [vmem:[%s6689_s1 + $0x118] sm:$0xff] }
 0x264   :  { %3797 = vmatprep.subr.mxu1 %v6813_v30  ;;  %1133 = vmatmul.mubr.f32.vlgmr.msra.gmra.mxu0 %v1064_v22  ;;  %v5529_v22 = vld [vmem:[%s6689_s1 + $0x190] sm:$0xff] }
 0x265   :  { %3798 = vmatpush3.msra.mxu1 %v2701_v16  ;;  %3834 = vmatprep.mubr.msk.f32.mxu0 %vm4263_vm0, %v6813_v30  ;;  %v5517_v16 = vld [vmem:[%s6689_s1 + $0x198] sm:$0xff] }
 0x266   :  { %3194 = vmatprep.subr.mxu1 %v5383_v18 }
 0x2e2   :  { %v821_v24 = vpop.f32.mrf.mxu0 }
 0x2e3   :  { %v5395_v28 = vadd.f32 %v821_v24, %v5129_v32  ;;  %v1067_v32 = vld [vmem:[%s6690_s0 + $0x98] sm:$0xff]  ;;  %v5535_v24 = vld [vmem:[%s6689_s1 + $0x110] sm:$0xff] }
 0x2e4   :  { %v3766_v26 = vpop.f32.mrf.mxu0 }
 0x2e5   :  { %v5541_v26 = vld [vmem:[%s6689_s1 + $0x188] sm:$0xff] }
 0x302   :  { %v3139_v57 = vpop.f32.mrf.mxu0 }
 0x304   :  { %v3140_v63 = vpop.f32.mrf.mxu0 }
 0x305   :  { %v3141_v40 = vadd.f32 %v3140_v63, %v3139_v57  ;;  %v5562_v57 = vld [vmem:[%s6689_s1 + $0x100] sm:$0xff]  ;;  %v5586_v63 = vld [vmem:[%s6689_s1 + $0xb0] sm:$0xff] }
 0x306   :  { %6819 = vst [vmem:[#allocation4_spill] sm:$0xff] %v5586_v63 }
 0x307   :  { %v967_v46 = vadd.f32 %v3141_v40, %v897_v44  ;;  %v5592_v44 = vld [vmem:[%s6689_s1 + $0x30] sm:$0xff]  ;;  %v5598_v40 = vld [vmem:[%s6689_s1 + $0xa8] sm:$0xff] }
 0x308   :  { %6820 = vst [vmem:[#allocation5_spill] sm:$0xff] %v5592_v44  ;;  %6821 = vst [vmem:[#allocation6_spill] sm:$0xff] %v5598_v40 }
 0x309   :  { %v971_v48 = vmin.f32 %v967_v46, 0.0  ;;  %vm970_vm4 = vcmp.gt.f32.partialorder %v967_v46, 0.0 }
 0x30b   :  { %v972_v36 = vmul.f32 1.442695, %v971_v48  ;;  %v5610_v48 = vld [vmem:[%s6689_s1 + $0xa0] sm:$0xff] }
 0x30c   :  { %6823 = vst [vmem:[#allocation8_spill] sm:$0xff] %v5610_v48 }
 0x30d   :  { %4125 = vpow2.f32 %v972_v36  ;;  %v5616_v36 = vld [vmem:[%s6689_s1 + $0x20] sm:$0xff] }
 0x30e   :  { %6824 = vst [vmem:[#allocation9_spill] sm:$0xff] %v5616_v36 }
 0x31a   :  { %v4126_v3 = vpop.eup %4125 }
 0x31b   :  { %v2700_v5 = vadd.f32 -1.0, %v4126_v3  ;;  %v5622_v3 = vld [vmem:[%s6689_s1 + $0x98] sm:$0xff] }
 0x31c   :  { %6825 = vst [vmem:[#allocation10_spill] sm:$0xff] %v5622_v3 }
 0x31d   :  { %v975_v7 = vsel %vm970_vm4, %v967_v46, %v2700_v5  ;;  %v5604_v46 = vld [vmem:[%s6689_s1 + $0x28] sm:$0xff]  ;;  %v5628_v5 = vld [vmem:[%s6689_s1 + $0x18] sm:$0xff] }
 0x31e   :  { %3800 = vmatmul.mubr.f32.vlgmr.msra.gmra.mxu1 %v975_v7  ;;  %6822 = vst [vmem:[#allocation7_spill] sm:$0xff] %v5604_v46  ;;  %6826 = vst [vmem:[#allocation11_spill] sm:$0xff] %v5628_v5  ;;  %v5640_v7 = vld [vmem:[%s6689_s1 + $0x10] sm:$0xff] }
 0x31f   :  { %3195 = vmatpush3.msra.mxu1 %v5138_v38  ;;  %1202 = vmatprep.mubr.f32.mxu1 %v1067_v32  ;;  %v5634_v32 = vld [vmem:[%s6689_s1 + $0x90] sm:$0xff]  ;;  %6828 = vst [vmem:[#allocation14_spill] sm:$0xff] %v5640_v7 }
 0x320   :  { %3196 = vmatprep.subr.mxu1 %v5144_v42  ;;  %6827 = vst [vmem:[#allocation12_spill] sm:$0xff] %v5634_v32 }
 0x321   :  { %3197 = vmatpush3.msra.mxu1 %v5150_v58 }
 0x322   :  { %3198 = vmatprep.subr.mxu1 %v5156_v62 }
 0x323   :  { %3199 = vmatpush3.msra.mxu1 %v5162_v52 }
 0x324   :  { %3200 = vmatprep.subr.mxu1 %v5409_v9 }
 0x325   :  { %3201 = vmatpush3.msra.mxu1 %v5415_v11 }
 0x326   :  { %3202 = vmatprep.subr.mxu1 %v5421_v13 }
 0x327   :  { %3203 = vmatpush3.msra.mxu1 %v5427_v50 }
 0x328   :  { %3204 = vmatprep.subr.mxu1 %v5433_v51 }
 0x329   :  { %3205 = vmatpush3.msra.mxu1 %v5439_v53 }
 0x32a   :  { %3206 = vmatprep.subr.mxu1 %v5445_v55 }
 0x32b   :  { %3207 = vmatpush3.msra.mxu1 %v5451_v61 }
 0x32c   :  { %3208 = vmatprep.subr.mxu1 %v5457_v56 }
 0x32d   :  { %3209 = vmatpush3.msra.mxu1 %v5463_v59 }
 0x32e   :  { %3210 = vmatprep.subr.mxu1 %v5469_v0 }
 0x32f   :  { %3211 = vmatpush3.msra.mxu1 %v5475_v2 }
 0x330   :  { %3212 = vmatprep.subr.mxu1 %v5481_v4 }
 0x331   :  { %3213 = vmatpush3.msra.mxu1 %v5487_v6 }
 0x332   :  { %3214 = vmatprep.subr.mxu1 %v5493_v8 }
 0x333   :  { %3215 = vmatpush3.msra.mxu1 %v5499_v10 }
 0x334   :  { %3216 = vmatprep.subr.mxu1 %v5505_v12 }
 0x335   :  { %3217 = vmatpush3.msra.mxu1 %v5511_v14 }
 0x336   :  { %3218 = vmatprep.subr.mxu1 %v5517_v16 }
 0x337   :  { %3219 = vmatpush3.msra.mxu1 %v5523_v20 }
 0x338   :  { %3220 = vmatprep.subr.mxu1 %v5529_v22 }
 0x339   :  { %3221 = vmatpush3.msra.mxu1 %v5535_v24 }
 0x33a   :  { %3222 = vmatprep.subr.mxu1 %v5541_v26 }
 0x33b   :  { %3223 = vmatpush3.msra.mxu1 %v5547_v34 }
 0x33c   :  { %3224 = vmatprep.subr.mxu1 %v5556_v60 }
 0x33d   :  { %3225 = vmatpush3.msra.mxu1 %v5562_v57 }
 0x33e   :  { %1203 = vmatmul.mubr.f32.vlgmr.msra.gmra.mxu1 %v1066_v54  ;;  %3246 = vmatprep.subr.mxu1 %v5197_v15  ;;  %v5646_v54 = vld [vmem:[%s6689_s1 + $0x88] sm:$0xff] }
 0x33f   :  { %3247 = vmatpush3.msra.mxu1 %v5203_v17  ;;  %6829 = vst [vmem:[#allocation16_spill] sm:$0xff] %v5646_v54 }
 0x340   :  { %3248 = vmatprep.subr.mxu1 %v5209_v19 }
 0x341   :  { %3249 = vmatpush3.msra.mxu1 %v5215_v21 }
 0x342   :  { %3250 = vmatprep.subr.mxu1 %v5221_v23 }
 0x343   :  { %3251 = vmatpush3.msra.mxu1 %v5227_v25 }
 0x344   :  { %3252 = vmatprep.subr.mxu1 %v5233_v27 }
 0x345   :  { %3253 = vmatpush3.msra.mxu1 %v5239_v29 }
 0x346   :  { %3254 = vmatprep.subr.mxu1 %v5245_v31 }
 0x347   :  { %3255 = vmatpush3.msra.mxu1 %v5251_v33 }
 0x348   :  { %3256 = vmatprep.subr.mxu1 %v5257_v35 }
 0x349   :  { %3257 = vmatpush3.msra.mxu1 %v5263_v37 }
 0x34a   :  { %3258 = vmatprep.subr.mxu1 %v5269_v39 }
 0x34b   :  { %3259 = vmatpush3.msra.mxu1 %v5275_v41 }
 0x34c   :  { %3260 = vmatprep.subr.mxu1 %v5281_v43 }
 0x34d   :  { %3261 = vmatpush3.msra.mxu1 %v5287_v45 }
 0x34e   :  { %3262 = vmatprep.subr.mxu1 %v5293_v47 }
 0x34f   :  { %3263 = vmatpush3.msra.mxu1 %v5299_v49 }
 0x350   :  { %3264 = vmatprep.subr.mxu1 %v5586_v63 }
 0x351   :  { %3265 = vmatpush3.msra.mxu1 %v5592_v44 }
 0x352   :  { %3266 = vmatprep.subr.mxu1 %v5598_v40 }
 0x353   :  { %3267 = vmatpush3.msra.mxu1 %v5604_v46 }
 0x354   :  { %3268 = vmatprep.subr.mxu1 %v5610_v48 }
 0x355   :  { %3269 = vmatpush3.msra.mxu1 %v5616_v36  ;;  %v3191_v36 = vpop.f32.mrf.mxu0 }
 0x356   :  { %3270 = vmatprep.subr.mxu1 %v5622_v3 }
 0x357   :  { %3271 = vmatpush3.msra.mxu1 %v5628_v5  ;;  %v5652_v5 = vld [vmem:[%s6689_s1 + $0x8] sm:$0xff] }
 0x358   :  { %3272 = vmatprep.subr.mxu1 %v5634_v32  ;;  %6830 = vst [vmem:[#allocation18_spill] sm:$0xff] %v5652_v5  ;;  %v5658_v32 = vld [vmem:[%s6689_s1 + $0x80] sm:$0xff] }
 0x359   :  { %3273 = vmatpush3.msra.mxu1 %v5640_v7  ;;  %6831 = vst [vmem:[#allocation19_spill] sm:$0xff] %v5658_v32  ;;  %v5664_v7 = vld [vmem:[%s6689_s1] sm:$0xff] }
 0x35a   :  { %3274 = vmatprep.subr.mxu1 %v5646_v54  ;;  %6832 = vst [vmem:[#allocation2_spill] sm:$0xff] %v5664_v7  ;;  %v2732_v54 = vld [vmem:[%s6691_s3 + $0x270] sm:$0xff] }
 0x35b   :  { %3275 = vmatpush3.msra.mxu1 %v5652_v5  ;;  %v2733_v5 = vld [vmem:[%s6691_s3 + $0x278] sm:$0xff] }
 0x35c   :  { %3276 = vmatprep.subr.mxu1 %v5658_v32  ;;  %3803 = vmatpush3.msra.mxu0 %v2733_v5  ;;  %v2730_v32 = vld [vmem:[%s6691_s3 + $0x260] sm:$0xff]  ;;  %v2729_v5 = vld [vmem:[%s6691_s3 + $0x258] sm:$0xff] }
 0x35d   :  { %3277 = vmatpush3.msra.mxu1 %v5664_v7  ;;  %3804 = vmatprep.subr.mxu0 %v6813_v30  ;;  %v2731_v7 = vld [vmem:[%s6691_s3 + $0x268] sm:$0xff] }
 0x35e   :  { %3837 = vmatprep.subr.mxu1 %v6813_v30  ;;  %3805 = vmatpush3.msra.mxu0 %v2732_v54  ;;  %v2726_v54 = vld [vmem:[%s6691_s3 + $0x240] sm:$0xff] }
 0x35f   :  { %3806 = vmatprep.subr.mxu0 %v6813_v30 }
 0x360   :  { %3807 = vmatpush3.msra.mxu0 %v2731_v7  ;;  %v2728_v7 = vld [vmem:[%s6691_s3 + $0x250] sm:$0xff] }
 0x361   :  { %3808 = vmatprep.subr.mxu0 %v6813_v30 }
 0x362   :  { %3809 = vmatpush3.msra.mxu0 %v2730_v32  ;;  %v2727_v32 = vld [vmem:[%s6691_s3 + $0x248] sm:$0xff] }
 0x363   :  { %3810 = vmatprep.subr.mxu0 %v6813_v30 }
 0x364   :  { %3811 = vmatpush3.msra.mxu0 %v2729_v5  ;;  %v2725_v5 = vld [vmem:[%s6691_s3 + $0x238] sm:$0xff] }
 0x365   :  { %3812 = vmatprep.subr.mxu0 %v6813_v30 }
 0x366   :  { %3813 = vmatpush3.msra.mxu0 %v2728_v7  ;;  %v2724_v7 = vld [vmem:[%s6691_s3 + $0x230] sm:$0xff] }
 0x367   :  { %3814 = vmatprep.subr.mxu0 %v6813_v30 }
 0x368   :  { %3815 = vmatpush3.msra.mxu0 %v2727_v32  ;;  %v2723_v32 = vld [vmem:[%s6691_s3 + $0x228] sm:$0xff] }
 0x369   :  { %3816 = vmatprep.subr.mxu0 %v6813_v30 }
 0x36a   :  { %3817 = vmatpush3.msra.mxu0 %v2726_v54  ;;  %v2722_v54 = vld [vmem:[%s6691_s3 + $0x220] sm:$0xff] }
 0x36b   :  { %3818 = vmatprep.subr.mxu0 %v6813_v30 }
 0x36c   :  { %3819 = vmatpush3.msra.mxu0 %v2725_v5  ;;  %v2721_v5 = vld [vmem:[%s6691_s3 + $0x218] sm:$0xff] }
 0x36d   :  { %3820 = vmatprep.subr.mxu0 %v6813_v30 }
 0x36e   :  { %3821 = vmatpush3.msra.mxu0 %v2724_v7  ;;  %v2720_v7 = vld [vmem:[%s6691_s3 + $0x210] sm:$0xff] }
 0x36f   :  { %3822 = vmatprep.subr.mxu0 %v6813_v30 }
 0x370   :  { %3823 = vmatpush3.msra.mxu0 %v2723_v32  ;;  %v2719_v32 = vld [vmem:[%s6691_s3 + $0x208] sm:$0xff] }
 0x371   :  { %3824 = vmatprep.subr.mxu0 %v6813_v30 }
 0x372   :  { %3825 = vmatpush3.msra.mxu0 %v2722_v54  ;;  %v2718_v54 = vld [vmem:[%s6691_s3 + $0x200] sm:$0xff] }
 0x373   :  { %3826 = vmatprep.subr.mxu0 %v6813_v30 }
 0x374   :  { %3827 = vmatpush3.msra.mxu0 %v2721_v5  ;;  %v1303_v5 = vld [vmem:[%s6690_s0 + $0xa8] sm:$0xff] }
 0x375   :  { %3828 = vmatprep.subr.mxu0 %v6813_v30  ;;  %1370 = vmatprep.mubr.f32.mxu1 %v1303_v5 }
 0x376   :  { %3829 = vmatpush3.msra.mxu0 %v2720_v7  ;;  %v1302_v7 = vld [vmem:[%s6690_s0 + $0xa0] sm:$0xff] }
 0x377   :  { %3830 = vmatprep.subr.mxu0 %v6813_v30  ;;  %1371 = vmatmul.mubr.f32.vlgmr.msra.gmra.mxu1 %v1302_v7 }
 0x378   :  { %3831 = vmatpush3.msra.mxu0 %v2719_v32  ;;  %3869 = vmatprep.mubr.msk.f32.mxu1 %vm4263_vm0, %v6813_v30 }
 0x379   :  { %3832 = vmatprep.subr.mxu0 %v6813_v30 }
 0x37a   :  { %3833 = vmatpush3.msra.mxu0 %v2718_v54 }
 0x37b   :  { %3281 = vmatprep.subr.mxu0 %v5383_v18  ;;  %v3192_v18 = vpop.f32.mrf.mxu0 }
 0x37c   :  { %v3193_v48 = vadd.f32 %v3192_v18, %v3191_v36  ;;  %v6836_v18 = vld [vmem:[#allocation4_spill] sm:$0xff]  ;;  %v6842_v36 = vld [vmem:[#allocation10_spill] sm:$0xff] }
 0x37e   :  { %v1135_v5 = vadd.f32 %v3193_v48, %v4943_v1  ;;  %v1304_v1 = vld [vmem:[%s6690_s0 + $0xb0] sm:$0xff]  ;;  %v6841_v48 = vld [vmem:[#allocation9_spill] sm:$0xff] }
 0x3de   :  { %v1059_v3 = vpop.f32.mrf.mxu1 }
 0x3df   :  { %v5741_v32 = vadd.f32 %v1059_v3, %v5395_v28  ;;  %v1305_v28 = vld [vmem:[%s6690_s0 + $0xb8] sm:$0xff] }
 0x3e0   :  { %v3801_v54 = vpop.f32.mrf.mxu1 }
 0x3e1   :  { %v6843_v54 = vld [vmem:[#allocation11_spill] sm:$0xff] }
 0x3fe   :  { %v3226_v46 = vpop.f32.mrf.mxu1 }
 0x400   :  { %v3227_v40 = vpop.f32.mrf.mxu1 }
 0x401   :  { %v3228_v44 = vadd.f32 %v3227_v40, %v3226_v46  ;;  %v6839_v40 = vld [vmem:[#allocation7_spill] sm:$0xff]  ;;  %v6840_v46 = vld [vmem:[#allocation8_spill] sm:$0xff] }
 0x403   :  { %v1205_v63 = vadd.f32 %v3228_v44, %v1135_v5  ;;  %v6838_v44 = vld [vmem:[#allocation6_spill] sm:$0xff]  ;;  %v6844_v5 = vld [vmem:[#allocation12_spill] sm:$0xff] }
 0x405   :  { %v1209_v49 = vmin.f32 %v1205_v63, 0.0  ;;  %vm1208_vm5 = vcmp.gt.f32.partialorder %v1205_v63, 0.0 }
 0x407   :  { %v1210_v47 = vmul.f32 1.442695, %v1209_v49  ;;  %v6835_v49 = vld [vmem:[#allocation17_spill] sm:$0xff] }
 0x409   :  { %4127 = vpow2.f32 %v1210_v47  ;;  %v6834_v47 = vld [vmem:[#allocation15_spill] sm:$0xff] }
 0x416   :  { %v4128_v7 = vpop.eup %4127 }
 0x417   :  { %v2717_v45 = vadd.f32 -1.0, %v4128_v7  ;;  %v6845_v7 = vld [vmem:[#allocation14_spill] sm:$0xff] }
 0x419   :  { %v1213_v3 = vsel %vm1208_vm5, %v1205_v63, %v2717_v45  ;;  %v6833_v45 = vld [vmem:[#allocation13_spill] sm:$0xff] }
 0x41a   :  { %3835 = vmatmul.mubr.f32.vlgmr.msra.gmra.mxu0 %v1213_v3  ;;  %v6837_v63 = vld [vmem:[#allocation5_spill] sm:$0xff]  ;;  %v6847_v3 = vld [vmem:[#allocation18_spill] sm:$0xff] }
 0x41b   :  { %3282 = vmatpush3.msra.mxu0 %v5138_v38  ;;  %1440 = vmatprep.mubr.f32.mxu0 %v1305_v28  ;;  %v6846_v28 = vld [vmem:[#allocation16_spill] sm:$0xff] }
 0x41c   :  { %3283 = vmatprep.subr.mxu0 %v5144_v42 }
 0x41d   :  { %3284 = vmatpush3.msra.mxu0 %v5150_v58 }
 0x41e   :  { %3285 = vmatprep.subr.mxu0 %v5156_v62 }
 0x41f   :  { %3286 = vmatpush3.msra.mxu0 %v5162_v52 }
 0x420   :  { %3287 = vmatprep.subr.mxu0 %v5409_v9 }
 0x421   :  { %3288 = vmatpush3.msra.mxu0 %v5415_v11 }
 0x422   :  { %3289 = vmatprep.subr.mxu0 %v5421_v13 }
 0x423   :  { %3290 = vmatpush3.msra.mxu0 %v5427_v50 }
 0x424   :  { %3291 = vmatprep.subr.mxu0 %v5433_v51 }
 0x425   :  { %3292 = vmatpush3.msra.mxu0 %v5439_v53 }
 0x426   :  { %3293 = vmatprep.subr.mxu0 %v5445_v55 }
 0x427   :  { %3294 = vmatpush3.msra.mxu0 %v5451_v61 }
 0x428   :  { %3295 = vmatprep.subr.mxu0 %v5457_v56 }
 0x429   :  { %3296 = vmatpush3.msra.mxu0 %v5463_v59 }
 0x42a   :  { %3297 = vmatprep.subr.mxu0 %v5469_v0 }
 0x42b   :  { %3298 = vmatpush3.msra.mxu0 %v5475_v2 }
 0x42c   :  { %3299 = vmatprep.subr.mxu0 %v5481_v4 }
 0x42d   :  { %3300 = vmatpush3.msra.mxu0 %v5487_v6 }
 0x42e   :  { %3301 = vmatprep.subr.mxu0 %v5493_v8 }
 0x42f   :  { %3302 = vmatpush3.msra.mxu0 %v5499_v10 }
 0x430   :  { %3303 = vmatprep.subr.mxu0 %v5505_v12 }
 0x431   :  { %3304 = vmatpush3.msra.mxu0 %v5511_v14 }
 0x432   :  { %3305 = vmatprep.subr.mxu0 %v5517_v16 }
 0x433   :  { %3306 = vmatpush3.msra.mxu0 %v5523_v20 }
 0x434   :  { %3307 = vmatprep.subr.mxu0 %v5529_v22 }
 0x435   :  { %3308 = vmatpush3.msra.mxu0 %v5535_v24 }
 0x436   :  { %3309 = vmatprep.subr.mxu0 %v5541_v26 }
 0x437   :  { %3310 = vmatpush3.msra.mxu0 %v5547_v34 }
 0x438   :  { %3311 = vmatprep.subr.mxu0 %v5556_v60 }
 0x439   :  { %3312 = vmatpush3.msra.mxu0 %v5562_v57 }
 0x43a   :  { %1441 = vmatmul.mubr.f32.vlgmr.msra.gmra.mxu0 %v1304_v1  ;;  %3333 = vmatprep.subr.mxu0 %v5197_v15  ;;  %v6848_v1 = vld [vmem:[#allocation19_spill] sm:$0xff] }
 0x43b   :  { %3334 = vmatpush3.msra.mxu0 %v5203_v17 }
 0x43c   :  { %3335 = vmatprep.subr.mxu0 %v5209_v19 }
 0x43d   :  { %3336 = vmatpush3.msra.mxu0 %v5215_v21 }
 0x43e   :  { %3337 = vmatprep.subr.mxu0 %v5221_v23 }
 0x43f   :  { %3338 = vmatpush3.msra.mxu0 %v5227_v25 }
 0x440   :  { %3339 = vmatprep.subr.mxu0 %v5233_v27 }
 0x441   :  { %3340 = vmatpush3.msra.mxu0 %v5239_v29 }
 0x442   :  { %3341 = vmatprep.subr.mxu0 %v5245_v31 }
 0x443   :  { %3342 = vmatpush3.msra.mxu0 %v5251_v33 }
 0x444   :  { %3343 = vmatprep.subr.mxu0 %v5257_v35 }
 0x445   :  { %3344 = vmatpush3.msra.mxu0 %v5263_v37 }
 0x446   :  { %3345 = vmatprep.subr.mxu0 %v5269_v39 }
 0x447   :  { %3346 = vmatpush3.msra.mxu0 %v5275_v41 }
 0x448   :  { %3347 = vmatprep.subr.mxu0 %v5281_v43 }
 0x449   :  { %3348 = vmatpush3.msra.mxu0 %v6833_v45 }
 0x44a   :  { %3349 = vmatprep.subr.mxu0 %v6834_v47 }
 0x44b   :  { %3350 = vmatpush3.msra.mxu0 %v6835_v49 }
 0x44c   :  { %3351 = vmatprep.subr.mxu0 %v6836_v18 }
 0x44d   :  { %3352 = vmatpush3.msra.mxu0 %v6837_v63 }
 0x44e   :  { %3353 = vmatprep.subr.mxu0 %v6838_v44  ;;  %v6849_v44 = vld [vmem:[#allocation2_spill] sm:$0xff] }
 0x44f   :  { %3354 = vmatpush3.msra.mxu0 %v6839_v40 }
 0x450   :  { %3355 = vmatprep.subr.mxu0 %v6840_v46 }
 0x451   :  { %3356 = vmatpush3.msra.mxu0 %v6841_v48 }
 0x452   :  { %3357 = vmatprep.subr.mxu0 %v6842_v36  ;;  %v2750_v36 = vld [vmem:[%s6691_s3 + $0x2f8] sm:$0xff] }
 0x453   :  { %3358 = vmatpush3.msra.mxu0 %v6843_v54  ;;  %3838 = vmatpush3.msra.mxu1 %v2750_v36  ;;  %v2746_v36 = vld [vmem:[%s6691_s3 + $0x2d8] sm:$0xff] }
 0x454   :  { %3359 = vmatprep.subr.mxu0 %v6844_v5  ;;  %v2749_v5 = vld [vmem:[%s6691_s3 + $0x2f0] sm:$0xff]  ;;  %3839 = vmatprep.subr.mxu1 %v6813_v30 }
 0x455   :  { %3360 = vmatpush3.msra.mxu0 %v6845_v7  ;;  %3840 = vmatpush3.msra.mxu1 %v2749_v5  ;;  %v2744_v5 = vld [vmem:[%s6691_s3 + $0x2c8] sm:$0xff]  ;;  %v3278_v7 = vpop.f32.mrf.mxu1 }
 0x456   :  { %3361 = vmatprep.subr.mxu0 %v6846_v28  ;;  %3841 = vmatprep.subr.mxu1 %v6813_v30 }
 0x457   :  { %3362 = vmatpush3.msra.mxu0 %v6847_v3  ;;  %v6850_v3 = vld [vmem:[#allocation3_spill] sm:$0xff] }
 0x458   :  { %3363 = vmatprep.subr.mxu0 %v6848_v1  ;;  %v2747_v1 = vld [vmem:[%s6691_s3 + $0x2e0] sm:$0xff] }
 0x459   :  { %3364 = vmatpush3.msra.mxu0 %v6849_v44  ;;  %v2748_v44 = vld [vmem:[%s6691_s3 + $0x2e8] sm:$0xff] }
 0x45a   :  { %3872 = vmatprep.subr.mxu0 %v6813_v30  ;;  %3842 = vmatpush3.msra.mxu1 %v2748_v44  ;;  %v2745_v44 = vld [vmem:[%s6691_s3 + $0x2d0] sm:$0xff] }
 0x45b   :  { %3843 = vmatprep.subr.mxu1 %v6813_v30 }
 0x45c   :  { %3844 = vmatpush3.msra.mxu1 %v2747_v1  ;;  %v2743_v1 = vld [vmem:[%s6691_s3 + $0x2c0] sm:$0xff] }
 0x45d   :  { %3845 = vmatprep.subr.mxu1 %v6813_v30 }
 0x45e   :  { %3846 = vmatpush3.msra.mxu1 %v2746_v36  ;;  %v2742_v36 = vld [vmem:[%s6691_s3 + $0x2b8] sm:$0xff] }
 0x45f   :  { %3847 = vmatprep.subr.mxu1 %v6813_v30 }
 0x460   :  { %3848 = vmatpush3.msra.mxu1 %v2745_v44  ;;  %v2741_v44 = vld [vmem:[%s6691_s3 + $0x2b0] sm:$0xff] }
 0x461   :  { %3849 = vmatprep.subr.mxu1 %v6813_v30 }
 0x462   :  { %3850 = vmatpush3.msra.mxu1 %v2744_v5  ;;  %v2740_v5 = vld [vmem:[%s6691_s3 + $0x2a8] sm:$0xff] }
 0x463   :  { %3851 = vmatprep.subr.mxu1 %v6813_v30 }
 0x464   :  { %3852 = vmatpush3.msra.mxu1 %v2743_v1  ;;  %v2739_v1 = vld [vmem:[%s6691_s3 + $0x2a0] sm:$0xff] }
 0x465   :  { %3853 = vmatprep.subr.mxu1 %v6813_v30 }
 0x466   :  { %3854 = vmatpush3.msra.mxu1 %v2742_v36  ;;  %v2738_v36 = vld [vmem:[%s6691_s3 + $0x298] sm:$0xff] }
 0x467   :  { %3855 = vmatprep.subr.mxu1 %v6813_v30 }
 0x468   :  { %3856 = vmatpush3.msra.mxu1 %v2741_v44  ;;  %v2737_v44 = vld [vmem:[%s6691_s3 + $0x290] sm:$0xff] }
 0x469   :  { %3857 = vmatprep.subr.mxu1 %v6813_v30 }
 0x46a   :  { %3858 = vmatpush3.msra.mxu1 %v2740_v5  ;;  %v2736_v5 = vld [vmem:[%s6691_s3 + $0x288] sm:$0xff] }
 0x46b   :  { %3859 = vmatprep.subr.mxu1 %v6813_v30 }
 0x46c   :  { %3860 = vmatpush3.msra.mxu1 %v2739_v1  ;;  %v2735_v1 = vld [vmem:[%s6691_s3 + $0x280] sm:$0xff] }
 0x46d   :  { %3861 = vmatprep.subr.mxu1 %v6813_v30 }
 0x46e   :  { %3862 = vmatpush3.msra.mxu1 %v2738_v36  ;;  %v1541_v36 = vld [vmem:[%s6690_s0 + $0xc8] sm:$0xff] }
 0x46f   :  { %3863 = vmatprep.subr.mxu1 %v6813_v30  ;;  %1608 = vmatprep.mubr.f32.mxu0 %v1541_v36  ;;  %v5892_v36 = vld [vmem:[%s6692_s2] ss:$0 sm:$0xff] }
 0x470   :  { %3864 = vmatpush3.msra.mxu1 %v2737_v44  ;;  %v1540_v44 = vld [vmem:[%s6690_s0 + $0xc0] sm:$0xff] }
 0x471   :  { %3865 = vmatprep.subr.mxu1 %v6813_v30  ;;  %1609 = vmatmul.mubr.f32.vlgmr.msra.gmra.mxu0 %v1540_v44 }
 0x472   :  { %3866 = vmatpush3.msra.mxu1 %v2736_v5  ;;  %3904 = vmatprep.mubr.msk.f32.mxu0 %vm4263_vm0, %v6813_v30 }
 0x473   :  { %3867 = vmatprep.subr.mxu1 %v6813_v30 }
 0x474   :  { %3868 = vmatpush3.msra.mxu1 %v2735_v1 }
 0x475   :  { %3368 = vmatprep.subr.mxu1 %v6850_v3  ;;  %v3279_v3 = vpop.f32.mrf.mxu1 }
 0x476   :  { %v3280_v54 = vadd.f32 %v3279_v3, %v3278_v7  ;;  %v1543_v7 = vld [vmem:[%s6690_s0 + $0xd8] sm:$0xff] }
 0x478   :  { %v1373_v44 = vadd.f32 %v5892_v36, %v3280_v54  ;;  %v2754_v54 = vld [vmem:[%s6691_s3 + $0x310] sm:$0xff] }
 0x4da   :  { %v1297_v28 = vpop.f32.mrf.mxu0 }
 0x4db   :  { %v5887_v5 = vadd.f32 %v1297_v28, %v5741_v32 }
 0x4dc   :  { %v3836_v1 = vpop.f32.mrf.mxu0 }
 0x4dd   :  { %v2753_v1 = vld [vmem:[%s6691_s3 + $0x308] sm:$0xff] }
 0x4fa   :  { %v3313_v48 = vpop.f32.mrf.mxu0 }
 0x4fc   :  { %v3314_v46 = vpop.f32.mrf.mxu0 }
 0x4fd   :  { %v3315_v40 = vadd.f32 %v3314_v46, %v3313_v48  ;;  %v2756_v46 = vld [vmem:[%s6691_s3 + $0x320] sm:$0xff]  ;;  %v2755_v48 = vld [vmem:[%s6691_s3 + $0x318] sm:$0xff] }
 0x4ff   :  { %v1443_v63 = vadd.f32 %v3315_v40, %v1373_v44  ;;  %v2757_v40 = vld [vmem:[%s6691_s3 + $0x328] sm:$0xff]  ;;  %v2752_v44 = vld [vmem:[%s6691_s3 + $0x300] sm:$0xff] }
 0x501   :  { %v1447_v30 = vmin.f32 %v1443_v63, 0.0  ;;  %vm1446_vm6 = vcmp.gt.f32.partialorder %v1443_v63, 0.0 }
 0x503   :  { %v1448_v18 = vmul.f32 1.442695, %v1447_v30  ;;  %v1542_v30 = vld [vmem:[%s6690_s0 + $0xd0] sm:$0xff] }
 0x505   :  { %4129 = vpow2.f32 %v1448_v18  ;;  %v2759_v18 = vld [vmem:[%s6691_s3 + $0x338] sm:$0xff] }
 0x512   :  { %v4130_v32 = vpop.eup %4129 }
 0x513   :  { %v2734_v28 = vadd.f32 -1.0, %v4130_v32  ;;  %v6866_v32 = vld [vmem:[#allocation3_spill] sm:$0xff] }
 0x515   :  { %v1451_v3 = vsel %vm1446_vm6, %v1443_v63, %v2734_v28  ;;  %v2758_v63 = vld [vmem:[%s6691_s3 + $0x330] sm:$0xff]  ;;  %v1779_v28 = vld [vmem:[%s6690_s0 + $0xe8] sm:$0xff] }
 0x516   :  { %3870 = vmatmul.mubr.f32.vlgmr.msra.gmra.mxu1 %v1451_v3 }
 0x517   :  { %3369 = vmatpush3.msra.mxu1 %v5138_v38  ;;  %1678 = vmatprep.mubr.f32.mxu1 %v1543_v7  ;;  %v6851_v38 = vld [vmem:[#allocation4_spill] sm:$0xff]  ;;  %v1778_v7 = vld [vmem:[%s6690_s0 + $0xe0] sm:$0xff] }
 0x518   :  { %3370 = vmatprep.subr.mxu1 %v5144_v42  ;;  %v6852_v42 = vld [vmem:[#allocation5_spill] sm:$0xff] }
 0x519   :  { %3371 = vmatpush3.msra.mxu1 %v5150_v58  ;;  %v6853_v58 = vld [vmem:[#allocation6_spill] sm:$0xff] }
 0x51a   :  { %3372 = vmatprep.subr.mxu1 %v5156_v62  ;;  %v6854_v62 = vld [vmem:[#allocation7_spill] sm:$0xff] }
 0x51b   :  { %3373 = vmatpush3.msra.mxu1 %v5162_v52  ;;  %v6855_v52 = vld [vmem:[#allocation8_spill] sm:$0xff] }
 0x51c   :  { %3374 = vmatprep.subr.mxu1 %v5409_v9 }
 0x51d   :  { %3375 = vmatpush3.msra.mxu1 %v5415_v11 }
 0x51e   :  { %3376 = vmatprep.subr.mxu1 %v5421_v13 }
 0x51f   :  { %3377 = vmatpush3.msra.mxu1 %v5427_v50 }
 0x520   :  { %3378 = vmatprep.subr.mxu1 %v5433_v51 }
 0x521   :  { %3379 = vmatpush3.msra.mxu1 %v5439_v53 }
 0x522   :  { %3380 = vmatprep.subr.mxu1 %v5445_v55 }
 0x523   :  { %3381 = vmatpush3.msra.mxu1 %v5451_v61 }
 0x524   :  { %3382 = vmatprep.subr.mxu1 %v5457_v56 }
 0x525   :  { %3383 = vmatpush3.msra.mxu1 %v5463_v59 }
 0x526   :  { %3384 = vmatprep.subr.mxu1 %v5469_v0 }
 0x527   :  { %3385 = vmatpush3.msra.mxu1 %v5475_v2 }
 0x528   :  { %3386 = vmatprep.subr.mxu1 %v5481_v4 }
 0x529   :  { %3387 = vmatpush3.msra.mxu1 %v5487_v6 }
 0x52a   :  { %3388 = vmatprep.subr.mxu1 %v5493_v8 }
 0x52b   :  { %3389 = vmatpush3.msra.mxu1 %v5499_v10 }
 0x52c   :  { %3390 = vmatprep.subr.mxu1 %v5505_v12 }
 0x52d   :  { %3391 = vmatpush3.msra.mxu1 %v5511_v14 }
 0x52e   :  { %3392 = vmatprep.subr.mxu1 %v5517_v16 }
 0x52f   :  { %3393 = vmatpush3.msra.mxu1 %v5523_v20 }
 0x530   :  { %3394 = vmatprep.subr.mxu1 %v5529_v22 }
 0x531   :  { %3395 = vmatpush3.msra.mxu1 %v5535_v24 }
 0x532   :  { %3396 = vmatprep.subr.mxu1 %v5541_v26 }
 0x533   :  { %3397 = vmatpush3.msra.mxu1 %v5547_v34 }
 0x534   :  { %3398 = vmatprep.subr.mxu1 %v5556_v60 }
 0x535   :  { %3399 = vmatpush3.msra.mxu1 %v5562_v57 }
 0x536   :  { %1679 = vmatmul.mubr.f32.vlgmr.msra.gmra.mxu1 %v1542_v30  ;;  %3420 = vmatprep.subr.mxu1 %v5197_v15  ;;  %v6856_v15 = vld [vmem:[#allocation9_spill] sm:$0xff] }
 0x537   :  { %3421 = vmatpush3.msra.mxu1 %v5203_v17  ;;  %v6857_v17 = vld [vmem:[#allocation10_spill] sm:$0xff]  ;;  %1846 = vmatprep.mubr.f32.mxu1 %v1779_v28  ;;  %v6065_v28 = vld [vmem:[%s6689_s1 + $0x1e8] sm:$0xff] }
 0x538   :  { %3422 = vmatprep.subr.mxu1 %v5209_v19  ;;  %v6858_v19 = vld [vmem:[#allocation11_spill] sm:$0xff] }
 0x539   :  { %3423 = vmatpush3.msra.mxu1 %v5215_v21  ;;  %v6859_v21 = vld [vmem:[#allocation12_spill] sm:$0xff] }
 0x53a   :  { %3424 = vmatprep.subr.mxu1 %v5221_v23  ;;  %v6860_v23 = vld [vmem:[#allocation14_spill] sm:$0xff] }
 0x53b   :  { %3425 = vmatpush3.msra.mxu1 %v5227_v25  ;;  %v6861_v25 = vld [vmem:[#allocation16_spill] sm:$0xff] }
 0x53c   :  { %3426 = vmatprep.subr.mxu1 %v5233_v27  ;;  %v6862_v27 = vld [vmem:[#allocation18_spill] sm:$0xff] }
 0x53d   :  { %3427 = vmatpush3.msra.mxu1 %v5239_v29  ;;  %v6863_v29 = vld [vmem:[#allocation19_spill] sm:$0xff] }
 0x53e   :  { %3428 = vmatprep.subr.mxu1 %v5245_v31  ;;  %v6864_v31 = vld [vmem:[#allocation2_spill] sm:$0xff] }
 0x53f   :  { %3429 = vmatpush3.msra.mxu1 %v5251_v33  ;;  %v6865_v33 = vmov 0.0  }
 0x540   :  { %3430 = vmatprep.subr.mxu1 %v5257_v35  ;;  %v2767_v35 = vld [vmem:[%s6691_s3 + $0x378] sm:$0xff] }
 0x541   :  { %3431 = vmatpush3.msra.mxu1 %v5263_v37  ;;  %v2766_v37 = vld [vmem:[%s6691_s3 + $0x370] sm:$0xff]  ;;  %3873 = vmatpush3.msra.mxu0 %v2767_v35 }
 0x542   :  { %3432 = vmatprep.subr.mxu1 %v5269_v39  ;;  %3874 = vmatprep.subr.mxu0 %v6865_v33  ;;  %v2765_v39 = vld [vmem:[%s6691_s3 + $0x368] sm:$0xff] }
 0x543   :  { %3433 = vmatpush3.msra.mxu1 %v5275_v41  ;;  %3875 = vmatpush3.msra.mxu0 %v2766_v37  ;;  %v2764_v41 = vld [vmem:[%s6691_s3 + $0x360] sm:$0xff]  ;;  %v3365_v37 = vpop.f32.mrf.mxu0 }
 0x544   :  { %3434 = vmatprep.subr.mxu1 %v5281_v43  ;;  %3876 = vmatprep.subr.mxu0 %v6865_v33  ;;  %v2763_v43 = vld [vmem:[%s6691_s3 + $0x358] sm:$0xff] }
 0x545   :  { %3435 = vmatpush3.msra.mxu1 %v6833_v45  ;;  %3877 = vmatpush3.msra.mxu0 %v2765_v39  ;;  %v2762_v45 = vld [vmem:[%s6691_s3 + $0x350] sm:$0xff]  ;;  %v3366_v39 = vpop.f32.mrf.mxu0 }
 0x546   :  { %3436 = vmatprep.subr.mxu1 %v6834_v47  ;;  %3878 = vmatprep.subr.mxu0 %v6865_v33  ;;  %v2761_v47 = vld [vmem:[%s6691_s3 + $0x348] sm:$0xff] }
 0x547   :  { %3437 = vmatpush3.msra.mxu1 %v6835_v49  ;;  %3879 = vmatpush3.msra.mxu0 %v2764_v41  ;;  %v2760_v49 = vld [vmem:[%s6691_s3 + $0x340] sm:$0xff]  ;;  %v3367_v41 = vadd.f32 %v3366_v39, %v3365_v37 }
 0x548   :  { %3438 = vmatprep.subr.mxu1 %v6851_v38  ;;  %3880 = vmatprep.subr.mxu0 %v6865_v33 }
 0x549   :  { %3439 = vmatpush3.msra.mxu1 %v6852_v42  ;;  %3881 = vmatpush3.msra.mxu0 %v2763_v43 }
 0x54a   :  { %3440 = vmatprep.subr.mxu1 %v6853_v58  ;;  %3882 = vmatprep.subr.mxu0 %v6865_v33 }
 0x54b   :  { %3441 = vmatpush3.msra.mxu1 %v6854_v62  ;;  %3883 = vmatpush3.msra.mxu0 %v2762_v45 }
 0x54c   :  { %3442 = vmatprep.subr.mxu1 %v6855_v52  ;;  %3884 = vmatprep.subr.mxu0 %v6865_v33 }
 0x54d   :  { %3443 = vmatpush3.msra.mxu1 %v6856_v15  ;;  %3885 = vmatpush3.msra.mxu0 %v2761_v47  ;;  %v1611_v47 = vadd.f32 %v5892_v36, %v3367_v41 }
 0x54e   :  { %3444 = vmatprep.subr.mxu1 %v6857_v17  ;;  %3886 = vmatprep.subr.mxu0 %v6865_v33 }
 0x54f   :  { %3445 = vmatpush3.msra.mxu1 %v6858_v19  ;;  %3887 = vmatpush3.msra.mxu0 %v2760_v49 }
 0x550   :  { %3446 = vmatprep.subr.mxu1 %v6859_v21  ;;  %3888 = vmatprep.subr.mxu0 %v6865_v33 }
 0x551   :  { %3447 = vmatpush3.msra.mxu1 %v6860_v23  ;;  %3889 = vmatpush3.msra.mxu0 %v2759_v18 }
 0x552   :  { %3448 = vmatprep.subr.mxu1 %v6861_v25  ;;  %3890 = vmatprep.subr.mxu0 %v6865_v33 }
 0x553   :  { %3449 = vmatpush3.msra.mxu1 %v6862_v27  ;;  %3891 = vmatpush3.msra.mxu0 %v2758_v63 }
 0x554   :  { %3450 = vmatprep.subr.mxu1 %v6863_v29  ;;  %3892 = vmatprep.subr.mxu0 %v6865_v33 }
 0x555   :  { %3451 = vmatpush3.msra.mxu1 %v6864_v31  ;;  %3893 = vmatpush3.msra.mxu0 %v2757_v40 }
 0x556   :  { %3907 = vmatprep.subr.mxu1 %v6865_v33  ;;  %3894 = vmatprep.subr.mxu0 %v6865_v33 }
 0x557   :  { %3895 = vmatpush3.msra.mxu0 %v2756_v46  ;;  %1847 = vmatmul.mubr.f32.vlgmr.msra.gmra.mxu1 %v1778_v7  ;;  %v6071_v7 = vld [vmem:[%s6689_s1 + $0x168] sm:$0xff] }
 0x558   :  { %3896 = vmatprep.subr.mxu0 %v6865_v33  ;;  %3939 = vmatprep.mubr.msk.f32.mxu1 %vm4263_vm0, %v6865_v33 }
 0x559   :  { %3897 = vmatpush3.msra.mxu0 %v2755_v48 }
 0x55a   :  { %3898 = vmatprep.subr.mxu0 %v6865_v33 }
 0x55b   :  { %3899 = vmatpush3.msra.mxu0 %v2754_v54 }
 0x55c   :  { %3900 = vmatprep.subr.mxu0 %v6865_v33 }
 0x55d   :  { %3901 = vmatpush3.msra.mxu0 %v2753_v1  ;;  %v6047_v1 = vld [vmem:[%s6689_s1 + $0x178] sm:$0xff] }
 0x55e   :  { %3902 = vmatprep.subr.mxu0 %v6865_v33 }
 0x55f   :  { %3903 = vmatpush3.msra.mxu0 %v2752_v44  ;;  %v6053_v44 = vld [vmem:[%s6689_s1 + $0x1f0] sm:$0xff] }
 0x560   :  { %3455 = vmatprep.subr.mxu0 %v6866_v32  ;;  %v6059_v32 = vld [vmem:[%s6689_s1 + $0x170] sm:$0xff] }
 0x5d6   :  { %v1535_v3 = vpop.f32.mrf.mxu1 }
 0x5d7   :  { %v6038_v30 = vadd.f32 %v1535_v3, %v5887_v5  ;;  %v1781_v5 = vld [vmem:[%s6690_s0 + $0xf8] sm:$0xff] }
 0x5d8   :  { %v3871_v35 = vpop.f32.mrf.mxu1 }
 0x5f6   :  { %v3400_v43 = vpop.f32.mrf.mxu1 }
 0x5f8   :  { %v3401_v45 = vpop.f32.mrf.mxu1 }
 0x5f9   :  { %v3402_v49 = vadd.f32 %v3401_v45, %v3400_v43 }
 0x5fb   :  { %v1681_v18 = vadd.f32 %v3402_v49, %v1611_v47 }
 0x5fd   :  { %v1685_v63 = vmin.f32 %v1681_v18, 0.0  ;;  %vm1684_vm7 = vcmp.gt.f32.partialorder %v1681_v18, 0.0 }
 0x5ff   :  { %v1686_v40 = vmul.f32 1.442695, %v1685_v63 }
 0x601   :  { %4131 = vpow2.f32 %v1686_v40 }
 0x60e   :  { %v4132_v46 = vpop.eup %4131 }
 0x60f   :  { %v2751_v48 = vadd.f32 -1.0, %v4132_v46 }
 0x611   :  { %v1689_v54 = vsel %vm1684_vm7, %v1681_v18, %v2751_v48 }
 0x612   :  { %3905 = vmatmul.mubr.f32.vlgmr.msra.gmra.mxu0 %v1689_v54  ;;  %v4237_v54 = vld [vmem:[%s6689_s1 + $0x160] sm:$0xff] }
 0x613   :  { %3456 = vmatpush3.msra.mxu0 %v6047_v1  ;;  %1916 = vmatprep.mubr.f32.mxu0 %v1781_v5  ;;  %v4236_v5 = vld [vmem:[%s6689_s1 + $0x1e0] sm:$0xff] }
 0x614   :  { %3457 = vmatprep.subr.mxu0 %v6053_v44 }
 0x615   :  { %3458 = vmatpush3.msra.mxu0 %v6059_v32 }
 0x616   :  { %3459 = vmatprep.subr.mxu0 %v6065_v28 }
 0x617   :  { %3460 = vmatpush3.msra.mxu0 %v6071_v7  ;;  %v3452_v35 = vpop.f32.mrf.mxu1 }
 0x618   :  { %3461 = vmatprep.subr.mxu0 %v5409_v9  ;;  %v1780_v9 = vld [vmem:[%s6690_s0 + $0xf0] sm:$0xff] }
 0x619   :  { %3462 = vmatpush3.msra.mxu0 %v5415_v11  ;;  %v4217_v11 = vld [vmem:[%s6689_s1 + $0xf8] sm:$0xff]  ;;  %v3453_v37 = vpop.f32.mrf.mxu1 }
 0x61a   :  { %3463 = vmatprep.subr.mxu0 %v5421_v13  ;;  %v4218_v13 = vld [vmem:[%s6689_s1 + $0x78] sm:$0xff]  ;;  %v3454_v39 = vadd.f32 %v3453_v37, %v3452_v35 }
 0x61b   :  { %3464 = vmatpush3.msra.mxu0 %v5427_v50  ;;  %v4219_v50 = vld [vmem:[%s6689_s1 + $0xf0] sm:$0xff] }
 0x61c   :  { %3465 = vmatprep.subr.mxu0 %v5433_v51  ;;  %v4220_v51 = vld [vmem:[%s6689_s1 + $0x70] sm:$0xff]  ;;  %v1849_v45 = vadd.f32 %v5892_v36, %v3454_v39 }
 0x61d   :  { %3466 = vmatpush3.msra.mxu0 %v5439_v53  ;;  %v4221_v53 = vld [vmem:[%s6689_s1 + $0xe8] sm:$0xff] }
 0x61e   :  { %3467 = vmatprep.subr.mxu0 %v5445_v55  ;;  %v4222_v55 = vld [vmem:[%s6689_s1 + $0x68] sm:$0xff] }
 0x61f   :  { %3468 = vmatpush3.msra.mxu0 %v5451_v61  ;;  %v4223_v61 = vld [vmem:[%s6689_s1 + $0xe0] sm:$0xff] }
 0x620   :  { %3469 = vmatprep.subr.mxu0 %v5457_v56  ;;  %v4224_v56 = vld [vmem:[%s6689_s1 + $0x60] sm:$0xff] }
 0x621   :  { %3470 = vmatpush3.msra.mxu0 %v5463_v59  ;;  %v4225_v59 = vld [vmem:[%s6689_s1 + $0xd8] sm:$0xff] }
 0x622   :  { %3471 = vmatprep.subr.mxu0 %v5469_v0  ;;  %v4226_v0 = vld [vmem:[%s6689_s1 + $0x58] sm:$0xff] }
 0x623   :  { %3472 = vmatpush3.msra.mxu0 %v5475_v2  ;;  %v4227_v2 = vld [vmem:[%s6689_s1 + $0xd0] sm:$0xff] }
 0x624   :  { %3473 = vmatprep.subr.mxu0 %v5481_v4  ;;  %v4228_v4 = vld [vmem:[%s6689_s1 + $0x50] sm:$0xff] }
 0x625   :  { %3474 = vmatpush3.msra.mxu0 %v5487_v6  ;;  %v4229_v6 = vld [vmem:[%s6689_s1 + $0xc8] sm:$0xff] }
 0x626   :  { %3475 = vmatprep.subr.mxu0 %v5493_v8  ;;  %v4230_v8 = vld [vmem:[%s6689_s1 + $0x48] sm:$0xff] }
 0x627   :  { %3476 = vmatpush3.msra.mxu0 %v5499_v10  ;;  %v4231_v10 = vld [vmem:[%s6689_s1 + $0xc0] sm:$0xff] }
 0x628   :  { %3477 = vmatprep.subr.mxu0 %v5505_v12  ;;  %v4232_v12 = vld [vmem:[%s6689_s1 + $0x40] sm:$0xff] }
 0x629   :  { %3478 = vmatpush3.msra.mxu0 %v5511_v14  ;;  %v4233_v14 = vld [vmem:[%s6689_s1 + $0xb8] sm:$0xff] }
 0x62a   :  { %3479 = vmatprep.subr.mxu0 %v5517_v16  ;;  %v4234_v16 = vld [vmem:[%s6689_s1 + $0x38] sm:$0xff] }
 0x62b   :  { %3480 = vmatpush3.msra.mxu0 %v5523_v20  ;;  %v2784_v20 = vld [vmem:[%s6691_s3 + $0x3f8] sm:$0xff] }
 0x62c   :  { %3481 = vmatprep.subr.mxu0 %v5529_v22  ;;  %v2783_v22 = vld [vmem:[%s6691_s3 + $0x3f0] sm:$0xff]  ;;  %3908 = vmatpush3.msra.mxu1 %v2784_v20  ;;  %v4261_v20 = vld [vmem:[%s6689_s1 + $0x100] sm:$0xff] }
 0x62d   :  { %3482 = vmatpush3.msra.mxu0 %v5535_v24  ;;  %3909 = vmatprep.subr.mxu1 %v6865_v33  ;;  %v2782_v24 = vld [vmem:[%s6691_s3 + $0x3e8] sm:$0xff] }
 0x62e   :  { %3483 = vmatprep.subr.mxu0 %v5541_v26  ;;  %3910 = vmatpush3.msra.mxu1 %v2783_v22  ;;  %v2781_v26 = vld [vmem:[%s6691_s3 + $0x3e0] sm:$0xff]  ;;  %v2801_v22 = vld [vmem:[%s6691_s3 + $0x478] sm:$0xff] }
 0x62f   :  { %3484 = vmatpush3.msra.mxu0 %v5547_v34  ;;  %3911 = vmatprep.subr.mxu1 %v6865_v33  ;;  %v2780_v34 = vld [vmem:[%s6691_s3 + $0x3d8] sm:$0xff] }
 0x630   :  { %3485 = vmatprep.subr.mxu0 %v5556_v60  ;;  %3912 = vmatpush3.msra.mxu1 %v2782_v24  ;;  %v2779_v60 = vld [vmem:[%s6691_s3 + $0x3d0] sm:$0xff] }
 0x631   :  { %3486 = vmatpush3.msra.mxu0 %v5562_v57  ;;  %3913 = vmatprep.subr.mxu1 %v6865_v33  ;;  %v2778_v57 = vld [vmem:[%s6691_s3 + $0x3c8] sm:$0xff]  ;;  %v2800_v24 = vld [vmem:[%s6691_s3 + $0x470] sm:$0xff] }
 0x632   :  { %1917 = vmatmul.mubr.f32.vlgmr.msra.gmra.mxu0 %v1780_v9  ;;  %3507 = vmatprep.subr.mxu0 %v4217_v11  ;;  %v4243_v9 = vld [vmem:[%s6689_s1 + $0x148] sm:$0xff]  ;;  %v4244_v11 = vld [vmem:[%s6689_s1 + $0x1c0] sm:$0xff] }
 0x633   :  { %3508 = vmatpush3.msra.mxu0 %v4218_v13  ;;  %3914 = vmatpush3.msra.mxu1 %v2781_v26  ;;  %v4245_v13 = vld [vmem:[%s6689_s1 + $0x140] sm:$0xff]  ;;  %v2799_v26 = vld [vmem:[%s6691_s3 + $0x468] sm:$0xff] }
 0x634   :  { %3509 = vmatprep.subr.mxu0 %v4219_v50  ;;  %3915 = vmatprep.subr.mxu1 %v6865_v33  ;;  %v4246_v50 = vld [vmem:[%s6689_s1 + $0x1b8] sm:$0xff] }
 0x635   :  { %3510 = vmatpush3.msra.mxu0 %v4220_v51  ;;  %3916 = vmatpush3.msra.mxu1 %v2780_v34  ;;  %v4247_v51 = vld [vmem:[%s6689_s1 + $0x138] sm:$0xff]  ;;  %v2798_v34 = vld [vmem:[%s6691_s3 + $0x460] sm:$0xff] }
 0x636   :  { %3511 = vmatprep.subr.mxu0 %v4221_v53  ;;  %3917 = vmatprep.subr.mxu1 %v6865_v33  ;;  %v4248_v53 = vld [vmem:[%s6689_s1 + $0x1b0] sm:$0xff] }
 0x637   :  { %3512 = vmatpush3.msra.mxu0 %v4222_v55  ;;  %3918 = vmatpush3.msra.mxu1 %v2779_v60  ;;  %v4249_v55 = vld [vmem:[%s6689_s1 + $0x130] sm:$0xff]  ;;  %v2797_v60 = vld [vmem:[%s6691_s3 + $0x458] sm:$0xff] }
 0x638   :  { %3513 = vmatprep.subr.mxu0 %v4223_v61  ;;  %3919 = vmatprep.subr.mxu1 %v6865_v33  ;;  %v4250_v61 = vld [vmem:[%s6689_s1 + $0x1a8] sm:$0xff] }
 0x639   :  { %3514 = vmatpush3.msra.mxu0 %v4224_v56  ;;  %3920 = vmatpush3.msra.mxu1 %v2778_v57  ;;  %v4251_v56 = vld [vmem:[%s6689_s1 + $0x128] sm:$0xff]  ;;  %v2796_v57 = vld [vmem:[%s6691_s3 + $0x450] sm:$0xff] }
 0x63a   :  { %3515 = vmatprep.subr.mxu0 %v4225_v59  ;;  %3921 = vmatprep.subr.mxu1 %v6865_v33  ;;  %v4252_v59 = vld [vmem:[%s6689_s1 + $0x1a0] sm:$0xff] }
 0x63b   :  { %3516 = vmatpush3.msra.mxu0 %v4226_v0  ;;  %v4253_v0 = vld [vmem:[%s6689_s1 + $0x120] sm:$0xff] }
 0x63c   :  { %3517 = vmatprep.subr.mxu0 %v4227_v2  ;;  %v4254_v2 = vld [vmem:[%s6689_s1 + $0x198] sm:$0xff] }
 0x63d   :  { %3518 = vmatpush3.msra.mxu0 %v4228_v4  ;;  %v4255_v4 = vld [vmem:[%s6689_s1 + $0x118] sm:$0xff] }
 0x63e   :  { %3519 = vmatprep.subr.mxu0 %v4229_v6  ;;  %v4256_v6 = vld [vmem:[%s6689_s1 + $0x190] sm:$0xff] }
 0x63f   :  { %3520 = vmatpush3.msra.mxu0 %v4230_v8  ;;  %v4257_v8 = vld [vmem:[%s6689_s1 + $0x110] sm:$0xff] }
 0x640   :  { %3521 = vmatprep.subr.mxu0 %v4231_v10  ;;  %v4258_v10 = vld [vmem:[%s6689_s1 + $0x188] sm:$0xff] }
 0x641   :  { %3522 = vmatpush3.msra.mxu0 %v4232_v12  ;;  %v4259_v12 = vld [vmem:[%s6689_s1 + $0x108] sm:$0xff] }
 0x642   :  { %3523 = vmatprep.subr.mxu0 %v4233_v14  ;;  %v2018_v14 = vld [vmem:[%s6690_s0 + $0x110] sm:$0xff] }
 0x643   :  { %3524 = vmatpush3.msra.mxu0 %v4234_v16  ;;  %v4260_v16 = vld [vmem:[%s6689_s1 + $0x180] sm:$0xff] }
 0x644   :  { %3525 = vmatprep.subr.mxu0 %v6851_v38  ;;  %v2777_v38 = vld [vmem:[%s6691_s3 + $0x3c0] sm:$0xff] }
 0x645   :  { %3526 = vmatpush3.msra.mxu0 %v6852_v42  ;;  %3922 = vmatpush3.msra.mxu1 %v2777_v38  ;;  %v2776_v42 = vld [vmem:[%s6691_s3 + $0x3b8] sm:$0xff]  ;;  %v2795_v38 = vld [vmem:[%s6691_s3 + $0x448] sm:$0xff] }
 0x646   :  { %3527 = vmatprep.subr.mxu0 %v6853_v58  ;;  %3923 = vmatprep.subr.mxu1 %v6865_v33  ;;  %v2775_v58 = vld [vmem:[%s6691_s3 + $0x3b0] sm:$0xff] }
 0x647   :  { %3528 = vmatpush3.msra.mxu0 %v6854_v62  ;;  %3924 = vmatpush3.msra.mxu1 %v2776_v42  ;;  %v2774_v62 = vld [vmem:[%s6691_s3 + $0x3a8] sm:$0xff]  ;;  %v2794_v42 = vld [vmem:[%s6691_s3 + $0x440] sm:$0xff] }
 0x648   :  { %3529 = vmatprep.subr.mxu0 %v6855_v52  ;;  %3925 = vmatprep.subr.mxu1 %v6865_v33  ;;  %v2773_v52 = vld [vmem:[%s6691_s3 + $0x3a0] sm:$0xff] }
 0x649   :  { %3530 = vmatpush3.msra.mxu0 %v6856_v15  ;;  %3926 = vmatpush3.msra.mxu1 %v2775_v58  ;;  %v2772_v15 = vld [vmem:[%s6691_s3 + $0x398] sm:$0xff] }
 0x64a   :  { %3531 = vmatprep.subr.mxu0 %v6857_v17  ;;  %3927 = vmatprep.subr.mxu1 %v6865_v33  ;;  %v2771_v17 = vld [vmem:[%s6691_s3 + $0x390] sm:$0xff]  ;;  %v2793_v58 = vld [vmem:[%s6691_s3 + $0x438] sm:$0xff] }
 0x64b   :  { %3532 = vmatpush3.msra.mxu0 %v6858_v19  ;;  %3928 = vmatpush3.msra.mxu1 %v2774_v62  ;;  %v2770_v19 = vld [vmem:[%s6691_s3 + $0x388] sm:$0xff]  ;;  %v2792_v62 = vld [vmem:[%s6691_s3 + $0x430] sm:$0xff] }
 0x64c   :  { %3533 = vmatprep.subr.mxu0 %v6859_v21  ;;  %3929 = vmatprep.subr.mxu1 %v6865_v33  ;;  %v2769_v21 = vld [vmem:[%s6691_s3 + $0x380] sm:$0xff] }
 0x64d   :  { %3534 = vmatpush3.msra.mxu0 %v6860_v23  ;;  %3930 = vmatpush3.msra.mxu1 %v2773_v52  ;;  %v4235_v23 = vld [vmem:[%s6689_s1 + $0x1f8] sm:$0xff]  ;;  %v2791_v52 = vld [vmem:[%s6691_s3 + $0x428] sm:$0xff] }
 0x64e   :  { %3535 = vmatprep.subr.mxu0 %v6861_v25  ;;  %3931 = vmatprep.subr.mxu1 %v6865_v33  ;;  %v2017_v25 = vld [vmem:[%s6690_s0 + $0x108] sm:$0xff] }
 0x64f   :  { %3536 = vmatpush3.msra.mxu0 %v6862_v27  ;;  %3932 = vmatpush3.msra.mxu1 %v2772_v15  ;;  %v2016_v27 = vld [vmem:[%s6690_s0 + $0x100] sm:$0xff] }
 0x650   :  { %3537 = vmatprep.subr.mxu0 %v6863_v29  ;;  %3933 = vmatprep.subr.mxu1 %v6865_v33  ;;  %v2790_v15 = vld [vmem:[%s6691_s3 + $0x420] sm:$0xff] }
 0x651   :  { %3538 = vmatpush3.msra.mxu0 %v6864_v31  ;;  %3934 = vmatpush3.msra.mxu1 %v2771_v17  ;;  %v2789_v17 = vld [vmem:[%s6691_s3 + $0x418] sm:$0xff] }
 0x652   :  { %3942 = vmatprep.subr.mxu0 %v6865_v33  ;;  %3935 = vmatprep.subr.mxu1 %v6865_v33 }
 0x653   :  { %3936 = vmatpush3.msra.mxu1 %v2770_v19  ;;  %2084 = vmatprep.mubr.f32.mxu0 %v2017_v25  ;;  %v2788_v19 = vld [vmem:[%s6691_s3 + $0x410] sm:$0xff]  ;;  %v2283_v25 = vld [vmem:[%s6693_s5 + $0x78] sm:$0xff] }
 0x654   :  { %3937 = vmatprep.subr.mxu1 %v6865_v33  ;;  %2085 = vmatmul.mubr.f32.vlgmr.msra.gmra.mxu0 %v2016_v27  ;;  %v2282_v27 = vld [vmem:[%s6693_s5 + $0x70] sm:$0xff] }
 0x655   :  { %3938 = vmatpush3.msra.mxu1 %v2769_v21  ;;  %3974 = vmatprep.mubr.msk.f32.mxu0 %vm4263_vm0, %v6865_v33  ;;  %v2787_v21 = vld [vmem:[%s6691_s3 + $0x408] sm:$0xff] }
 0x656   :  { %3542 = vmatprep.subr.mxu1 %v4235_v23  ;;  %3943 = vmatpush3.msra.mxu0 %v2801_v22  ;;  %v2786_v23 = vld [vmem:[%s6691_s3 + $0x400] sm:$0xff]  ;;  %v2377_v22 = vld [vmem:[%s6694_s7 + $0x50] sm:$0xff] }
 0x657   :  { %3944 = vmatprep.subr.mxu0 %v6865_v33 }
 0x658   :  { %3945 = vmatpush3.msra.mxu0 %v2800_v24  ;;  %v2376_v24 = vld [vmem:[%s6694_s7 + $0x48] sm:$0xff] }
 0x659   :  { %3946 = vmatprep.subr.mxu0 %v6865_v33 }
 0x65a   :  { %3947 = vmatpush3.msra.mxu0 %v2799_v26  ;;  %v2375_v26 = vld [vmem:[%s6694_s7 + $0x40] sm:$0xff] }
 0x65b   :  { %3948 = vmatprep.subr.mxu0 %v6865_v33 }
 0x65c   :  { %3949 = vmatpush3.msra.mxu0 %v2798_v34  ;;  %v2374_v34 = vld [vmem:[%s6694_s7 + $0x38] sm:$0xff] }
 0x65d   :  { %3950 = vmatprep.subr.mxu0 %v6865_v33 }
 0x65e   :  { %3951 = vmatpush3.msra.mxu0 %v2797_v60  ;;  %v2373_v60 = vld [vmem:[%s6694_s7 + $0x30] sm:$0xff] }
 0x65f   :  { %3952 = vmatprep.subr.mxu0 %v6865_v33 }
 0x660   :  { %3953 = vmatpush3.msra.mxu0 %v2796_v57  ;;  %v2372_v57 = vld [vmem:[%s6694_s7 + $0x28] sm:$0xff] }
 0x661   :  { %3954 = vmatprep.subr.mxu0 %v6865_v33 }
 0x662   :  { %3955 = vmatpush3.msra.mxu0 %v2795_v38  ;;  %v2371_v38 = vld [vmem:[%s6694_s7 + $0x20] sm:$0xff] }
 0x663   :  { %3956 = vmatprep.subr.mxu0 %v6865_v33 }
 0x664   :  { %3957 = vmatpush3.msra.mxu0 %v2794_v42  ;;  %v2370_v42 = vld [vmem:[%s6694_s7 + $0x18] sm:$0xff] }
 0x665   :  { %3958 = vmatprep.subr.mxu0 %v6865_v33 }
 0x666   :  { %3959 = vmatpush3.msra.mxu0 %v2793_v58  ;;  %v2369_v58 = vld [vmem:[%s6694_s7 + $0x10] sm:$0xff] }
 0x667   :  { %3960 = vmatprep.subr.mxu0 %v6865_v33 }
 0x668   :  { %3961 = vmatpush3.msra.mxu0 %v2792_v62  ;;  %v2368_v62 = vld [vmem:[%s6694_s7 + $0x8] sm:$0xff] }
 0x669   :  { %3962 = vmatprep.subr.mxu0 %v6865_v33 }
 0x66a   :  { %3963 = vmatpush3.msra.mxu0 %v2791_v52  ;;  %v2367_v52 = vld [vmem:[%s6694_s7] sm:$0xff] }
 0x66b   :  { %3964 = vmatprep.subr.mxu0 %v6865_v33 }
 0x66c   :  { %3965 = vmatpush3.msra.mxu0 %v2790_v15  ;;  %v2481_v15 = vld [vmem:[%s6696_s9 + $0x78] sm:$0xff] }
 0x66d   :  { %3966 = vmatprep.subr.mxu0 %v6865_v33 }
 0x66e   :  { %3967 = vmatpush3.msra.mxu0 %v2789_v17  ;;  %v2480_v17 = vld [vmem:[%s6696_s9 + $0x70] sm:$0xff] }
 0x66f   :  { %3968 = vmatprep.subr.mxu0 %v6865_v33 }
 0x670   :  { %3969 = vmatpush3.msra.mxu0 %v2788_v19  ;;  %v2479_v19 = vld [vmem:[%s6696_s9 + $0x68] sm:$0xff] }
 0x671   :  { %3970 = vmatprep.subr.mxu0 %v6865_v33 }
 0x672   :  { %3971 = vmatpush3.msra.mxu0 %v2787_v21  ;;  %v2478_v21 = vld [vmem:[%s6696_s9 + $0x60] sm:$0xff] }
 0x673   :  { %3972 = vmatprep.subr.mxu0 %v6865_v33 }
 0x674   :  { %3973 = vmatpush3.msra.mxu0 %v2786_v23  ;;  %v2804_v23 = vld [vmem:[%s6697_s6] ss:$0 sm:$0xff] }
 0x675   :  { %4012 = vmatprep.subr.mxu0 %v6865_v33 }
 0x6d2   :  { %v1773_v29 = vpop.f32.mrf.mxu0 }
 0x6d3   :  { %v6247_v31 = vadd.f32 %v1773_v29, %v6038_v30  ;;  %v2019_v30 = vld [vmem:[%s6690_s0 + $0x118] sm:$0xff]  ;;  %v2281_v29 = vld [vmem:[%s6693_s5 + $0x68] sm:$0xff] }
 0x6d4   :  { %v3906_v3 = vpop.f32.mrf.mxu0 }
 0x6f2   :  { %v3487_v41 = vpop.f32.mrf.mxu0 }
 0x6f4   :  { %v3488_v43 = vpop.f32.mrf.mxu0 }
 0x6f5   :  { %v3489_v47 = vadd.f32 %v3488_v43, %v3487_v41 }
 0x6f7   :  { %v1919_v49 = vadd.f32 %v3489_v47, %v1849_v45 }
 0x6f9   :  { %v1923_v18 = vmin.f32 %v1919_v49, 0.0  ;;  %vm1922_vm8 = vcmp.gt.f32.partialorder %v1919_v49, 0.0 }
 0x6fb   :  { %v1924_v63 = vmul.f32 1.442695, %v1923_v18 }
 0x6fd   :  { %4133 = vpow2.f32 %v1924_v63 }
 0x70a   :  { %v4134_v40 = vpop.eup %4133 }
 0x70b   :  { %v2768_v46 = vadd.f32 -1.0, %v4134_v40 }
 0x70d   :  { %v1927_v48 = vsel %vm1922_vm8, %v1919_v49, %v2768_v46 }
 0x70e   :  { %3940 = vmatmul.mubr.f32.vlgmr.msra.gmra.mxu1 %v1927_v48 }
 0x70f   :  { %3543 = vmatpush3.msra.mxu1 %v6047_v1  ;;  %2154 = vmatprep.mubr.f32.mxu1 %v2019_v30  ;;  %v4238_v1 = vld [vmem:[%s6689_s1 + $0x1d8] sm:$0xff] }
 0x710   :  { %3544 = vmatprep.subr.mxu1 %v6053_v44  ;;  %v4239_v44 = vld [vmem:[%s6689_s1 + $0x158] sm:$0xff] }
 0x711   :  { %3545 = vmatpush3.msra.mxu1 %v6059_v32  ;;  %v4240_v32 = vld [vmem:[%s6689_s1 + $0x1d0] sm:$0xff] }
 0x712   :  { %3546 = vmatprep.subr.mxu1 %v6065_v28  ;;  %v4241_v28 = vld [vmem:[%s6689_s1 + $0x150] sm:$0xff] }
 0x713   :  { %3547 = vmatpush3.msra.mxu1 %v6071_v7  ;;  %v4242_v7 = vld [vmem:[%s6689_s1 + $0x1c8] sm:$0xff] }
 0x714   :  { %3548 = vmatprep.subr.mxu1 %v4236_v5  ;;  %v3539_v39 = vpop.f32.mrf.mxu0 }
 0x715   :  { %3549 = vmatpush3.msra.mxu1 %v4237_v54  ;;  %v2278_v54 = vld [vmem:[%s6693_s5 + $0x50] sm:$0xff] }
 0x716   :  { %3550 = vmatprep.subr.mxu1 %v4238_v1  ;;  %v3540_v41 = vpop.f32.mrf.mxu0  ;;  %v2277_v1 = vld [vmem:[%s6693_s5 + $0x48] sm:$0xff] }
 0x717   :  { %3551 = vmatpush3.msra.mxu1 %v4239_v44  ;;  %v3541_v43 = vadd.f32 %v3540_v41, %v3539_v39  ;;  %v2276_v44 = vld [vmem:[%s6693_s5 + $0x40] sm:$0xff] }
 0x718   :  { %3552 = vmatprep.subr.mxu1 %v4240_v32  ;;  %v2275_v32 = vld [vmem:[%s6693_s5 + $0x38] sm:$0xff] }
 0x719   :  { %3553 = vmatpush3.msra.mxu1 %v4241_v28  ;;  %v2087_v49 = vadd.f32 %v5892_v36, %v3541_v43  ;;  %v2279_v36 = vld [vmem:[%s6693_s5 + $0x58] sm:$0xff]  ;;  %v2274_v28 = vld [vmem:[%s6693_s5 + $0x30] sm:$0xff] }
 0x71a   :  { %3554 = vmatprep.subr.mxu1 %v4242_v7  ;;  %v2273_v7 = vld [vmem:[%s6693_s5 + $0x28] sm:$0xff]  ;;  %v2477_v43 = vld [vmem:[%s6696_s9 + $0x58] sm:$0xff] }
 0x71b   :  { %3555 = vmatpush3.msra.mxu1 %v4243_v9  ;;  %v2272_v9 = vld [vmem:[%s6693_s5 + $0x20] sm:$0xff] }
 0x71c   :  { %3556 = vmatprep.subr.mxu1 %v4244_v11  ;;  %v2271_v11 = vld [vmem:[%s6693_s5 + $0x18] sm:$0xff] }
 0x71d   :  { %3557 = vmatpush3.msra.mxu1 %v4245_v13  ;;  %v2270_v13 = vld [vmem:[%s6693_s5 + $0x10] sm:$0xff] }
 0x71e   :  { %3558 = vmatprep.subr.mxu1 %v4246_v50  ;;  %v2269_v50 = vld [vmem:[%s6693_s5 + $0x8] sm:$0xff] }
 0x71f   :  { %3559 = vmatpush3.msra.mxu1 %v4247_v51  ;;  %v2268_v51 = vld [vmem:[%s6693_s5] sm:$0xff] }
 0x720   :  { %3560 = vmatprep.subr.mxu1 %v4248_v53  ;;  %v2382_v53 = vld [vmem:[%s6694_s7 + $0x78] sm:$0xff] }
 0x721   :  { %3561 = vmatpush3.msra.mxu1 %v4249_v55  ;;  %v2381_v55 = vld [vmem:[%s6694_s7 + $0x70] sm:$0xff] }
 0x722   :  { %3562 = vmatprep.subr.mxu1 %v4250_v61  ;;  %v2380_v61 = vld [vmem:[%s6694_s7 + $0x68] sm:$0xff] }
 0x723   :  { %3563 = vmatpush3.msra.mxu1 %v4251_v56  ;;  %v2379_v56 = vld [vmem:[%s6694_s7 + $0x60] sm:$0xff] }
 0x724   :  { %3564 = vmatprep.subr.mxu1 %v4252_v59 }
 0x725   :  { %3565 = vmatpush3.msra.mxu1 %v4253_v0  ;;  %v2802_v0 = vld [vmem:[%s6695_s4] ss:$0 sm:$0xff] }
 0x726   :  { %3566 = vmatprep.subr.mxu1 %v4254_v2 }
 0x727   :  { %3567 = vmatpush3.msra.mxu1 %v4255_v4 }
 0x728   :  { %3568 = vmatprep.subr.mxu1 %v4256_v6 }
 0x729   :  { %3569 = vmatpush3.msra.mxu1 %v4257_v8 }
 0x72a   :  { %3570 = vmatprep.subr.mxu1 %v4258_v10 }
 0x72b   :  { %3571 = vmatpush3.msra.mxu1 %v4259_v12 }
 0x72c   :  { %3572 = vmatprep.subr.mxu1 %v4260_v16 }
 0x72d   :  { %3573 = vmatpush3.msra.mxu1 %v4261_v20  ;;  %v2378_v20 = vld [vmem:[%s6694_s7 + $0x58] sm:$0xff] }
 0x72e   :  { %2155 = vmatmul.mubr.f32.vlgmr.msra.gmra.mxu1 %v2018_v14  ;;  %3977 = vmatprep.subr.mxu1 %v6865_v33 }
 0x72f   :  { %4009 = vmatprep.mubr.msk.f32.mxu1 %vm4263_vm0, %v6865_v33  ;;  %3978 = vmatpush3.msra.mxu1 %v2283_v25 }
 0x730   :  { %3979 = vmatprep.subr.mxu1 %v6865_v33 }
 0x731   :  { %3980 = vmatpush3.msra.mxu1 %v2282_v27 }
 0x732   :  { %3981 = vmatprep.subr.mxu1 %v6865_v33 }
 0x733   :  { %3982 = vmatpush3.msra.mxu1 %v2281_v29 }
 0x734   :  { %3983 = vmatprep.subr.mxu1 %v6865_v33 }
 0x7ce   :  { %v2011_v3 = vpop.f32.mrf.mxu1 }
 0x7cf   :  { %v6419_v35 = vadd.f32 %v2011_v3, %v6247_v31  ;;  %v2280_v31 = vld [vmem:[%s6693_s5 + $0x60] sm:$0xff] }
 0x7d0   :  { %v3941_v37 = vpop.f32.mrf.mxu1  ;;  %3984 = vmatpush3.msra.mxu1 %v2280_v31  ;;  %v2466_v31 = vld [vmem:[%s6696_s9] sm:$0xff] }
 0x7d1   :  { %3985 = vmatprep.subr.mxu1 %v6865_v33 }
 0x7d2   :  { %3986 = vmatpush3.msra.mxu1 %v2279_v36  ;;  %v2580_v36 = vld [vmem:[%s6698_s11 + $0x78] sm:$0xff] }
 0x7d3   :  { %3987 = vmatprep.subr.mxu1 %v6865_v33 }
 0x7d4   :  { %3988 = vmatpush3.msra.mxu1 %v2278_v54  ;;  %v2579_v54 = vld [vmem:[%s6698_s11 + $0x70] sm:$0xff] }
 0x7d5   :  { %3989 = vmatprep.subr.mxu1 %v6865_v33 }
 0x7d6   :  { %3990 = vmatpush3.msra.mxu1 %v2277_v1  ;;  %v2578_v1 = vld [vmem:[%s6698_s11 + $0x68] sm:$0xff] }
 0x7d7   :  { %3991 = vmatprep.subr.mxu1 %v6865_v33 }
 0x7d8   :  { %3992 = vmatpush3.msra.mxu1 %v2276_v44  ;;  %v2577_v44 = vld [vmem:[%s6698_s11 + $0x60] sm:$0xff] }
 0x7d9   :  { %3993 = vmatprep.subr.mxu1 %v6865_v33 }
 0x7da   :  { %3994 = vmatpush3.msra.mxu1 %v2275_v32  ;;  %v2806_v32 = vld [vmem:[%s6699_s8] ss:$0 sm:$0xff] }
 0x7db   :  { %3995 = vmatprep.subr.mxu1 %v6865_v33 }
 0x7dc   :  { %3996 = vmatpush3.msra.mxu1 %v2274_v28 }
 0x7dd   :  { %3997 = vmatprep.subr.mxu1 %v6865_v33 }
 0x7de   :  { %3998 = vmatpush3.msra.mxu1 %v2273_v7 }
 0x7df   :  { %3999 = vmatprep.subr.mxu1 %v6865_v33 }
 0x7e0   :  { %4000 = vmatpush3.msra.mxu1 %v2272_v9 }
 0x7e1   :  { %4001 = vmatprep.subr.mxu1 %v6865_v33 }
 0x7e2   :  { %4002 = vmatpush3.msra.mxu1 %v2271_v11 }
 0x7e3   :  { %4003 = vmatprep.subr.mxu1 %v6865_v33 }
 0x7e4   :  { %4004 = vmatpush3.msra.mxu1 %v2270_v13 }
 0x7e5   :  { %4005 = vmatprep.subr.mxu1 %v6865_v33 }
 0x7e6   :  { %4006 = vmatpush3.msra.mxu1 %v2269_v50 }
 0x7e7   :  { %4007 = vmatprep.subr.mxu1 %v6865_v33 }
 0x7e8   :  { %4008 = vmatpush3.msra.mxu1 %v2268_v51 }
 0x7e9   :  { %4047 = vmatprep.subr.mxu1 %v6865_v33 }
 0x7ee   :  { %v3574_v45 = vpop.f32.mrf.mxu1 }
 0x7f0   :  { %v3575_v47 = vpop.f32.mrf.mxu1 }
 0x7f1   :  { %v3576_v18 = vadd.f32 %v3575_v47, %v3574_v45  ;;  %v2476_v45 = vld [vmem:[%s6696_s9 + $0x50] sm:$0xff]  ;;  %v2475_v47 = vld [vmem:[%s6696_s9 + $0x48] sm:$0xff] }
 0x7f3   :  { %v2157_v63 = vadd.f32 %v3576_v18, %v2087_v49  ;;  %v2474_v49 = vld [vmem:[%s6696_s9 + $0x40] sm:$0xff]  ;;  %v2473_v18 = vld [vmem:[%s6696_s9 + $0x38] sm:$0xff] }
 0x7f5   :  { %v2161_v40 = vmin.f32 %v2157_v63, 0.0  ;;  %vm2160_vm9 = vcmp.gt.f32.partialorder %v2157_v63, 0.0 }
 0x7f7   :  { %v2162_v46 = vmul.f32 1.442695, %v2161_v40  ;;  %v2471_v40 = vld [vmem:[%s6696_s9 + $0x28] sm:$0xff] }
 0x7f9   :  { %4135 = vpow2.f32 %v2162_v46  ;;  %v2470_v46 = vld [vmem:[%s6696_s9 + $0x20] sm:$0xff] }
 0x806   :  { %v4136_v30 = vpop.eup %4135 }
 0x807   :  { %v2785_v48 = vadd.f32 -1.0, %v4136_v30  ;;  %v2469_v30 = vld [vmem:[%s6696_s9 + $0x18] sm:$0xff] }
 0x809   :  { %v2165_v5 = vsel %vm2160_vm9, %v2157_v63, %v2785_v48  ;;  %v2472_v63 = vld [vmem:[%s6696_s9 + $0x30] sm:$0xff] }
 0x80a   :  { %3975 = vmatmul.mubr.f32.vlgmr.msra.gmra.mxu0 %v2165_v5  ;;  %v2468_v48 = vld [vmem:[%s6696_s9 + $0x10] sm:$0xff]  ;;  %v2467_v5 = vld [vmem:[%s6696_s9 + $0x8] sm:$0xff] }
 0x80b   :  { %4044 = vmatprep.mubr.msk.f32.mxu0 %vm4263_vm0, %v6865_v33  ;;  %4013 = vmatpush3.msra.mxu0 %v2382_v53 }
 0x80c   :  { %4014 = vmatprep.subr.mxu0 %v6865_v33 }
 0x80d   :  { %4015 = vmatpush3.msra.mxu0 %v2381_v55  ;;  %v2576_v55 = vld [vmem:[%s6698_s11 + $0x58] sm:$0xff] }
 0x80e   :  { %4016 = vmatprep.subr.mxu0 %v6865_v33 }
 0x80f   :  { %4017 = vmatpush3.msra.mxu0 %v2380_v61  ;;  %v2575_v61 = vld [vmem:[%s6698_s11 + $0x50] sm:$0xff] }
 0x810   :  { %4018 = vmatprep.subr.mxu0 %v6865_v33 }
 0x811   :  { %4019 = vmatpush3.msra.mxu0 %v2379_v56  ;;  %v2574_v56 = vld [vmem:[%s6698_s11 + $0x48] sm:$0xff] }
 0x812   :  { %4020 = vmatprep.subr.mxu0 %v6865_v33 }
 0x813   :  { %4021 = vmatpush3.msra.mxu0 %v2378_v20 }
 0x814   :  { %4022 = vmatprep.subr.mxu0 %v6865_v33 }
 0x815   :  { %4023 = vmatpush3.msra.mxu0 %v2377_v22 }
 0x816   :  { %4024 = vmatprep.subr.mxu0 %v6865_v33 }
 0x817   :  { %4025 = vmatpush3.msra.mxu0 %v2376_v24 }
 0x818   :  { %4026 = vmatprep.subr.mxu0 %v6865_v33 }
 0x819   :  { %4027 = vmatpush3.msra.mxu0 %v2375_v26 }
 0x81a   :  { %4028 = vmatprep.subr.mxu0 %v6865_v33 }
 0x81b   :  { %4029 = vmatpush3.msra.mxu0 %v2374_v34 }
 0x81c   :  { %4030 = vmatprep.subr.mxu0 %v6865_v33 }
 0x81d   :  { %4031 = vmatpush3.msra.mxu0 %v2373_v60 }
 0x81e   :  { %4032 = vmatprep.subr.mxu0 %v6865_v33 }
 0x81f   :  { %4033 = vmatpush3.msra.mxu0 %v2372_v57 }
 0x820   :  { %4034 = vmatprep.subr.mxu0 %v6865_v33 }
 0x821   :  { %4035 = vmatpush3.msra.mxu0 %v2371_v38 }
 0x822   :  { %4036 = vmatprep.subr.mxu0 %v6865_v33 }
 0x823   :  { %4037 = vmatpush3.msra.mxu0 %v2370_v42 }
 0x824   :  { %4038 = vmatprep.subr.mxu0 %v6865_v33 }
 0x825   :  { %4039 = vmatpush3.msra.mxu0 %v2369_v58 }
 0x826   :  { %4040 = vmatprep.subr.mxu0 %v6865_v33 }
 0x827   :  { %4041 = vmatpush3.msra.mxu0 %v2368_v62 }
 0x828   :  { %4042 = vmatprep.subr.mxu0 %v6865_v33 }
 0x829   :  { %4043 = vmatpush3.msra.mxu0 %v2367_v52 }
 0x82a   :  { %4082 = vmatprep.subr.mxu0 %v6865_v33 }
 0x8ca   :  { %v2249_v59 = vpop.f32.mrf.mxu0 }
 0x8cb   :  { %v2253_v2 = vadd.f32 %v2249_v59, %v6419_v35  ;;  %v2573_v59 = vld [vmem:[%s6698_s11 + $0x40] sm:$0xff] }
 0x8cc   :  { %v3976_v4 = vpop.f32.mrf.mxu0 }
 0x8cd   :  { %v2261_v6 = vadd.f32 %v2802_v0, %v2253_v2  ;;  %v2572_v0 = vld [vmem:[%s6698_s11 + $0x38] sm:$0xff]  ;;  %v2571_v2 = vld [vmem:[%s6698_s11 + $0x30] sm:$0xff]  ;;  %v2570_v4 = vld [vmem:[%s6698_s11 + $0x28] sm:$0xff] }
 0x8cf   :  { %v2263_v8 = vmin.f32 %v2261_v6, 0.0  ;;  %vm2262_vm10 = vcmp.gt.f32.partialorder %v2261_v6, 0.0 }
 0x8d1   :  { %v2264_v10 = vmul.f32 1.442695, %v2263_v8  ;;  %v2568_v8 = vld [vmem:[%s6698_s11 + $0x18] sm:$0xff] }
 0x8d3   :  { %4137 = vpow2.f32 %v2264_v10  ;;  %v2567_v10 = vld [vmem:[%s6698_s11 + $0x10] sm:$0xff] }
 0x8e0   :  { %v4138_v12 = vpop.eup %4137 }
 0x8e1   :  { %v2803_v14 = vadd.f32 -1.0, %v4138_v12  ;;  %v2566_v12 = vld [vmem:[%s6698_s11 + $0x8] sm:$0xff] }
 0x8e3   :  { %v2267_v16 = vsel %vm2262_vm10, %v2261_v6, %v2803_v14  ;;  %v2569_v6 = vld [vmem:[%s6698_s11 + $0x20] sm:$0xff] }
 0x8e4   :  { %4010 = vmatmul.mubr.f32.vlgmr.msra.gmra.mxu1 %v2267_v16  ;;  %v2565_v14 = vld [vmem:[%s6698_s11] sm:$0xff] }
 0x8e5   :  { %4079 = vmatprep.mubr.msk.f32.mxu1 %vm4263_vm0, %v6865_v33  ;;  %4048 = vmatpush3.msra.mxu1 %v2481_v15  ;;  %v2808_v16 = vld [vmem:[%s6700_s10] ss:$0 sm:$0xff] }
 0x8e6   :  { %4049 = vmatprep.subr.mxu1 %v6865_v33 }
 0x8e7   :  { %4050 = vmatpush3.msra.mxu1 %v2480_v17 }
 0x8e8   :  { %4051 = vmatprep.subr.mxu1 %v6865_v33 }
 0x8e9   :  { %4052 = vmatpush3.msra.mxu1 %v2479_v19 }
 0x8ea   :  { %4053 = vmatprep.subr.mxu1 %v6865_v33 }
 0x8eb   :  { %4054 = vmatpush3.msra.mxu1 %v2478_v21 }
 0x8ec   :  { %4055 = vmatprep.subr.mxu1 %v6865_v33 }
 0x8ed   :  { %4056 = vmatpush3.msra.mxu1 %v2477_v43 }
 0x8ee   :  { %4057 = vmatprep.subr.mxu1 %v6865_v33 }
 0x8ef   :  { %4058 = vmatpush3.msra.mxu1 %v2476_v45 }
 0x8f0   :  { %4059 = vmatprep.subr.mxu1 %v6865_v33 }
 0x8f1   :  { %4060 = vmatpush3.msra.mxu1 %v2475_v47 }
 0x8f2   :  { %4061 = vmatprep.subr.mxu1 %v6865_v33 }
 0x8f3   :  { %4062 = vmatpush3.msra.mxu1 %v2474_v49 }
 0x8f4   :  { %4063 = vmatprep.subr.mxu1 %v6865_v33 }
 0x8f5   :  { %4064 = vmatpush3.msra.mxu1 %v2473_v18 }
 0x8f6   :  { %4065 = vmatprep.subr.mxu1 %v6865_v33 }
 0x8f7   :  { %4066 = vmatpush3.msra.mxu1 %v2472_v63 }
 0x8f8   :  { %4067 = vmatprep.subr.mxu1 %v6865_v33 }
 0x8f9   :  { %4068 = vmatpush3.msra.mxu1 %v2471_v40 }
 0x8fa   :  { %4069 = vmatprep.subr.mxu1 %v6865_v33 }
 0x8fb   :  { %4070 = vmatpush3.msra.mxu1 %v2470_v46 }
 0x8fc   :  { %4071 = vmatprep.subr.mxu1 %v6865_v33 }
 0x8fd   :  { %4072 = vmatpush3.msra.mxu1 %v2469_v30 }
 0x8fe   :  { %4073 = vmatprep.subr.mxu1 %v6865_v33 }
 0x8ff   :  { %4074 = vmatpush3.msra.mxu1 %v2468_v48 }
 0x900   :  { %4075 = vmatprep.subr.mxu1 %v6865_v33 }
 0x901   :  { %4076 = vmatpush3.msra.mxu1 %v2467_v5 }
 0x902   :  { %4077 = vmatprep.subr.mxu1 %v6865_v33 }
 0x903   :  { %4078 = vmatpush3.msra.mxu1 %v2466_v31 }
 0x9a4   :  { %v2357_v25 = vpop.f32.mrf.mxu1 }
 0x9a5   :  { %v2358_v27 = vadd.f32 %v2804_v23, %v2357_v25 }
 0x9a6   :  { %v4011_v29 = vpop.f32.mrf.mxu1 }
 0x9a7   :  { %v2362_v3 = vmin.f32 %v2358_v27, 0.0  ;;  %vm2361_vm11 = vcmp.gt.f32.partialorder %v2358_v27, 0.0 }
 0x9a9   :  { %v2363_v35 = vmul.f32 1.442695, %v2362_v3 }
 0x9ab   :  { %4139 = vpow2.f32 %v2363_v35 }
 0x9b8   :  { %v4140_v37 = vpop.eup %4139 }
 0x9b9   :  { %v2805_v39 = vadd.f32 -1.0, %v4140_v37 }
 0x9bb   :  { %v2366_v41 = vsel %vm2361_vm11, %v2358_v27, %v2805_v39 }
 0x9bc   :  { %4045 = vmatmul.mubr.f32.vlgmr.msra.gmra.mxu0 %v2366_v41 }
 0x9bd   :  { %4114 = vmatprep.mubr.msk.f32.mxu0 %vm4263_vm0, %v6865_v33  ;;  %4083 = vmatpush3.msra.mxu0 %v2580_v36 }
 0x9be   :  { %4084 = vmatprep.subr.mxu0 %v6865_v33 }
 0x9bf   :  { %4085 = vmatpush3.msra.mxu0 %v2579_v54 }
 0x9c0   :  { %4086 = vmatprep.subr.mxu0 %v6865_v33 }
 0x9c1   :  { %4087 = vmatpush3.msra.mxu0 %v2578_v1 }
 0x9c2   :  { %4088 = vmatprep.subr.mxu0 %v6865_v33 }
 0x9c3   :  { %4089 = vmatpush3.msra.mxu0 %v2577_v44 }
 0x9c4   :  { %4090 = vmatprep.subr.mxu0 %v6865_v33 }
 0x9c5   :  { %4091 = vmatpush3.msra.mxu0 %v2576_v55 }
 0x9c6   :  { %4092 = vmatprep.subr.mxu0 %v6865_v33 }
 0x9c7   :  { %4093 = vmatpush3.msra.mxu0 %v2575_v61 }
 0x9c8   :  { %4094 = vmatprep.subr.mxu0 %v6865_v33 }
 0x9c9   :  { %4095 = vmatpush3.msra.mxu0 %v2574_v56 }
 0x9ca   :  { %4096 = vmatprep.subr.mxu0 %v6865_v33 }
 0x9cb   :  { %4097 = vmatpush3.msra.mxu0 %v2573_v59 }
 0x9cc   :  { %4098 = vmatprep.subr.mxu0 %v6865_v33 }
 0x9cd   :  { %4099 = vmatpush3.msra.mxu0 %v2572_v0 }
 0x9ce   :  { %4100 = vmatprep.subr.mxu0 %v6865_v33 }
 0x9cf   :  { %4101 = vmatpush3.msra.mxu0 %v2571_v2 }
 0x9d0   :  { %4102 = vmatprep.subr.mxu0 %v6865_v33 }
 0x9d1   :  { %4103 = vmatpush3.msra.mxu0 %v2570_v4 }
 0x9d2   :  { %4104 = vmatprep.subr.mxu0 %v6865_v33 }
 0x9d3   :  { %4105 = vmatpush3.msra.mxu0 %v2569_v6 }
 0x9d4   :  { %4106 = vmatprep.subr.mxu0 %v6865_v33 }
 0x9d5   :  { %4107 = vmatpush3.msra.mxu0 %v2568_v8 }
 0x9d6   :  { %4108 = vmatprep.subr.mxu0 %v6865_v33 }
 0x9d7   :  { %4109 = vmatpush3.msra.mxu0 %v2567_v10 }
 0x9d8   :  { %4110 = vmatprep.subr.mxu0 %v6865_v33 }
 0x9d9   :  { %4111 = vmatpush3.msra.mxu0 %v2566_v12 }
 0x9da   :  { %4112 = vmatprep.subr.mxu0 %v6865_v33  ;;  %v2810_v33 = vld [vmem:[%s6701_s12] ss:$0 sm:$0xff] }
 0x9db   :  { %4113 = vmatpush3.msra.mxu0 %v2565_v14 }
 0xa7c   :  { %v2456_v28 = vpop.f32.mrf.mxu0 }
 0xa7d   :  { %v2457_v7 = vadd.f32 %v2806_v32, %v2456_v28 }
 0xa7e   :  { %v4046_v9 = vpop.f32.mrf.mxu0 }
 0xa7f   :  { %v2461_v11 = vmin.f32 %v2457_v7, 0.0  ;;  %vm2460_vm12 = vcmp.gt.f32.partialorder %v2457_v7, 0.0 }
 0xa81   :  { %v2462_v13 = vmul.f32 1.442695, %v2461_v11 }
 0xa83   :  { %4141 = vpow2.f32 %v2462_v13 }
 0xa90   :  { %v4142_v50 = vpop.eup %4141 }
 0xa91   :  { %v2807_v51 = vadd.f32 -1.0, %v4142_v50 }
 0xa93   :  { %v2465_v53 = vsel %vm2460_vm12, %v2457_v7, %v2807_v51 }
 0xa94   :  { %4080 = vmatmul.mubr.f32.vlgmr.msra.gmra.mxu1 %v2465_v53 }
 0xb54   :  { %v2555_v20 = vpop.f32.mrf.mxu1 }
 0xb55   :  { %v2556_v22 = vadd.f32 %v2808_v16, %v2555_v20 }
 0xb56   :  { %v4081_v24 = vpop.f32.mrf.mxu1 }
 0xb57   :  { %v2560_v26 = vmin.f32 %v2556_v22, 0.0  ;;  %vm2559_vm13 = vcmp.gt.f32.partialorder %v2556_v22, 0.0 }
 0xb59   :  { %v2561_v34 = vmul.f32 1.442695, %v2560_v26 }
 0xb5b   :  { %4143 = vpow2.f32 %v2561_v34 }
 0xb68   :  { %v4144_v60 = vpop.eup %4143 }
 0xb69   :  { %v2809_v57 = vadd.f32 -1.0, %v4144_v60 }
 0xb6b   :  { %v2564_v38 = vsel %vm2559_vm13, %v2556_v22, %v2809_v57 }
 0xb6c   :  { %4115 = vmatmul.mubr.f32.vlgmr.msra.gmra.mxu0 %v2564_v38 }
 0xc2c   :  { %v2654_v42 = vpop.f32.mrf.mxu0 }
 0xc2d   :  { %v2655_v58 = vadd.f32 %v2810_v33, %v2654_v42 }
 0xc2e   :  { %v4116_v62 = vpop.f32.mrf.mxu0 }
 0xc2f   :  { %4145 = vtanh.f32 %v2655_v58 }
 0xc3c   :  { %v4146_v52 = vpop.eup %4145 }
 0xc3d   :  { %2659 = vst [vmem:[%s6702_s13] sm:$0xff] %v4146_v52 }

</bundles_post_ra>
